<compile_context>
chip_gen: v6e
topology: v6e:2x2x1
jax: 0.10.0
libtpu: 0.0.40
codegen_flags: <defaults>
</compile_context>

<pallas_src>
import functools

import jax
import jax.numpy as jnp
from jax import lax
from jax.experimental import pallas as pl
from jax.experimental.pallas import tpu as pltpu


# ----------------------------------------------------------------------------
# Fused kernel: conv1 -> conv2 -> conv3 for one image per grid step.
# ----------------------------------------------------------------------------
def _fused_kernel(xcat_ref, fea_ref,
                  w1a_ref, t1a_ref, w1b_ref, t1b_ref,
                  w2_ref, t2_ref,
                  w3ax_ref, w3af_ref, t3_ref,
                  w3bt_ref, b3_ref,
                  o_ref, *, H, W):
    HW = H * W
    f32 = jnp.float32

    # ---- conv1: 1x1 -> BN(folded) -> ReLU -> 1x1 -> BN(folded) -> ReLU ------
    xcat = xcat_ref[0]                                            # (HW, C1) bf16
    h = jnp.dot(xcat, w1a_ref[...], preferred_element_type=f32)
    h = jnp.maximum(h + t1a_ref[...], 0.0)
    h = jnp.dot(h.astype(jnp.bfloat16), w1b_ref[...], preferred_element_type=f32)
    h1 = jnp.maximum(h + t1b_ref[...], 0.0)                       # (HW, 32) f32

    # ---- conv2: 3x3 -> BN(folded) -> ReLU ------------------------------------
    # The 3x3 conv is 9 tap matmuls on in-VMEM slices of the padded feature
    # block (no im2col, feature read from HBM exactly once), f32 accumulation.
    acc = jnp.zeros((HW, 64), f32)
    for dh in range(3):
        for dw in range(3):
            tap = fea_ref[0, dh:dh + H, dw:dw + W, :].reshape(HW, 256)
            acc = acc + jnp.dot(tap, w2_ref[dh * 3 + dw],
                                preferred_element_type=f32)
    h2 = jnp.maximum(acc + t2_ref[...], 0.0)                      # (HW, 64) f32

    # ---- conv3: 1x1 on concat(h1, h2) expressed as a split matmul -----------
    h3 = jnp.dot(h1.astype(jnp.bfloat16), w3ax_ref[...], preferred_element_type=f32)
    h3 = h3 + jnp.dot(h2.astype(jnp.bfloat16), w3af_ref[...],
                      preferred_element_type=f32)
    h3 = jnp.maximum(h3 + t3_ref[...], 0.0)                       # (HW, 64) f32

    # ---- final 1x1 + bias in (C, HW) orientation -----------------------------
    # Lane-dense store (HW on lanes) and the result is already NCHW-shaped.
    h3t = h3.T.astype(jnp.bfloat16)                               # (64, HW)
    seg = jnp.dot(w3bt_ref[...], h3t, preferred_element_type=f32)  # (C2p, HW)
    o_ref[0] = seg + b3_ref[...]


# ----------------------------------------------------------------------------
# Wrapper (pallas_call glue)
# ----------------------------------------------------------------------------
def trans_infer_forward(kparams, x, x_coarse, x_fea):
    """Matches Trans_infer.forward. Inputs / output are NCHW like PyTorch."""
    N, _, H, W = x.shape
    HW = H * W
    C2 = kparams['c2']
    C2P = kparams['w3b_t'].shape[0]

    # cat([x, x_coarse], dim=1) -> channels-last pixel rows (N, HW, C1), bf16.
    x_cat = jnp.concatenate([x, x_coarse], axis=1)
    x_cat = jnp.transpose(x_cat, (0, 2, 3, 1)).reshape(N, HW, -1)
    x_cat = x_cat.astype(jnp.bfloat16)
    C1 = x_cat.shape[-1]

    # x_fea: NCHW -> NHWC (one unavoidable layout pass, fused with the halo pad
    # by XLA).  The kernel then reads the padded feature exactly once.
    fea = jnp.transpose(x_fea, (0, 2, 3, 1)).astype(jnp.bfloat16)
    fea = jnp.pad(fea, ((0, 0), (1, 1), (1, 1), (0, 0)))

    weights = (kparams['w1a'], kparams['t1a'], kparams['w1b'], kparams['t1b'],
               kparams['w2'], kparams['t2'],
               kparams['w3a_x'], kparams['w3a_f'], kparams['t3'],
               kparams['w3b_t'], kparams['b3'])

    def _full_spec(a):
        nd = a.ndim
        return pl.BlockSpec(a.shape, lambda n: (0,) * nd)

    # Scoped VMEM: dominated by the double-buffered padded-feature block.
    fea_block_bytes = (H + 2) * (W + 2) * 256 * 2
    vmem_limit = int(min(56 * 2**20, max(32 * 2**20, 8 * fea_block_bytes)))

    out = pl.pallas_call(
        functools.partial(_fused_kernel, H=H, W=W),
        out_shape=jax.ShapeDtypeStruct((N, C2P, HW), jnp.float32),
        grid=(N,),
        in_specs=[
            pl.BlockSpec((1, HW, C1), lambda n: (n, 0, 0)),
            pl.BlockSpec((1, H + 2, W + 2, 256), lambda n: (n, 0, 0, 0)),
        ] + [_full_spec(a) for a in weights],
        out_specs=pl.BlockSpec((1, C2P, HW), lambda n: (n, 0, 0)),
        compiler_params=pltpu.CompilerParams(
            dimension_semantics=("parallel",),
            vmem_limit_bytes=vmem_limit),
    )(x_cat, fea, *weights)

    # (N, C2p, H*W) is already channel-major: drop channel padding, reshape.
    return out[:, :C2, :].reshape(N, C2, H, W)


# ----------------------------------------------------------------------------
# Parameters: raw (reference) params + kernel-ready folded/bf16 params
# ----------------------------------------------------------------------------
def _fold_bn(gamma, beta, mean, var, eps=1e-5):
    scale = gamma / jnp.sqrt(var + eps)
    shift = beta - mean * scale
    return scale[None, :], shift[None, :]   # (1, C)


def init_params(key, num_classes1, num_classes2):
    ks = jax.random.split(key, 10)

    def w(k, shape, fan_in):
        return jax.random.normal(k, shape, jnp.float32) / jnp.sqrt(float(fan_in))

    def bn(k, c):
        k1, k2, k3, k4 = jax.random.split(k, 4)
        gamma = 1.0 + 0.1 * jax.random.normal(k1, (c,), jnp.float32)
        beta = 0.1 * jax.random.normal(k2, (c,), jnp.float32)
        mean = 0.1 * jax.random.normal(k3, (c,), jnp.float32)
        var = 0.5 + jax.random.uniform(k4, (c,), jnp.float32)
        return _fold_bn(gamma, beta, mean, var)

    p = {}
    p['w1a'] = w(ks[0], (num_classes1, 32), num_classes1)        # 1x1, no bias
    p['s1a'], p['t1a'] = bn(ks[1], 32)
    p['w1b'] = w(ks[2], (32, 32), 32)                            # 1x1, no bias
    p['s1b'], p['t1b'] = bn(ks[3], 32)
    p['w2'] = w(ks[4], (9, 256, 64), 9 * 256)                    # 3x3, tap-major
    p['s2'], p['t2'] = bn(ks[5], 64)
    w3a = w(ks[6], (96, 64), 96)                                 # 1x1 on 96 = 32+64
    p['w3a_x'] = w3a[:32]
    p['w3a_f'] = w3a[32:]
    p['s3'], p['t3'] = bn(ks[7], 64)
    p['w3b'] = w(ks[8], (64, num_classes2), 64)                  # 1x1, with bias
    p['b3'] = 0.01 * jax.random.normal(ks[9], (1, num_classes2), jnp.float32)
    return p


def prepare_kernel_params(p):
    """Fold BN scale into conv weights, cast matmul operands to bf16, pad the
    final output channels to a multiple of 8 for dense stores."""
    c2 = p['w3b'].shape[1]
    c2p = -(-c2 // 8) * 8
    kp = {'c2': int(c2)}
    kp['w1a'] = (p['w1a'] * p['s1a']).astype(jnp.bfloat16)
    kp['t1a'] = p['t1a'].astype(jnp.float32)
    kp['w1b'] = (p['w1b'] * p['s1b']).astype(jnp.bfloat16)
    kp['t1b'] = p['t1b'].astype(jnp.float32)
    kp['w2'] = (p['w2'] * p['s2']).astype(jnp.bfloat16)
    kp['t2'] = p['t2'].astype(jnp.float32)
    kp['w3a_x'] = (p['w3a_x'] * p['s3']).astype(jnp.bfloat16)
    kp['w3a_f'] = (p['w3a_f'] * p['s3']).astype(jnp.bfloat16)
    kp['t3'] = p['t3'].astype(jnp.float32)
    w3bt = p['w3b'].T                                            # (c2, 64)
    b3 = p['b3'].reshape(-1, 1)                                  # (c2, 1)
    kp['w3b_t'] = jnp.pad(w3bt, ((0, c2p - c2), (0, 0))).astype(jnp.bfloat16)
    kp['b3'] = jnp.pad(b3, ((0, c2p - c2), (0, 0))).astype(jnp.float32)
    return kp


# ----------------------------------------------------------------------------
# Pure-JAX reference (unfolded BN, f32) for correctness check
# ----------------------------------------------------------------------------
def reference(params, x, x_coarse, x_fea):
    hi = lax.Precision.HIGHEST

    def c1x1(y, w):
        return jnp.einsum('nhwc,cd->nhwd', y, w, precision=hi)

    def bnrelu(y, s, t):
        return jnp.maximum(y * s[0] + t[0], 0.0)

    xh = jnp.transpose(jnp.concatenate([x, x_coarse], axis=1), (0, 2, 3, 1))
    h = bnrelu(c1x1(xh, params['w1a']), params['s1a'], params['t1a'])
    h = bnrelu(c1x1(h, params['w1b']), params['s1b'], params['t1b'])

    fea = jnp.transpose(x_fea, (0, 2, 3, 1))
    w2 = params['w2'].reshape(3, 3, 256, 64)
    y2 = lax.conv_general_dilated(fea, w2, (1, 1), 'SAME',
                                  dimension_numbers=('NHWC', 'HWIO', 'NHWC'),
                                  precision=hi)
    y2 = bnrelu(y2, params['s2'], params['t2'])

    fuse = jnp.concatenate([h, y2], axis=-1)
    w3a = jnp.concatenate([params['w3a_x'], params['w3a_f']], axis=0)
    h3 = bnrelu(c1x1(fuse, w3a), params['s3'], params['t3'])
    seg = c1x1(h3, params['w3b']) + params['b3'][0]
    return jnp.transpose(seg, (0, 3, 1, 2))


# ----------------------------------------------------------------------------
if __name__ == "__main__":
    num_classes1 = 8     # channels of cat([x, x_coarse], dim=1)
    num_classes2 = 7
    N, H, W = 2, 16, 16

    key = jax.random.PRNGKey(0)
    kx, kc, kf, kp = jax.random.split(key, 4)
    x = jax.random.normal(kx, (N, 4, H, W), jnp.float32)         # NCHW
    x_coarse = jax.random.normal(kc, (N, 4, H, W), jnp.float32)  # NCHW
    x_fea = jax.random.normal(kf, (N, 256, H, W), jnp.float32)   # NCHW

    params = init_params(kp, num_classes1, num_classes2)
    kparams = prepare_kernel_params(params)

    fwd = jax.jit(functools.partial(trans_infer_forward, kparams))
    out = jax.block_until_ready(fwd(x, x_coarse, x_fea))
    assert out.shape == (N, num_classes2, H, W), out.shape

    ref = jax.block_until_ready(reference(params, x, x_coarse, x_fea))
    scale = float(jnp.max(jnp.abs(ref)))
    max_err = float(jnp.max(jnp.abs(out - ref)))
    # bf16 matmul operands with f32 accumulation -> scale-relative tolerance.
    assert max_err <= 3e-2 * scale + 3e-2, (max_err, scale)

    print("KERNEL_OK")
</pallas_src>

<mosaic_0001>
module attributes {stable_mosaic.version = 11 : i64} {
  func.func @_fused_kernel(%arg0: i32, %arg1: memref<1x256x8xbf16, #tpu.memory_space<vmem>>, %arg2: memref<1x18x18x256xbf16, #tpu.memory_space<vmem>>, %arg3: memref<8x32xbf16, #tpu.memory_space<vmem>>, %arg4: memref<1x32xf32, #tpu.memory_space<vmem>>, %arg5: memref<32x32xbf16, #tpu.memory_space<vmem>>, %arg6: memref<1x32xf32, #tpu.memory_space<vmem>>, %arg7: memref<9x256x64xbf16, #tpu.memory_space<vmem>>, %arg8: memref<1x64xf32, #tpu.memory_space<vmem>>, %arg9: memref<32x64xbf16, #tpu.memory_space<vmem>>, %arg10: memref<64x64xbf16, #tpu.memory_space<vmem>>, %arg11: memref<1x64xf32, #tpu.memory_space<vmem>>, %arg12: memref<8x64xbf16, #tpu.memory_space<vmem>>, %arg13: memref<8x1xf32, #tpu.memory_space<vmem>>, %arg14: memref<1x8x256xf32, #tpu.memory_space<vmem>>) attributes {dimension_semantics = [#tpu.dimension_semantics<parallel>], iteration_bounds = array<i64: 2>, scalar_prefetch = 0 : i64, scratch_operands = 0 : i64, tpu.core_type = #tpu.core_type<tc>, window_params = [{transform_indices = @transform_0, window_bounds = array<i64: 1, 256, 8>}, {transform_indices = @transform_1, window_bounds = array<i64: 1, 18, 18, 256>}, {pipeline_mode = #tpu.pipeline_mode<synchronous>, transform_indices = @transform_2, window_bounds = array<i64: 8, 32>}, {pipeline_mode = #tpu.pipeline_mode<synchronous>, transform_indices = @transform_3, window_bounds = array<i64: 1, 32>}, {pipeline_mode = #tpu.pipeline_mode<synchronous>, transform_indices = @transform_4, window_bounds = array<i64: 32, 32>}, {pipeline_mode = #tpu.pipeline_mode<synchronous>, transform_indices = @transform_5, window_bounds = array<i64: 1, 32>}, {pipeline_mode = #tpu.pipeline_mode<synchronous>, transform_indices = @transform_6, window_bounds = array<i64: 9, 256, 64>}, {pipeline_mode = #tpu.pipeline_mode<synchronous>, transform_indices = @transform_7, window_bounds = array<i64: 1, 64>}, {pipeline_mode = #tpu.pipeline_mode<synchronous>, transform_indices = @transform_8, window_bounds = array<i64: 32, 64>}, {pipeline_mode = #tpu.pipeline_mode<synchronous>, transform_indices = @transform_9, window_bounds = array<i64: 64, 64>}, {pipeline_mode = #tpu.pipeline_mode<synchronous>, transform_indices = @transform_10, window_bounds = array<i64: 1, 64>}, {pipeline_mode = #tpu.pipeline_mode<synchronous>, transform_indices = @transform_11, window_bounds = array<i64: 8, 64>}, {pipeline_mode = #tpu.pipeline_mode<synchronous>, transform_indices = @transform_12, window_bounds = array<i64: 8, 1>}, {transform_indices = @transform_13, window_bounds = array<i64: 1, 8, 256>}]} {
    %c0 = arith.constant 0 : index
    %c0_0 = arith.constant 0 : index
    %c0_1 = arith.constant 0 : index
    %0 = vector.load %arg1[%c0, %c0_0, %c0_1] : memref<1x256x8xbf16, #tpu.memory_space<vmem>>, vector<1x256x8xbf16>
    %1 = vector.shape_cast %0 : vector<1x256x8xbf16> to vector<256x8xbf16>
    %c0_2 = arith.constant 0 : index
    %c0_3 = arith.constant 0 : index
    %2 = vector.load %arg3[%c0_2, %c0_3] : memref<8x32xbf16, #tpu.memory_space<vmem>>, vector<8x32xbf16>
    %cst = arith.constant dense<0.000000e+00> : vector<256x32xf32>
    %3 = tpu.matmul %1, %2, %cst {dimension_numbers = #tpu.dot_dimension_numbers<[1], [0], [0], [1], [0, 0, 1, 1], [], []>} : vector<256x8xbf16>, vector<8x32xbf16>, vector<256x32xf32> -> vector<256x32xf32>
    %c0_4 = arith.constant 0 : index
    %c0_5 = arith.constant 0 : index
    %4 = vector.load %arg4[%c0_4, %c0_5] : memref<1x32xf32, #tpu.memory_space<vmem>>, vector<1x32xf32>
    %5 = vector.broadcast %4 : vector<1x32xf32> to vector<256x32xf32>
    %6 = arith.addf %3, %5 : vector<256x32xf32>
    %cst_6 = arith.constant 0.000000e+00 : f32
    %7 = vector.broadcast %cst_6 : f32 to vector<256x32xf32>
    %8 = arith.maximumf %6, %7 : vector<256x32xf32>
    %9 = arith.truncf %8 : vector<256x32xf32> to vector<256x32xbf16>
    %c0_7 = arith.constant 0 : index
    %c0_8 = arith.constant 0 : index
    %10 = vector.load %arg5[%c0_7, %c0_8] : memref<32x32xbf16, #tpu.memory_space<vmem>>, vector<32x32xbf16>
    %cst_9 = arith.constant dense<0.000000e+00> : vector<256x32xf32>
    %11 = tpu.matmul %9, %10, %cst_9 {dimension_numbers = #tpu.dot_dimension_numbers<[1], [0], [0], [1], [0, 0, 1, 1], [], []>} : vector<256x32xbf16>, vector<32x32xbf16>, vector<256x32xf32> -> vector<256x32xf32>
    %c0_10 = arith.constant 0 : index
    %c0_11 = arith.constant 0 : index
    %12 = vector.load %arg6[%c0_10, %c0_11] : memref<1x32xf32, #tpu.memory_space<vmem>>, vector<1x32xf32>
    %13 = vector.broadcast %12 : vector<1x32xf32> to vector<256x32xf32>
    %14 = arith.addf %11, %13 : vector<256x32xf32>
    %cst_12 = arith.constant 0.000000e+00 : f32
    %15 = vector.broadcast %cst_12 : f32 to vector<256x32xf32>
    %16 = arith.maximumf %14, %15 : vector<256x32xf32>
    %cst_13 = arith.constant 0.000000e+00 : f32
    %17 = vector.broadcast %cst_13 : f32 to vector<256x64xf32>
    %c0_14 = arith.constant 0 : index
    %c0_15 = arith.constant 0 : index
    %c0_16 = arith.constant 0 : index
    %c0_17 = arith.constant 0 : index
    %18 = vector.load %arg2[%c0_14, %c0_15, %c0_16, %c0_17] : memref<1x18x18x256xbf16, #tpu.memory_space<vmem>>, vector<1x16x16x256xbf16>
    %19 = vector.shape_cast %18 : vector<1x16x16x256xbf16> to vector<16x16x256xbf16>
    %20 = vector.shape_cast %19 : vector<16x16x256xbf16> to vector<256x256xbf16>
    %c0_18 = arith.constant 0 : index
    %c0_19 = arith.constant 0 : index
    %c0_20 = arith.constant 0 : index
    %21 = vector.load %arg7[%c0_18, %c0_19, %c0_20] : memref<9x256x64xbf16, #tpu.memory_space<vmem>>, vector<1x256x64xbf16>
    %22 = vector.shape_cast %21 : vector<1x256x64xbf16> to vector<256x64xbf16>
    %cst_21 = arith.constant dense<0.000000e+00> : vector<256x64xf32>
    %23 = tpu.matmul %20, %22, %cst_21 {dimension_numbers = #tpu.dot_dimension_numbers<[1], [0], [0], [1], [0, 0, 1, 1], [], []>} : vector<256x256xbf16>, vector<256x64xbf16>, vector<256x64xf32> -> vector<256x64xf32>
    %24 = arith.addf %17, %23 : vector<256x64xf32>
    %c0_22 = arith.constant 0 : index
    %c0_23 = arith.constant 0 : index
    %c1 = arith.constant 1 : index
    %c0_24 = arith.constant 0 : index
    %25 = vector.load %arg2[%c0_22, %c0_23, %c1, %c0_24] : memref<1x18x18x256xbf16, #tpu.memory_space<vmem>>, vector<1x16x16x256xbf16>
    %26 = vector.shape_cast %25 : vector<1x16x16x256xbf16> to vector<16x16x256xbf16>
    %27 = vector.shape_cast %26 : vector<16x16x256xbf16> to vector<256x256xbf16>
    %c1_25 = arith.constant 1 : index
    %c0_26 = arith.constant 0 : index
    %c0_27 = arith.constant 0 : index
    %28 = vector.load %arg7[%c1_25, %c0_26, %c0_27] : memref<9x256x64xbf16, #tpu.memory_space<vmem>>, vector<1x256x64xbf16>
    %29 = vector.shape_cast %28 : vector<1x256x64xbf16> to vector<256x64xbf16>
    %cst_28 = arith.constant dense<0.000000e+00> : vector<256x64xf32>
    %30 = tpu.matmul %27, %29, %cst_28 {dimension_numbers = #tpu.dot_dimension_numbers<[1], [0], [0], [1], [0, 0, 1, 1], [], []>} : vector<256x256xbf16>, vector<256x64xbf16>, vector<256x64xf32> -> vector<256x64xf32>
    %31 = arith.addf %24, %30 : vector<256x64xf32>
    %c0_29 = arith.constant 0 : index
    %c0_30 = arith.constant 0 : index
    %c2 = arith.constant 2 : index
    %c0_31 = arith.constant 0 : index
    %32 = vector.load %arg2[%c0_29, %c0_30, %c2, %c0_31] : memref<1x18x18x256xbf16, #tpu.memory_space<vmem>>, vector<1x16x16x256xbf16>
    %33 = vector.shape_cast %32 : vector<1x16x16x256xbf16> to vector<16x16x256xbf16>
    %34 = vector.shape_cast %33 : vector<16x16x256xbf16> to vector<256x256xbf16>
    %c2_32 = arith.constant 2 : index
    %c0_33 = arith.constant 0 : index
    %c0_34 = arith.constant 0 : index
    %35 = vector.load %arg7[%c2_32, %c0_33, %c0_34] : memref<9x256x64xbf16, #tpu.memory_space<vmem>>, vector<1x256x64xbf16>
    %36 = vector.shape_cast %35 : vector<1x256x64xbf16> to vector<256x64xbf16>
    %cst_35 = arith.constant dense<0.000000e+00> : vector<256x64xf32>
    %37 = tpu.matmul %34, %36, %cst_35 {dimension_numbers = #tpu.dot_dimension_numbers<[1], [0], [0], [1], [0, 0, 1, 1], [], []>} : vector<256x256xbf16>, vector<256x64xbf16>, vector<256x64xf32> -> vector<256x64xf32>
    %38 = arith.addf %31, %37 : vector<256x64xf32>
    %c0_36 = arith.constant 0 : index
    %c1_37 = arith.constant 1 : index
    %c0_38 = arith.constant 0 : index
    %c0_39 = arith.constant 0 : index
    %39 = vector.load %arg2[%c0_36, %c1_37, %c0_38, %c0_39] : memref<1x18x18x256xbf16, #tpu.memory_space<vmem>>, vector<1x16x16x256xbf16>
    %40 = vector.shape_cast %39 : vector<1x16x16x256xbf16> to vector<16x16x256xbf16>
    %41 = vector.shape_cast %40 : vector<16x16x256xbf16> to vector<256x256xbf16>
    %c3 = arith.constant 3 : index
    %c0_40 = arith.constant 0 : index
    %c0_41 = arith.constant 0 : index
    %42 = vector.load %arg7[%c3, %c0_40, %c0_41] : memref<9x256x64xbf16, #tpu.memory_space<vmem>>, vector<1x256x64xbf16>
    %43 = vector.shape_cast %42 : vector<1x256x64xbf16> to vector<256x64xbf16>
    %cst_42 = arith.constant dense<0.000000e+00> : vector<256x64xf32>
    %44 = tpu.matmul %41, %43, %cst_42 {dimension_numbers = #tpu.dot_dimension_numbers<[1], [0], [0], [1], [0, 0, 1, 1], [], []>} : vector<256x256xbf16>, vector<256x64xbf16>, vector<256x64xf32> -> vector<256x64xf32>
    %45 = arith.addf %38, %44 : vector<256x64xf32>
    %c0_43 = arith.constant 0 : index
    %c1_44 = arith.constant 1 : index
    %c1_45 = arith.constant 1 : index
    %c0_46 = arith.constant 0 : index
    %46 = vector.load %arg2[%c0_43, %c1_44, %c1_45, %c0_46] : memref<1x18x18x256xbf16, #tpu.memory_space<vmem>>, vector<1x16x16x256xbf16>
    %47 = vector.shape_cast %46 : vector<1x16x16x256xbf16> to vector<16x16x256xbf16>
    %48 = vector.shape_cast %47 : vector<16x16x256xbf16> to vector<256x256xbf16>
    %c4 = arith.constant 4 : index
    %c0_47 = arith.constant 0 : index
    %c0_48 = arith.constant 0 : index
    %49 = vector.load %arg7[%c4, %c0_47, %c0_48] : memref<9x256x64xbf16, #tpu.memory_space<vmem>>, vector<1x256x64xbf16>
    %50 = vector.shape_cast %49 : vector<1x256x64xbf16> to vector<256x64xbf16>
    %cst_49 = arith.constant dense<0.000000e+00> : vector<256x64xf32>
    %51 = tpu.matmul %48, %50, %cst_49 {dimension_numbers = #tpu.dot_dimension_numbers<[1], [0], [0], [1], [0, 0, 1, 1], [], []>} : vector<256x256xbf16>, vector<256x64xbf16>, vector<256x64xf32> -> vector<256x64xf32>
    %52 = arith.addf %45, %51 : vector<256x64xf32>
    %c0_50 = arith.constant 0 : index
    %c1_51 = arith.constant 1 : index
    %c2_52 = arith.constant 2 : index
    %c0_53 = arith.constant 0 : index
    %53 = vector.load %arg2[%c0_50, %c1_51, %c2_52, %c0_53] : memref<1x18x18x256xbf16, #tpu.memory_space<vmem>>, vector<1x16x16x256xbf16>
    %54 = vector.shape_cast %53 : vector<1x16x16x256xbf16> to vector<16x16x256xbf16>
    %55 = vector.shape_cast %54 : vector<16x16x256xbf16> to vector<256x256xbf16>
    %c5 = arith.constant 5 : index
    %c0_54 = arith.constant 0 : index
    %c0_55 = arith.constant 0 : index
    %56 = vector.load %arg7[%c5, %c0_54, %c0_55] : memref<9x256x64xbf16, #tpu.memory_space<vmem>>, vector<1x256x64xbf16>
    %57 = vector.shape_cast %56 : vector<1x256x64xbf16> to vector<256x64xbf16>
    %cst_56 = arith.constant dense<0.000000e+00> : vector<256x64xf32>
    %58 = tpu.matmul %55, %57, %cst_56 {dimension_numbers = #tpu.dot_dimension_numbers<[1], [0], [0], [1], [0, 0, 1, 1], [], []>} : vector<256x256xbf16>, vector<256x64xbf16>, vector<256x64xf32> -> vector<256x64xf32>
    %59 = arith.addf %52, %58 : vector<256x64xf32>
    %c0_57 = arith.constant 0 : index
    %c2_58 = arith.constant 2 : index
    %c0_59 = arith.constant 0 : index
    %c0_60 = arith.constant 0 : index
    %60 = vector.load %arg2[%c0_57, %c2_58, %c0_59, %c0_60] : memref<1x18x18x256xbf16, #tpu.memory_space<vmem>>, vector<1x16x16x256xbf16>
    %61 = vector.shape_cast %60 : vector<1x16x16x256xbf16> to vector<16x16x256xbf16>
    %62 = vector.shape_cast %61 : vector<16x16x256xbf16> to vector<256x256xbf16>
    %c6 = arith.constant 6 : index
    %c0_61 = arith.constant 0 : index
    %c0_62 = arith.constant 0 : index
    %63 = vector.load %arg7[%c6, %c0_61, %c0_62] : memref<9x256x64xbf16, #tpu.memory_space<vmem>>, vector<1x256x64xbf16>
    %64 = vector.shape_cast %63 : vector<1x256x64xbf16> to vector<256x64xbf16>
    %cst_63 = arith.constant dense<0.000000e+00> : vector<256x64xf32>
    %65 = tpu.matmul %62, %64, %cst_63 {dimension_numbers = #tpu.dot_dimension_numbers<[1], [0], [0], [1], [0, 0, 1, 1], [], []>} : vector<256x256xbf16>, vector<256x64xbf16>, vector<256x64xf32> -> vector<256x64xf32>
    %66 = arith.addf %59, %65 : vector<256x64xf32>
    %c0_64 = arith.constant 0 : index
    %c2_65 = arith.constant 2 : index
    %c1_66 = arith.constant 1 : index
    %c0_67 = arith.constant 0 : index
    %67 = vector.load %arg2[%c0_64, %c2_65, %c1_66, %c0_67] : memref<1x18x18x256xbf16, #tpu.memory_space<vmem>>, vector<1x16x16x256xbf16>
    %68 = vector.shape_cast %67 : vector<1x16x16x256xbf16> to vector<16x16x256xbf16>
    %69 = vector.shape_cast %68 : vector<16x16x256xbf16> to vector<256x256xbf16>
    %c7 = arith.constant 7 : index
    %c0_68 = arith.constant 0 : index
    %c0_69 = arith.constant 0 : index
    %70 = vector.load %arg7[%c7, %c0_68, %c0_69] : memref<9x256x64xbf16, #tpu.memory_space<vmem>>, vector<1x256x64xbf16>
    %71 = vector.shape_cast %70 : vector<1x256x64xbf16> to vector<256x64xbf16>
    %cst_70 = arith.constant dense<0.000000e+00> : vector<256x64xf32>
    %72 = tpu.matmul %69, %71, %cst_70 {dimension_numbers = #tpu.dot_dimension_numbers<[1], [0], [0], [1], [0, 0, 1, 1], [], []>} : vector<256x256xbf16>, vector<256x64xbf16>, vector<256x64xf32> -> vector<256x64xf32>
    %73 = arith.addf %66, %72 : vector<256x64xf32>
    %c0_71 = arith.constant 0 : index
    %c2_72 = arith.constant 2 : index
    %c2_73 = arith.constant 2 : index
    %c0_74 = arith.constant 0 : index
    %74 = vector.load %arg2[%c0_71, %c2_72, %c2_73, %c0_74] : memref<1x18x18x256xbf16, #tpu.memory_space<vmem>>, vector<1x16x16x256xbf16>
    %75 = vector.shape_cast %74 : vector<1x16x16x256xbf16> to vector<16x16x256xbf16>
    %76 = vector.shape_cast %75 : vector<16x16x256xbf16> to vector<256x256xbf16>
    %c8 = arith.constant 8 : index
    %c0_75 = arith.constant 0 : index
    %c0_76 = arith.constant 0 : index
    %77 = vector.load %arg7[%c8, %c0_75, %c0_76] : memref<9x256x64xbf16, #tpu.memory_space<vmem>>, vector<1x256x64xbf16>
    %78 = vector.shape_cast %77 : vector<1x256x64xbf16> to vector<256x64xbf16>
    %cst_77 = arith.constant dense<0.000000e+00> : vector<256x64xf32>
    %79 = tpu.matmul %76, %78, %cst_77 {dimension_numbers = #tpu.dot_dimension_numbers<[1], [0], [0], [1], [0, 0, 1, 1], [], []>} : vector<256x256xbf16>, vector<256x64xbf16>, vector<256x64xf32> -> vector<256x64xf32>
    %80 = arith.addf %73, %79 : vector<256x64xf32>
    %c0_78 = arith.constant 0 : index
    %c0_79 = arith.constant 0 : index
    %81 = vector.load %arg8[%c0_78, %c0_79] : memref<1x64xf32, #tpu.memory_space<vmem>>, vector<1x64xf32>
    %82 = vector.broadcast %81 : vector<1x64xf32> to vector<256x64xf32>
    %83 = arith.addf %80, %82 : vector<256x64xf32>
    %cst_80 = arith.constant 0.000000e+00 : f32
    %84 = vector.broadcast %cst_80 : f32 to vector<256x64xf32>
    %85 = arith.maximumf %83, %84 : vector<256x64xf32>
    %86 = arith.truncf %16 : vector<256x32xf32> to vector<256x32xbf16>
    %c0_81 = arith.constant 0 : index
    %c0_82 = arith.constant 0 : index
    %87 = vector.load %arg9[%c0_81, %c0_82] : memref<32x64xbf16, #tpu.memory_space<vmem>>, vector<32x64xbf16>
    %cst_83 = arith.constant dense<0.000000e+00> : vector<256x64xf32>
    %88 = tpu.matmul %86, %87, %cst_83 {dimension_numbers = #tpu.dot_dimension_numbers<[1], [0], [0], [1], [0, 0, 1, 1], [], []>} : vector<256x32xbf16>, vector<32x64xbf16>, vector<256x64xf32> -> vector<256x64xf32>
    %89 = arith.truncf %85 : vector<256x64xf32> to vector<256x64xbf16>
    %c0_84 = arith.constant 0 : index
    %c0_85 = arith.constant 0 : index
    %90 = vector.load %arg10[%c0_84, %c0_85] : memref<64x64xbf16, #tpu.memory_space<vmem>>, vector<64x64xbf16>
    %cst_86 = arith.constant dense<0.000000e+00> : vector<256x64xf32>
    %91 = tpu.matmul %89, %90, %cst_86 {dimension_numbers = #tpu.dot_dimension_numbers<[1], [0], [0], [1], [0, 0, 1, 1], [], []>} : vector<256x64xbf16>, vector<64x64xbf16>, vector<256x64xf32> -> vector<256x64xf32>
    %92 = arith.addf %88, %91 : vector<256x64xf32>
    %c0_87 = arith.constant 0 : index
    %c0_88 = arith.constant 0 : index
    %93 = vector.load %arg11[%c0_87, %c0_88] : memref<1x64xf32, #tpu.memory_space<vmem>>, vector<1x64xf32>
    %94 = vector.broadcast %93 : vector<1x64xf32> to vector<256x64xf32>
    %95 = arith.addf %92, %94 : vector<256x64xf32>
    %cst_89 = arith.constant 0.000000e+00 : f32
    %96 = vector.broadcast %cst_89 : f32 to vector<256x64xf32>
    %97 = arith.maximumf %95, %96 : vector<256x64xf32>
    %98 = tpu.transpose %97, [1, 0] : vector<256x64xf32> -> vector<64x256xf32>
    %99 = arith.truncf %98 : vector<64x256xf32> to vector<64x256xbf16>
    %c0_90 = arith.constant 0 : index
    %c0_91 = arith.constant 0 : index
    %100 = vector.load %arg12[%c0_90, %c0_91] : memref<8x64xbf16, #tpu.memory_space<vmem>>, vector<8x64xbf16>
    %cst_92 = arith.constant dense<0.000000e+00> : vector<8x256xf32>
    %101 = tpu.matmul %100, %99, %cst_92 {dimension_numbers = #tpu.dot_dimension_numbers<[1], [0], [0], [1], [0, 0, 1, 1], [], []>} : vector<8x64xbf16>, vector<64x256xbf16>, vector<8x256xf32> -> vector<8x256xf32>
    %c0_93 = arith.constant 0 : index
    %c0_94 = arith.constant 0 : index
    %102 = vector.load %arg13[%c0_93, %c0_94] : memref<8x1xf32, #tpu.memory_space<vmem>>, vector<8x1xf32>
    %103 = vector.broadcast %102 : vector<8x1xf32> to vector<8x256xf32>
    %104 = arith.addf %101, %103 : vector<8x256xf32>
    %c0_95 = arith.constant 0 : index
    %c0_96 = arith.constant 0 : index
    %c0_97 = arith.constant 0 : index
    %105 = vector.load %arg14[%c0_95, %c0_96, %c0_97] : memref<1x8x256xf32, #tpu.memory_space<vmem>>, vector<1x8x256xf32>
    %106 = vector.shape_cast %105 : vector<1x8x256xf32> to vector<8x256xf32>
    %107 = vector.shape_cast %104 : vector<8x256xf32> to vector<1x8x256xf32>
    tpu.vector_store %arg14[%c0_95, %c0_96, %c0_97], %107 {strides = array<i32>} : memref<1x8x256xf32, #tpu.memory_space<vmem>>, vector<1x8x256xf32>,
    return
  }
  func.func @transform_0(%arg0: i32) -> (i32, i32, i32) {
    %c0_i32 = arith.constant 0 : i32
    %c0_i32_0 = arith.constant 0 : i32
    %c0_i32_1 = arith.constant 0 : i32
    return %arg0, %c0_i32, %c0_i32_0 : i32, i32, i32
  }
  func.func @transform_1(%arg0: i32) -> (i32, i32, i32, i32) {
    %c0_i32 = arith.constant 0 : i32
    %c0_i32_0 = arith.constant 0 : i32
    %c0_i32_1 = arith.constant 0 : i32
    %c0_i32_2 = arith.constant 0 : i32
    return %arg0, %c0_i32, %c0_i32_0, %c0_i32_1 : i32, i32, i32, i32
  }
  func.func @transform_2(%arg0: i32) -> (i32, i32) {
    %c0_i32 = arith.constant 0 : i32
    %c0_i32_0 = arith.constant 0 : i32
    %c0_i32_1 = arith.constant 0 : i32
    return %c0_i32, %c0_i32_0 : i32, i32
  }
  func.func @transform_3(%arg0: i32) -> (i32, i32) {
    %c0_i32 = arith.constant 0 : i32
    %c0_i32_0 = arith.constant 0 : i32
    %c0_i32_1 = arith.constant 0 : i32
    return %c0_i32, %c0_i32_0 : i32, i32
  }
  func.func @transform_4(%arg0: i32) -> (i32, i32) {
    %c0_i32 = arith.constant 0 : i32
    %c0_i32_0 = arith.constant 0 : i32
    %c0_i32_1 = arith.constant 0 : i32
    return %c0_i32, %c0_i32_0 : i32, i32
  }
  func.func @transform_5(%arg0: i32) -> (i32, i32) {
    %c0_i32 = arith.constant 0 : i32
    %c0_i32_0 = arith.constant 0 : i32
    %c0_i32_1 = arith.constant 0 : i32
    return %c0_i32, %c0_i32_0 : i32, i32
  }
  func.func @transform_6(%arg0: i32) -> (i32, i32, i32) {
    %c0_i32 = arith.constant 0 : i32
    %c0_i32_0 = arith.constant 0 : i32
    %c0_i32_1 = arith.constant 0 : i32
    %c0_i32_2 = arith.constant 0 : i32
    return %c0_i32, %c0_i32_0, %c0_i32_1 : i32, i32, i32
  }
  func.func @transform_7(%arg0: i32) -> (i32, i32) {
    %c0_i32 = arith.constant 0 : i32
    %c0_i32_0 = arith.constant 0 : i32
    %c0_i32_1 = arith.constant 0 : i32
    return %c0_i32, %c0_i32_0 : i32, i32
  }
  func.func @transform_8(%arg0: i32) -> (i32, i32) {
    %c0_i32 = arith.constant 0 : i32
    %c0_i32_0 = arith.constant 0 : i32
    %c0_i32_1 = arith.constant 0 : i32
    return %c0_i32, %c0_i32_0 : i32, i32
  }
  func.func @transform_9(%arg0: i32) -> (i32, i32) {
    %c0_i32 = arith.constant 0 : i32
    %c0_i32_0 = arith.constant 0 : i32
    %c0_i32_1 = arith.constant 0 : i32
    return %c0_i32, %c0_i32_0 : i32, i32
  }
  func.func @transform_10(%arg0: i32) -> (i32, i32) {
    %c0_i32 = arith.constant 0 : i32
    %c0_i32_0 = arith.constant 0 : i32
    %c0_i32_1 = arith.constant 0 : i32
    return %c0_i32, %c0_i32_0 : i32, i32
  }
  func.func @transform_11(%arg0: i32) -> (i32, i32) {
    %c0_i32 = arith.constant 0 : i32
    %c0_i32_0 = arith.constant 0 : i32
    %c0_i32_1 = arith.constant 0 : i32
    return %c0_i32, %c0_i32_0 : i32, i32
  }
  func.func @transform_12(%arg0: i32) -> (i32, i32) {
    %c0_i32 = arith.constant 0 : i32
    %c0_i32_0 = arith.constant 0 : i32
    %c0_i32_1 = arith.constant 0 : i32
    return %c0_i32, %c0_i32_0 : i32, i32
  }
  func.func @transform_13(%arg0: i32) -> (i32, i32, i32) {
    %c0_i32 = arith.constant 0 : i32
    %c0_i32_0 = arith.constant 0 : i32
    %c0_i32_1 = arith.constant 0 : i32
    return %arg0, %c0_i32, %c0_i32_0 : i32, i32, i32
  }
}

</mosaic_0001>

<bundles_post_ra>
// kernel: trans_infer_forward.1
= control target key start
LH: loop header
LB: loop body
LE: loop exit
PB: predicated region body
PF: predicated region fallthrough
CT: control target
= control target key end

     0   :  { %s10696_s25 = smov 0   ;;  %s14366_s0 = inlined_call_operand.vmem [shape: bf16[2,256,8], index: 0, kind: input, shape index: {}]   ;;  %s14367_s1 = inlined_call_operand.vmem [shape: bf16[2,18,18,256], index: 1, kind: input, shape index: {}]   ;;  %s14368_s2 = inlined_call_operand.vmem [shape: bf16[8,32], index: 2, kind: input, shape index: {}]   ;;  %s14369_s3 = inlined_call_operand.vmem [shape: f32[1,32], index: 3, kind: input, shape index: {}]   ;;  %s14370_s4 = inlined_call_operand.vmem [shape: bf16[32,32], index: 4, kind: input, shape index: {}]   ;;  %s14371_s5 = inlined_call_operand.vmem [shape: f32[1,32], index: 5, kind: input, shape index: {}]   ;;  %s14372_s6 = inlined_call_operand.vmem [shape: bf16[9,256,64], index: 6, kind: input, shape index: {}]   ;;  %s14373_s7 = inlined_call_operand.vmem [shape: f32[1,64], index: 7, kind: input, shape index: {}]   ;;  %s14374_s8 = inlined_call_operand.vmem [shape: bf16[32,64], index: 8, kind: input, shape index: {}]   ;;  %s14375_s9 = inlined_call_operand.vmem [shape: bf16[64,64], index: 9, kind: input, shape index: {}]   ;;  %s14376_s10 = inlined_call_operand.vmem [shape: f32[1,64], index: 10, kind: input, shape index: {}]   ;;  %s14377_s11 = inlined_call_operand.vmem [shape: bf16[8,64], index: 11, kind: input, shape index: {}]   ;;  %s14378_s12 = inlined_call_operand.vmem [shape: f32[8,1], index: 12, kind: input, shape index: {}]   ;;  %s14379_s13 = inlined_call_operand.vmem [shape: f32[2,8,256], index: 13, kind: output, shape index: {}]  }
   0x1 LB: > { %s7903_s26 = sadd.s32 4294967295, %s10623_s25   ;;  %p7907_p0 = scmp.ge.s32.totalorder %s10623_s25, 1  ;;  %s10623_s25 = sphi %s10696_s25, %s23_s25  }
   0x2   : > { %p397_p1 = scmp.lt.s32.totalorder %s10623_s25, 3 }
   0x4   : > { %p398_p2 = pnand %p7907_p0, %p397_p1 }
   0x6   : > { %401 = sbr.rel (%p398_p2) target bundleno = 1621 (0x655), region = 72 }
   0xb   : > { %v494_v0 = vld [vmem:[%s14368_s2] sm:$0xf]  ;;  %vm631_vm0 = vcmask 1043456   ;;  %p446_p3 = scmp.lt.s32.totalorder %s7903_s26, 1  ;;  %v10266_v1 = vld [vmem:[%s14372_s6 + $0xf8] sm:$0xff]   ;;  %vm582_vm1 = vcmask 64512  }
   0xc   : > { %10165 = vmatprep.subr.msk.bf16.mxu0 %vm631_vm0, %v494_v0  ;;  %v633_v2 = vsel %vm631_vm0, %v494_v0, 0  ;;  %v10267_v3 = vld [vmem:[%s14372_s6 + $0xb8] sm:$0xff]   ;;  %v10268_v4 = vld [vmem:[%s14372_s6 + $0xf0] sm:$0xff]   ;;  %v10270_v9 = vld [vmem:[%s14372_s6 + $0xe8] sm:$0xff]   ;;  %vm1189_vm2 = vsmask.f32 3328 }
   0xd   : > { %10020 = vmatpush3.bf16.msra.mxu0 %v633_v2  ;;  %s14875_s26 = smov (!%p446_p3, %s7903_s26), 1  ;;  %v10269_v8 = vld [vmem:[%s14372_s6 + $0xb0] sm:$0xff]   ;;  %v10271_v14 = vld [vmem:[%s14372_s6 + $0xa8] sm:$0xff]   ;;  %v10272_v15 = vld [vmem:[%s14372_s6 + $0xe0] sm:$0xff]   ;;  %vm1190_vm3 = vsmask.f32 7440 }
   0xe   : > { %8973 = vmatprep.subr.bf16.mxu0 %v10266_v1  ;;  %s8936_s14 = sshll.u32 %s14875_s26, 7  ;;  %v10273_v16 = vld [vmem:[%s14372_s6 + $0xa0] sm:$0xff]   ;;  %v10274_v17 = vld [vmem:[%s14372_s6 + $0xd8] sm:$0xff]   ;;  %v10276_v20 = vld [vmem:[%s14372_s6 + $0xd0] sm:$0xff]   ;;  %s10166_s24 = smul.u32 432, %s14875_s26  ;;  %vm2459_vm5 = vcmask 1042432  }
   0xf   : > { %s10719_s19 = scalar_lea.vmem %s14366_s0, %s8936_s14  ;;  %v10275_v19 = vld [vmem:[%s14372_s6 + $0x98] sm:$0xff]   ;;  %v10277_v22 = vld [vmem:[%s14372_s6 + $0x90] sm:$0xff]   ;;  %v10278_v23 = vld [vmem:[%s14372_s6 + $0xc8] sm:$0xff]   ;;  %vm2460_vm6 = vcmask 1046532   ;;  %vm867_vm8 = vcmask 261120   ;;  %vm7209_vm9 = vcmask 523264  }
  0x10   : > { %v10250_v5 = vld [vmem:[%s10719_s19] sm:$0xff]   ;;  %v10251_v6 = vld [vmem:[%s10719_s19 + $0x8] sm:$0xff]   ;;  %v10252_v7 = vld [vmem:[%s10719_s19 + $0x10] sm:$0xff]   ;;  %s10775_s16 = scalar_lea.vmem %s14367_s1, %s10166_s24  ;;  %s8937_s27 = sshll.u32 %s14875_s26, 4 }
  0x11   : > { %10021 = vmatprep.mubr.msk.bf16.mxu0 %vm582_vm1, %v10250_v5  ;;  %v10253_v10 = vld [vmem:[%s10719_s19 + $0x18] sm:$0xff]   ;;  %v10254_v11 = vld [vmem:[%s10719_s19 + $0x20] sm:$0xff]   ;;  %v10255_v12 = vld [vmem:[%s10719_s19 + $0x28] sm:$0xff]   ;;  %s460_s30 = scalar_lea.vmem %s14379_s13, %s8937_s27 }
  0x12   : > { %10022 = vmatmul.mubr.msk.bf16.vlgmr.msra.gmra.mxu0 %vm582_vm1, %v10251_v6  ;;  %v10256_v13 = vld [vmem:[%s10719_s19 + $0x30] sm:$0xff]   ;;  %v10257_v18 = vld [vmem:[%s10719_s19 + $0x38] sm:$0xff]   ;;  %v10258_v21 = vld [vmem:[%s10719_s19 + $0x40] sm:$0xff]  }
  0x13   : > { %10025 = vmatprep.mubr.msk.bf16.mxu0 %vm582_vm1, %v10252_v7  ;;  %8974 = vmatpush3.bf16.msra.mxu0 %v10267_v3  ;;  %v10279_v24 = vld [vmem:[%s14372_s6 + $0x88] sm:$0xff]   ;;  %v10280_v26 = vld [vmem:[%s14372_s6 + $0xc0] sm:$0xff]   ;;  %v10260_v28 = vld [vmem:[%s10719_s19 + $0x50] sm:$0xff]  }
  0x14   : > { %8975 = vmatprep.subr.bf16.mxu0 %v10268_v4  ;;  %v10259_v25 = vld [vmem:[%s10719_s19 + $0x48] sm:$0xff]   ;;  %v1109_v27 = vld [vmem:[%s10775_s16] sm:$0xff]  ;;  %v1173_v35 = vld [vmem:[%s10775_s16 + $0x10] sm:$0x11] }
  0x15   : > { %v1110_v29 = vld [vmem:[%s10775_s16 + $0x8] sm:$0xff]  ;;  %v10281_v30 = vld [vmem:[%s14372_s6 + $0x80] sm:$0xff]   ;;  %v1193_v31 = vshrl.u32 %v1109_v27, 16  ;;  %v1196_v32 = vshll.u32 %v1109_v27, 16  ;;  %v1111_v36 = vld [vmem:[%s10775_s16 + $0x18] sm:$0xff]  ;;  %v1212_v44 = vshll.u32 %v1173_v35, 16 }
  0x16   : > { %v1202_v33 = vshll.u32 %v1110_v29, 16  ;;  %v1206_v34 = vshrl.u32 %v1110_v29, 16  ;;  %v10261_v37 = vld [vmem:[%s10719_s19 + $0x58] sm:$0xff]   ;;  %v10262_v38 = vld [vmem:[%s10719_s19 + $0x60] sm:$0xff]   ;;  %v1217_v45 = vshrl.u32 %v1111_v36, 16  ;;  %v1220_v46 = vshll.u32 %v1111_v36, 16  ;;  %vm10805_vm4 = vmor %vm1189_vm2, %vm1190_vm3 }
  0x17   : > { %8976 = vmatpush3.bf16.msra.mxu0 %v10269_v8  ;;  %v1195_v39 = vrot.slane %v1193_v31, 4  ;;  %v1112_v40 = vld [vmem:[%s10775_s16 + $0x20] sm:$0xff]  ;;  %v1198_v41 = vrot.slane %v1196_v32, 5  ;;  %v10263_v51 = vld [vmem:[%s10719_s19 + $0x68] sm:$0xff]   ;;  %v1214_v52 = vrot.slane %v1212_v44, 5  ;;  %v1113_v54 = vld [vmem:[%s10775_s16 + $0x30] sm:$0xff] }
  0x18   : > { %8977 = vmatprep.subr.bf16.mxu0 %v10270_v9  ;;  %v1204_v42 = vrot.slane %v1202_v33, 5  ;;  %v1208_v43 = vrot.slane %v1206_v34, 4  ;;  %v1226_v47 = vshll.u32 %v1112_v40, 16  ;;  %v1230_v48 = vshrl.u32 %v1112_v40, 16  ;;  %v1174_v53 = vld [vmem:[%s10775_s16 + $0x28] sm:$0x11]  ;;  %vm11008_vm7 = vmor %vm2459_vm5, %vm2460_vm6 }
  0x19   : > { %v1199_v49 = vor.u32 %v1198_v41, %v1195_v39  ;;  %v10264_v55 = vld [vmem:[%s10719_s19 + $0x70] sm:$0xff]   ;;  %v1219_v56 = vrot.slane %v1217_v45, 4  ;;  %v1222_v57 = vrot.slane %v1220_v46, 5  ;;  %v1236_v0 = vshll.u32 %v1174_v53, 16  ;;  %v1114_v1 = vld [vmem:[%s10775_s16 + $0x38] sm:$0xff]  ;;  %v1115_v4 = vld [vmem:[%s10775_s16 + $0x48] sm:$0xff] }
  0x1a   : > { %10026 = vmatmul.mubr.msk.bf16.gmra.mxu0 %vm582_vm1, %v10253_v10  ;;  %v1209_v50 = vor.u32 %v1208_v43, %v1204_v42  ;;  %v1228_v58 = vrot.slane %v1226_v47, 5  ;;  %v1232_v59 = vrot.slane %v1230_v48, 4  ;;  %v1241_v2 = vshrl.u32 %v1113_v54, 16  ;;  %v1175_v7 = vld [vmem:[%s10775_s16 + $0x40] sm:$0x11]  ;;  %v1116_v9 = vld [vmem:[%s10775_s16 + $0x50] sm:$0xff] }
  0x1b   : > { %10029 = vmatprep.mubr.msk.bf16.mxu0 %vm582_vm1, %v10254_v11  ;;  %8978 = vmatpush3.bf16.msra.mxu0 %v10271_v14  ;;  %v1200_v60 = vrot.slane %v1199_v49, 4  ;;  %v1223_v63 = vor.u32 %v1222_v57, %v1219_v56  ;;  %v1244_v8 = vshll.u32 %v1113_v54, 16  ;;  %v10265_v10 = vld [vmem:[%s10719_s19 + $0x78] sm:$0xff]   ;;  %v1250_v11 = vshll.u32 %v1114_v1, 16  ;;  %v1117_v29 = vld [vmem:[%s10775_s16 + $0x60] sm:$0xff]  ;;  %v1118_v34 = vld [vmem:[%s10775_s16 + $0x68] sm:$0xff] }
  0x1c   : > { %8979 = vmatprep.subr.bf16.mxu0 %v10272_v15  ;;  %v1210_v61 = vrot.slane %v1209_v50, 4  ;;  %v1233_v3 = vor.u32 %v1232_v59, %v1228_v58  ;;  %v1238_v14 = vrot.slane %v1236_v0, 5  ;;  %v1243_v15 = vrot.slane %v1241_v2, 4  ;;  %v1177_v59 = vld [vmem:[%s10775_s16 + $0x70] sm:$0x11] }
  0x1d   : > { %v1205_v5 = vsel %vm10805_vm4, %v1200_v60, %v1204_v42  ;;  %v1289_v41 = vshrl.u32 %v1117_v29, 16  ;;  %v1292_v44 = vshll.u32 %v1117_v29, 16  ;;  %v1298_v45 = vshll.u32 %v1118_v34, 16 }
  0x1e   : > { %v1215_v6 = vsel %vm10805_vm4, %v1210_v61, %v1214_v52  ;;  %v1302_v48 = vshrl.u32 %v1118_v34, 16  ;;  %v1120_v52 = vld [vmem:[%s10775_s16 + $0x80] sm:$0xff] }
  0x1f   : > { %8980 = vmatpush3.bf16.msra.mxu0 %v10273_v16  ;;  %v7998_v16 = vcombine.high %v1205_v5, %v1215_v6  ;;  %v1291_v50 = vrot.slane %v1289_v41, 4  ;;  %v1300_v56 = vrot.slane %v1298_v45, 5 }
  0x20   : > { %8981 = vmatprep.subr.bf16.mxu0 %v10274_v17  ;;  %v1234_v17 = vrot.slane %v1233_v3, 4  ;;  %v1304_v60 = vrot.slane %v1302_v48, 4  ;;  %v1178_v3 = vld [vmem:[%s10775_s16 + $0x88] sm:$0x11]  ;;  %v1125_v48 = vld [vmem:[%s10775_s16 + $0xc0] sm:$0xff] }
  0x22   : > { %10030 = vmatmul.mubr.msk.bf16.gmra.mxu0 %vm582_vm1, %v10255_v12  ;;  %v1254_v12 = vshrl.u32 %v1114_v1, 16  ;;  %v10282_v1 = vld [vmem:[%s14370_s4 + $0x8] sm:$0xff]  }
  0x23   : > { %10033 = vmatprep.mubr.msk.bf16.mxu0 %vm582_vm1, %v10256_v13  ;;  %8982 = vmatpush3.bf16.msra.mxu0 %v10275_v19  ;;  %v1224_v13 = vrot.slane %v1223_v63, 4  ;;  %v1268_v19 = vshll.u32 %v1115_v4, 16 }
  0x24   : > { %8983 = vmatprep.subr.bf16.mxu0 %v10276_v20  ;;  %v1274_v20 = vshll.u32 %v1116_v9, 16  ;;  %10053 = vmatprep.subr.bf16.mxu1 %v10282_v1 }
  0x25   : > { %v1229_v27 = vsel %vm10805_vm4, %v1224_v13, %v1228_v58  ;;  %v1270_v31 = vrot.slane %v1268_v19, 5  ;;  %10054 = vmatpush3.bf16.msra.mxu1 %v10282_v1 }
  0x26   : > { %v1276_v32 = vrot.slane %v1274_v20, 5 }
  0x27   : > { %8984 = vmatpush3.bf16.msra.mxu0 %v10277_v22  ;;  %v1246_v22 = vrot.slane %v1244_v8, 5 }
  0x28   : > { %8985 = vmatprep.subr.bf16.mxu0 %v10278_v23  ;;  %v1252_v23 = vrot.slane %v1250_v11, 5  ;;  %v1305_v11 = vor.u32 %v1304_v60, %v1300_v56  ;;  %v1388_v60 = vshll.u32 %v1125_v48, 16 }
  0x29   : > { %v1247_v35 = vor.u32 %v1246_v22, %v1243_v15 }
  0x2a   : > { %10034 = vmatmul.mubr.msk.bf16.gmra.mxu0 %vm582_vm1, %v10257_v18  ;;  %v1265_v18 = vshrl.u32 %v1115_v4, 16  ;;  %v1322_v4 = vshll.u32 %v1120_v52, 16 }
  0x2b   : > { %10037 = vmatprep.mubr.msk.bf16.mxu0 %vm582_vm1, %v10258_v21  ;;  %8986 = vmatpush3.bf16.msra.mxu0 %v10279_v24  ;;  %v1278_v21 = vshrl.u32 %v1116_v9, 16  ;;  %v1256_v24 = vrot.slane %v1254_v12, 4  ;;  %v1248_v46 = vrot.slane %v1247_v35, 4  ;;  %v1308_v9 = vshll.u32 %v1177_v59, 16 }
  0x2c   : > { %8987 = vmatprep.subr.bf16.mxu0 %v10280_v26  ;;  %v1176_v26 = vld [vmem:[%s10775_s16 + $0x58] sm:$0x11]  ;;  %v1324_v15 = vrot.slane %v1322_v4, 5  ;;  %v1385_v59 = vshrl.u32 %v1125_v48, 16 }
  0x2d   : > { %v1280_v33 = vrot.slane %v1278_v21, 4  ;;  %v1257_v36 = vor.u32 %v1256_v24, %v1252_v23  ;;  %v1284_v40 = vshll.u32 %v1176_v26, 16  ;;  %v1253_v57 = vsel %vm10805_vm4, %v1248_v46, %v1252_v23  ;;  %v1179_v24 = vld [vmem:[%s10775_s16 + $0xa0] sm:$0x11] }
  0x2e   : > { %v1306_v26 = vrot.slane %v1305_v11, 4 }
  0x2f   : > { %8988 = vmatpush3.bf16.msra.mxu0 %v10281_v30  ;;  %v1267_v30 = vrot.slane %v1265_v18, 4  ;;  %v1281_v43 = vor.u32 %v1280_v33, %v1276_v32  ;;  %v1258_v47 = vrot.slane %v1257_v36, 4  ;;  %v1286_v49 = vrot.slane %v1284_v40, 5  ;;  %v1122_v18 = vld [vmem:[%s10775_s16 + $0x98] sm:$0xff] }
  0x30   : > { %v1350_v34 = vshrl.u32 %v1122_v18, 16  ;;  %v1356_v36 = vshll.u32 %v1179_v24, 16 }
  0x31   : > { %v1271_v42 = vor.u32 %v1270_v31, %v1267_v30  ;;  %v1282_v54 = vrot.slane %v1281_v43, 4  ;;  %v1346_v31 = vshll.u32 %v1122_v18, 16 }
  0x32   : > { %10038 = vmatmul.mubr.msk.bf16.gmra.mxu0 %vm582_vm1, %v10259_v25  ;;  %v1260_v25 = vshll.u32 %v1175_v7, 16 }
  0x33   : > { %10041 = vmatprep.mubr.msk.bf16.mxu0 %vm582_vm1, %v10260_v28  ;;  %v1239_v28 = vsel %vm10805_vm4, %v1234_v17, %v1238_v14  ;;  %v1272_v53 = vrot.slane %v1271_v42, 4  ;;  %v1287_v8 = vsel %vm10805_vm4, %v1282_v54, %v1286_v49  ;;  %v10283_v14 = vld [vmem:[%s14370_s4] sm:$0xff]   ;;  %v1332_v17 = vshll.u32 %v1178_v3, 16 }
  0x34   : > { %v8000_v39 = vcombine.high %v1229_v27, %v1239_v28  ;;  %v7999_v61 = vcombine.low %v1229_v27, %v1239_v28  ;;  %10055 = vmatprep.subr.bf16.mxu1 %v10283_v14  ;;  %v1310_v27 = vrot.slane %v1308_v9, 5  ;;  %v1348_v41 = vrot.slane %v1346_v31, 5  ;;  %v1181_v9 = vld [vmem:[%s10775_s16 + $0xd0] sm:$0x11]  ;;  %v1130_v31 = vld [vmem:[%s10775_s16 + $0xf8] sm:$0xff] }
  0x35   : > { %v1277_v7 = vsel %vm10805_vm4, %v1272_v53, %v1276_v32  ;;  %10056 = vmatpush3.bf16.msra.mxu1 %v10283_v14  ;;  %v1334_v29 = vrot.slane %v1332_v17, 5  ;;  %v1358_v49 = vrot.slane %v1356_v36, 5 }
  0x36   : > { %v8004_v22 = vcombine.high %v1277_v7, %v1287_v8  ;;  %v1311_v40 = vsel %vm10805_vm4, %v1306_v26, %v1310_v27  ;;  %v8003_v43 = vcombine.low %v1277_v7, %v1287_v8  ;;  %v1387_v7 = vrot.slane %v1385_v59, 4  ;;  %v1128_v26 = vld [vmem:[%s10775_s16 + $0xe0] sm:$0xff] }
  0x37   : > { %v1390_v8 = vrot.slane %v1388_v60, 5  ;;  %v1422_v36 = vshrl.u32 %v1128_v26, 16  ;;  %v1131_v60 = vld [vmem:[%s10775_s16 + $0x108] sm:$0xff] }
  0x39   : > { %v1391_v18 = vor.u32 %v1390_v8, %v1387_v7  ;;  %v10293_v7 = vld [vmem:[%s14372_s6 + $0x128] sm:$0xff]   ;;  %v1457_v8 = vshrl.u32 %v1131_v60, 16 }
  0x3a   : > { %10042 = vmatmul.mubr.msk.bf16.gmra.mxu0 %vm582_vm1, %v10261_v37  ;;  %v1262_v37 = vrot.slane %v1260_v25, 5 }
  0x3b   : > { %10045 = vmatprep.mubr.msk.bf16.mxu0 %vm582_vm1, %v10262_v38  ;;  %v7997_v38 = vcombine.low %v1205_v5, %v1215_v6  ;;  %v1326_v5 = vshrl.u32 %v1120_v52, 16  ;;  %v1121_v6 = vld [vmem:[%s10775_s16 + $0x90] sm:$0xff] }
  0x3c   : > { %v1263_v58 = vsel %vm10805_vm4, %v1258_v47, %v1262_v37  ;;  %v1337_v19 = vshrl.u32 %v1121_v6, 16  ;;  %v1340_v20 = vshll.u32 %v1121_v6, 16  ;;  %v1123_v37 = vld [vmem:[%s10775_s16 + $0xa8] sm:$0xff] }
  0x3d   : > { %v8002_v2 = vcombine.high %v1253_v57, %v1263_v58  ;;  %v8001_v21 = vcombine.low %v1253_v57, %v1263_v58  ;;  %v1361_v45 = vshrl.u32 %v1123_v37, 16  ;;  %v1364_v47 = vshll.u32 %v1123_v37, 16  ;;  %v10284_v37 = vld [vmem:[%s14372_s6 + $0x178] sm:$0xff]  }
  0x3e   : > { %v1339_v30 = vrot.slane %v1337_v19, 4  ;;  %v1342_v32 = vrot.slane %v1340_v20, 5  ;;  %v1404_v19 = vshll.u32 %v1181_v9, 16  ;;  %9197 = vmatprep.subr.bf16.mxu0 %v10284_v37  ;;  %v1133_v9 = vld [vmem:[%s10775_s16 + $0x120] sm:$0xff] }
  0x3f   : > { %v1366_v58 = vrot.slane %v1364_v47, 5 }
  0x40   : > { %v1343_v42 = vor.u32 %v1342_v32, %v1339_v30  ;;  %v1406_v30 = vrot.slane %v1404_v19, 5 }
  0x42   : > { %10046 = vmatmul.mubr.msk.bf16.gmra.mxu0 %vm582_vm1, %v10263_v51  ;;  %v1119_v51 = vld [vmem:[%s10775_s16 + $0x78] sm:$0xff]  ;;  %v1344_v53 = vrot.slane %v1343_v42, 4 }
  0x43   : > { %10049 = vmatprep.mubr.msk.bf16.mxu0 %vm582_vm1, %v10264_v55  ;;  %v1294_v55 = vrot.slane %v1292_v44, 5  ;;  %v1313_v63 = vshrl.u32 %v1119_v51, 16  ;;  %v1316_v0 = vshll.u32 %v1119_v51, 16  ;;  %v1352_v44 = vrot.slane %v1350_v34, 4  ;;  %v1126_v51 = vld [vmem:[%s10775_s16 + $0xc8] sm:$0xff] }
  0x45   : > { %v1315_v12 = vrot.slane %v1313_v63, 4  ;;  %v1318_v13 = vrot.slane %v1316_v0, 5  ;;  %v1398_v63 = vshrl.u32 %v1126_v51, 16  ;;  %v1180_v0 = vld [vmem:[%s10775_s16 + $0xb8] sm:$0x11] }
  0x47   : > { %v1319_v23 = vor.u32 %v1318_v13, %v1315_v12  ;;  %v1400_v11 = vrot.slane %v1398_v63, 4  ;;  %v1380_v12 = vshll.u32 %v1180_v0, 16 }
  0x49   : > { %v1320_v33 = vrot.slane %v1319_v23, 4 }
  0x4a   : > { %10050 = vmatmul.mubr.msk.bf16.gmra.mxu0 %vm582_vm1, %v10265_v10  ;;  %v1295_v10 = vor.u32 %v1294_v55, %v1291_v50  ;;  %v1353_v55 = vor.u32 %v1352_v44, %v1348_v41  ;;  %v1442_v44 = vshll.u32 %v1130_v31, 16 }
  0x4b   : > { %1865 = vmatprep.mubr.bf16.mxu0 %v7998_v16  ;;  %v1328_v16 = vrot.slane %v1326_v5, 4  ;;  %v1325_v52 = vsel %vm10805_vm4, %v1320_v33, %v1324_v15 }
  0x4c   : > { %v1296_v25 = vrot.slane %v1295_v10, 4  ;;  %v1354_v3 = vrot.slane %v1353_v55, 4 }
  0x4d   : > { %v1329_v28 = vor.u32 %v1328_v16, %v1324_v15  ;;  %v1127_v15 = vld [vmem:[%s10775_s16 + $0xd8] sm:$0xff]  ;;  %v1349_v16 = vsel %vm10805_vm4, %v1344_v53, %v1348_v41 }
  0x4e   : > { %v1359_v17 = vsel %vm10805_vm4, %v1354_v3, %v1358_v49  ;;  %v1409_v23 = vshrl.u32 %v1127_v15, 16  ;;  %v1412_v27 = vshll.u32 %v1127_v15, 16  ;;  %v1424_v49 = vrot.slane %v1422_v36, 4  ;;  %v10301_v36 = vld [vmem:[%s14372_s6 + $0x118] sm:$0xff]  }
  0x4f   : > { %v1330_v35 = vrot.slane %v1329_v28, 4  ;;  %v8010_v24 = vcombine.high %v1349_v16, %v1359_v17  ;;  %v1129_v28 = vld [vmem:[%s10775_s16 + $0xf0] sm:$0xff] }
  0x50   : > { %v1411_v34 = vrot.slane %v1409_v23, 4  ;;  %v1433_v41 = vshrl.u32 %v1129_v28, 16  ;;  %v1436_v42 = vshll.u32 %v1129_v28, 16  ;;  %v1134_v23 = vld [vmem:[%s10775_s16 + $0x128] sm:$0xff] }
  0x51   : > { %v1335_v54 = vsel %vm10805_vm4, %v1330_v35, %v1334_v29  ;;  %v1392_v29 = vrot.slane %v1391_v18, 4  ;;  %v1418_v35 = vshll.u32 %v1128_v26, 16  ;;  %v1459_v26 = vrot.slane %v1457_v8, 4 }
  0x52   : > { %1866 = vmatmul.mubr.bf16.vlgmr.msra.gmra.mxu0 %v7997_v38  ;;  %v1124_v38 = vld [vmem:[%s10775_s16 + $0xb0] sm:$0xff]  ;;  %v1438_v55 = vrot.slane %v1436_v42, 5 }
  0x53   : > { %1873 = vmatprep.mubr.bf16.mxu0 %v8000_v39  ;;  %v1301_v39 = vsel %vm10805_vm4, %v1296_v25, %v1300_v56  ;;  %v1370_v50 = vshll.u32 %v1124_v38, 16  ;;  %v1363_v56 = vrot.slane %v1361_v45, 4  ;;  %v1374_v57 = vshrl.u32 %v1124_v38, 16  ;;  %v1185_v42 = vld [vmem:[%s10775_s16 + $0x130] sm:$0x11] }
  0x54   : > { %v8006_v46 = vcombine.high %v1301_v39, %v1311_v40  ;;  %v8005_v1 = vcombine.low %v1301_v39, %v1311_v40  ;;  %v1182_v39 = vld [vmem:[%s10775_s16 + $0xe8] sm:$0x11]  ;;  %v1414_v40 = vrot.slane %v1412_v27, 5  ;;  %v1446_v45 = vshrl.u32 %v1130_v31, 16 }
  0x55   : > { %v1372_v4 = vrot.slane %v1370_v50, 5  ;;  %v1367_v5 = vor.u32 %v1366_v58, %v1363_v56  ;;  %v1376_v6 = vrot.slane %v1374_v57, 4  ;;  %v10888_v48 = vrot.slane %v1418_v35, 5  ;;  %v10286_v50 = vld [vmem:[%s14372_s6 + $0x78] sm:$0xff]   ;;  %v10289_v56 = vld [vmem:[%s14372_s6 + $0x130] sm:$0xff]  }
  0x56   : > { %v1428_v53 = vshll.u32 %v1182_v39, 16  ;;  %v1183_v57 = vld [vmem:[%s10775_s16 + $0x100] sm:$0x11]  ;;  %v10900_v58 = vrot.slane %v1442_v44, 5  ;;  %9085 = vmatprep.subr.bf16.mxu1 %v10286_v50  ;;  %v1448_v59 = vrot.slane %v1446_v45, 4  ;;  %v1135_v35 = vld [vmem:[%s10775_s16 + $0x138] sm:$0xff] }
  0x57   : > { %v1368_v13 = vrot.slane %v1367_v5, 4  ;;  %v1377_v14 = vor.u32 %v1376_v6, %v1372_v4  ;;  %v1425_v0 = vor.u32 %v1424_v49, %v10888_v48  ;;  %v1452_v5 = vshll.u32 %v1183_v57, 16  ;;  %v1132_v6 = vld [vmem:[%s10775_s16 + $0x110] sm:$0xff] }
  0x58   : > { %v1430_v3 = vrot.slane %v1428_v53, 5  ;;  %v1470_v15 = vshrl.u32 %v1132_v6, 16  ;;  %v10303_v44 = vld [vmem:[%s14372_s6 + $0x150] sm:$0xff]  }
  0x59   : > { %v1378_v25 = vrot.slane %v1377_v14, 4  ;;  %v10873_v33 = vsel %vm10805_vm4, %v1368_v13, %v1372_v4  ;;  %v1460_v13 = vshll.u32 %v1131_v60, 16  ;;  %v1466_v14 = vshll.u32 %v1132_v6, 16  ;;  %v10305_v49 = vld [vmem:[%s14372_s6 + $0x110] sm:$0xff]   ;;  %v1186_v60 = vld [vmem:[%s10775_s16 + $0x148] sm:$0x11] }
  0x5a   : > { %1874 = vmatmul.mubr.bf16.gmra.mxu0 %v7999_v61  ;;  %v1394_v61 = vshll.u32 %v1126_v51, 16  ;;  %v10287_v51 = vld [vmem:[%s14372_s6 + $0x170] sm:$0xff]   ;;  %v1454_v19 = vrot.slane %v1452_v5, 5  ;;  %v10311_v6 = vld [vmem:[%s14372_s6 + $0x140] sm:$0xff]  }
  0x5b   : > { %1881 = vmatprep.mubr.bf16.mxu0 %v8002_v2  ;;  %v8008_v2 = vcombine.high %v1325_v52, %v1335_v54  ;;  %v1462_v27 = vrot.slane %v1460_v13, 5  ;;  %v10933_v28 = vrot.slane %v1466_v14, 5  ;;  %v1524_v14 = vshll.u32 %v1186_v60, 16 }
  0x5c   : > { %v1396_v10 = vrot.slane %v1394_v61, 5 }
  0x5e   : > { %v1401_v20 = vor.u32 %v1400_v11, %v1396_v10  ;;  %v10905_v61 = vsel %vm10805_vm4, %v1392_v29, %v1396_v10  ;;  %v1449_v11 = vor.u32 %v1448_v59, %v10900_v58  ;;  %v1472_v29 = vrot.slane %v1470_v15, 4 }
  0x60   : > { %v1402_v32 = vrot.slane %v1401_v20, 4  ;;  %v1481_v20 = vshrl.u32 %v1133_v9, 16  ;;  %v1473_v57 = vor.u32 %v1472_v29, %v10933_v28 }
  0x62   : > { %1882 = vmatmul.mubr.bf16.gmra.mxu0 %v8001_v21  ;;  %v8007_v21 = vcombine.low %v1325_v52, %v1335_v54  ;;  %v1415_v52 = vor.u32 %v1414_v40, %v1411_v34  ;;  %v1435_v54 = vrot.slane %v1433_v41, 4  ;;  %v10909_v63 = vsel %vm10805_vm4, %v1402_v32, %v1406_v30  ;;  %v10299_v30 = vld [vmem:[%s14372_s6 + $0x158] sm:$0xff]   ;;  %v1136_v40 = vld [vmem:[%s10775_s16 + $0x140] sm:$0xff] }
  0x63   : > { %1889 = vmatprep.mubr.bf16.mxu0 %v8004_v22  ;;  %v1382_v22 = vrot.slane %v1380_v12, 5  ;;  %v8014_v12 = vcombine.high %v10905_v61, %v10909_v63  ;;  %v1483_v32 = vrot.slane %v1481_v20, 4  ;;  %v1494_v34 = vshrl.u32 %v1134_v23, 16 }
  0x64   : > { %v1439_v4 = vor.u32 %v1438_v55, %v1435_v54  ;;  %v8013_v41 = vcombine.low %v10905_v61, %v10909_v63  ;;  %v1500_v54 = vshll.u32 %v1185_v42, 16  ;;  %v10307_v55 = vld [vmem:[%s14372_s6 + $0x148] sm:$0xff]  }
  0x65   : > { %v10880_v38 = vsel %vm10805_vm4, %v1378_v25, %v1382_v22  ;;  %v1184_v22 = vld [vmem:[%s10775_s16 + $0x118] sm:$0x11]  ;;  %v1450_v25 = vrot.slane %v1449_v11, 4  ;;  %v1496_v53 = vrot.slane %v1494_v34, 4  ;;  %v10309_v61 = vld [vmem:[%s14372_s6 + $0x108] sm:$0xff]   ;;  %v10313_v11 = vld [vmem:[%s14372_s6 + $0x100] sm:$0xff]  }
  0x66   : > { %v8012_v47 = vcombine.high %v10873_v33, %v10880_v38  ;;  %v8011_v10 = vcombine.low %v10873_v33, %v10880_v38  ;;  %v1440_v18 = vrot.slane %v1439_v4, 4  ;;  %v1476_v31 = vshll.u32 %v1184_v22, 16 }
  0x67   : > { %v1490_v33 = vshll.u32 %v1134_v23, 16 }
  0x68   : > { %v1445_v50 = vsel %vm10805_vm4, %v1440_v18, %v10900_v58  ;;  %v1478_v8 = vrot.slane %v1476_v31, 5  ;;  %v1187_v31 = vld [vmem:[%s10775_s16 + $0x160] sm:$0x11] }
  0x6a   : > { %1890 = vmatmul.mubr.bf16.gmra.mxu0 %v8003_v43  ;;  %v10285_v43 = vld [vmem:[%s14372_s6 + $0x138] sm:$0xff]  }
  0x6b   : > { %1897 = vmatprep.mubr.bf16.mxu0 %v8006_v46  ;;  %9198 = vmatpush3.bf16.msra.mxu0 %v10285_v43  ;;  %v8009_v46 = vcombine.low %v1349_v16, %v1359_v17  ;;  %v10295_v16 = vld [vmem:[%s14372_s6 + $0x160] sm:$0xff]   ;;  %v1426_v17 = vrot.slane %v1425_v0, 4  ;;  %v1505_v43 = vshrl.u32 %v1135_v35, 16 }
  0x6c   : > { %9199 = vmatprep.subr.bf16.mxu0 %v10287_v51  ;;  %v1463_v51 = vor.u32 %v1462_v27, %v1459_v26 }
  0x6d   : > { %v1431_v38 = vsel %vm10805_vm4, %v1426_v17, %v1430_v3  ;;  %v1507_v58 = vrot.slane %v1505_v43, 4  ;;  %v1138_v17 = vld [vmem:[%s10775_s16 + $0x158] sm:$0xff] }
  0x6e   : > { %v1464_v5 = vrot.slane %v1463_v51, 4  ;;  %v1538_v27 = vshll.u32 %v1138_v17, 16  ;;  %v1542_v29 = vshrl.u32 %v1138_v17, 16  ;;  %v11014_v17 = vld [vmem:[%s10775_s16 + $0x20] sm:$0xff] }
  0x6f   : > { %9200 = vmatpush3.bf16.msra.mxu0 %v10289_v56  ;;  %v1455_v56 = vsel %vm10805_vm4, %v1450_v25, %v1454_v19 }
  0x70   : > { %v8018_v4 = vcombine.high %v1445_v50, %v1455_v56  ;;  %v1469_v18 = vsel %vm10805_vm4, %v1464_v5, %v10933_v28  ;;  %v8017_v22 = vcombine.low %v1445_v50, %v1455_v56  ;;  %v11000_v5 = vld [vmem:[%s10775_s16 + $0x8] sm:$0xff] }
  0x72   : > { %1898 = vmatmul.mubr.bf16.gmra.mxu0 %v8005_v1  ;;  %v10291_v1 = vld [vmem:[%s14372_s6 + $0x168] sm:$0xff]  }
  0x73   : > { %1905 = vmatprep.mubr.bf16.mxu0 %v8008_v2  ;;  %v1416_v2 = vrot.slane %v1415_v52, 4  ;;  %9201 = vmatprep.subr.bf16.mxu0 %v10291_v1  ;;  %v1492_v52 = vrot.slane %v1490_v33, 5  ;;  %v1140_v33 = vld [vmem:[%s10775_s16 + $0x170] sm:$0xff] }
  0x74   : > { %9202 = vmatpush3.bf16.msra.mxu0 %v10293_v7  ;;  %v1474_v7 = vrot.slane %v1473_v57, 4  ;;  %v1562_v42 = vshll.u32 %v1140_v33, 16  ;;  %v1566_v43 = vshrl.u32 %v1140_v33, 16 }
  0x75   : > { %9203 = vmatprep.subr.bf16.mxu0 %v10295_v16  ;;  %v1421_v37 = vsel %vm10805_vm4, %v1416_v2, %v10888_v48  ;;  %v1518_v48 = vshrl.u32 %v1136_v40, 16  ;;  %v1137_v2 = vld [vmem:[%s10775_s16 + $0x150] sm:$0xff] }
  0x76   : > { %v8016_v45 = vcombine.high %v1421_v37, %v1431_v38  ;;  %v8015_v3 = vcombine.low %v1421_v37, %v1431_v38  ;;  %v1529_v15 = vshrl.u32 %v1137_v2, 16  ;;  %v1479_v19 = vsel %vm10805_vm4, %v1474_v7, %v1478_v8  ;;  %v2411_v8 = vld [vmem:[%s10775_s16] sm:$0xee] }
  0x77   : > { %v1520_v1 = vrot.slane %v1518_v48, 4  ;;  %v1532_v26 = vshll.u32 %v1137_v2, 16  ;;  %v8019_v37 = vcombine.low %v1469_v18, %v1479_v19  ;;  %v1544_v38 = vrot.slane %v1542_v29, 4 }
  0x78   : > { %v1531_v25 = vrot.slane %v1529_v15, 4  ;;  %v1564_v56 = vrot.slane %v1562_v42, 5  ;;  %v1568_v57 = vrot.slane %v1566_v43, 4  ;;  %v10531_v15 = vld [vmem:[%s10775_s16 + $0x10] sm:$0x11] }
  0x7a   : > { %1906 = vmatmul.mubr.bf16.gmra.mxu0 %v8007_v21  ;;  %v10297_v21 = vld [vmem:[%s14372_s6 + $0x120] sm:$0xff]  }
  0x7b   : > { %1913 = vmatprep.mubr.bf16.mxu0 %v8010_v24  ;;  %v1484_v24 = vshll.u32 %v1133_v9, 16  ;;  %9204 = vmatpush3.bf16.msra.mxu0 %v10297_v21 }
  0x7c   : > { %9205 = vmatprep.subr.bf16.mxu0 %v10299_v30  ;;  %v8020_v30 = vcombine.high %v1469_v18, %v1479_v19  ;;  %v2471_v18 = vrot.slane %v11014_v17, 5 }
  0x7d   : > { %v1486_v39 = vrot.slane %v1484_v24, 5  ;;  %v1526_v24 = vrot.slane %v1524_v14, 5 }
  0x7f   : > { %9206 = vmatpush3.bf16.msra.mxu0 %v10301_v36  ;;  %v1487_v59 = vor.u32 %v1486_v39, %v1483_v32  ;;  %v1139_v32 = vld [vmem:[%s10775_s16 + $0x168] sm:$0xff]  ;;  %v1540_v36 = vrot.slane %v1538_v27, 5  ;;  %v1548_v39 = vshll.u32 %v1187_v31, 16 }
  0x80   : > { %9207 = vmatprep.subr.bf16.mxu0 %v10303_v44 }
  0x81   : > { %v1488_v9 = vrot.slane %v1487_v59, 4  ;;  %v1550_v51 = vrot.slane %v1548_v39, 5 }
  0x82   : > { %1914 = vmatmul.mubr.bf16.gmra.mxu0 %v8009_v46  ;;  %v1508_v46 = vshll.u32 %v1135_v35, 16  ;;  %v1534_v35 = vrot.slane %v1532_v26, 5  ;;  %v10533_v26 = vld [vmem:[%s10775_s16 + $0x28] sm:$0x11] }
  0x83   : > { %1921 = vmatprep.mubr.bf16.mxu0 %v8012_v47  ;;  %v1514_v47 = vshll.u32 %v1136_v40, 16  ;;  %9208 = vmatpush3.bf16.msra.mxu0 %v10305_v49  ;;  %v1493_v28 = vsel %vm10805_vm4, %v1488_v9, %v1492_v52  ;;  %v1553_v40 = vshrl.u32 %v1139_v32, 16  ;;  %v2474_v27 = vrot.slane %v10533_v26, 5 }
  0x84   : > { %v1510_v63 = vrot.slane %v1508_v46, 5  ;;  %9209 = vmatprep.subr.bf16.mxu0 %v10307_v55  ;;  %v1188_v46 = vld [vmem:[%s10775_s16 + $0x178] sm:$0x11] }
  0x85   : > { %v1516_v0 = vrot.slane %v1514_v47, 5  ;;  %v1545_v47 = vor.u32 %v1544_v38, %v1540_v36  ;;  %v1572_v59 = vshll.u32 %v1188_v46, 16  ;;  %v10535_v38 = vld [vmem:[%s10775_s16 + $0x40] sm:$0x11] }
  0x86   : > { %v1511_v13 = vor.u32 %v1510_v63, %v1507_v58  ;;  %v2481_v39 = vrot.slane %v10535_v38, 5  ;;  %v11044_v46 = vld [vmem:[%s14369_s3] ss:$0 sm:$0xff] }
  0x87   : > { %9210 = vmatpush3.bf16.msra.mxu0 %v10309_v61  ;;  %v1521_v16 = vor.u32 %v1520_v1, %v1516_v0  ;;  %v1546_v55 = vrot.slane %v1545_v47, 4  ;;  %v1569_v61 = vor.u32 %v1568_v57, %v1564_v56  ;;  %v2414_v47 = vld [vmem:[%s10775_s16 + $0x48] sm:$0xee]  ;;  %v10537_v57 = vld [vmem:[%s10775_s16 + $0x58] sm:$0x11]  ;;  %v11095_v38 = vld [vmem:[%s10775_s16 + $0x80] sm:$0xff] }
  0x88   : > { %9211 = vmatprep.subr.bf16.mxu0 %v10311_v6  ;;  %v1512_v21 = vrot.slane %v1511_v13, 4  ;;  %v2464_v6 = vrot.slane %v11000_v5, 5  ;;  %v8093_v13 = vrot.slane %v2411_v8, 9 }
  0x89   : > { %v1522_v23 = vrot.slane %v1521_v16, 4  ;;  %v2467_v16 = vrot.slane %v10531_v15, 5 }
  0x8a   : > { %1922 = vmatmul.mubr.bf16.gmra.mxu0 %v8011_v10  ;;  %v1497_v10 = vor.u32 %v1496_v53, %v1492_v52  ;;  %v1517_v48 = vsel %vm10805_vm4, %v1512_v21, %v1516_v0  ;;  %v1555_v53 = vrot.slane %v1553_v40, 4  ;;  %v1551_v0 = vsel %vm10805_vm4, %v1546_v55, %v1550_v51 }
  0x8b   : > { %1929 = vmatprep.mubr.bf16.mxu0 %v8014_v12  ;;  %v1502_v12 = vrot.slane %v1500_v54, 5  ;;  %9212 = vmatpush3.bf16.msra.mxu0 %v10313_v11  ;;  %v1527_v49 = vsel %vm10805_vm4, %v1522_v23, %v1526_v24  ;;  %v2466_v14 = vrot.slane %v2464_v6, 4  ;;  %v2465_v21 = vsel %vm11008_vm7, %v8093_v13, %v2464_v6  ;;  %v11061_v6 = vld [vmem:[%s10775_s16 + $0x68] sm:$0xff] }
  0x8c   : > { %v1498_v20 = vrot.slane %v1497_v10, 4  ;;  %v8024_v60 = vcombine.high %v1517_v48, %v1527_v49  ;;  %v8023_v1 = vcombine.low %v1517_v48, %v1527_v49  ;;  %v8096_v55 = vrot.slane %v2414_v47, 9  ;;  %v10298_v47 = vld [vmem:[%s14372_s6 + $0x60] sm:$0xff]  }
  0x8e   : > { %v1503_v34 = vsel %vm10805_vm4, %v1498_v20, %v1502_v12  ;;  %v14448_v12 = vmov 0  ;;  %v2412_v20 = vld [vmem:[%s10775_s16 + $0x18] sm:$0xee] }
  0x8f   : > { %v8022_v44 = vcombine.high %v1493_v28, %v1503_v34  ;;  %v8021_v52 = vcombine.low %v1493_v28, %v1503_v34  ;;  %v14449_v12 = vsel %vm11008_vm7, 4294967295, %v14448_v12  ;;  %v8094_v24 = vrot.slane %v2412_v20, 9  ;;  %v2413_v28 = vld [vmem:[%s10775_s16 + $0x30] sm:$0xee] }
  0x90   : > { %14450 = vst [vmem:[#allocation2_spill] sm:$0xff] %v14449_v12 }
  0x92   : > { %1930 = vmatmul.mubr.bf16.gmra.mxu0 %v8013_v41  ;;  %v1556_v41 = vshll.u32 %v1139_v32, 16  ;;  %v11028_v32 = vld [vmem:[%s10775_s16 + $0x38] sm:$0xff] }
  0x93   : > { %1937 = vmatprep.mubr.bf16.mxu0 %v8016_v45  ;;  %v1535_v45 = vor.u32 %v1534_v35, %v1531_v25  ;;  %v2473_v25 = vrot.slane %v2471_v18, 4  ;;  %v2478_v33 = vrot.slane %v11028_v32, 5 }
  0x94   : > { %v1558_v54 = vrot.slane %v1556_v41, 5 }
  0x95   : > { %v1536_v50 = vrot.slane %v1535_v45, 4  ;;  %v2475_v31 = vsel %vm11008_vm7, %v2473_v25, %v2474_v27  ;;  %v10292_v27 = vld [vmem:[%s14372_s6 + $0x30] sm:$0xff]  }
  0x96   : > { %v1559_v58 = vor.u32 %v1558_v54, %v1555_v53 }
  0x97   : > { %v1541_v63 = vsel %vm10805_vm4, %v1536_v50, %v1540_v36  ;;  %v8095_v36 = vrot.slane %v2413_v28, 9 }
  0x98   : > { %v1560_v2 = vrot.slane %v1559_v58, 4  ;;  %v8026_v7 = vcombine.high %v1541_v63, %v1551_v0  ;;  %v8025_v11 = vcombine.low %v1541_v63, %v1551_v0 }
  0x99   : > { %v2479_v42 = vsel %vm11008_vm7, %v8095_v36, %v2478_v33 }
  0x9a   : > { %1938 = vmatmul.mubr.bf16.gmra.mxu0 %v8015_v3  ;;  %v1574_v3 = vrot.slane %v1572_v59, 5  ;;  %v1565_v9 = vsel %vm10805_vm4, %v1560_v2, %v1564_v56  ;;  %v2488_v59 = vrot.slane %v10537_v57, 5 }
  0x9b   : > { %1945 = vmatprep.mubr.bf16.mxu0 %v8018_v4  ;;  %v1570_v4 = vrot.slane %v1569_v61, 4 }
  0x9d   : > { %v1575_v10 = vsel %vm10805_vm4, %v1570_v4, %v1574_v3 }
  0x9e   : > { %v8028_v19 = vcombine.high %v1565_v9, %v1575_v10  ;;  %v8027_v23 = vcombine.low %v1565_v9, %v1575_v10  ;;  %v10288_v9 = vld [vmem:[%s14372_s6 + $0x38] sm:$0xff]   ;;  %v2415_v10 = vld [vmem:[%s10775_s16 + $0x60] sm:$0xee] }
  0xa2   : > { %1946 = vmatmul.mubr.bf16.gmra.mxu0 %v8017_v22  ;;  %v2468_v22 = vsel %vm11008_vm7, %v2466_v14, %v2467_v16  ;;  %v10290_v14 = vld [vmem:[%s14372_s6 + $0x70] sm:$0xff]  }
  0xa3   : > { %1953 = vmatprep.mubr.bf16.mxu0 %v8020_v30  ;;  %v8142_v29 = vcombine.high %v2465_v21, %v2468_v22  ;;  %v2472_v30 = vsel %vm11008_vm7, %v8094_v24, %v2471_v18  ;;  %v8141_v34 = vcombine.low %v2465_v21, %v2468_v22  ;;  %v8097_v22 = vrot.slane %v2415_v10, 9  ;;  %v10539_v24 = vld [vmem:[%s10775_s16 + $0x70] sm:$0x11] }
  0xa4   : > { %v8144_v35 = vcombine.high %v2472_v30, %v2475_v31  ;;  %v8143_v49 = vcombine.low %v2472_v30, %v2475_v31  ;;  %v2495_v25 = vrot.slane %v10539_v24, 5  ;;  %v10294_v31 = vld [vmem:[%s14372_s6 + $0x68] sm:$0xff]  }
  0xaa   : > { %1954 = vmatmul.mubr.bf16.gmra.mxu0 %v8019_v37  ;;  %v2480_v37 = vrot.slane %v2478_v33, 4 }
  0xab   : > { %1961 = vmatprep.mubr.bf16.mxu0 %v8022_v44  ;;  %v11038_v44 = vld [vmem:[%s10775_s16 + $0x50] sm:$0xff] }
  0xac   : > { %v2482_v43 = vsel %vm11008_vm7, %v2480_v37, %v2481_v39  ;;  %v2485_v45 = vrot.slane %v11038_v44, 5  ;;  %v2499_v39 = vrot.slane %v11095_v38, 5 }
  0xad   : > { %v8145_v15 = vcombine.low %v2479_v42, %v2482_v43 }
  0xae   : > { %v2487_v56 = vrot.slane %v2485_v45, 4  ;;  %v11054_v3 = vsel %vm11008_vm7, %v8096_v55, %v2485_v45  ;;  %v2501_v55 = vrot.slane %v2499_v39, 4 }
  0xb0   : > { %v11058_v4 = vsel %vm11008_vm7, %v2487_v56, %v2488_v59  ;;  %v10541_v56 = vld [vmem:[%s10775_s16 + $0x88] sm:$0x11] }
  0xb1   : > { %v2502_v57 = vrot.slane %v10541_v56, 5 }
  0xb2   : > { %1962 = vmatmul.mubr.bf16.gmra.mxu0 %v8021_v52  ;;  %v8146_v52 = vcombine.high %v2479_v42, %v2482_v43  ;;  %v2416_v42 = vld [vmem:[%s10775_s16 + $0x78] sm:$0xee] }
  0xb3   : > { %1969 = vmatprep.mubr.bf16.mxu0 %v8024_v60 }
  0xba   : > { %1970 = vmatmul.mubr.bf16.gmra.mxu0 %v8023_v1 }
  0xbb   : > { %1977 = vmatprep.mubr.bf16.mxu0 %v8026_v7  ;;  %v2492_v7 = vrot.slane %v11061_v6, 5 }
  0xbd   : > { %v11088_v36 = vsel %vm11008_vm7, %v8097_v22, %v2492_v7 }
  0xc2   : > { %1978 = vmatmul.mubr.bf16.gmra.mxu0 %v8025_v11 }
  0xc3   : > { %1985 = vmatprep.mubr.bf16.mxu0 %v8028_v19  ;;  %v8148_v19 = vcombine.high %v11054_v3, %v11058_v4 }
  0xca   : > { %1986 = vmatmul.mubr.bf16.gmra.mxu0 %v8027_v23  ;;  %v2494_v23 = vrot.slane %v2492_v7, 4  ;;  %v11128_v7 = vsel %vm11008_vm7, %v2501_v55, %v2502_v57 }
  0xcb   : > { %2863 = vmatprep.mubr.bf16.mxu0 %v8142_v29 }
  0xcc   : > { %v11092_v37 = vsel %vm11008_vm7, %v2494_v23, %v2495_v25 }
  0xd2   : > { %v10023_v40 = vpop.f32.mrf.mxu0  ;;  %2864 = vmatmul.mubr.bf16.vlgmr.msra.gmra.mxu0 %v8141_v34 }
  0xd3   : > { %2871 = vmatprep.mubr.bf16.mxu0 %v8144_v35  ;;  %v678_v53 = vadd.f32 %v10023_v40, %v11044_v46 }
  0xd4   : > { %v669_v41 = vpop.f32.mrf.mxu0 }
  0xd5   : > { %v670_v50 = vadd.f32 %v11044_v46, %v669_v41  ;;  %v798_v1 = vmax.f32 %v678_v53, 0.0  ;;  %v10296_v41 = vld [vmem:[%s14372_s6 + $0x28] sm:$0xff]  }
  0xd6   : > { %v10024_v48 = vpop.f32.mrf.mxu0 }
  0xd7   : > { %v681_v51 = vadd.f32 %v10024_v48, %v11044_v46  ;;  %v796_v63 = vmax.f32 %v670_v50, 0.0  ;;  %v8147_v48 = vcombine.low %v11054_v3, %v11058_v4 }
  0xd8   : > { %v672_v54 = vpop.f32.mrf.mxu0 }
  0xd9   : > { %v673_v60 = vadd.f32 %v11044_v46, %v672_v54  ;;  %v799_v58 = vmax.f32 %v681_v51, 0.0  ;;  %v8150_v51 = vcombine.high %v11088_v36, %v11092_v37  ;;  %v8098_v54 = vrot.slane %v2416_v42, 9 }
  0xda   : > { %v10027_v61 = vpop.f32.mrf.mxu0  ;;  %2872 = vmatmul.mubr.bf16.gmra.mxu0 %v8143_v49 }
  0xdb   : > { %v797_v0 = vmax.f32 %v673_v60, 0.0  ;;  %2879 = vmatprep.mubr.bf16.mxu0 %v8146_v52  ;;  %v829_v11 = vpack.c.bf16 %v799_v58, %v798_v1  ;;  %v694_v20 = vadd.f32 %v10027_v61, %v11044_v46  ;;  %v10300_v60 = vld [vmem:[%s14372_s6 + $0x20] sm:$0xff]   ;;  %v11124_v4 = vsel %vm11008_vm7, %v8098_v54, %v2499_v39 }
  0xdc   : > { %v685_v2 = vpop.f32.mrf.mxu0 }
  0xdd   : > { %v828_v8 = vpack.c.bf16 %v797_v0, %v796_v63  ;;  %v686_v16 = vadd.f32 %v11044_v46, %v685_v2  ;;  %v802_v34 = vmax.f32 %v694_v20, 0.0  ;;  %v10302_v63 = vld [vmem:[%s14372_s6 + $0x58] sm:$0xff]  }
  0xde   : > { %v10028_v13 = vpop.f32.mrf.mxu0 }
  0xdf   : > { %v697_v18 = vadd.f32 %v10028_v13, %v11044_v46  ;;  %10057 = vmatprep.mubr.msk.bf16.mxu1 %vm867_vm8, %v828_v8  ;;  %v800_v33 = vmax.f32 %v686_v16, 0.0  ;;  %v11131_v8 = vld [vmem:[%s10775_s16 + $0x98] sm:$0xff]  ;;  %v2417_v13 = vld [vmem:[%s10775_s16 + $0x90] sm:$0xee] }
  0xe0   : > { %v688_v21 = vpop.f32.mrf.mxu0  ;;  %10058 = vmatmul.mubr.msk.bf16.vlgmr.msra.gmra.mxu1 %vm867_vm8, %v829_v11  ;;  %v10304_v11 = vld [vmem:[%s14372_s6 + $0x18] sm:$0xff]   ;;  %v10306_v16 = vld [vmem:[%s14372_s6 + $0x50] sm:$0xff]   ;;  %v8099_v24 = vrot.slane %v2417_v13, 9 }
  0xe1   : > { %v689_v26 = vadd.f32 %v11044_v46, %v688_v21  ;;  %9086 = vmatpush3.bf16.msra.mxu1 %v10288_v9  ;;  %v803_v29 = vmax.f32 %v697_v18, 0.0  ;;  %v2506_v9 = vrot.slane %v11131_v8, 5  ;;  %v8149_v18 = vcombine.low %v11088_v36, %v11092_v37 }
  0xe2   : > { %v10031_v30 = vpop.f32.mrf.mxu0  ;;  %9087 = vmatprep.subr.bf16.mxu1 %v10290_v14  ;;  %2880 = vmatmul.mubr.bf16.gmra.mxu0 %v8145_v15  ;;  %v8152_v21 = vcombine.high %v11124_v4, %v11128_v7 }
  0xe3   : > { %v801_v28 = vmax.f32 %v689_v26, 0.0  ;;  %2887 = vmatprep.mubr.bf16.mxu0 %v8148_v19  ;;  %v831_v43 = vpack.c.bf16 %v803_v29, %v802_v34  ;;  %v710_v52 = vadd.f32 %v10031_v30, %v11044_v46  ;;  %v2508_v25 = vrot.slane %v2506_v9, 4  ;;  %v10543_v26 = vld [vmem:[%s10775_s16 + $0xa0] sm:$0x11]  ;;  %v10308_v30 = vld [vmem:[%s14372_s6 + $0x10] sm:$0xff]  }
  0xe4   : > { %v701_v35 = vpop.f32.mrf.mxu0  ;;  %v11160_v39 = vsel %vm11008_vm7, %v8099_v24, %v2506_v9 }
  0xe5   : > { %v830_v40 = vpack.c.bf16 %v801_v28, %v800_v33  ;;  %9088 = vmatpush3.bf16.msra.mxu1 %v10292_v27  ;;  %v702_v49 = vadd.f32 %v11044_v46, %v701_v35  ;;  %v806_v2 = vmax.f32 %v710_v52, 0.0  ;;  %v2509_v27 = vrot.slane %v10543_v26, 5  ;;  %v10310_v28 = vld [vmem:[%s14372_s6 + $0x48] sm:$0xff]  }
  0xe6   : > { %v10032_v45 = vpop.f32.mrf.mxu0  ;;  %9089 = vmatprep.subr.bf16.mxu1 %v10294_v31 }
  0xe7   : > { %v713_v50 = vadd.f32 %v10032_v45, %v11044_v46  ;;  %10061 = vmatprep.mubr.msk.bf16.mxu1 %vm867_vm8, %v830_v40  ;;  %v804_v0 = vmax.f32 %v702_v49, 0.0  ;;  %v11164_v40 = vsel %vm11008_vm7, %v2508_v25, %v2509_v27  ;;  %v10312_v45 = vld [vmem:[%s14372_s6 + $0x8] sm:$0xff]   ;;  %v10347_v27 = vld [vmem:[%s14372_s6 + $0x230] sm:$0xff]  }
  0xe8   : > { %v704_v53 = vpop.f32.mrf.mxu0  ;;  %10062 = vmatmul.mubr.msk.bf16.gmra.mxu1 %vm867_vm8, %v831_v43  ;;  %v8154_v54 = vcombine.high %v11160_v39, %v11164_v40 }
  0xe9   : > { %v705_v59 = vadd.f32 %v11044_v46, %v704_v53  ;;  %9090 = vmatpush3.bf16.msra.mxu1 %v10296_v41  ;;  %v807_v58 = vmax.f32 %v713_v50, 0.0  ;;  %v11167_v41 = vld [vmem:[%s10775_s16 + $0xb0] sm:$0xff]  ;;  %v10314_v50 = vld [vmem:[%s14372_s6 + $0x40] sm:$0xff]  }
  0xea   : > { %v10035_v61 = vpop.f32.mrf.mxu0  ;;  %9091 = vmatprep.subr.bf16.mxu1 %v10298_v47  ;;  %2888 = vmatmul.mubr.bf16.gmra.mxu0 %v8147_v48  ;;  %v2513_v42 = vrot.slane %v11167_v41, 5  ;;  %v2418_v47 = vld [vmem:[%s10775_s16 + $0xa8] sm:$0xee] }
  0xeb   : > { %v805_v1 = vmax.f32 %v705_v59, 0.0  ;;  %2895 = vmatprep.mubr.bf16.mxu0 %v8150_v51  ;;  %v833_v14 = vpack.c.bf16 %v807_v58, %v806_v2  ;;  %v726_v22 = vadd.f32 %v10035_v61, %v11044_v46  ;;  %v8151_v51 = vcombine.low %v11124_v4, %v11128_v7  ;;  %v10340_v61 = vld [vmem:[%s14372_s6 + $0x278] sm:$0xff]  }
  0xec   : > { %v717_v3 = vpop.f32.mrf.mxu0  ;;  %v8100_v57 = vrot.slane %v2418_v47, 9  ;;  %v2515_v59 = vrot.slane %v2513_v42, 4  ;;  %9421 = vmatprep.subr.bf16.mxu0 %v10340_v61  ;;  %v10357_v61 = vld [vmem:[%s14372_s6 + $0x220] sm:$0xff]  }
  0xed   : > { %v832_v10 = vpack.c.bf16 %v805_v1, %v804_v0  ;;  %9092 = vmatpush3.bf16.msra.mxu1 %v10300_v60  ;;  %v718_v19 = vadd.f32 %v11044_v46, %v717_v3  ;;  %v810_v36 = vmax.f32 %v726_v22, 0.0  ;;  %v10545_v60 = vld [vmem:[%s10775_s16 + $0xb8] sm:$0x11]  ;;  %v10315_v1 = vld [vmem:[%s14372_s6] sm:$0xff]  }
  0xee   : > { %v10036_v15 = vpop.f32.mrf.mxu0  ;;  %9093 = vmatprep.subr.bf16.mxu1 %v10302_v63  ;;  %v2516_v58 = vrot.slane %v10545_v60, 5  ;;  %v10341_v63 = vld [vmem:[%s14372_s6 + $0x238] sm:$0xff]  }
  0xef   : > { %v729_v20 = vadd.f32 %v10036_v15, %v11044_v46  ;;  %10065 = vmatprep.mubr.msk.bf16.mxu1 %vm867_vm8, %v832_v10  ;;  %v808_v34 = vmax.f32 %v718_v19, 0.0  ;;  %9422 = vmatpush3.bf16.msra.mxu0 %v10341_v63  ;;  %v10344_v22 = vld [vmem:[%s14372_s6 + $0x1f8] sm:$0xff]  }
  0xf0   : > { %v720_v23 = vpop.f32.mrf.mxu0  ;;  %10066 = vmatmul.mubr.msk.bf16.gmra.mxu1 %vm867_vm8, %v833_v14  ;;  %v11203_v13 = vsel %vm11008_vm7, %v2515_v59, %v2516_v58  ;;  %v11206_v14 = vld [vmem:[%s10775_s16 + $0xc8] sm:$0xff] }
  0xf1   : > { %v721_v29 = vadd.f32 %v11044_v46, %v720_v23  ;;  %9094 = vmatpush3.bf16.msra.mxu1 %v10304_v11  ;;  %v811_v31 = vmax.f32 %v729_v20, 0.0  ;;  %v11199_v11 = vsel %vm11008_vm7, %v8100_v57, %v2513_v42  ;;  %v2520_v15 = vrot.slane %v11206_v14, 5  ;;  %v10345_v23 = vld [vmem:[%s14372_s6 + $0x270] sm:$0xff]   ;;  %v10355_v57 = vld [vmem:[%s14372_s6 + $0x260] sm:$0xff]  }
  0xf2   : > { %v10039_v33 = vpop.f32.mrf.mxu0  ;;  %9095 = vmatprep.subr.bf16.mxu1 %v10306_v16  ;;  %2896 = vmatmul.mubr.bf16.gmra.mxu0 %v8149_v18  ;;  %v2419_v18 = vld [vmem:[%s10775_s16 + $0xc0] sm:$0xee]  ;;  %v8156_v26 = vcombine.high %v11199_v11, %v11203_v13 }
  0xf3   : > { %v809_v35 = vmax.f32 %v721_v29, 0.0  ;;  %2903 = vmatprep.mubr.bf16.mxu0 %v8152_v21  ;;  %v835_v48 = vpack.c.bf16 %v811_v31, %v810_v36  ;;  %v742_v55 = vadd.f32 %v10039_v33, %v11044_v46  ;;  %v8153_v21 = vcombine.low %v11160_v39, %v11164_v40  ;;  %9423 = vmatprep.subr.bf16.mxu0 %v10345_v23 }
  0xf4   : > { %v733_v37 = vpop.f32.mrf.mxu0  ;;  %v8101_v31 = vrot.slane %v2419_v18, 9  ;;  %v2522_v33 = vrot.slane %v2520_v15, 4  ;;  %9424 = vmatpush3.bf16.msra.mxu0 %v10347_v27 }
  0xf5   : > { %v834_v43 = vpack.c.bf16 %v809_v35, %v808_v34  ;;  %9096 = vmatpush3.bf16.msra.mxu1 %v10308_v30  ;;  %v734_v52 = vadd.f32 %v11044_v46, %v733_v37  ;;  %v814_v9 = vmax.f32 %v742_v55, 0.0  ;;  %v10349_v35 = vld [vmem:[%s14372_s6 + $0x268] sm:$0xff]  }
  0xf6   : > { %v10040_v49 = vpop.f32.mrf.mxu0  ;;  %9097 = vmatprep.subr.bf16.mxu1 %v10310_v28  ;;  %v10547_v28 = vld [vmem:[%s10775_s16 + $0xd0] sm:$0x11]  ;;  %9425 = vmatprep.subr.bf16.mxu0 %v10349_v35 }
  0xf7   : > { %v745_v53 = vadd.f32 %v10040_v49, %v11044_v46  ;;  %10069 = vmatprep.mubr.msk.bf16.mxu1 %vm867_vm8, %v834_v43  ;;  %v812_v4 = vmax.f32 %v734_v52, 0.0  ;;  %v2523_v34 = vrot.slane %v10547_v28, 5  ;;  %v10351_v43 = vld [vmem:[%s14372_s6 + $0x228] sm:$0xff]  }
  0xf8   : > { %v736_v56 = vpop.f32.mrf.mxu0  ;;  %10070 = vmatmul.mubr.msk.bf16.gmra.mxu1 %vm867_vm8, %v835_v48  ;;  %v11238_v48 = vsel %vm11008_vm7, %v8101_v31, %v2520_v15  ;;  %9426 = vmatpush3.bf16.msra.mxu0 %v10351_v43  ;;  %v10369_v43 = vld [vmem:[%s14372_s6 + $0x248] sm:$0xff]  }
  0xf9   : > { %v737_v0 = vadd.f32 %v11044_v46, %v736_v56  ;;  %9098 = vmatpush3.bf16.msra.mxu1 %v10312_v45  ;;  %v815_v2 = vmax.f32 %v745_v53, 0.0  ;;  %v11242_v49 = vsel %vm11008_vm7, %v2522_v33, %v2523_v34  ;;  %v2420_v53 = vld [vmem:[%s10775_s16 + $0xd8] sm:$0xee]  ;;  %v8155_v56 = vcombine.low %v11199_v11, %v11203_v13  ;;  %9427 = vmatprep.subr.bf16.mxu0 %v10355_v57  ;;  %v10367_v34 = vld [vmem:[%s14372_s6 + $0x210] sm:$0xff]  }
  0xfa   : > { %v10043_v3 = vpop.f32.mrf.mxu0  ;;  %9099 = vmatprep.subr.bf16.mxu1 %v10314_v50  ;;  %2904 = vmatmul.mubr.bf16.gmra.mxu0 %v8151_v51  ;;  %v11245_v50 = vld [vmem:[%s10775_s16 + $0xe0] sm:$0xff]  ;;  %v8158_v58 = vcombine.high %v11238_v48, %v11242_v49 }
  0xfb   : > { %v813_v7 = vmax.f32 %v737_v0, 0.0  ;;  %2911 = vmatprep.mubr.bf16.mxu0 %v8154_v54  ;;  %v837_v19 = vpack.c.bf16 %v815_v2, %v814_v9  ;;  %v758_v29 = vadd.f32 %v10043_v3, %v11044_v46  ;;  %v2527_v51 = vrot.slane %v11245_v50, 5  ;;  %v10549_v3 = vld [vmem:[%s10775_s16 + $0xe8] sm:$0x11] }
  0xfc   : > { %v749_v10 = vpop.f32.mrf.mxu0  ;;  %9428 = vmatpush3.bf16.msra.mxu0 %v10357_v61 }
  0xfd   : > { %v836_v16 = vpack.c.bf16 %v813_v7, %v812_v4  ;;  %9100 = vmatpush3.bf16.msra.mxu1 %v10315_v1  ;;  %v750_v24 = vadd.f32 %v11044_v46, %v749_v10  ;;  %v818_v45 = vmax.f32 %v758_v29, 0.0  ;;  %v8102_v1 = vrot.slane %v2420_v53, 9  ;;  %v10359_v7 = vld [vmem:[%s14372_s6 + $0x258] sm:$0xff]  }
  0xfe   : > { %v10044_v20 = vpop.f32.mrf.mxu0  ;;  %9309 = vmatprep.subr.bf16.mxu1 %v10344_v22  ;;  %v2529_v2 = vrot.slane %v2527_v51, 4  ;;  %v2530_v4 = vrot.slane %v10549_v3, 5  ;;  %v11281_v22 = vld [vmem:[%s10775_s16 + $0xf8] sm:$0xff]  ;;  %9429 = vmatprep.subr.bf16.mxu0 %v10359_v7  ;;  %v8157_v29 = vcombine.low %v11238_v48, %v11242_v49  ;;  %v10375_v3 = vld [vmem:[%s14372_s6 + $0x240] sm:$0xff]  }
  0xff   : > { %v761_v25 = vadd.f32 %v10044_v20, %v11044_v46  ;;  %10073 = vmatprep.mubr.msk.bf16.mxu1 %vm867_vm8, %v836_v16  ;;  %v816_v40 = vmax.f32 %v750_v24, 0.0  ;;  %v10361_v16 = vld [vmem:[%s14372_s6 + $0x218] sm:$0xff]   ;;  %v11274_v20 = vsel %vm11008_vm7, %v8102_v1, %v2527_v51  ;;  %v2534_v23 = vrot.slane %v11281_v22, 5  ;;  %v10377_v7 = vld [vmem:[%s14372_s6 + $0x200] sm:$0xff]  }
 0x100   : > { %v752_v30 = vpop.f32.mrf.mxu0  ;;  %10074 = vmatmul.mubr.msk.bf16.gmra.mxu1 %vm867_vm8, %v837_v19  ;;  %9430 = vmatpush3.bf16.msra.mxu0 %v10361_v16 }
 0x101   : > { %v753_v36 = vadd.f32 %v11044_v46, %v752_v30  ;;  %v819_v37 = vmax.f32 %v761_v25, 0.0  ;;  %v2421_v25 = vld [vmem:[%s10775_s16 + $0xf0] sm:$0xee] }
 0x102   : > { %v10047_v39 = vpop.f32.mrf.mxu0  ;;  %2912 = vmatmul.mubr.bf16.gmra.mxu0 %v8153_v21  ;;  %v11278_v21 = vsel %vm11008_vm7, %v2529_v2, %v2530_v4  ;;  %v10365_v30 = vld [vmem:[%s14372_s6 + $0x250] sm:$0xff]  }
 0x103   : > { %v817_v42 = vmax.f32 %v753_v36, 0.0  ;;  %2919 = vmatprep.mubr.bf16.mxu0 %v8156_v26  ;;  %v839_v54 = vpack.c.bf16 %v819_v37, %v818_v45  ;;  %v774_v63 = vadd.f32 %v10047_v39, %v11044_v46  ;;  %v8160_v28 = vcombine.high %v11274_v20, %v11278_v21  ;;  %9431 = vmatprep.subr.bf16.mxu0 %v10365_v30  ;;  %v2423_v30 = vld [vmem:[%s10775_s16 + $0x120] sm:$0xee] }
 0x104   : > { %v765_v47 = vpop.f32.mrf.mxu0  ;;  %v8103_v37 = vrot.slane %v2421_v25, 9  ;;  %v2536_v39 = vrot.slane %v2534_v23, 4  ;;  %9432 = vmatpush3.bf16.msra.mxu0 %v10367_v34  ;;  %v8159_v2 = vcombine.low %v11274_v20, %v11278_v21 }
 0x105   : > { %v838_v52 = vpack.c.bf16 %v817_v42, %v816_v40  ;;  %v766_v59 = vadd.f32 %v11044_v46, %v765_v47  ;;  %v822_v18 = vmax.f32 %v774_v63, 0.0  ;;  %v10551_v40 = vld [vmem:[%s10775_s16 + $0x100] sm:$0x11]  ;;  %9433 = vmatprep.subr.bf16.mxu0 %v10369_v43  ;;  %v2422_v63 = vld [vmem:[%s10775_s16 + $0x108] sm:$0xee]  ;;  %v10350_v43 = vld [vmem:[%s14372_s6 + $0x1b0] sm:$0xff]  }
 0x106   : > { %v10048_v55 = vpop.f32.mrf.mxu0  ;;  %v2537_v42 = vrot.slane %v10551_v40, 5 }
 0x107   : > { %v777_v60 = vadd.f32 %v10048_v55, %v11044_v46  ;;  %10077 = vmatprep.mubr.msk.bf16.mxu1 %vm867_vm8, %v838_v52  ;;  %v820_v13 = vmax.f32 %v766_v59, 0.0  ;;  %v10371_v52 = vld [vmem:[%s14372_s6 + $0x208] sm:$0xff]   ;;  %v2535_v55 = vsel %vm11008_vm7, %v8103_v37, %v2534_v23 }
 0x108   : > { %v768_v0 = vpop.f32.mrf.mxu0  ;;  %10078 = vmatmul.mubr.msk.bf16.gmra.mxu1 %vm867_vm8, %v839_v54  ;;  %9434 = vmatpush3.bf16.msra.mxu0 %v10371_v52 }
 0x109   : > { %v769_v9 = vadd.f32 %v11044_v46, %v768_v0  ;;  %v823_v10 = vmax.f32 %v777_v60, 0.0  ;;  %v10553_v60 = vld [vmem:[%s10775_s16] sm:$0xff]  ;;  %9435 = vmatprep.subr.bf16.mxu0 %v10375_v3 }
 0x10a   : > { %v10051_v11 = vpop.f32.mrf.mxu0  ;;  %2920 = vmatmul.mubr.bf16.gmra.mxu0 %v8155_v56  ;;  %v11313_v56 = vld [vmem:[%s10775_s16 + $0x110] sm:$0xff] }
 0x10b   : > { %v821_v15 = vmax.f32 %v769_v9, 0.0  ;;  %2927 = vmatprep.mubr.bf16.mxu0 %v8158_v58  ;;  %v841_v26 = vpack.c.bf16 %v823_v10, %v822_v18  ;;  %v790_v35 = vadd.f32 %v10051_v11, %v11044_v46  ;;  %v2541_v57 = vrot.slane %v11313_v56, 5 }
 0x10c   : > { %v781_v19 = vpop.f32.mrf.mxu0  ;;  %v8046_v58 = vcombine.high %v10553_v60, %v11000_v5  ;;  %v8104_v10 = vrot.slane %v2422_v63, 9  ;;  %9436 = vmatpush3.bf16.msra.mxu0 %v10377_v7  ;;  %v10358_v63 = vld [vmem:[%s14372_s6 + $0x1e0] sm:$0xff]  }
 0x10d   : > { %v840_v24 = vpack.c.bf16 %v821_v15, %v820_v13  ;;  %v782_v31 = vadd.f32 %v11044_v46, %v781_v19  ;;  %v826_v53 = vmax.f32 %v790_v35, 0.0  ;;  %v2543_v11 = vrot.slane %v2541_v57, 4  ;;  %v10554_v13 = vld [vmem:[%s10775_s16 + $0x118] sm:$0x11] }
 0x10e   : > { %v10052_v27 = vpop.f32.mrf.mxu0  ;;  %v2544_v15 = vrot.slane %v10554_v13, 5  ;;  %v8045_v19 = vcombine.low %v10553_v60, %v11000_v5  ;;  %v2542_v21 = vsel %vm11008_vm7, %v8104_v10, %v2541_v57  ;;  %v10346_v5 = vld [vmem:[%s14372_s6 + $0x1b8] sm:$0xff]   ;;  %v10360_v10 = vld [vmem:[%s14372_s6 + $0x1a0] sm:$0xff]  }
 0x10f   : > { %v793_v33 = vadd.f32 %v10052_v27, %v11044_v46  ;;  %10081 = vmatprep.mubr.msk.bf16.mxu1 %vm867_vm8, %v840_v24  ;;  %v824_v49 = vmax.f32 %v782_v31, 0.0  ;;  %v11340_v24 = vld [vmem:[%s10775_s16 + $0x128] sm:$0xff]  ;;  %v10364_v13 = vld [vmem:[%s14372_s6 + $0x1d8] sm:$0xff]  }
 0x110   : > { %v784_v36 = vpop.f32.mrf.mxu0  ;;  %10082 = vmatmul.mubr.msk.bf16.gmra.mxu1 %vm867_vm8, %v841_v26  ;;  %v2545_v23 = vsel %vm11008_vm7, %v2543_v11, %v2544_v15  ;;  %v2548_v25 = vrot.slane %v11340_v24, 5  ;;  %v10556_v26 = vld [vmem:[%s10775_s16 + $0x18] sm:$0xff] }
 0x111   : > { %v785_v45 = vadd.f32 %v11044_v46, %v784_v36  ;;  %v827_v47 = vmax.f32 %v793_v33, 0.0  ;;  %v2538_v46 = vsel %vm11008_vm7, %v2536_v39, %v2537_v42  ;;  %v8048_v27 = vcombine.high %v10556_v26, %v11014_v17  ;;  %v10557_v39 = vld [vmem:[%s10775_s16 + $0x130] sm:$0x11]  ;;  %v11393_v15 = vld [vmem:[%s10775_s16 + $0x158] sm:$0xff] }
 0x112   : > { %v8989_v48 = vpop.f32.mrf.mxu0  ;;  %2928 = vmatmul.mubr.bf16.gmra.mxu0 %v8157_v29  ;;  %v8162_v4 = vcombine.high %v2535_v55, %v2538_v46  ;;  %v8161_v33 = vcombine.low %v2535_v55, %v2538_v46  ;;  %v8164_v34 = vcombine.high %v2542_v21, %v2545_v23  ;;  %v8105_v36 = vrot.slane %v2423_v30, 9  ;;  %v10559_v55 = vld [vmem:[%s10775_s16 + $0x30] sm:$0xff] }
 0x113   : > { %v825_v51 = vmax.f32 %v785_v45, 0.0  ;;  %2935 = vmatprep.mubr.bf16.mxu0 %v8160_v28  ;;  %v843_v0 = vpack.c.bf16 %v827_v47, %v826_v53  ;;  %v10348_v28 = vld [vmem:[%s14372_s6 + $0x1f0] sm:$0xff]   ;;  %v2550_v37 = vrot.slane %v2548_v25, 4  ;;  %v2551_v40 = vrot.slane %v10557_v39, 5  ;;  %v10354_v47 = vld [vmem:[%s14372_s6 + $0x1e8] sm:$0xff]   ;;  %v11369_v53 = vld [vmem:[%s10775_s16 + $0x140] sm:$0xff] }
 0x114   : > { %v8990_v54 = vpop.f32.mrf.mxu0  ;;  %v8050_v46 = vcombine.high %v10559_v55, %v11028_v32 }
 0x115   : > { %v842_v59 = vpack.c.bf16 %v825_v51, %v824_v49  ;;  %v11318_v61 = vadd.f32 %v8990_v54, %v8989_v48  ;;  %v8047_v48 = vcombine.low %v10556_v26, %v11014_v17  ;;  %v2549_v51 = vsel %vm11008_vm7, %v8105_v36, %v2548_v25  ;;  %v10356_v17 = vld [vmem:[%s14372_s6 + $0x1a8] sm:$0xff]   ;;  %v2425_v25 = vld [vmem:[%s10775_s16 + $0x150] sm:$0xee]  ;;  %v10563_v36 = vld [vmem:[%s10775_s16 + $0x160] sm:$0x11] }
 0x116   : > { %v8992_v1 = vpop.f32.mrf.mxu0  ;;  %v2552_v52 = vsel %vm11008_vm7, %v2550_v37, %v2551_v40  ;;  %v2555_v54 = vrot.slane %v11369_v53, 5  ;;  %v10562_v26 = vld [vmem:[%s10775_s16 + $0x48] sm:$0xff]  ;;  %v2565_v37 = vrot.slane %v10563_v36, 5  ;;  %v11420_v40 = vld [vmem:[%s10775_s16 + $0x18] sm:$0xff] }
 0x117   : > { %10085 = vmatprep.mubr.msk.bf16.mxu1 %vm867_vm8, %v842_v59  ;;  %v2424_v59 = vld [vmem:[%s10775_s16 + $0x138] sm:$0xee] }
 0x118   : > { %10086 = vmatmul.mubr.msk.bf16.gmra.mxu1 %vm867_vm8, %v843_v0  ;;  %v8993_v9 = vpop.f32.mrf.mxu0  ;;  %v8166_v0 = vcombine.high %v2549_v51, %v2552_v52  ;;  %v2557_v3 = vrot.slane %v2555_v54, 4 }
 0x119   : > { %2282 = vmatprep.mubr.bf16.mxu1 %v8046_v58  ;;  %v11332_v16 = vadd.f32 %v8993_v9, %v8992_v1  ;;  %v8163_v58 = vcombine.low %v2542_v21, %v2545_v23 }
 0x11a   : > { %v8995_v18 = vpop.f32.mrf.mxu0  ;;  %2936 = vmatmul.mubr.bf16.gmra.mxu0 %v8159_v2  ;;  %v8106_v2 = vrot.slane %v2424_v59, 9  ;;  %v8051_v59 = vcombine.low %v10562_v26, %v11038_v44 }
 0x11b   : > { %2943 = vmatprep.mubr.bf16.mxu0 %v8162_v4  ;;  %v10560_v4 = vld [vmem:[%s10775_s16 + $0x148] sm:$0x11] }
 0x11c   : > { %v8996_v20 = vpop.f32.mrf.mxu0  ;;  %v2558_v7 = vrot.slane %v10560_v4, 5  ;;  %v11399_v21 = vsel %vm11008_vm7, %v8106_v2, %v2555_v54  ;;  %v11442_v54 = vld [vmem:[%s10775_s16 + $0x170] sm:$0xff] }
 0x11d   : > { %v11345_v29 = vadd.f32 %v8996_v20, %v8995_v18  ;;  %v2562_v18 = vrot.slane %v11393_v15, 5  ;;  %v11459_v4 = vld [vmem:[%s10775_s16 + $0x30] sm:$0xff] }
 0x11e   : > { %v8998_v31 = vpop.f32.mrf.mxu0  ;;  %v11403_v23 = vsel %vm11008_vm7, %v2557_v3, %v2558_v7 }
 0x120   : > { %2283 = vmatmul.mubr.bf16.vlgmr.msra.gmra.mxu1 %v8045_v19  ;;  %v8999_v35 = vpop.f32.mrf.mxu0  ;;  %v8049_v19 = vcombine.low %v10559_v55, %v11028_v32  ;;  %v10366_v32 = vld [vmem:[%s14372_s6 + $0x198] sm:$0xff]   ;;  %v2569_v55 = vrot.slane %v11442_v54, 5 }
 0x121   : > { %2290 = vmatprep.mubr.bf16.mxu1 %v8048_v27  ;;  %v11355_v42 = vadd.f32 %v8999_v35, %v8998_v31  ;;  %9310 = vmatpush3.bf16.msra.mxu1 %v10346_v5  ;;  %v8052_v27 = vcombine.high %v10562_v26, %v11038_v44  ;;  %v8165_v31 = vcombine.low %v2549_v51, %v2552_v52  ;;  %v2564_v35 = vrot.slane %v2562_v18, 4  ;;  %v10376_v44 = vld [vmem:[%s14372_s6 + $0x188] sm:$0xff]  }
 0x122   : > { %v9001_v45 = vpop.f32.mrf.mxu0  ;;  %2944 = vmatmul.mubr.bf16.gmra.mxu0 %v8161_v33  ;;  %9311 = vmatprep.subr.bf16.mxu1 %v10348_v28  ;;  %v10368_v33 = vld [vmem:[%s14372_s6 + $0x1d0] sm:$0xff]   ;;  %v8168_v28 = vcombine.high %v11399_v21, %v11403_v23 }
 0x123   : > { %2951 = vmatprep.mubr.bf16.mxu0 %v8164_v34  ;;  %v8107_v34 = vrot.slane %v2425_v25, 9  ;;  %v11439_v52 = vsel %vm11008_vm7, %v2564_v35, %v2565_v37  ;;  %v10566_v25 = vld [vmem:[%s10775_s16 + $0x178] sm:$0x11]  ;;  %v3615_v35 = vshll.u32 %v11459_v4, 16 }
 0x124   : > { %v9002_v49 = vpop.f32.mrf.mxu0  ;;  %v2572_v26 = vrot.slane %v10566_v25, 5 }
 0x125   : > { %v11374_v57 = vadd.f32 %v9002_v49, %v9001_v45  ;;  %9312 = vmatpush3.bf16.msra.mxu1 %v10350_v43  ;;  %v10370_v45 = vld [vmem:[%s14372_s6 + $0x190] sm:$0xff]   ;;  %v10374_v49 = vld [vmem:[%s14372_s6 + $0x1c8] sm:$0xff]   ;;  %v11435_v51 = vsel %vm11008_vm7, %v8107_v34, %v2562_v18  ;;  %v11469_v18 = vld [vmem:[%s10775_s16 + $0x38] sm:$0xff] }
 0x126   : > { %v9004_v60 = vpop.f32.mrf.mxu0  ;;  %9313 = vmatprep.subr.bf16.mxu1 %v10354_v47  ;;  %v11428_v47 = vld [vmem:[%s10775_s16 + $0x20] sm:$0xff]  ;;  %v3621_v36 = vshll.u32 %v11469_v18, 16  ;;  %v3625_v37 = vshrl.u32 %v11469_v18, 16 }
 0x127   : > { %14451 = vst [vmem:[#allocation3_spill] sm:$0xff] %v11374_v57  ;;  %v10379_v34 = vld [vmem:[%s14372_s6 + $0x180] sm:$0xff]  }
 0x128   : > { %2291 = vmatmul.mubr.bf16.gmra.mxu1 %v8047_v48  ;;  %v9005_v1 = vpop.f32.mrf.mxu0 }
 0x129   : > { %2298 = vmatprep.mubr.bf16.mxu1 %v8050_v46  ;;  %v11384_v9 = vadd.f32 %v9005_v1, %v9004_v60  ;;  %9314 = vmatpush3.bf16.msra.mxu1 %v10356_v17  ;;  %v3588_v46 = vshrl.u32 %v11420_v40, 16  ;;  %v2426_v60 = vld [vmem:[%s10775_s16 + $0x168] sm:$0xee]  ;;  %v10565_v1 = vld [vmem:[%s10775_s16 + $0x60] sm:$0xff] }
 0x12a   : > { %v9007_v11 = vpop.f32.mrf.mxu0  ;;  %2952 = vmatmul.mubr.bf16.gmra.mxu0 %v8163_v58  ;;  %9315 = vmatprep.subr.bf16.mxu1 %v10358_v63  ;;  %v3591_v58 = vshll.u32 %v11420_v40, 16  ;;  %v3597_v63 = vshll.u32 %v11428_v47, 16  ;;  %v8054_v2 = vcombine.high %v10565_v1, %v11061_v6 }
 0x12b   : > { %14452 = vst [vmem:[#allocation4_spill] sm:$0xff] %v11384_v9  ;;  %2959 = vmatprep.mubr.bf16.mxu0 %v8166_v0  ;;  %v3601_v0 = vshrl.u32 %v11428_v47, 16 }
 0x12c   : > { %v9008_v20 = vpop.f32.mrf.mxu0 }
 0x12d   : > { %v11408_v30 = vadd.f32 %v9008_v20, %v9007_v11  ;;  %9316 = vmatpush3.bf16.msra.mxu1 %v10360_v10  ;;  %v8167_v10 = vcombine.low %v11399_v21, %v11403_v23  ;;  %v8170_v11 = vcombine.high %v11435_v51, %v11439_v52  ;;  %v2571_v20 = vrot.slane %v2569_v55, 4 }
 0x12e   : > { %v9010_v5 = vpop.f32.mrf.mxu0  ;;  %9317 = vmatprep.subr.bf16.mxu1 %v10364_v13  ;;  %v10378_v13 = vld [vmem:[%s14372_s6 + $0x1c0] sm:$0xff]   ;;  %v3599_v21 = vrot.slane %v3597_v63, 5  ;;  %v3603_v23 = vrot.slane %v3601_v0, 4 }
 0x12f   : > { %14453 = vst [vmem:[#allocation5_spill] sm:$0xff] %v11408_v30 }
 0x130   : > { %2299 = vmatmul.mubr.bf16.gmra.mxu1 %v8049_v19  ;;  %v9011_v39 = vpop.f32.mrf.mxu0  ;;  %v8108_v19 = vrot.slane %v2426_v60, 9 }
 0x131   : > { %2306 = vmatprep.mubr.bf16.mxu1 %v8052_v27  ;;  %v11422_v43 = vadd.f32 %v9011_v39, %v9010_v5  ;;  %9318 = vmatpush3.bf16.msra.mxu1 %v10366_v32  ;;  %v3590_v27 = vrot.slane %v3588_v46, 4  ;;  %v3593_v5 = vrot.slane %v3591_v58, 5  ;;  %v3604_v58 = vor.u32 %v3603_v23, %v3599_v21 }
 0x132   : > { %v9013_v48 = vpop.f32.mrf.mxu0  ;;  %2960 = vmatmul.mubr.bf16.gmra.mxu0 %v8165_v31  ;;  %9319 = vmatprep.subr.bf16.mxu1 %v10368_v33  ;;  %v3612_v31 = vshrl.u32 %v11459_v4, 16  ;;  %v2570_v46 = vsel %vm11008_vm7, %v8108_v19, %v2569_v55  ;;  %v8169_v55 = vcombine.low %v11435_v51, %v11439_v52  ;;  %v11498_v19 = vld [vmem:[%s10775_s16 + $0x50] sm:$0xff] }
 0x133   : > { %14454 = vst [vmem:[#allocation6_spill] sm:$0xff] %v11422_v43  ;;  %2967 = vmatprep.mubr.bf16.mxu0 %v8168_v28  ;;  %v8303_v28 = vld [vmem:[%s10775_s16 + $0x28] sm:$0x11]  ;;  %v3594_v60 = vor.u32 %v3593_v5, %v3590_v27 }
 0x134   : > { %v9014_v17 = vpop.f32.mrf.mxu0  ;;  %v3607_v63 = vshll.u32 %v8303_v28, 16  ;;  %v3614_v0 = vrot.slane %v3612_v31, 4  ;;  %v8339_v43 = vld [vmem:[%s10775_s16 + $0x148] sm:$0x11] }
 0x135   : > { %v11453_v3 = vadd.f32 %v9014_v17, %v9013_v48  ;;  %9320 = vmatpush3.bf16.msra.mxu1 %v10370_v45  ;;  %v8053_v45 = vcombine.low %v10565_v1, %v11061_v6  ;;  %v10567_v48 = vld [vmem:[%s10775_s16 + $0x78] sm:$0xff]  ;;  %v3617_v6 = vrot.slane %v3615_v35, 5  ;;  %v3623_v1 = vrot.slane %v3621_v36, 5 }
 0x136   : > { %v9016_v7 = vpop.f32.mrf.mxu0  ;;  %9321 = vmatprep.subr.bf16.mxu1 %v10374_v49  ;;  %v8056_v49 = vcombine.high %v10567_v48, %v11095_v38  ;;  %v3595_v25 = vrot.slane %v3594_v60, 4  ;;  %v3609_v27 = vrot.slane %v3607_v63, 5  ;;  %v3649_v35 = vshrl.u32 %v11498_v19, 16 }
 0x137   : > { %14455 = vst [vmem:[#allocation7_spill] sm:$0xff] %v11453_v3  ;;  %v3618_v5 = vor.u32 %v3617_v6, %v3614_v0  ;;  %v8055_v36 = vcombine.low %v10567_v48, %v11095_v38 }
 0x138   : > { %2307 = vmatmul.mubr.bf16.gmra.mxu1 %v8051_v59  ;;  %v9017_v32 = vpop.f32.mrf.mxu0  ;;  %v2573_v59 = vsel %vm11008_vm7, %v2571_v20, %v2572_v26  ;;  %v3605_v26 = vrot.slane %v3604_v58, 4 }
 0x139   : > { %2314 = vmatprep.mubr.bf16.mxu1 %v8054_v2  ;;  %v11473_v33 = vadd.f32 %v9017_v32, %v9016_v7  ;;  %9322 = vmatpush3.bf16.msra.mxu1 %v10376_v44  ;;  %v3627_v44 = vrot.slane %v3625_v37, 4  ;;  %v10568_v37 = vld [vmem:[%s10775_s16 + $0x90] sm:$0xff]  ;;  %v3619_v63 = vrot.slane %v3618_v5, 4 }
 0x13a   : > { %v9019_v39 = vpop.f32.mrf.mxu0  ;;  %2968 = vmatmul.mubr.bf16.gmra.mxu0 %v8167_v10  ;;  %9323 = vmatprep.subr.bf16.mxu1 %v10378_v13  ;;  %v8306_v10 = vld [vmem:[%s10775_s16 + $0x40] sm:$0x11]  ;;  %v11495_v13 = vld [vmem:[%s10775_s16 + $0x48] sm:$0xff]  ;;  %v3610_v60 = vsel %vm10805_vm4, %v3605_v26, %v3609_v27 }
 0x13b   : > { %14456 = vst [vmem:[#allocation8_spill] sm:$0xff] %v11473_v33  ;;  %2975 = vmatprep.mubr.bf16.mxu0 %v8170_v11  ;;  %v8172_v11 = vcombine.high %v2570_v46, %v2573_v59  ;;  %v3628_v23 = vor.u32 %v3627_v44, %v3623_v1  ;;  %v3631_v31 = vshll.u32 %v8306_v10, 16  ;;  %v3636_v51 = vshrl.u32 %v11495_v13, 16 }
 0x13c   : > { %v9020_v17 = vpop.f32.mrf.mxu0  ;;  %v3639_v52 = vshll.u32 %v11495_v13, 16 }
 0x13d   : > { %v11489_v2 = vadd.f32 %v9020_v17, %v9019_v39  ;;  %9324 = vmatpush3.bf16.msra.mxu1 %v10379_v34  ;;  %v3645_v34 = vshll.u32 %v11498_v19, 16  ;;  %v8058_v39 = vcombine.high %v10568_v37, %v11131_v8  ;;  %v3600_v17 = vsel %vm10805_vm4, %v3595_v25, %v3599_v21  ;;  %v11520_v21 = vld [vmem:[%s10775_s16 + $0x68] sm:$0xff] }
 0x13e   : > { %v9022_v7 = vpop.f32.mrf.mxu0  ;;  %v3629_v0 = vrot.slane %v3628_v23, 4  ;;  %v3633_v38 = vrot.slane %v3631_v31, 5  ;;  %v3638_v6 = vrot.slane %v3636_v51, 4  ;;  %v3641_v44 = vrot.slane %v3639_v52, 5 }
 0x13f   : > { %14457 = vst [vmem:[#allocation9_spill] sm:$0xff] %v11489_v2  ;;  %v8382_v10 = vcombine.high %v3600_v17, %v3610_v60  ;;  %v11526_v25 = vsel %vm10805_vm4, %v3619_v63, %v3623_v1  ;;  %v3669_v52 = vshll.u32 %v11520_v21, 16  ;;  %v8057_v1 = vcombine.low %v10568_v37, %v11131_v8 }
 0x140   : > { %2315 = vmatmul.mubr.bf16.gmra.mxu1 %v8053_v45  ;;  %v9023_v20 = vpop.f32.mrf.mxu0  ;;  %v11530_v27 = vsel %vm10805_vm4, %v3629_v0, %v3633_v38  ;;  %v3642_v5 = vor.u32 %v3641_v44, %v3638_v6 }
 0x141   : > { %2322 = vmatprep.mubr.bf16.mxu1 %v8056_v49  ;;  %v11500_v32 = vadd.f32 %v9023_v20, %v9022_v7  ;;  %v8171_v49 = vcombine.low %v2570_v46, %v2573_v59  ;;  %v3647_v7 = vrot.slane %v3645_v34, 5  ;;  %v8309_v46 = vld [vmem:[%s10775_s16 + $0x58] sm:$0x11]  ;;  %v3673_v34 = vshrl.u32 %v11520_v21, 16 }
 0x142   : > { %v9025_v28 = vpop.f32.mrf.mxu0  ;;  %2976 = vmatmul.mubr.bf16.gmra.mxu0 %v8169_v55  ;;  %v3651_v55 = vrot.slane %v3649_v35, 4  ;;  %v3655_v31 = vshll.u32 %v8309_v46, 16  ;;  %v8384_v0 = vcombine.high %v11526_v25, %v11530_v27  ;;  %v3643_v38 = vrot.slane %v3642_v5, 4  ;;  %v8312_v46 = vld [vmem:[%s10775_s16 + $0x70] sm:$0x11] }
 0x143   : > { %14458 = vst [vmem:[#allocation10_spill] sm:$0xff] %v11500_v32  ;;  %2983 = vmatprep.mubr.bf16.mxu0 %v8172_v11  ;;  %v11517_v11 = vld [vmem:[%s10775_s16 + $0x60] sm:$0xff]  ;;  %v3671_v8 = vrot.slane %v3669_v52, 5  ;;  %v3675_v37 = vrot.slane %v3673_v34, 4 }
 0x144   : > { %v9026_v45 = vpop.f32.mrf.mxu0  ;;  %v3652_v23 = vor.u32 %v3651_v55, %v3647_v7  ;;  %v3663_v51 = vshll.u32 %v11517_v11, 16  ;;  %v3657_v6 = vrot.slane %v3655_v31, 5  ;;  %v11554_v5 = vsel %vm10805_vm4, %v3643_v38, %v3647_v7 }
 0x145   : > { %v11513_v58 = vadd.f32 %v9026_v45, %v9025_v28  ;;  %v3660_v28 = vshrl.u32 %v11517_v11, 16 }
 0x146   : > { %v9028_v48 = vpop.f32.mrf.mxu0  ;;  %v3665_v55 = vrot.slane %v3663_v51, 5  ;;  %v3679_v51 = vshll.u32 %v8312_v46, 16 }
 0x147   : > { %14459 = vst [vmem:[#allocation11_spill] sm:$0xff] %v11513_v58  ;;  %v3662_v44 = vrot.slane %v3660_v28, 4  ;;  %v3676_v28 = vor.u32 %v3675_v37, %v3671_v8 }
 0x148   : > { %2323 = vmatmul.mubr.bf16.gmra.mxu1 %v8055_v36  ;;  %v9029_v59 = vpop.f32.mrf.mxu0  ;;  %v10569_v36 = vld [vmem:[%s10775_s16 + $0xa8] sm:$0xff]  ;;  %v3681_v37 = vrot.slane %v3679_v51, 5 }
 0x149   : > { %2330 = vmatprep.mubr.bf16.mxu1 %v8058_v39  ;;  %v11522_v20 = vadd.f32 %v9029_v59, %v9028_v48  ;;  %v8060_v39 = vcombine.high %v10569_v36, %v11167_v41  ;;  %v3653_v48 = vrot.slane %v3652_v23, 4  ;;  %v11545_v59 = vld [vmem:[%s10775_s16 + $0x78] sm:$0xff]  ;;  %v3666_v31 = vor.u32 %v3665_v55, %v3662_v44 }
 0x14a   : > { %v9031_v26 = vpop.f32.mrf.mxu0  ;;  %2984 = vmatmul.mubr.bf16.gmra.mxu0 %v8171_v49  ;;  %v8381_v49 = vcombine.low %v3600_v17, %v3610_v60  ;;  %v11550_v17 = vld [vmem:[%s10775_s16 + $0x80] sm:$0xff]  ;;  %v3684_v52 = vshrl.u32 %v11545_v59, 16  ;;  %v8059_v34 = vcombine.low %v10569_v36, %v11167_v41  ;;  %v8317_v36 = vld [vmem:[%s10775_s16 + $0x98] sm:$0xff]  ;;  %v3677_v55 = vrot.slane %v3676_v28, 4 }
 0x14b   : > { %14460 = vst [vmem:[#allocation12_spill] sm:$0xff] %v11522_v20  ;;  %4260 = vmatprep.mubr.bf16.mxu0 %v8382_v10  ;;  %v11558_v23 = vsel %vm10805_vm4, %v3653_v48, %v3657_v6  ;;  %v3697_v7 = vshrl.u32 %v11550_v17, 16  ;;  %v8383_v6 = vcombine.low %v11526_v25, %v11530_v27  ;;  %v3667_v44 = vrot.slane %v3666_v31, 4  ;;  %v8315_v20 = vld [vmem:[%s10775_s16 + $0x88] sm:$0x11]  ;;  %v10571_v28 = vld [vmem:[%s10775_s16 + $0xd8] sm:$0xff] }
 0x14c   : > { %v9032_v35 = vpop.f32.mrf.mxu0  ;;  %v8386_v41 = vcombine.high %v11554_v5, %v11558_v23  ;;  %v3717_v27 = vshll.u32 %v8317_v36, 16  ;;  %v3721_v58 = vshrl.u32 %v8317_v36, 16  ;;  %v8064_v51 = vcombine.high %v10571_v28, %v11245_v50 }
 0x14d   : > { %v11539_v45 = vadd.f32 %v9032_v35, %v9031_v26  ;;  %v3687_v35 = vshll.u32 %v11545_v59, 16 }
 0x14e   : > { %v9034_v63 = vpop.f32.mrf.mxu0 }
 0x14f   : > { %14461 = vst [vmem:[#allocation13_spill] sm:$0xff] %v11539_v45 }
 0x150   : > { %2331 = vmatmul.mubr.bf16.gmra.mxu1 %v8057_v1  ;;  %v9035_v10 = vpop.f32.mrf.mxu0 }
 0x151   : > { %2338 = vmatprep.mubr.bf16.mxu1 %v8060_v39  ;;  %v11547_v26 = vadd.f32 %v9035_v10, %v9034_v63  ;;  %v3693_v39 = vshll.u32 %v11550_v17, 16  ;;  %v3686_v10 = vrot.slane %v3684_v52, 4  ;;  %v3672_v52 = vsel %vm10805_vm4, %v3667_v44, %v3671_v8  ;;  %v11591_v44 = vld [vmem:[%s10775_s16 + $0xa8] sm:$0xff] }
 0x152   : > { %v9037_v60 = vpop.f32.mrf.mxu0  ;;  %4261 = vmatmul.mubr.bf16.vlgmr.msra.gmra.mxu0 %v8381_v49  ;;  %v10570_v49 = vld [vmem:[%s10775_s16 + $0xc0] sm:$0xff] }
 0x153   : > { %14462 = vst [vmem:[#allocation14_spill] sm:$0xff] %v11547_v26  ;;  %4268 = vmatprep.mubr.bf16.mxu0 %v8384_v0  ;;  %v8062_v63 = vcombine.high %v10570_v49, %v11206_v14  ;;  %v8316_v0 = vld [vmem:[%s10775_s16 + $0x90] sm:$0xff]  ;;  %v3689_v26 = vrot.slane %v3687_v35, 5  ;;  %v8061_v31 = vcombine.low %v10570_v49, %v11206_v14  ;;  %v3719_v49 = vrot.slane %v3717_v27, 5 }
 0x154   : > { %v9038_v1 = vpop.f32.mrf.mxu0  ;;  %v3711_v25 = vshll.u32 %v8316_v0, 16 }
 0x155   : > { %v11567_v38 = vadd.f32 %v9038_v1, %v9037_v60  ;;  %v3695_v60 = vrot.slane %v3693_v39, 5  ;;  %v3699_v1 = vrot.slane %v3697_v7, 4  ;;  %v3690_v39 = vor.u32 %v3689_v26, %v3686_v10 }
 0x156   : > { %v9040_v48 = vpop.f32.mrf.mxu0  ;;  %v3713_v14 = vrot.slane %v3711_v25, 5 }
 0x157   : > { %14463 = vst [vmem:[#allocation15_spill] sm:$0xff] %v11567_v38  ;;  %v3708_v38 = vshrl.u32 %v8316_v0, 16  ;;  %v3700_v7 = vor.u32 %v3699_v1, %v3695_v60 }
 0x158   : > { %2339 = vmatmul.mubr.bf16.gmra.mxu1 %v8059_v34  ;;  %v9041_v46 = vpop.f32.mrf.mxu0  ;;  %v3682_v34 = vsel %vm10805_vm4, %v3677_v55, %v3681_v37  ;;  %v3691_v55 = vrot.slane %v3690_v39, 4 }
 0x159   : > { %2346 = vmatprep.mubr.bf16.mxu1 %v8062_v63  ;;  %v11575_v45 = vadd.f32 %v9041_v46, %v9040_v48  ;;  %v3703_v63 = vshll.u32 %v8315_v20, 16  ;;  %v3710_v0 = vrot.slane %v3708_v38, 4  ;;  %v8318_v46 = vld [vmem:[%s10775_s16 + $0xa0] sm:$0x11]  ;;  %v8388_v8 = vcombine.high %v3672_v52, %v3682_v34 }
 0x15a   : > { %v9043_v32 = vpop.f32.mrf.mxu0  ;;  %4269 = vmatmul.mubr.bf16.gmra.mxu0 %v8383_v6  ;;  %v3723_v6 = vrot.slane %v3721_v58, 4  ;;  %v3701_v20 = vrot.slane %v3700_v7, 4  ;;  %v3727_v10 = vshll.u32 %v8318_v46, 16  ;;  %v8387_v7 = vcombine.low %v3672_v52, %v3682_v34  ;;  %v8321_v52 = vld [vmem:[%s10775_s16 + $0xb8] sm:$0x11] }
 0x15b   : > { %14464 = vst [vmem:[#allocation16_spill] sm:$0xff] %v11575_v45  ;;  %4276 = vmatprep.mubr.bf16.mxu0 %v8386_v41  ;;  %v8385_v41 = vcombine.low %v11554_v5, %v11558_v23  ;;  %v11594_v45 = vld [vmem:[%s10775_s16 + $0xb0] sm:$0xff]  ;;  %v3714_v58 = vor.u32 %v3713_v14, %v3710_v0  ;;  %v3732_v5 = vshrl.u32 %v11591_v44, 16  ;;  %v3735_v23 = vshll.u32 %v11591_v44, 16 }
 0x15c   : > { %v9044_v35 = vpop.f32.mrf.mxu0  ;;  %v3724_v37 = vor.u32 %v3723_v6, %v3719_v49  ;;  %v3741_v25 = vshll.u32 %v11594_v45, 16  ;;  %v3745_v27 = vshrl.u32 %v11594_v45, 16 }
 0x15d   : > { %v11585_v48 = vadd.f32 %v9044_v35, %v9043_v32  ;;  %v3705_v32 = vrot.slane %v3703_v63, 5  ;;  %v10572_v35 = vld [vmem:[%s10775_s16 + $0xf0] sm:$0xff]  ;;  %v3696_v63 = vsel %vm10805_vm4, %v3691_v55, %v3695_v60  ;;  %v3715_v6 = vrot.slane %v3714_v58, 4  ;;  %v11616_v60 = vld [vmem:[%s10775_s16 + $0xc8] sm:$0xff] }
 0x15e   : > { %v9046_v36 = vpop.f32.mrf.mxu0  ;;  %v3737_v46 = vrot.slane %v3735_v23, 5 }
 0x15f   : > { %14465 = vst [vmem:[#allocation17_spill] sm:$0xff] %v11585_v48  ;;  %v3706_v0 = vsel %vm10805_vm4, %v3701_v20, %v3705_v32  ;;  %v11613_v48 = vld [vmem:[%s10775_s16 + $0xc0] sm:$0xff]  ;;  %v11622_v20 = vsel %vm10805_vm4, %v3715_v6, %v3719_v49  ;;  %v8065_v49 = vcombine.low %v10572_v35, %v11281_v22 }
 0x160   : > { %2347 = vmatmul.mubr.bf16.gmra.mxu1 %v8061_v31  ;;  %v9047_v26 = vpop.f32.mrf.mxu0  ;;  %v8063_v31 = vcombine.low %v10571_v28, %v11245_v50  ;;  %v3729_v50 = vrot.slane %v3727_v10, 5  ;;  %v3759_v23 = vshll.u32 %v11613_v48, 16  ;;  %v8389_v6 = vcombine.low %v3696_v63, %v3706_v0 }
 0x161   : > { %2354 = vmatprep.mubr.bf16.mxu1 %v8064_v51  ;;  %v11596_v38 = vadd.f32 %v9047_v26, %v9046_v36  ;;  %v8066_v51 = vcombine.high %v10572_v35, %v11281_v22  ;;  %v3725_v36 = vrot.slane %v3724_v37, 4  ;;  %v3747_v26 = vrot.slane %v3745_v27, 4 }
 0x162   : > { %v9049_v1 = vpop.f32.mrf.mxu0  ;;  %4277 = vmatmul.mubr.bf16.gmra.mxu0 %v8385_v41  ;;  %v3734_v41 = vrot.slane %v3732_v5, 4  ;;  %v3756_v5 = vshrl.u32 %v11613_v48, 16  ;;  %v3769_v27 = vshrl.u32 %v11616_v60, 16 }
 0x163   : > { %14466 = vst [vmem:[#allocation18_spill] sm:$0xff] %v11596_v38  ;;  %4284 = vmatprep.mubr.bf16.mxu0 %v8388_v8  ;;  %v3743_v8 = vrot.slane %v3741_v25, 5  ;;  %v8390_v38 = vcombine.high %v3696_v63, %v3706_v0  ;;  %v11626_v58 = vsel %vm10805_vm4, %v3725_v36, %v3729_v50  ;;  %v3765_v25 = vshll.u32 %v11616_v60, 16  ;;  %v11646_v63 = vld [vmem:[%s10775_s16 + $0xe0] sm:$0xff] }
 0x164   : > { %v9050_v39 = vpop.f32.mrf.mxu0  ;;  %v3738_v37 = vor.u32 %v3737_v46, %v3734_v41  ;;  %v8392_v36 = vcombine.high %v11622_v20, %v11626_v58  ;;  %v3758_v46 = vrot.slane %v3756_v5, 4  ;;  %v3771_v35 = vrot.slane %v3769_v27, 4 }
 0x165   : > { %v11609_v14 = vadd.f32 %v9050_v39, %v9049_v1  ;;  %v3748_v10 = vor.u32 %v3747_v26, %v3743_v8  ;;  %v3751_v1 = vshll.u32 %v8321_v52, 16  ;;  %v3761_v26 = vrot.slane %v3759_v23, 5 }
 0x166   : > { %v9052_v28 = vpop.f32.mrf.mxu0  ;;  %v3739_v50 = vrot.slane %v3738_v37, 4  ;;  %v3767_v22 = vrot.slane %v3765_v25, 5 }
 0x167   : > { %14467 = vst [vmem:[#allocation19_spill] sm:$0xff] %v11609_v14  ;;  %v3753_v41 = vrot.slane %v3751_v1, 5  ;;  %v3762_v5 = vor.u32 %v3761_v26, %v3758_v46 }
 0x168   : > { %2355 = vmatmul.mubr.bf16.gmra.mxu1 %v8063_v31  ;;  %v9053_v34 = vpop.f32.mrf.mxu0  ;;  %v3772_v23 = vor.u32 %v3771_v35, %v3767_v22  ;;  %v11670_v35 = vld [vmem:[%s10775_s16 + $0xf0] sm:$0xff] }
 0x169   : > { %2362 = vmatprep.mubr.bf16.mxu1 %v8066_v51  ;;  %v11618_v55 = vadd.f32 %v9053_v34, %v9052_v28  ;;  %v10573_v51 = vld [vmem:[%s10775_s16 + $0x108] sm:$0xff]  ;;  %v3749_v28 = vrot.slane %v3748_v10, 4  ;;  %v8324_v34 = vld [vmem:[%s10775_s16 + $0xd0] sm:$0x11]  ;;  %v11651_v10 = vsel %vm10805_vm4, %v3739_v50, %v3743_v8  ;;  %v3793_v8 = vshrl.u32 %v11646_v63, 16 }
 0x16a   : > { %v9055_v32 = vpop.f32.mrf.mxu0  ;;  %4285 = vmatmul.mubr.bf16.gmra.mxu0 %v8387_v7  ;;  %v8068_v39 = vcombine.high %v10573_v51, %v11313_v56  ;;  %v8067_v0 = vcombine.low %v10573_v51, %v11313_v56  ;;  %v3775_v25 = vshll.u32 %v8324_v34, 16  ;;  %v3789_v51 = vshll.u32 %v11646_v63, 16 }
 0x16b   : > { %14468 = vst [vmem:[#allocation20_spill] sm:$0xff] %v11618_v55  ;;  %4292 = vmatprep.mubr.bf16.mxu0 %v8390_v38  ;;  %v11655_v1 = vsel %vm10805_vm4, %v3749_v28, %v3753_v41  ;;  %v8391_v50 = vcombine.low %v11622_v20, %v11626_v58  ;;  %v3763_v41 = vrot.slane %v3762_v5, 4  ;;  %v3773_v46 = vrot.slane %v3772_v23, 4  ;;  %v8327_v20 = vld [vmem:[%s10775_s16 + $0xe8] sm:$0x11] }
 0x16c   : > { %v9056_v31 = vpop.f32.mrf.mxu0  ;;  %v8394_v28 = vcombine.high %v11651_v10, %v11655_v1  ;;  %v3777_v26 = vrot.slane %v3775_v25, 5  ;;  %v3804_v5 = vshrl.u32 %v11670_v35, 16  ;;  %v3807_v23 = vshll.u32 %v11670_v35, 16 }
 0x16d   : > { %v11635_v7 = vadd.f32 %v9056_v31, %v9055_v32  ;;  %v11643_v31 = vld [vmem:[%s10775_s16 + $0xd8] sm:$0xff] }
 0x16e   : > { %v9058_v38 = vpop.f32.mrf.mxu0  ;;  %v3783_v56 = vshll.u32 %v11643_v31, 16  ;;  %v3806_v55 = vrot.slane %v3804_v5, 4  ;;  %v3809_v14 = vrot.slane %v3807_v23, 5 }
 0x16f   : > { %14469 = vst [vmem:[#allocation21_spill] sm:$0xff] %v11635_v7 }
 0x170   : > { %2363 = vmatmul.mubr.bf16.gmra.mxu1 %v8065_v49  ;;  %v9059_v52 = vpop.f32.mrf.mxu0  ;;  %v3780_v49 = vshrl.u32 %v11643_v31, 16 }
 0x171   : > { %2370 = vmatprep.mubr.bf16.mxu1 %v8068_v39  ;;  %v11640_v32 = vadd.f32 %v9059_v52, %v9058_v38  ;;  %v10574_v39 = vld [vmem:[%s10775_s16 + $0x120] sm:$0xff]  ;;  %v11673_v52 = vld [vmem:[%s10775_s16 + $0xf8] sm:$0xff] }
 0x172   : > { %v9061_v37 = vpop.f32.mrf.mxu0  ;;  %4293 = vmatmul.mubr.bf16.gmra.mxu0 %v8389_v6  ;;  %v8070_v6 = vcombine.high %v10574_v39, %v11340_v24  ;;  %v3813_v25 = vshll.u32 %v11673_v52, 16 }
 0x173   : > { %14470 = vst [vmem:[#allocation22_spill] sm:$0xff] %v11640_v32  ;;  %4300 = vmatprep.mubr.bf16.mxu0 %v8392_v36  ;;  %v3782_v32 = vrot.slane %v3780_v49, 4  ;;  %v10404_v49 = vld [vmem:[%s14372_s6 + $0x378] sm:$0xff]  }
 0x174   : > { %v9062_v27 = vpop.f32.mrf.mxu0  ;;  %9645 = vmatprep.subr.bf16.mxu0 %v10404_v49  ;;  %v11723_v49 = vld [vmem:[%s10775_s16 + $0x110] sm:$0xff] }
 0x175   : > { %v11663_v38 = vadd.f32 %v9062_v27, %v9061_v37  ;;  %v3785_v37 = vrot.slane %v3783_v56, 5  ;;  %v3791_v27 = vrot.slane %v3789_v51, 5  ;;  %v8069_v56 = vcombine.low %v10574_v39, %v11340_v24  ;;  %v10575_v24 = vld [vmem:[%s10775_s16 + $0x138] sm:$0xff] }
 0x176   : > { %v9064_v36 = vpop.f32.mrf.mxu0  ;;  %v11688_v51 = vsel %vm10805_vm4, %v3763_v41, %v3767_v22  ;;  %v8072_v39 = vcombine.high %v10575_v24, %v11369_v53  ;;  %v8393_v22 = vcombine.low %v11651_v10, %v11655_v1  ;;  %v8330_v1 = vld [vmem:[%s10775_s16 + $0x100] sm:$0x11] }
 0x177   : > { %14471 = vst [vmem:[#allocation23_spill] sm:$0xff] %v11663_v38  ;;  %v3795_v38 = vrot.slane %v3793_v8, 4  ;;  %v10405_v8 = vld [vmem:[%s14372_s6 + $0x338] sm:$0xff]  }
 0x178   : > { %2371 = vmatmul.mubr.bf16.gmra.mxu1 %v8067_v0  ;;  %v9065_v34 = vpop.f32.mrf.mxu0  ;;  %v3817_v0 = vshrl.u32 %v11673_v52, 16  ;;  %9646 = vmatpush3.bf16.msra.mxu0 %v10405_v8 }
 0x179   : > { %2378 = vmatprep.mubr.bf16.mxu1 %v8070_v6  ;;  %v11675_v7 = vadd.f32 %v9065_v34, %v9064_v36  ;;  %v11695_v36 = vsel %vm10805_vm4, %v3773_v46, %v3777_v26  ;;  %v3796_v34 = vor.u32 %v3795_v38, %v3791_v27  ;;  %v11703_v46 = vrot.slane %v3813_v25, 5  ;;  %v10408_v38 = vld [vmem:[%s14372_s6 + $0x2f8] sm:$0xff]   ;;  %v10409_v26 = vld [vmem:[%s14372_s6 + $0x370] sm:$0xff]   ;;  %v11718_v25 = vld [vmem:[%s10775_s16 + $0x108] sm:$0xff] }
 0x17a   : > { %v9067_v58 = vpop.f32.mrf.mxu0  ;;  %4301 = vmatmul.mubr.bf16.gmra.mxu0 %v8391_v50  ;;  %v3786_v50 = vor.u32 %v3785_v37, %v3782_v32  ;;  %v3819_v32 = vrot.slane %v3817_v0, 4  ;;  %v8396_v10 = vcombine.high %v11688_v51, %v11695_v36  ;;  %v10411_v37 = vld [vmem:[%s14372_s6 + $0x330] sm:$0xff]   ;;  %9533 = vmatprep.subr.bf16.mxu1 %v10408_v38 }
 0x17b   : > { %14472 = vst [vmem:[#allocation24_spill] sm:$0xff] %v11675_v7  ;;  %4308 = vmatprep.mubr.bf16.mxu0 %v8394_v28  ;;  %v3799_v7 = vshll.u32 %v8327_v20, 16  ;;  %v3797_v5 = vrot.slane %v3796_v34, 4  ;;  %9647 = vmatprep.subr.bf16.mxu0 %v10409_v26  ;;  %v3828_v34 = vshrl.u32 %v11718_v25, 16 }
 0x17c   : > { %v9068_v6 = vpop.f32.mrf.mxu0  ;;  %9648 = vmatpush3.bf16.msra.mxu0 %v10411_v37 }
 0x17d   : > { %v11699_v28 = vadd.f32 %v9068_v6, %v9067_v58  ;;  %v3787_v58 = vrot.slane %v3786_v50, 4  ;;  %v3801_v23 = vrot.slane %v3799_v7, 5  ;;  %v3810_v6 = vor.u32 %v3809_v14, %v3806_v55  ;;  %v10413_v7 = vld [vmem:[%s14372_s6 + $0x368] sm:$0xff]  }
 0x17e   : > { %v9070_v41 = vpop.f32.mrf.mxu0  ;;  %v8071_v50 = vcombine.low %v10575_v24, %v11369_v53  ;;  %v10415_v14 = vld [vmem:[%s14372_s6 + $0x328] sm:$0xff]   ;;  %v3837_v53 = vshll.u32 %v11723_v49, 16  ;;  %v3841_v24 = vshrl.u32 %v11723_v49, 16  ;;  %9649 = vmatprep.subr.bf16.mxu0 %v10413_v7 }
 0x17f   : > { %14473 = vst [vmem:[#allocation25_spill] sm:$0xff] %v11699_v28  ;;  %v3820_v28 = vor.u32 %v3819_v32, %v11703_v46  ;;  %v10576_v32 = vld [vmem:[%s10775_s16 + $0x150] sm:$0xff] }
 0x180   : > { %2379 = vmatmul.mubr.bf16.gmra.mxu1 %v8069_v56  ;;  %v9071_v20 = vpop.f32.mrf.mxu0  ;;  %v3823_v56 = vshll.u32 %v8330_v1, 16  ;;  %v8074_v38 = vcombine.high %v10576_v32, %v11393_v15  ;;  %v3811_v1 = vrot.slane %v3810_v6, 4  ;;  %9650 = vmatpush3.bf16.msra.mxu0 %v10415_v14  ;;  %v3843_v6 = vrot.slane %v3841_v24, 4  ;;  %v10423_v14 = vld [vmem:[%s14372_s6 + $0x358] sm:$0xff]  }
 0x181   : > { %2386 = vmatprep.mubr.bf16.mxu1 %v8072_v39  ;;  %v11720_v0 = vadd.f32 %v9071_v20, %v9070_v41  ;;  %v3831_v39 = vshll.u32 %v11718_v25, 16  ;;  %v11741_v41 = vsel %vm10805_vm4, %v3797_v5, %v3801_v23  ;;  %v3821_v37 = vrot.slane %v3820_v28, 4 }
 0x182   : > { %v9073_v8 = vpop.f32.mrf.mxu0  ;;  %4309 = vmatmul.mubr.bf16.gmra.mxu0 %v8393_v22  ;;  %v11737_v22 = vsel %vm10805_vm4, %v3787_v58, %v3791_v27  ;;  %v8395_v27 = vcombine.low %v11688_v51, %v11695_v36  ;;  %v3825_v20 = vrot.slane %v3823_v56, 5  ;;  %v10419_v58 = vld [vmem:[%s14372_s6 + $0x360] sm:$0xff]   ;;  %v3830_v23 = vrot.slane %v3828_v34, 4  ;;  %v8333_v36 = vld [vmem:[%s10775_s16 + $0x118] sm:$0x11] }
 0x183   : > { %14474 = vst [vmem:[#allocation26_spill] sm:$0xff] %v11720_v0  ;;  %4316 = vmatprep.mubr.bf16.mxu0 %v8396_v10  ;;  %v8398_v5 = vcombine.high %v11737_v22, %v11741_v41  ;;  %v3833_v7 = vrot.slane %v3831_v39, 5  ;;  %v3839_v28 = vrot.slane %v3837_v53, 5  ;;  %v11761_v56 = vld [vmem:[%s10775_s16 + $0x120] sm:$0xff]  ;;  %9651 = vmatprep.subr.bf16.mxu0 %v10419_v58  ;;  %v11771_v39 = vsel %vm10805_vm4, %v3811_v1, %v11703_v46  ;;  %v10425_v46 = vld [vmem:[%s14372_s6 + $0x318] sm:$0xff]  }
 0x184   : > { %v9074_v55 = vpop.f32.mrf.mxu0  ;;  %v3847_v24 = vshll.u32 %v8333_v36, 16  ;;  %v8397_v36 = vcombine.low %v11737_v22, %v11741_v41 }
 0x185   : > { %v11747_v26 = vadd.f32 %v9074_v55, %v9073_v8  ;;  %v10421_v8 = vld [vmem:[%s14372_s6 + $0x320] sm:$0xff]   ;;  %v3834_v53 = vor.u32 %v3833_v7, %v3830_v23 }
 0x186   : > { %v9076_v10 = vpop.f32.mrf.mxu0  ;;  %9652 = vmatpush3.bf16.msra.mxu0 %v10421_v8 }
 0x187   : > { %14475 = vst [vmem:[#allocation27_spill] sm:$0xff] %v11747_v26  ;;  %v11766_v26 = vld [vmem:[%s10775_s16 + $0x128] sm:$0xff]  ;;  %9653 = vmatprep.subr.bf16.mxu0 %v10423_v14  ;;  %v3835_v14 = vrot.slane %v3834_v53, 4  ;;  %v8336_v53 = vld [vmem:[%s10775_s16 + $0x130] sm:$0x11] }
 0x188   : > { %2387 = vmatmul.mubr.bf16.gmra.mxu1 %v8071_v50  ;;  %v9077_v51 = vpop.f32.mrf.mxu0  ;;  %v11775_v50 = vsel %vm10805_vm4, %v3821_v37, %v3825_v20  ;;  %v3844_v37 = vor.u32 %v3843_v6, %v3839_v28  ;;  %v3861_v20 = vshll.u32 %v11766_v26, 16  ;;  %v3865_v58 = vshrl.u32 %v11766_v26, 16  ;;  %v10429_v6 = vld [vmem:[%s14372_s6 + $0x350] sm:$0xff]  }
 0x189   : > { %2394 = vmatprep.mubr.bf16.mxu1 %v8074_v38  ;;  %v11763_v55 = vadd.f32 %v9077_v51, %v9076_v10  ;;  %v3852_v38 = vshrl.u32 %v11761_v56, 16  ;;  %v3855_v10 = vshll.u32 %v11761_v56, 16  ;;  %v11793_v51 = vld [vmem:[%s10775_s16 + $0x138] sm:$0xff] }
 0x18a   : > { %v9079_v34 = vpop.f32.mrf.mxu0  ;;  %4317 = vmatmul.mubr.bf16.gmra.mxu0 %v8395_v27  ;;  %v8073_v27 = vcombine.low %v10576_v32, %v11393_v15  ;;  %v8400_v15 = vcombine.high %v11771_v39, %v11775_v50  ;;  %v11800_v32 = vld [vmem:[%s10775_s16 + $0x140] sm:$0xff]  ;;  %v3845_v41 = vrot.slane %v3844_v37, 4  ;;  %v3863_v0 = vrot.slane %v3861_v20, 5  ;;  %v10433_v37 = vld [vmem:[%s14372_s6 + $0x348] sm:$0xff]  }
 0x18b   : > { %14476 = vst [vmem:[#allocation28_spill] sm:$0xff] %v11763_v55  ;;  %4324 = vmatprep.mubr.bf16.mxu0 %v8398_v5  ;;  %v10577_v5 = vld [vmem:[%s10775_s16 + $0x168] sm:$0xff]  ;;  %v3849_v55 = vrot.slane %v3847_v24, 5  ;;  %9654 = vmatpush3.bf16.msra.mxu0 %v10425_v46  ;;  %v3867_v2 = vrot.slane %v3865_v58, 4  ;;  %v3876_v33 = vshrl.u32 %v11793_v51, 16  ;;  %v3879_v24 = vshll.u32 %v11793_v51, 16 }
 0x18c   : > { %v9080_v1 = vpop.f32.mrf.mxu0  ;;  %v8076_v23 = vcombine.high %v10577_v5, %v11442_v54  ;;  %9655 = vmatprep.subr.bf16.mxu0 %v10429_v6  ;;  %v8075_v46 = vcombine.low %v10577_v5, %v11442_v54  ;;  %v8254_v20 = vcombine.high %v11420_v40, %v11428_v47  ;;  %v11823_v58 = vsel %vm10805_vm4, %v3835_v14, %v3839_v28  ;;  %v10435_v54 = vld [vmem:[%s14372_s6 + $0x308] sm:$0xff]  }
 0x18d   : > { %v11790_v7 = vadd.f32 %v9080_v1, %v9079_v34  ;;  %v3854_v34 = vrot.slane %v3852_v38, 4  ;;  %v3857_v1 = vrot.slane %v3855_v10, 5  ;;  %v3885_v38 = vshll.u32 %v11800_v32, 16 }
 0x18e   : > { %v9082_v8 = vpop.f32.mrf.mxu0  ;;  %v3889_v10 = vshrl.u32 %v11800_v32, 16  ;;  %v3871_v6 = vshll.u32 %v8336_v53, 16  ;;  %v3881_v28 = vrot.slane %v3879_v24, 5  ;;  %v10441_v53 = vld [vmem:[%s14372_s6 + $0x300] sm:$0xff]  }
 0x18f   : > { %14477 = vst [vmem:[#allocation29_spill] sm:$0xff] %v11790_v7  ;;  %v10431_v7 = vld [vmem:[%s14372_s6 + $0x310] sm:$0xff]   ;;  %v3887_v14 = vrot.slane %v3885_v38, 5 }
 0x190   : > { %2395 = vmatmul.mubr.bf16.gmra.mxu1 %v8073_v27  ;;  %v9083_v22 = vpop.f32.mrf.mxu0  ;;  %9656 = vmatpush3.bf16.msra.mxu0 %v10431_v7  ;;  %v11835_v7 = vld [vmem:[%s10775_s16 + $0x150] sm:$0xff] }
 0x191   : > { %2402 = vmatprep.mubr.bf16.mxu1 %v8076_v23  ;;  %v11809_v3 = vadd.f32 %v9083_v22, %v9082_v8  ;;  %v3858_v23 = vor.u32 %v3857_v1, %v3854_v34  ;;  %v11830_v8 = vsel %vm10805_vm4, %v3845_v41, %v3849_v55  ;;  %9657 = vmatprep.subr.bf16.mxu0 %v10433_v37  ;;  %v3891_v34 = vrot.slane %v3889_v10, 4  ;;  %v10439_v55 = vld [vmem:[%s14372_s6 + $0x340] sm:$0xff]   ;;  %v11846_v41 = vld [vmem:[%s10775_s16 + $0x158] sm:$0xff] }
 0x192   : > { %v9213_v27 = vpop.f32.mrf.mxu0  ;;  %4325 = vmatmul.mubr.bf16.gmra.mxu0 %v8397_v36  ;;  %v3868_v36 = vor.u32 %v3867_v2, %v3863_v0  ;;  %v3903_v10 = vshll.u32 %v11835_v7, 16  ;;  %v3909_v30 = vshll.u32 %v11846_v41, 16 }
 0x193   : > { %14478 = vst [vmem:[#allocation30_spill] sm:$0xff] %v11809_v3  ;;  %4332 = vmatprep.mubr.bf16.mxu0 %v8400_v15  ;;  %v3878_v15 = vrot.slane %v3876_v33, 4  ;;  %v8399_v3 = vcombine.low %v11771_v39, %v11775_v50  ;;  %v8402_v33 = vcombine.high %v11823_v58, %v11830_v8  ;;  %v3859_v2 = vrot.slane %v3858_v23, 4 }
 0x194   : > { %v9214_v5 = vpop.f32.mrf.mxu0  ;;  %9658 = vmatpush3.bf16.msra.mxu0 %v10435_v54  ;;  %v3869_v38 = vrot.slane %v3868_v36, 4  ;;  %v3873_v39 = vrot.slane %v3871_v6, 5  ;;  %v3900_v50 = vshrl.u32 %v11835_v7, 16  ;;  %v3892_v23 = vor.u32 %v3891_v34, %v3887_v14 }
 0x195   : > { %v11832_v22 = vadd.f32 %v9214_v5, %v9213_v27  ;;  %9659 = vmatprep.subr.bf16.mxu0 %v10439_v55  ;;  %v3882_v37 = vor.u32 %v3881_v28, %v3878_v15  ;;  %v3895_v5 = vshll.u32 %v8339_v43, 16  ;;  %v8253_v36 = vcombine.low %v11420_v40, %v11428_v47  ;;  %v10410_v55 = vld [vmem:[%s14372_s6 + $0x2b8] sm:$0xff]  }
 0x196   : > { %v9216_v1 = vpop.f32.mrf.mxu0  ;;  %v8256_v6 = vcombine.high %v11459_v4, %v11469_v18  ;;  %v11863_v15 = vsel %vm10805_vm4, %v3859_v2, %v3863_v0  ;;  %v11867_v43 = vsel %vm10805_vm4, %v3869_v38, %v3873_v39  ;;  %v3905_v28 = vrot.slane %v3903_v10, 5  ;;  %v8342_v2 = vld [vmem:[%s10775_s16 + $0x160] sm:$0x11]  ;;  %v10412_v38 = vld [vmem:[%s14372_s6 + $0x2f0] sm:$0xff]  }
 0x197   : > { %v3883_v47 = vrot.slane %v3882_v37, 4  ;;  %v3893_v34 = vrot.slane %v3892_v23, 4  ;;  %v8401_v0 = vcombine.low %v11823_v58, %v11830_v8  ;;  %v8404_v39 = vcombine.high %v11863_v15, %v11867_v43  ;;  %v11888_v10 = vld [vmem:[%s10775_s16 + $0x170] sm:$0xff]  ;;  %v11893_v58 = vld [vmem:[%s14371_s5] ss:$0 sm:$0xff] }
 0x198   : > { %2403 = vmatmul.mubr.bf16.gmra.mxu1 %v8075_v46  ;;  %v9217_v24 = vpop.f32.mrf.mxu0  ;;  %v3913_v46 = vshrl.u32 %v11846_v41, 16  ;;  %9660 = vmatpush3.bf16.msra.mxu0 %v10441_v53  ;;  %v11877_v53 = vrot.slane %v3909_v30, 5  ;;  %14480 = vst [vmem:[#allocation32_spill] sm:$0xff] %v11888_v10 }
 0x199   : > { %3378 = vmatprep.mubr.bf16.mxu1 %v8254_v20  ;;  %v11853_v27 = vadd.f32 %v9217_v24, %v9216_v1  ;;  %v3897_v1 = vrot.slane %v3895_v5, 5  ;;  %v11899_v5 = vsel %vm10805_vm4, %v3883_v47, %v3887_v14  ;;  %v10418_v14 = vld [vmem:[%s14372_s6 + $0x2e8] sm:$0xff]   ;;  %v3933_v47 = vshll.u32 %v11888_v10, 16 }
 0x19a   : > { %v9219_v54 = vpop.f32.mrf.mxu0  ;;  %4333 = vmatmul.mubr.bf16.gmra.mxu0 %v8399_v3  ;;  %v3902_v3 = vrot.slane %v3900_v50, 4  ;;  %v3915_v24 = vrot.slane %v3913_v46, 4  ;;  %v11885_v50 = vld [vmem:[%s10775_s16 + $0x168] sm:$0xff]  ;;  %v3919_v46 = vshll.u32 %v8342_v2, 16 }
 0x19b   : > { %4340 = vmatprep.mubr.bf16.mxu0 %v8402_v33  ;;  %14479 = vst [vmem:[#allocation31_spill] sm:$0xff] %v11885_v50 }
 0x19c   : > { %v9220_v20 = vpop.f32.mrf.mxu0  ;;  %v3906_v8 = vor.u32 %v3905_v28, %v3902_v3  ;;  %v3924_v3 = vshrl.u32 %v11885_v50, 16  ;;  %v3927_v28 = vshll.u32 %v11885_v50, 16 }
 0x19d   : > { %v11869_v40 = vadd.f32 %v9220_v20, %v9219_v54  ;;  %v11903_v54 = vsel %vm10805_vm4, %v3893_v34, %v3897_v1  ;;  %v10414_v20 = vld [vmem:[%s14372_s6 + $0x2b0] sm:$0xff]   ;;  %v8255_v1 = vcombine.low %v11459_v4, %v11469_v18  ;;  %v3921_v18 = vrot.slane %v3919_v46, 5 }
 0x19e   : > { %v9222_v33 = vpop.f32.mrf.mxu0  ;;  %v3929_v57 = vrot.slane %v3927_v28, 5 }
 0x1a0   : > { %v10059_v37 = vpop.f32.mrf.mxu1  ;;  %3379 = vmatmul.mubr.bf16.vlgmr.msra.gmra.mxu1 %v8253_v36  ;;  %v9223_v30 = vpop.f32.mrf.mxu0 }
 0x1a1   : > { %3386 = vmatprep.mubr.bf16.mxu1 %v8256_v6  ;;  %v11895_v23 = vadd.f32 %v9223_v30, %v9222_v33  ;;  %9534 = vmatpush3.bf16.msra.mxu1 %v10410_v55  ;;  %v3916_v6 = vor.u32 %v3915_v24, %v11877_v53  ;;  %v959_v34 = vadd.f32 %v10059_v37, %v11893_v58  ;;  %v3937_v55 = vshrl.u32 %v11888_v10, 16 }
 0x1a2   : > { %v950_v36 = vpop.f32.mrf.mxu1  ;;  %v9225_v9 = vpop.f32.mrf.mxu0  ;;  %4341 = vmatmul.mubr.bf16.gmra.mxu0 %v8401_v0  ;;  %9535 = vmatprep.subr.bf16.mxu1 %v10412_v38  ;;  %v8258_v0 = vcombine.high %v11495_v13, %v11498_v19  ;;  %v8403_v24 = vcombine.low %v11863_v15, %v11867_v43  ;;  %v8406_v38 = vcombine.high %v11899_v5, %v11903_v54  ;;  %v3907_v30 = vrot.slane %v3906_v8, 4 }
 0x1a3   : > { %4348 = vmatprep.mubr.bf16.mxu0 %v8404_v39  ;;  %v951_v37 = vadd.f32 %v11893_v58, %v950_v36  ;;  %v10420_v39 = vld [vmem:[%s14372_s6 + $0x2a8] sm:$0xff]   ;;  %v3917_v15 = vrot.slane %v3916_v6, 4  ;;  %v3926_v43 = vrot.slane %v3924_v3, 4  ;;  %v11932_v8 = vrot.slane %v3933_v47, 5  ;;  %v10422_v36 = vld [vmem:[%s14372_s6 + $0x2e0] sm:$0xff]  }
 0x1a4   : > { %v10060_v33 = vpop.f32.mrf.mxu1  ;;  %v9226_v2 = vpop.f32.mrf.mxu0 }
 0x1a5   : > { %v962_v50 = vadd.f32 %v10060_v33, %v11893_v58  ;;  %v11927_v4 = vadd.f32 %v9226_v2, %v9225_v9  ;;  %9536 = vmatpush3.bf16.msra.mxu1 %v10414_v20  ;;  %v1079_v9 = vmax.f32 %v959_v34, 0.0  ;;  %v8345_v33 = vld [vmem:[%s10775_s16 + $0x178] sm:$0x11]  ;;  %v3939_v2 = vrot.slane %v3937_v55, 4  ;;  %v10424_v34 = vld [vmem:[%s14372_s6 + $0x2a0] sm:$0xff]  }
 0x1a6   : > { %v953_v10 = vpop.f32.mrf.mxu1  ;;  %v9228_v12 = vpop.f32.mrf.mxu0  ;;  %9537 = vmatprep.subr.bf16.mxu1 %v10418_v14  ;;  %v1077_v14 = vmax.f32 %v951_v37, 0.0 }
 0x1a7   : > { %14481 = vst [vmem:[#allocation33_spill] sm:$0xff] %v11927_v4  ;;  %v1080_v46 = vmax.f32 %v962_v50, 0.0  ;;  %v954_v20 = vadd.f32 %v11893_v58, %v953_v10  ;;  %v11947_v50 = vld [vmem:[%s10775_s16 + $0x180] sm:$0xff]  ;;  %v11950_v10 = vld [vmem:[%s10775_s16 + $0x188] sm:$0xff] }
 0x1a8   : > { %v10063_v4 = vpop.f32.mrf.mxu1  ;;  %3387 = vmatmul.mubr.bf16.gmra.mxu1 %v8255_v1  ;;  %v9229_v6 = vpop.f32.mrf.mxu0  ;;  %v8257_v1 = vcombine.low %v11495_v13, %v11498_v19  ;;  %v11967_v13 = vsel %vm10805_vm4, %v3917_v15, %v3921_v18  ;;  %v3940_v19 = vor.u32 %v3939_v2, %v11932_v8  ;;  %v10430_v15 = vld [vmem:[%s14372_s6 + $0x298] sm:$0xff]  }
 0x1a9   : > { %v11939_v3 = vpack.c.bf16 %v1080_v46, %v1079_v9  ;;  %v1078_v28 = vmax.f32 %v954_v20, 0.0  ;;  %3394 = vmatprep.mubr.bf16.mxu1 %v8258_v0  ;;  %v11941_v47 = vadd.f32 %v9229_v6, %v9228_v12  ;;  %9538 = vmatpush3.bf16.msra.mxu1 %v10420_v39  ;;  %v11957_v12 = vsel %vm10805_vm4, %v3907_v30, %v11877_v53  ;;  %v10428_v9 = vld [vmem:[%s14372_s6 + $0x2d8] sm:$0xff]  }
 0x1aa   : > { %v966_v55 = vpop.f32.mrf.mxu1  ;;  %v9231_v37 = vpop.f32.mrf.mxu0  ;;  %4349 = vmatmul.mubr.bf16.gmra.mxu0 %v8403_v24  ;;  %v3930_v0 = vor.u32 %v3929_v57, %v3926_v43  ;;  %v3943_v39 = vshll.u32 %v8345_v33, 16  ;;  %9539 = vmatprep.subr.bf16.mxu1 %v10422_v36  ;;  %v975_v20 = vadd.f32 %v10063_v4, %v11893_v58  ;;  %v3948_v57 = vshrl.u32 %v11947_v50, 16 }
 0x1ab   : > { %14482 = vst [vmem:[#allocation34_spill] sm:$0xff] %v11939_v3  ;;  %14483 = vst [vmem:[#allocation35_spill] sm:$0xff] %v11941_v47  ;;  %v11962_v46 = vpack.c.bf16 %v1078_v28, %v1077_v14  ;;  %4356 = vmatprep.mubr.bf16.mxu0 %v8406_v38  ;;  %v3951_v30 = vshll.u32 %v11947_v50, 16  ;;  %v3957_v43 = vshll.u32 %v11950_v10, 16  ;;  %v3961_v36 = vshrl.u32 %v11950_v10, 16 }
 0x1ac   : > { %v10064_v53 = vpop.f32.mrf.mxu1  ;;  %v9232_v24 = vpop.f32.mrf.mxu0  ;;  %v967_v33 = vadd.f32 %v11893_v58, %v966_v55  ;;  %v8260_v4 = vcombine.high %v11517_v11, %v11520_v21  ;;  %v8405_v14 = vcombine.low %v11899_v5, %v11903_v54  ;;  %v8408_v28 = vcombine.high %v11957_v12, %v11967_v13  ;;  %v10432_v11 = vld [vmem:[%s14372_s6 + $0x2d0] sm:$0xff]  }
 0x1ad   : > { %14484 = vst [vmem:[#allocation36_spill] sm:$0xff] %v11962_v46  ;;  %v978_v38 = vadd.f32 %v10064_v53, %v11893_v58  ;;  %v11978_v18 = vadd.f32 %v9232_v24, %v9231_v37  ;;  %9540 = vmatpush3.bf16.msra.mxu1 %v10424_v34  ;;  %v3931_v55 = vrot.slane %v3930_v0, 4  ;;  %v3945_v53 = vrot.slane %v3943_v39, 5 }
 0x1ae   : > { %v969_v2 = vpop.f32.mrf.mxu1  ;;  %v9234_v6 = vpop.f32.mrf.mxu0  ;;  %9541 = vmatprep.subr.bf16.mxu1 %v10428_v9  ;;  %v1083_v21 = vmax.f32 %v975_v20, 0.0  ;;  %v3941_v24 = vrot.slane %v3940_v19, 4  ;;  %v3950_v5 = vrot.slane %v3948_v57, 4  ;;  %v3953_v54 = vrot.slane %v3951_v30, 5  ;;  %v10438_v30 = vld [vmem:[%s14372_s6 + $0x2c8] sm:$0xff]  }
 0x1af   : > { %14485 = vst [vmem:[#allocation37_spill] sm:$0xff] %v11978_v18  ;;  %v1084_v34 = vmax.f32 %v978_v38, 0.0  ;;  %v970_v37 = vadd.f32 %v11893_v58, %v969_v2  ;;  %v11991_v18 = vrot.slane %v3957_v43, 5  ;;  %v3963_v0 = vrot.slane %v3961_v36, 4  ;;  %v8348_v38 = vld [vmem:[%s10775_s16 + $0x190] sm:$0x11] }
 0x1b0   : > { %v10067_v3 = vpop.f32.mrf.mxu1  ;;  %3395 = vmatmul.mubr.bf16.gmra.mxu1 %v8257_v1  ;;  %v9235_v46 = vpop.f32.mrf.mxu0  ;;  %v1081_v39 = vmax.f32 %v967_v33, 0.0  ;;  %v10434_v1 = vld [vmem:[%s14372_s6 + $0x290] sm:$0xff]   ;;  %v12009_v33 = vld [vmem:[%s10775_s16 + $0x68] sm:$0xff] }
 0x1b1   : > { %v11993_v9 = vpack.c.bf16 %v1084_v34, %v1083_v21  ;;  %v1082_v47 = vmax.f32 %v970_v37, 0.0  ;;  %3402 = vmatprep.mubr.bf16.mxu1 %v8260_v4  ;;  %v11995_v20 = vadd.f32 %v9235_v46, %v9234_v6  ;;  %9542 = vmatpush3.bf16.msra.mxu1 %v10430_v15  ;;  %v991_v36 = vadd.f32 %v10067_v3, %v11893_v58  ;;  %v10578_v46 = vld [vmem:[%s10775_s16 + $0x60] sm:$0xff] }
 0x1b2   : > { %v982_v19 = vpop.f32.mrf.mxu1  ;;  %v9237_v57 = vpop.f32.mrf.mxu0  ;;  %4357 = vmatmul.mubr.bf16.gmra.mxu0 %v8405_v14  ;;  %9543 = vmatprep.subr.bf16.mxu1 %v10432_v11  ;;  %v8259_v4 = vcombine.low %v10578_v46, %v12009_v33  ;;  %v12015_v15 = vsel %vm10805_vm4, %v3931_v55, %v11932_v8  ;;  %v12019_v14 = vsel %vm10805_vm4, %v3941_v24, %v3945_v53  ;;  %v3967_v11 = vshll.u32 %v8348_v38, 16  ;;  %v10440_v8 = vld [vmem:[%s14372_s6 + $0x288] sm:$0xff]   ;;  %v10446_v46 = vld [vmem:[%s14372_s6 + $0x280] sm:$0xff]  }
 0x1b3   : > { %14486 = vst [vmem:[#allocation38_spill] sm:$0xff] %v11993_v9  ;;  %v12004_v43 = vpack.c.bf16 %v1082_v47, %v1081_v39  ;;  %4364 = vmatprep.mubr.bf16.mxu0 %v8408_v28  ;;  %v3954_v47 = vor.u32 %v3953_v54, %v3950_v5  ;;  %v3964_v3 = vor.u32 %v3963_v0, %v11991_v18  ;;  %v10445_v5 = vld [vmem:[%s14372_s6 + $0x2c0] sm:$0xff]   ;;  %v1087_v54 = vmax.f32 %v991_v36, 0.0  ;;  %v14509_v9 = vld [vmem:[#allocation33_spill] sm:$0xff] }
 0x1b4   : > { %v10068_v2 = vpop.f32.mrf.mxu1  ;;  %v9238_v6 = vpop.f32.mrf.mxu0  ;;  %v983_v21 = vadd.f32 %v11893_v58, %v982_v19  ;;  %v8262_v28 = vcombine.high %v11545_v59, %v11550_v17  ;;  %v8407_v24 = vcombine.low %v11957_v12, %v11967_v13  ;;  %v8410_v17 = vcombine.high %v12015_v15, %v12019_v14 }
 0x1b5   : > { %14487 = vst [vmem:[#allocation39_spill] sm:$0xff] %v12004_v43  ;;  %v994_v34 = vadd.f32 %v10068_v2, %v11893_v58  ;;  %v12026_v37 = vadd.f32 %v9238_v6, %v9237_v57  ;;  %9544 = vmatpush3.bf16.msra.mxu1 %v10434_v1  ;;  %v3955_v1 = vrot.slane %v3954_v47, 4  ;;  %v3965_v19 = vrot.slane %v3964_v3, 4  ;;  %v14511_v43 = vld [vmem:[#allocation4_spill] sm:$0xff] }
 0x1b6   : > { %v985_v55 = vpop.f32.mrf.mxu1  ;;  %v9240_v53 = vpop.f32.mrf.mxu0  ;;  %9545 = vmatprep.subr.bf16.mxu1 %v10438_v30  ;;  %v3969_v57 = vrot.slane %v3967_v11, 5  ;;  %v1085_v12 = vmax.f32 %v983_v21, 0.0  ;;  %v10580_v11 = vld [vmem:[%s10775_s16 + $0x78] sm:$0xff]  ;;  %v12051_v21 = vld [vmem:[%s10775_s16 + $0x80] sm:$0xff] }
 0x1b7   : > { %v1088_v0 = vmax.f32 %v994_v34, 0.0  ;;  %v986_v59 = vadd.f32 %v11893_v58, %v985_v55  ;;  %v8261_v34 = vcombine.low %v10580_v11, %v12051_v21 }
 0x1b8   : > { %v10071_v39 = vpop.f32.mrf.mxu1  ;;  %3403 = vmatmul.mubr.bf16.gmra.mxu1 %v8259_v4  ;;  %v9241_v38 = vpop.f32.mrf.mxu0  ;;  %v3970_v55 = vsel %vm10805_vm4, %v3965_v19, %v3969_v57 }
 0x1b9   : > { %v12039_v13 = vpack.c.bf16 %v1088_v0, %v1087_v54  ;;  %v1086_v30 = vmax.f32 %v986_v59, 0.0  ;;  %3410 = vmatprep.mubr.bf16.mxu1 %v8262_v28  ;;  %v12041_v36 = vadd.f32 %v9241_v38, %v9240_v53  ;;  %9546 = vmatpush3.bf16.msra.mxu1 %v10440_v8  ;;  %v1007_v47 = vadd.f32 %v10071_v39, %v11893_v58  ;;  %v12063_v54 = vld [vmem:[%s10775_s16 + $0x98] sm:$0xff] }
 0x1ba   : > { %v998_v2 = vpop.f32.mrf.mxu1  ;;  %v9243_v4 = vpop.f32.mrf.mxu0  ;;  %4365 = vmatmul.mubr.bf16.gmra.mxu0 %v8407_v24  ;;  %9547 = vmatprep.subr.bf16.mxu1 %v10445_v5  ;;  %v3960_v8 = vsel %vm10805_vm4, %v3955_v1, %v11991_v18  ;;  %v10582_v5 = vld [vmem:[%s10775_s16 + $0x90] sm:$0xff]  ;;  %v8409_v18 = vcombine.low %v12015_v15, %v12019_v14 }
 0x1bb   : > { %14488 = vst [vmem:[#allocation40_spill] sm:$0xff] %v12039_v13  ;;  %v12046_v6 = vpack.c.bf16 %v1086_v30, %v1085_v12  ;;  %4372 = vmatprep.mubr.bf16.mxu0 %v8410_v17  ;;  %v999_v53 = vadd.f32 %v11893_v58, %v998_v2  ;;  %v8264_v0 = vcombine.high %v10582_v5, %v12063_v54  ;;  %v1091_v38 = vmax.f32 %v1007_v47, 0.0 }
 0x1bc   : > { %v10072_v3 = vpop.f32.mrf.mxu1  ;;  %v9244_v28 = vpop.f32.mrf.mxu0  ;;  %v8412_v57 = vcombine.high %v3960_v8, %v3970_v55  ;;  %v8263_v47 = vcombine.low %v10582_v5, %v12063_v54 }
 0x1bd   : > { %14489 = vst [vmem:[#allocation41_spill] sm:$0xff] %v12046_v6  ;;  %v1010_v24 = vadd.f32 %v10072_v3, %v11893_v58  ;;  %v12066_v59 = vadd.f32 %v9244_v28, %v9243_v4  ;;  %9548 = vmatpush3.bf16.msra.mxu1 %v10446_v46  ;;  %v1089_v2 = vmax.f32 %v999_v53, 0.0  ;;  %v4515_v6 = vrot.slane %v12051_v21, 5 }
 0x1be   : > { %v1001_v17 = vpop.f32.mrf.mxu1  ;;  %v9246_v39 = vpop.f32.mrf.mxu0 }
 0x1bf   : > { %v1092_v1 = vmax.f32 %v1010_v24, 0.0  ;;  %v1002_v19 = vadd.f32 %v11893_v58, %v1001_v17 }
 0x1c0   : > { %v10075_v12 = vpop.f32.mrf.mxu1  ;;  %3411 = vmatmul.mubr.bf16.gmra.mxu1 %v8261_v34  ;;  %v9247_v30 = vpop.f32.mrf.mxu0 }
 0x1c1   : > { %v12071_v3 = vpack.c.bf16 %v1092_v1, %v1091_v38  ;;  %v1090_v11 = vmax.f32 %v1002_v19, 0.0  ;;  %3418 = vmatprep.mubr.bf16.mxu1 %v8264_v0  ;;  %v12073_v4 = vadd.f32 %v9247_v30, %v9246_v39  ;;  %v1023_v15 = vadd.f32 %v10075_v12, %v11893_v58  ;;  %v10444_v12 = vld [vmem:[%s10775_s16 + $0x34] ss:$8 sps:$4 sm:$0xff]  }
 0x1c2   : > { %v1014_v46 = vpop.f32.mrf.mxu1  ;;  %v9249_v28 = vpop.f32.mrf.mxu0  ;;  %4373 = vmatmul.mubr.bf16.gmra.mxu0 %v8409_v18  ;;  %v8266_v0 = vcombine.high %v11591_v44, %v11594_v45  ;;  %v8411_v38 = vcombine.low %v3960_v8, %v3970_v55 }
 0x1c3   : > { %14490 = vst [vmem:[#allocation42_spill] sm:$0xff] %v12071_v3  ;;  %v12075_v13 = vpack.c.bf16 %v1090_v11, %v1089_v2  ;;  %4380 = vmatprep.mubr.bf16.mxu0 %v8412_v57  ;;  %v1015_v53 = vadd.f32 %v11893_v58, %v1014_v46  ;;  %v1095_v1 = vmax.f32 %v1023_v15, 0.0  ;;  %v10594_v3 = vld [vmem:[%s10775_s16 + $0x38] sm:$0xff] }
 0x1c4   : > { %v10076_v14 = vpop.f32.mrf.mxu1  ;;  %v9250_v34 = vpop.f32.mrf.mxu0 }
 0x1c5   : > { %14491 = vst [vmem:[#allocation43_spill] sm:$0xff] %v12075_v13  ;;  %v1026_v24 = vadd.f32 %v10076_v14, %v11893_v58  ;;  %v12083_v17 = vadd.f32 %v9250_v34, %v9249_v28  ;;  %v1093_v2 = vmax.f32 %v1015_v53, 0.0  ;;  %v10584_v14 = vld [vmem:[%s10775_s16 + $0xa8] sm:$0xff] }
 0x1c6   : > { %v1017_v39 = vpop.f32.mrf.mxu1  ;;  %v9252_v18 = vpop.f32.mrf.mxu0 }
 0x1c7   : > { %v1096_v19 = vmax.f32 %v1026_v24, 0.0  ;;  %v1018_v57 = vadd.f32 %v11893_v58, %v1017_v39  ;;  %v8268_v39 = vcombine.high %v11613_v48, %v11616_v60 }
 0x1c8   : > { %v10079_v5 = vpop.f32.mrf.mxu1  ;;  %3419 = vmatmul.mubr.bf16.gmra.mxu1 %v8263_v47  ;;  %v9253_v30 = vpop.f32.mrf.mxu0  ;;  %v12096_v47 = vld [vmem:[%s10775_s16 + $0xb0] sm:$0xff] }
 0x1c9   : > { %v12087_v11 = vpack.c.bf16 %v1096_v19, %v1095_v1  ;;  %v1094_v46 = vmax.f32 %v1018_v57, 0.0  ;;  %3426 = vmatprep.mubr.bf16.mxu1 %v8266_v0  ;;  %v12089_v45 = vadd.f32 %v9253_v30, %v9252_v18  ;;  %v1039_v55 = vadd.f32 %v10079_v5, %v11893_v58  ;;  %v10442_v19 = vld [vmem:[%s10775_s16 + $0x30] ss:$8 sps:$4 sm:$0xff]   ;;  %v10449_v30 = vld [vmem:[%s10775_s16 + $0x4c] ss:$8 sps:$4 sm:$0xff]  }
 0x1ca   : > { %v1030_v44 = vpop.f32.mrf.mxu1  ;;  %v9255_v28 = vpop.f32.mrf.mxu0  ;;  %4381 = vmatmul.mubr.bf16.gmra.mxu0 %v8411_v38  ;;  %v8265_v34 = vcombine.low %v10584_v14, %v12096_v47 }
 0x1cb   : > { %14492 = vst [vmem:[#allocation44_spill] sm:$0xff] %v12087_v11  ;;  %v12091_v8 = vpack.c.bf16 %v1094_v46, %v1093_v2  ;;  %5401 = vmatprep.mubr.bf16.mxu0 %v10444_v12  ;;  %v1031_v24 = vadd.f32 %v11893_v58, %v1030_v44  ;;  %v1099_v57 = vmax.f32 %v1039_v55, 0.0 }
 0x1cc   : > { %v10080_v15 = vpop.f32.mrf.mxu1  ;;  %v9256_v53 = vpop.f32.mrf.mxu0 }
 0x1cd   : > { %14493 = vst [vmem:[#allocation45_spill] sm:$0xff] %v12091_v8  ;;  %v1042_v0 = vadd.f32 %v10080_v15, %v11893_v58  ;;  %v12103_v18 = vadd.f32 %v9256_v53, %v9255_v28  ;;  %v1097_v44 = vmax.f32 %v1031_v24, 0.0 }
 0x1ce   : > { %v1033_v38 = vpop.f32.mrf.mxu1  ;;  %v9258_v1 = vpop.f32.mrf.mxu0 }
 0x1cf   : > { %v1100_v12 = vmax.f32 %v1042_v0, 0.0  ;;  %v1034_v5 = vadd.f32 %v11893_v58, %v1033_v38  ;;  %v12117_v38 = vld [vmem:[%s10775_s16 + $0xc8] sm:$0xff] }
 0x1d0   : > { %v10083_v2 = vpop.f32.mrf.mxu1  ;;  %3427 = vmatmul.mubr.bf16.gmra.mxu1 %v8265_v34  ;;  %v9259_v46 = vpop.f32.mrf.mxu0  ;;  %v10586_v34 = vld [vmem:[%s10775_s16 + $0xc0] sm:$0xff] }
 0x1d1   : > { %v12108_v15 = vpack.c.bf16 %v1100_v12, %v1099_v57  ;;  %v1098_v14 = vmax.f32 %v1034_v5, 0.0  ;;  %3434 = vmatprep.mubr.bf16.mxu1 %v8268_v39  ;;  %v12110_v48 = vadd.f32 %v9259_v46, %v9258_v1  ;;  %v1055_v53 = vadd.f32 %v10083_v2, %v11893_v58 }
 0x1d2   : > { %v1046_v60 = vpop.f32.mrf.mxu1  ;;  %v9261_v28 = vpop.f32.mrf.mxu0  ;;  %5402 = vmatmul.mubr.bf16.vlgmr.msra.gmra.mxu0 %v10442_v19  ;;  %v8267_v24 = vcombine.low %v10586_v34, %v12117_v38  ;;  %v8270_v19 = vcombine.high %v11643_v31, %v11646_v63 }
 0x1d3   : > { %14494 = vst [vmem:[#allocation46_spill] sm:$0xff] %v12108_v15  ;;  %v12112_v55 = vpack.c.bf16 %v1098_v14, %v1097_v44  ;;  %5409 = vmatprep.mubr.bf16.mxu0 %v10449_v30  ;;  %v1047_v39 = vadd.f32 %v11893_v58, %v1046_v60  ;;  %v10447_v30 = vld [vmem:[%s10775_s16 + $0x48] ss:$8 sps:$4 sm:$0xff]   ;;  %v1103_v46 = vmax.f32 %v1055_v53, 0.0  ;;  %v10452_v15 = vld [vmem:[%s10775_s16 + $0x64] ss:$8 sps:$4 sm:$0xff]  }
 0x1d4   : > { %v10084_v0 = vpop.f32.mrf.mxu1  ;;  %v9262_v57 = vpop.f32.mrf.mxu0 }
 0x1d5   : > { %14495 = vst [vmem:[#allocation47_spill] sm:$0xff] %v12112_v55  ;;  %v1058_v1 = vadd.f32 %v10084_v0, %v11893_v58  ;;  %v12124_v12 = vadd.f32 %v9262_v57, %v9261_v28  ;;  %v1101_v55 = vmax.f32 %v1047_v39, 0.0 }
 0x1d6   : > { %v1049_v5 = vpop.f32.mrf.mxu1  ;;  %v9264_v2 = vpop.f32.mrf.mxu0 }
 0x1d7   : > { %v1104_v44 = vmax.f32 %v1058_v1, 0.0  ;;  %v1050_v14 = vadd.f32 %v11893_v58, %v1049_v5  ;;  %v12138_v5 = vld [vmem:[%s10775_s16 + $0xe0] sm:$0xff] }
 0x1d8   : > { %v10087_v34 = vpop.f32.mrf.mxu1  ;;  %3435 = vmatmul.mubr.bf16.gmra.mxu1 %v8267_v24  ;;  %v9265_v60 = vpop.f32.mrf.mxu0  ;;  %v10588_v24 = vld [vmem:[%s10775_s16 + $0xd8] sm:$0xff] }
 0x1d9   : > { %v12129_v0 = vpack.c.bf16 %v1104_v44, %v1103_v46  ;;  %v1102_v11 = vmax.f32 %v1050_v14, 0.0  ;;  %3442 = vmatprep.mubr.bf16.mxu1 %v8270_v19  ;;  %v12131_v31 = vadd.f32 %v9265_v60, %v9264_v2  ;;  %v1071_v57 = vadd.f32 %v10087_v34, %v11893_v58 }
 0x1da   : > { %v1062_v63 = vpop.f32.mrf.mxu1  ;;  %v9267_v28 = vpop.f32.mrf.mxu0  ;;  %5410 = vmatmul.mubr.bf16.gmra.mxu0 %v10447_v30  ;;  %v8269_v39 = vcombine.low %v10588_v24, %v12138_v5  ;;  %v8272_v30 = vcombine.high %v11670_v35, %v11673_v52 }
 0x1db   : > { %14496 = vst [vmem:[#allocation48_spill] sm:$0xff] %v12129_v0  ;;  %v12133_v53 = vpack.c.bf16 %v1102_v11, %v1101_v55  ;;  %5417 = vmatprep.mubr.bf16.mxu0 %v10452_v15  ;;  %v1063_v19 = vadd.f32 %v11893_v58, %v1062_v63  ;;  %v10450_v15 = vld [vmem:[%s10775_s16 + $0x60] ss:$8 sps:$4 sm:$0xff]   ;;  %v1107_v14 = vmax.f32 %v1071_v57, 0.0  ;;  %v10455_v0 = vld [vmem:[%s10775_s16 + $0x7c] ss:$8 sps:$4 sm:$0xff]  }
 0x1dc   : > { %v10088_v1 = vpop.f32.mrf.mxu1  ;;  %v9268_v46 = vpop.f32.mrf.mxu0 }
 0x1dd   : > { %14497 = vst [vmem:[#allocation49_spill] sm:$0xff] %v12133_v53  ;;  %v1074_v2 = vadd.f32 %v10088_v1, %v11893_v58  ;;  %v12145_v11 = vadd.f32 %v9268_v46, %v9267_v28  ;;  %v1105_v53 = vmax.f32 %v1063_v19, 0.0 }
 0x1de   : > { %v1065_v55 = vpop.f32.mrf.mxu1  ;;  %v9270_v44 = vpop.f32.mrf.mxu0 }
 0x1df   : > { %v1108_v34 = vmax.f32 %v1074_v2, 0.0  ;;  %v1066_v60 = vadd.f32 %v11893_v58, %v1065_v55  ;;  %v10590_v2 = vld [vmem:[%s10775_s16 + $0xf0] sm:$0xff] }
 0x1e0   : > { %v9101_v24 = vpop.f32.mrf.mxu1  ;;  %3443 = vmatmul.mubr.bf16.gmra.mxu1 %v8269_v39  ;;  %v9271_v63 = vpop.f32.mrf.mxu0  ;;  %v12158_v39 = vld [vmem:[%s10775_s16 + $0xf8] sm:$0xff] }
 0x1e1   : > { %v12150_v1 = vpack.c.bf16 %v1108_v34, %v1107_v14  ;;  %v1106_v8 = vmax.f32 %v1066_v60, 0.0  ;;  %3450 = vmatprep.mubr.bf16.mxu1 %v8272_v30  ;;  %v12152_v35 = vadd.f32 %v9271_v63, %v9270_v44  ;;  %v8271_v19 = vcombine.low %v10590_v2, %v12158_v39  ;;  %v10458_v60 = vld [vmem:[%s10775_s16 + $0x94] ss:$8 sps:$4 sm:$0xff]  }
 0x1e2   : > { %v9102_v52 = vpop.f32.mrf.mxu1  ;;  %v9273_v28 = vpop.f32.mrf.mxu0  ;;  %5418 = vmatmul.mubr.bf16.gmra.mxu0 %v10450_v15  ;;  %v8274_v44 = vcombine.high %v11718_v25, %v11723_v49 }
 0x1e3   : > { %14498 = vst [vmem:[#allocation50_spill] sm:$0xff] %v12150_v1  ;;  %v12154_v57 = vpack.c.bf16 %v1106_v8, %v1105_v53  ;;  %v9103_v58 = vadd.f32 %v9102_v52, %v9101_v24  ;;  %5425 = vmatprep.mubr.bf16.mxu0 %v10455_v0  ;;  %v10453_v8 = vld [vmem:[%s10775_s16 + $0x78] ss:$8 sps:$4 sm:$0xff]  }
 0x1e4   : > { %v9104_v46 = vpop.f32.mrf.mxu1  ;;  %v9274_v55 = vpop.f32.mrf.mxu0 }
 0x1e5   : > { %14499 = vst [vmem:[#allocation51_spill] sm:$0xff] %v12154_v57  ;;  %v2285_v30 = vadd.f32 %v9103_v58, %v11318_v61  ;;  %v12164_v14 = vadd.f32 %v9274_v55, %v9273_v28  ;;  %v8430_v57 = vld [vmem:[%s10775_s16 + $0x30] sm:$0xee] }
 0x1e6   : > { %v9105_v15 = vpop.f32.mrf.mxu1  ;;  %v9276_v34 = vpop.f32.mrf.mxu0 }
 0x1e7   : > { %v9106_v53 = vadd.f32 %v9105_v15, %v9104_v46  ;;  %v12169_v0 = vadd.f32 %v11832_v22, %v2285_v30  ;;  %v8276_v30 = vcombine.high %v11761_v56, %v11766_v26 }
 0x1e8   : > { %v9107_v24 = vpop.f32.mrf.mxu1  ;;  %3451 = vmatmul.mubr.bf16.gmra.mxu1 %v8271_v19  ;;  %v9277_v63 = vpop.f32.mrf.mxu0  ;;  %v8273_v19 = vcombine.low %v11718_v25, %v11723_v49 }
 0x1e9   : > { %14500 = vst [vmem:[#allocation52_spill] sm:$0xff] %v12169_v0  ;;  %v2288_v52 = vadd.f32 %v9106_v53, %v11332_v16  ;;  %3458 = vmatprep.mubr.bf16.mxu1 %v8274_v44  ;;  %v12172_v61 = vadd.f32 %v9277_v63, %v9276_v34  ;;  %v8429_v34 = vld [vmem:[%s10775_s16 + $0x18] sm:$0xee]  ;;  %v10461_v63 = vld [vmem:[%s10775_s16 + $0xac] ss:$8 sps:$4 sm:$0xff]  }
 0x1ea   : > { %v9108_v28 = vpop.f32.mrf.mxu1  ;;  %v9279_v58 = vpop.f32.mrf.mxu0  ;;  %5426 = vmatmul.mubr.bf16.gmra.mxu0 %v10453_v8  ;;  %v10592_v8 = vld [vmem:[%s10775_s16 + $0x20] sm:$0xff]  ;;  %v10599_v0 = vld [vmem:[%s10775_s16 + $0x88] sm:$0x11] }
 0x1eb   : > { %v9109_v2 = vadd.f32 %v9108_v28, %v9107_v24  ;;  %5433 = vmatprep.mubr.bf16.mxu0 %v10458_v60  ;;  %v12175_v22 = vadd.f32 %v11853_v27, %v2288_v52  ;;  %v4487_v53 = vrot.slane %v10592_v8, 5  ;;  %v10456_v27 = vld [vmem:[%s10775_s16 + $0x90] ss:$8 sps:$4 sm:$0xff]   ;;  %v8445_v28 = vrot.slane %v8429_v34, 9  ;;  %v10593_v8 = vld [vmem:[%s10775_s16 + $0x28] sm:$0x11] }
 0x1ec   : > { %v9110_v46 = vpop.f32.mrf.mxu1  ;;  %v9280_v16 = vpop.f32.mrf.mxu0  ;;  %v4490_v1 = vrot.slane %v10593_v8, 5  ;;  %v8278_v34 = vcombine.high %v11793_v51, %v11800_v32  ;;  %v10595_v8 = vld [vmem:[%s10775_s16 + $0x40] sm:$0x11] }
 0x1ed   : > { %14501 = vst [vmem:[#allocation53_spill] sm:$0xff] %v12175_v22  ;;  %v2293_v55 = vadd.f32 %v9109_v2, %v11345_v29  ;;  %v12182_v44 = vadd.f32 %v9280_v16, %v9279_v58  ;;  %v4489_v16 = vrot.slane %v4487_v53, 4  ;;  %v4517_v22 = vrot.slane %v4515_v6, 4 }
 0x1ee   : > { %v9111_v15 = vpop.f32.mrf.mxu1  ;;  %v9282_v60 = vpop.f32.mrf.mxu0 }
 0x1ef   : > { %v9112_v24 = vadd.f32 %v9111_v15, %v9110_v46  ;;  %v12189_v25 = vadd.f32 %v11869_v40, %v2293_v55  ;;  %v4494_v46 = vrot.slane %v10594_v3, 5  ;;  %v4497_v3 = vrot.slane %v10595_v8, 5 }
 0x1f0   : > { %v9113_v29 = vpop.f32.mrf.mxu1  ;;  %3459 = vmatmul.mubr.bf16.gmra.mxu1 %v8273_v19  ;;  %v9283_v49 = vpop.f32.mrf.mxu0  ;;  %v8275_v19 = vcombine.low %v11761_v56, %v11766_v26  ;;  %v10596_v26 = vld [vmem:[%s10775_s16 + $0x50] sm:$0xff] }
 0x1f1   : > { %14502 = vst [vmem:[#allocation54_spill] sm:$0xff] %v12189_v25  ;;  %v2296_v52 = vadd.f32 %v9112_v24, %v11355_v42  ;;  %3466 = vmatprep.mubr.bf16.mxu1 %v8276_v30  ;;  %v12192_v58 = vadd.f32 %v9283_v49, %v9282_v60  ;;  %v14504_v60 = vld [vmem:[#allocation3_spill] sm:$0xff]  ;;  %v12213_v24 = vsel %vm11008_vm7, %v8445_v28, %v4487_v53  ;;  %v4501_v30 = vrot.slane %v10596_v26, 5  ;;  %v14507_v53 = vld [vmem:[#allocation32_spill] sm:$0xff] }
 0x1f2   : > { %v9114_v2 = vpop.f32.mrf.mxu1  ;;  %v9285_v15 = vpop.f32.mrf.mxu0  ;;  %5434 = vmatmul.mubr.bf16.gmra.mxu0 %v10456_v27  ;;  %v14508_v28 = vld [vmem:[#allocation31_spill] sm:$0xff] }
 0x1f3   : > { %v9115_v40 = vadd.f32 %v9114_v2, %v9113_v29  ;;  %5441 = vmatprep.mubr.bf16.mxu0 %v10461_v63  ;;  %v12200_v42 = vadd.f32 %v11895_v23, %v2296_v52  ;;  %v8446_v63 = vrot.slane %v8430_v57, 9  ;;  %v12219_v52 = vsel %vm11008_vm7, %v4489_v16, %v4490_v1  ;;  %v8431_v57 = vld [vmem:[%s10775_s16 + $0x48] sm:$0xee] }
 0x1f4   : > { %v9116_v55 = vpop.f32.mrf.mxu1  ;;  %v9286_v56 = vpop.f32.mrf.mxu0  ;;  %v4496_v2 = vrot.slane %v4494_v46, 4  ;;  %v8447_v21 = vrot.slane %v8431_v57, 9  ;;  %v10598_v57 = vld [vmem:[%s10775_s16 + $0x70] sm:$0x11] }
 0x1f5   : > { %14503 = vst [vmem:[#allocation55_spill] sm:$0xff] %v12200_v42  ;;  %v2301_v23 = vadd.f32 %v9115_v40, %v14504_v60  ;;  %v12215_v29 = vadd.f32 %v9286_v56, %v9285_v15  ;;  %v10459_v60 = vld [vmem:[%s10775_s16 + $0xa8] ss:$8 sps:$4 sm:$0xff]   ;;  %v4508_v15 = vrot.slane %v12009_v33, 5  ;;  %v10464_v56 = vld [vmem:[%s10775_s16 + $0xc4] ss:$8 sps:$4 sm:$0xff]  }
 0x1f6   : > { %v9117_v49 = vpop.f32.mrf.mxu1  ;;  %v9288_v40 = vpop.f32.mrf.mxu0  ;;  %v12252_v26 = vsel %vm11008_vm7, %v4496_v2, %v4497_v3  ;;  %v10484_v3 = vld [vmem:[%s14372_s6 + $0x438] sm:$0xff]  }
 0x1f7   : > { %14506 = vst [vmem:[#allocation3_spill] sm:$0xff] %v12215_v29  ;;  %v9118_v13 = vadd.f32 %v9117_v49, %v9116_v55  ;;  %v12230_v1 = vadd.f32 %v14509_v9, %v2301_v23  ;;  %v8432_v49 = vld [vmem:[%s10775_s16 + $0x60] sm:$0xee]  ;;  %v8433_v23 = vld [vmem:[%s10775_s16 + $0x78] sm:$0xee]  ;;  %v14513_v9 = vld [vmem:[#allocation35_spill] sm:$0xff] }
 0x1f8   : > { %v9119_v16 = vpop.f32.mrf.mxu1  ;;  %3467 = vmatmul.mubr.bf16.gmra.mxu1 %v8275_v19  ;;  %v9289_v33 = vpop.f32.mrf.mxu0  ;;  %v12245_v19 = vsel %vm11008_vm7, %v8446_v63, %v4494_v46  ;;  %v10483_v46 = vld [vmem:[%s14372_s6 + $0x478] sm:$0xff]  }
 0x1f9   : > { %14510 = vst [vmem:[#allocation2_spill] sm:$0xff] %v12230_v1  ;;  %v2304_v42 = vadd.f32 %v9118_v13, %v14511_v43  ;;  %3474 = vmatprep.mubr.bf16.mxu1 %v8278_v34  ;;  %v12248_v8 = vadd.f32 %v9289_v33, %v9288_v40  ;;  %v4503_v1 = vrot.slane %v4501_v30, 4  ;;  %v10597_v43 = vld [vmem:[%s10775_s16 + $0x58] sm:$0x11]  ;;  %v8448_v40 = vrot.slane %v8432_v49, 9  ;;  %9869 = vmatprep.subr.bf16.mxu0 %v10483_v46 }
 0x1fa   : > { %v9120_v55 = vpop.f32.mrf.mxu1  ;;  %v4504_v13 = vrot.slane %v10597_v43, 5  ;;  %v9291_v34 = vpop.f32.mrf.mxu0  ;;  %5442 = vmatmul.mubr.bf16.gmra.mxu0 %v10459_v60  ;;  %v4510_v33 = vrot.slane %v4508_v15, 4  ;;  %v4511_v43 = vrot.slane %v10598_v57, 5  ;;  %v8449_v60 = vrot.slane %v8433_v23, 9  ;;  %v10467_v57 = vld [vmem:[%s10775_s16 + $0xdc] ss:$8 sps:$4 sm:$0xff]  }
 0x1fb   : > { %14512 = vst [vmem:[#allocation32_spill] sm:$0xff] %v12248_v8  ;;  %v9121_v63 = vadd.f32 %v9120_v55, %v9119_v16  ;;  %5449 = vmatprep.mubr.bf16.mxu0 %v10464_v56  ;;  %v12259_v25 = vadd.f32 %v14513_v9, %v2304_v42  ;;  %v4518_v8 = vrot.slane %v10599_v0, 5  ;;  %v14515_v55 = vld [vmem:[#allocation5_spill] sm:$0xff]  ;;  %v12272_v9 = vld [vmem:[%s10775_s16 + $0x90] sm:$0xee]  ;;  %9870 = vmatpush3.bf16.msra.mxu0 %v10484_v3 }
 0x1fc   : > { %v9122_v2 = vpop.f32.mrf.mxu1  ;;  %v9292_v16 = vpop.f32.mrf.mxu0  ;;  %v10485_v42 = vld [vmem:[%s14372_s6 + $0x3f8] sm:$0xff]   ;;  %v10486_v3 = vld [vmem:[%s14372_s6 + $0x470] sm:$0xff]   ;;  %v12293_v46 = vsel %vm11008_vm7, %v4503_v1, %v4504_v13  ;;  %v12312_v1 = vsel %vm11008_vm7, %v4510_v33, %v4511_v43  ;;  %v14522_v33 = vrot.slane %v12063_v54, 5 }
 0x1fd   : > { %14514 = vst [vmem:[#allocation31_spill] sm:$0xff] %v12259_v25  ;;  %v2309_v49 = vadd.f32 %v9121_v63, %v14515_v55  ;;  %v12269_v56 = vadd.f32 %v9292_v16, %v9291_v34  ;;  %v12281_v63 = vsel %vm11008_vm7, %v8447_v21, %v4501_v30  ;;  %v10462_v16 = vld [vmem:[%s10775_s16 + $0xc0] ss:$8 sps:$4 sm:$0xff]   ;;  %v4529_v55 = vrot.slane %v12096_v47, 5  ;;  %v14517_v47 = vld [vmem:[#allocation37_spill] sm:$0xff]  ;;  %9757 = vmatprep.subr.bf16.mxu1 %v10485_v42 }
 0x1fe   : > { %v9123_v23 = vpop.f32.mrf.mxu1  ;;  %v9294_v34 = vpop.f32.mrf.mxu0  ;;  %v12297_v30 = vsel %vm11008_vm7, %v8448_v40, %v4508_v15  ;;  %v8435_v21 = vld [vmem:[%s10775_s16 + $0xa8] sm:$0xee]  ;;  %v12316_v15 = vsel %vm11008_vm7, %v8449_v60, %v4515_v6  ;;  %v12320_v13 = vsel %vm11008_vm7, %v4517_v22, %v4518_v8  ;;  %v4524_v43 = vrot.slane %v14522_v33, 4  ;;  %9871 = vmatprep.subr.bf16.mxu0 %v10486_v3  ;;  %v10600_v22 = vld [vmem:[%s10775_s16 + $0xa0] sm:$0x11] }
 0x1ff   : > { %14516 = vst [vmem:[#allocation33_spill] sm:$0xff] %v12269_v56  ;;  %v9124_v0 = vadd.f32 %v9123_v23, %v9122_v2  ;;  %v12302_v25 = vadd.f32 %v14517_v47, %v2309_v49  ;;  %v10488_v56 = vld [vmem:[%s14372_s6 + $0x430] sm:$0xff]   ;;  %v14519_v2 = vcombine.low %v11793_v51, %v11800_v32  ;;  %v14520_v49 = vld [vmem:[#allocation6_spill] sm:$0xff]  ;;  %v14521_v51 = vcombine.high %v11835_v7, %v11846_v41 }
 0x200   : > { %v9125_v29 = vpop.f32.mrf.mxu1  ;;  %v9295_v40 = vpop.f32.mrf.mxu0  ;;  %v8450_v32 = vrot.slane %v12272_v9, 9  ;;  %v4525_v8 = vrot.slane %v10600_v22, 5  ;;  %v8451_v42 = vrot.slane %v8435_v21, 9  ;;  %v10493_v9 = vld [vmem:[%s14372_s6 + $0x468] sm:$0xff]   ;;  %v4536_v3 = vrot.slane %v12117_v38, 5  ;;  %9872 = vmatpush3.bf16.msra.mxu0 %v10488_v56 }
 0x201   : > { %14518 = vst [vmem:[#allocation4_spill] sm:$0xff] %v12302_v25  ;;  %3475 = vmatmul.mubr.bf16.gmra.mxu1 %v14519_v2  ;;  %v2312_v23 = vadd.f32 %v9124_v0, %v14520_v49  ;;  %v12329_v6 = vadd.f32 %v9295_v40, %v9294_v34  ;;  %v4531_v2 = vrot.slane %v4529_v55, 4  ;;  %v10601_v0 = vld [vmem:[%s10775_s16 + $0xb8] sm:$0x11]  ;;  %9873 = vmatprep.subr.bf16.mxu0 %v10493_v9  ;;  %v14525_v56 = vld [vmem:[#allocation7_spill] sm:$0xff] }
 0x202   : > { %3482 = vmatprep.mubr.bf16.mxu1 %v14521_v51  ;;  %v9126_v60 = vpop.f32.mrf.mxu1  ;;  %v9297_v47 = vpop.f32.mrf.mxu0  ;;  %5450 = vmatmul.mubr.bf16.gmra.mxu0 %v10462_v16  ;;  %v4532_v49 = vrot.slane %v10601_v0, 5  ;;  %v10495_v16 = vld [vmem:[%s14372_s6 + $0x428] sm:$0xff]   ;;  %v12373_v9 = vsel %vm11008_vm7, %v8451_v42, %v4529_v55  ;;  %v10499_v55 = vld [vmem:[%s14372_s6 + $0x420] sm:$0xff]   ;;  %v10602_v22 = vld [vmem:[%s10775_s16 + $0xd0] sm:$0x11] }
 0x203   : > { %14523 = vst [vmem:[#allocation35_spill] sm:$0xff] %v12329_v6  ;;  %v9127_v51 = vadd.f32 %v9126_v60, %v9125_v29  ;;  %5457 = vmatprep.mubr.bf16.mxu0 %v10467_v57  ;;  %v12340_v40 = vadd.f32 %v11995_v20, %v2312_v23  ;;  %v8436_v60 = vld [vmem:[%s10775_s16 + $0xc0] sm:$0xee]  ;;  %v4543_v20 = vrot.slane %v12138_v5, 5  ;;  %v8437_v29 = vld [vmem:[%s10775_s16 + $0xd8] sm:$0xee]  ;;  %v12369_v5 = vsel %vm11008_vm7, %v4524_v43, %v4525_v8 }
 0x204   : > { %v9128_v21 = vpop.f32.mrf.mxu1  ;;  %v9298_v38 = vpop.f32.mrf.mxu0  ;;  %v14527_v57 = vrot.slane %v12063_v54, 5  ;;  %14528 = vst [vmem:[#allocation6_spill] sm:$0xff] %v12373_v9  ;;  %v10497_v54 = vld [vmem:[%s14372_s6 + $0x460] sm:$0xff]   ;;  %v4538_v43 = vrot.slane %v4536_v3, 4  ;;  %v10470_v8 = vld [vmem:[%s10775_s16 + $0xf4] ss:$8 sps:$4 sm:$0xff]   ;;  %9874 = vmatpush3.bf16.msra.mxu0 %v10495_v16 }
 0x205   : > { %14524 = vst [vmem:[#allocation5_spill] sm:$0xff] %v12340_v40  ;;  %v2317_v23 = vadd.f32 %v9127_v51, %v14525_v56  ;;  %v12358_v33 = vadd.f32 %v9298_v38, %v9297_v47  ;;  %v12377_v47 = vsel %vm11008_vm7, %v4531_v2, %v4532_v49  ;;  %v10465_v38 = vld [vmem:[%s10775_s16 + $0xd8] ss:$8 sps:$4 sm:$0xff]   ;;  %v14531_v2 = vcombine.low %v11835_v7, %v11846_v41  ;;  %v10603_v0 = vld [vmem:[%s10775_s16 + $0xe8] sm:$0x11]  ;;  %v14532_v16 = vld [vmem:[#allocation8_spill] sm:$0xff] }
 0x206   : > { %v9129_v34 = vpop.f32.mrf.mxu1  ;;  %v12365_v40 = vsel %vm11008_vm7, %v8450_v32, %v14527_v57  ;;  %14529 = vst [vmem:[#allocation7_spill] sm:$0xff] %v12377_v47  ;;  %v9300_v51 = vpop.f32.mrf.mxu0  ;;  %v8452_v57 = vrot.slane %v8436_v60, 9  ;;  %v4545_v60 = vrot.slane %v4543_v20, 4  ;;  %9875 = vmatprep.subr.bf16.mxu0 %v10497_v54  ;;  %v8438_v41 = vld [vmem:[%s10775_s16 + $0xf0] sm:$0xee]  ;;  %v10605_v25 = vld [vmem:[%s10775_s16 + $0x128] sm:$0xff] }
 0x207   : > { %14526 = vst [vmem:[#allocation37_spill] sm:$0xff] %v12358_v33  ;;  %v9130_v32 = vadd.f32 %v9129_v34, %v9128_v21  ;;  %v12385_v56 = vadd.f32 %v12026_v37, %v2317_v23  ;;  %v4539_v34 = vrot.slane %v10602_v22, 5  ;;  %v8453_v21 = vrot.slane %v8437_v29, 9  ;;  %v8440_v54 = vld [vmem:[%s10775_s16 + $0x120] sm:$0xee] }
 0x208   : > { %v9131_v42 = vpop.f32.mrf.mxu1  ;;  %v9301_v49 = vpop.f32.mrf.mxu0  ;;  %v4546_v37 = vrot.slane %v10603_v0, 5  ;;  %v4550_v29 = vrot.slane %v12158_v39, 5  ;;  %v12417_v39 = vsel %vm11008_vm7, %v8452_v57, %v4536_v3  ;;  %v8439_v0 = vld [vmem:[%s10775_s16 + $0x108] sm:$0xee]  ;;  %9876 = vmatpush3.bf16.msra.mxu0 %v10499_v55  ;;  %v10607_v47 = vld [vmem:[%s10775_s16 + $0x118] sm:$0x11] }
 0x209   : > { %14530 = vst [vmem:[#allocation56_spill] sm:$0xff] %v12385_v56  ;;  %3483 = vmatmul.mubr.bf16.gmra.mxu1 %v14531_v2  ;;  %v2320_v23 = vadd.f32 %v9130_v32, %v14532_v16  ;;  %v14533_v56 = vcombine.high %v14508_v28, %v14507_v53  ;;  %v12401_v7 = vadd.f32 %v9301_v49, %v9300_v51  ;;  %v10604_v2 = vld [vmem:[%s10775_s16 + $0x110] sm:$0xff]  ;;  %v10504_v49 = vld [vmem:[%s14372_s6 + $0x458] sm:$0xff]   ;;  %v4564_v32 = vrot.slane %v10605_v25, 5 }
 0x20a   : > { %v9132_v22 = vpop.f32.mrf.mxu1  ;;  %5458 = vmatmul.mubr.bf16.gmra.mxu0 %v10465_v38  ;;  %v4557_v51 = vrot.slane %v10604_v2, 5  ;;  %v10506_v2 = vld [vmem:[%s14372_s6 + $0x418] sm:$0xff]   ;;  %v12430_v3 = vsel %vm11008_vm7, %v4538_v43, %v4539_v34  ;;  %v12434_v57 = vsel %vm11008_vm7, %v8453_v21, %v4543_v20  ;;  %v8454_v25 = vrot.slane %v8438_v41, 9  ;;  %9877 = vmatprep.subr.bf16.mxu0 %v10504_v49  ;;  %v10606_v43 = vld [vmem:[%s10775_s16 + $0x100] sm:$0x11] }
 0x20b   : > { %3490 = vmatprep.mubr.bf16.mxu1 %v14533_v56  ;;  %14534 = vst [vmem:[#allocation8_spill] sm:$0xff] %v12401_v7  ;;  %v9303_v56 = vpop.f32.mrf.mxu0  ;;  %v9133_v16 = vadd.f32 %v9132_v22, %v9131_v42  ;;  %5465 = vmatprep.mubr.bf16.mxu0 %v10470_v8  ;;  %v12423_v38 = vadd.f32 %v12041_v36, %v2320_v23  ;;  %v14536_v8 = vld [vmem:[#allocation9_spill] sm:$0xff]  ;;  %v4552_v7 = vrot.slane %v4550_v29, 4  ;;  %v4553_v34 = vrot.slane %v10606_v43, 5  ;;  %v10473_v49 = vld [vmem:[%s10775_s16 + $0x10c] ss:$8 sps:$4 sm:$0xff]  }
 0x20c   : > { %v9134_v42 = vpop.f32.mrf.mxu1  ;;  %v12438_v36 = vsel %vm11008_vm7, %v4545_v60, %v4546_v37  ;;  %v8455_v20 = vrot.slane %v8439_v0, 9  ;;  %v4559_v21 = vrot.slane %v4557_v51, 4  ;;  %v4560_v9 = vrot.slane %v10607_v47, 5  ;;  %v10508_v37 = vld [vmem:[%s14372_s6 + $0x450] sm:$0xff]   ;;  %9878 = vmatpush3.bf16.msra.mxu0 %v10506_v2  ;;  %v14539_v2 = vld [vmem:[#allocation10_spill] sm:$0xff] }
 0x20d   : > { %14535 = vst [vmem:[#allocation57_spill] sm:$0xff] %v12423_v38  ;;  %v9304_v22 = vpop.f32.mrf.mxu0  ;;  %v2325_v55 = vadd.f32 %v9133_v16, %v14536_v8  ;;  %v10468_v38 = vld [vmem:[%s10775_s16 + $0xf0] ss:$8 sps:$4 sm:$0xff]   ;;  %v8456_v60 = vrot.slane %v8440_v54, 9  ;;  %v14538_v47 = vcombine.low %v14508_v28, %v14507_v53  ;;  %9879 = vmatprep.subr.bf16.mxu0 %v10508_v37  ;;  %v12474_v53 = vsel %vm11008_vm7, %v8454_v25, %v4550_v29  ;;  %v10476_v37 = vld [vmem:[%s10775_s16 + $0x124] ss:$8 sps:$4 sm:$0xff]  }
 0x20e   : > { %v12441_v23 = vadd.f32 %v9304_v22, %v9303_v56  ;;  %v9135_v33 = vpop.f32.mrf.mxu1  ;;  %v4566_v56 = vrot.slane %v4564_v32, 4  ;;  %v10608_v16 = vld [vmem:[%s10775_s16 + $0x130] sm:$0x11]  ;;  %v12478_v28 = vsel %vm11008_vm7, %v4552_v7, %v4553_v34  ;;  %v12488_v29 = vsel %vm11008_vm7, %v4559_v21, %v4560_v9  ;;  %v10517_v9 = vld [vmem:[%s14372_s6 + $0x408] sm:$0xff]   ;;  %v8442_v54 = vld [vmem:[%s10775_s16 + $0x150] sm:$0xee] }
 0x20f   : > { %v9306_v6 = vpop.f32.mrf.mxu0  ;;  %v9136_v41 = vadd.f32 %v9135_v33, %v9134_v42  ;;  %v4567_v22 = vrot.slane %v10608_v16, 5  ;;  %v12452_v8 = vadd.f32 %v12066_v59, %v2325_v55  ;;  %v10510_v0 = vld [vmem:[%s14372_s6 + $0x410] sm:$0xff]   ;;  %v14540_v16 = vcombine.high %v11947_v50, %v11950_v10  ;;  %14542 = vst [vmem:[#allocation58_spill] sm:$0xff] %v12478_v28  ;;  %14544 = vst [vmem:[#allocation60_spill] sm:$0xff] %v12488_v29 }
 0x210   : > { %v9137_v43 = vpop.f32.mrf.mxu1  ;;  %v12492_v7 = vsel %vm11008_vm7, %v8456_v60, %v4564_v32  ;;  %9880 = vmatpush3.bf16.msra.mxu0 %v10510_v0  ;;  %v12508_v32 = vld [vmem:[%s10775_s16 + $0x38] sm:$0xff]  ;;  %v14548_v0 = vld [vmem:[#allocation11_spill] sm:$0xff] }
 0x211   : > { %14537 = vst [vmem:[#allocation9_spill] sm:$0xff] %v12452_v8  ;;  %3491 = vmatmul.mubr.bf16.gmra.mxu1 %v14538_v47  ;;  %v9307_v42 = vpop.f32.mrf.mxu0  ;;  %v2328_v55 = vadd.f32 %v9136_v41, %v14539_v2  ;;  %14545 = vst [vmem:[#allocation61_spill] sm:$0xff] %v12492_v7  ;;  %v12499_v34 = vsel %vm11008_vm7, %v4566_v56, %v4567_v22  ;;  %v5620_v56 = vshll.u32 %v12508_v32, 16  ;;  %v5624_v22 = vshrl.u32 %v12508_v32, 16  ;;  %v10609_v2 = vld [vmem:[%s10775_s16 + $0x140] sm:$0xff] }
 0x212   : > { %3498 = vmatprep.mubr.bf16.mxu1 %v14540_v16  ;;  %v12470_v8 = vadd.f32 %v9307_v42, %v9306_v6  ;;  %v9138_v47 = vpop.f32.mrf.mxu1  ;;  %5466 = vmatmul.mubr.bf16.gmra.mxu0 %v10468_v38  ;;  %v12484_v6 = vsel %vm11008_vm7, %v8455_v20, %v4557_v51  ;;  %v10515_v38 = vld [vmem:[%s14372_s6 + $0x448] sm:$0xff]   ;;  %14546 = vst [vmem:[#allocation62_spill] sm:$0xff] %v12499_v34 }
 0x213   : > { %v9437_v59 = vpop.f32.mrf.mxu0  ;;  %14543 = vst [vmem:[#allocation59_spill] sm:$0xff] %v12484_v6  ;;  %v9139_v25 = vadd.f32 %v9138_v47, %v9137_v43  ;;  %5473 = vmatprep.mubr.bf16.mxu0 %v10473_v49  ;;  %v12502_v51 = vadd.f32 %v12073_v4, %v2328_v55  ;;  %v12515_v49 = vld [vmem:[%s10775_s16 + $0x138] sm:$0xee]  ;;  %9881 = vmatprep.subr.bf16.mxu0 %v10515_v38  ;;  %v8653_v4 = vld [vmem:[%s10775_s16 + $0x30] sm:$0xff]  ;;  %v4571_v55 = vrot.slane %v10609_v2, 5  ;;  %v5622_v34 = vrot.slane %v5620_v56, 5 }
 0x214   : > { %14541 = vst [vmem:[#allocation10_spill] sm:$0xff] %v12470_v8  ;;  %v9140_v20 = vpop.f32.mrf.mxu1  ;;  %v5611_v16 = vshrl.u32 %v8653_v4, 16  ;;  %v10471_v41 = vld [vmem:[%s10775_s16 + $0x108] ss:$8 sps:$4 sm:$0xff]   ;;  %v8457_v2 = vrot.slane %v12515_v49, 9  ;;  %9882 = vmatpush3.bf16.msra.mxu0 %v10517_v9 }
 0x215   : > { %14547 = vst [vmem:[#allocation63_spill] sm:$0xff] %v12502_v51  ;;  %v9438_v21 = vpop.f32.mrf.mxu0  ;;  %v2333_v43 = vadd.f32 %v9139_v25, %v14548_v0  ;;  %v10610_v51 = vld [vmem:[%s10775_s16 + $0x158] sm:$0xff]  ;;  %v10521_v25 = vld [vmem:[%s14372_s6 + $0x400] sm:$0xff]   ;;  %v4573_v29 = vrot.slane %v4571_v55, 4 }
 0x216   : > { %v12521_v42 = vadd.f32 %v9438_v21, %v9437_v59  ;;  %v9141_v47 = vpop.f32.mrf.mxu1  ;;  %v10519_v21 = vld [vmem:[%s14372_s6 + $0x440] sm:$0xff]   ;;  %v4578_v38 = vrot.slane %v10610_v51, 5  ;;  %v14551_v59 = vcombine.low %v11947_v50, %v11950_v10  ;;  %v5614_v51 = vshll.u32 %v8653_v4, 16  ;;  %v10611_v4 = vld [vmem:[%s10775_s16 + $0x148] sm:$0x11] }
 0x217   : > { %v9440_v60 = vpop.f32.mrf.mxu0  ;;  %v9142_v0 = vadd.f32 %v9141_v47, %v9140_v20  ;;  %9883 = vmatprep.subr.bf16.mxu0 %v10519_v21  ;;  %v12550_v49 = vld [vmem:[%s10775_s16 + $0x40] sm:$0x11]  ;;  %v5613_v47 = vrot.slane %v5611_v16, 4  ;;  %v4574_v56 = vrot.slane %v10611_v4, 5 }
 0x218   : > { %14549 = vst [vmem:[#allocation11_spill] sm:$0xff] %v12521_v42  ;;  %v12541_v42 = vadd.f32 %v12083_v17, %v2333_v43  ;;  %v9143_v33 = vpop.f32.mrf.mxu1  ;;  %v5626_v17 = vrot.slane %v5624_v22, 4  ;;  %v14552_v43 = vld [vmem:[#allocation12_spill] sm:$0xff]  ;;  %v5630_v50 = vshll.u32 %v12550_v49, 16  ;;  %v8458_v22 = vrot.slane %v8442_v54, 9  ;;  %9884 = vmatpush3.bf16.msra.mxu0 %v10521_v25  ;;  %v10487_v25 = vld [vmem:[%s14372_s6 + $0x3b8] sm:$0xff]  }
 0x219   : > { %3499 = vmatmul.mubr.bf16.gmra.mxu1 %v14551_v59  ;;  %v9441_v20 = vpop.f32.mrf.mxu0  ;;  %v2336_v9 = vadd.f32 %v9142_v0, %v14552_v43  ;;  %v5616_v16 = vrot.slane %v5614_v51, 5  ;;  %v4580_v43 = vrot.slane %v4578_v38, 4  ;;  %v10612_v8 = vld [vmem:[%s10775_s16 + $0x160] sm:$0x11] }
 0x21a   : > { %14550 = vst [vmem:[#allocation64_spill] sm:$0xff] %v12541_v42  ;;  %v14553_v42 = vcombine.high %v12213_v24, %v12219_v52  ;;  %v12556_v7 = vadd.f32 %v9441_v20, %v9440_v60  ;;  %v9144_v10 = vpop.f32.mrf.mxu1  ;;  %5474 = vmatmul.mubr.bf16.gmra.mxu0 %v10471_v41  ;;  %v5627_v21 = vor.u32 %v5626_v17, %v5622_v34  ;;  %v12564_v20 = vld [vmem:[%s10775_s16 + $0x50] sm:$0xff]  ;;  %v4581_v28 = vrot.slane %v10612_v8, 5  ;;  %v10474_v8 = vld [vmem:[%s10775_s16 + $0x120] ss:$8 sps:$4 sm:$0xff]  }
 0x21b   : > { %v9443_v59 = vpop.f32.mrf.mxu0  ;;  %v9145_v0 = vadd.f32 %v9144_v10, %v9143_v33  ;;  %5481 = vmatprep.mubr.bf16.mxu0 %v10476_v37  ;;  %v12561_v60 = vadd.f32 %v12089_v45, %v2336_v9  ;;  %v5617_v4 = vor.u32 %v5616_v16, %v5613_v47  ;;  %v14556_v33 = vld [vmem:[#allocation13_spill] sm:$0xff]  ;;  %v12573_v45 = vsel %vm11008_vm7, %v8457_v2, %v4571_v55 }
 0x21c   : > { %4886 = vmatprep.mubr.bf16.mxu1 %v14553_v42  ;;  %14554 = vst [vmem:[#allocation12_spill] sm:$0xff] %v12556_v7  ;;  %v5632_v42 = vrot.slane %v5630_v50, 5  ;;  %v8656_v7 = vld [vmem:[%s10775_s16 + $0x48] sm:$0xff]  ;;  %v9146_v6 = vpop.f32.mrf.mxu1  ;;  %v5628_v54 = vrot.slane %v5627_v21, 4  ;;  %14557 = vst [vmem:[#allocation13_spill] sm:$0xff] %v12573_v45  ;;  %v12581_v47 = vsel %vm11008_vm7, %v4573_v29, %v4574_v56  ;;  %v5644_v2 = vshll.u32 %v12564_v20, 16 }
 0x21d   : > { %14555 = vst [vmem:[#allocation65_spill] sm:$0xff] %v12561_v60  ;;  %v9444_v41 = vpop.f32.mrf.mxu0  ;;  %v5635_v51 = vshrl.u32 %v8656_v7, 16  ;;  %v2341_v37 = vadd.f32 %v9145_v0, %v14556_v33  ;;  %v5638_v9 = vshll.u32 %v8656_v7, 16  ;;  %14558 = vst [vmem:[#allocation66_spill] sm:$0xff] %v12581_v47  ;;  %v5618_v16 = vrot.slane %v5617_v4, 4 }
 0x21e   : > { %v12569_v17 = vadd.f32 %v9444_v41, %v9443_v59  ;;  %v9147_v50 = vpop.f32.mrf.mxu1  ;;  %v10492_v59 = vld [vmem:[%s14372_s6 + $0x3f0] sm:$0xff]   ;;  %v12588_v55 = vsel %vm10805_vm4, %v5628_v54, %v5632_v42  ;;  %v10479_v21 = vld [vmem:[%s10775_s16 + $0x13c] ss:$8 sps:$4 sm:$0xff]   ;;  %v12594_v0 = vsel %vm11008_vm7, %v8458_v22, %v4578_v38  ;;  %v14561_v4 = vcombine.low %v12213_v24, %v12219_v52 }
 0x21f   : > { %v9446_v10 = vpop.f32.mrf.mxu0  ;;  %14559 = vst [vmem:[#allocation67_spill] sm:$0xff] %v12588_v55  ;;  %v9148_v7 = vadd.f32 %v9147_v50, %v9146_v6  ;;  %v12597_v29 = vadd.f32 %v12103_v18, %v2341_v37  ;;  %v5637_v56 = vrot.slane %v5635_v51, 4  ;;  %v12604_v6 = vsel %vm11008_vm7, %v4580_v43, %v4581_v28  ;;  %v12607_v54 = vld [vmem:[%s10775_s16 + $0x170] sm:$0xff]  ;;  %v14563_v51 = vld [vmem:[#allocation14_spill] sm:$0xff]  ;;  %v12624_v43 = vld [vmem:[%s10775_s16 + $0x168] sm:$0xee] }
 0x220   : > { %v9149_v41 = vpop.f32.mrf.mxu1  ;;  %v12612_v18 = vsel %vm10805_vm4, %v5618_v16, %v5622_v34  ;;  %v5640_v22 = vrot.slane %v5638_v9, 5  ;;  %v14564_v24 = vcombine.high %v12245_v19, %v12252_v26  ;;  %v10494_v28 = vld [vmem:[%s14372_s6 + $0x3b0] sm:$0xff]   ;;  %v12629_v37 = vld [vmem:[%s10775_s16 + $0x58] sm:$0x11]  ;;  %v5648_v9 = vshrl.u32 %v12564_v20, 16  ;;  %v8659_v34 = vld [vmem:[%s10775_s16 + $0x60] sm:$0xff] }
 0x221   : > { %14560 = vst [vmem:[#allocation68_spill] sm:$0xff] %v12597_v29  ;;  %4887 = vmatmul.mubr.bf16.vlgmr.msra.gmra.mxu1 %v14561_v4  ;;  %v9447_v42 = vpop.f32.mrf.mxu0  ;;  %14562 = vst [vmem:[#allocation69_spill] sm:$0xff] %v12612_v18  ;;  %v2344_v33 = vadd.f32 %v9148_v7, %v14563_v51  ;;  %v5646_v4 = vrot.slane %v5644_v2, 5  ;;  %v5662_v2 = vshll.u32 %v8659_v34, 16  ;;  %v10615_v18 = vld [vmem:[%s10775_s16 + $0x178] sm:$0x11] }
 0x222   : > { %4894 = vmatprep.mubr.bf16.mxu1 %v14564_v24  ;;  %v12618_v52 = vadd.f32 %v9447_v42, %v9446_v10  ;;  %9758 = vmatpush3.bf16.msra.mxu1 %v10487_v25  ;;  %v9150_v50 = vpop.f32.mrf.mxu1  ;;  %v10496_v25 = vld [vmem:[%s14372_s6 + $0x3e8] sm:$0xff]   ;;  %v5641_v7 = vor.u32 %v5640_v22, %v5637_v56  ;;  %v5654_v42 = vshll.u32 %v12629_v37, 16  ;;  %v8459_v56 = vrot.slane %v12624_v43, 9  ;;  %v8444_v47 = vld [vmem:[%s10775_s16 + $0x180] sm:$0xee] }
 0x223   : > { %v9449_v16 = vpop.f32.mrf.mxu0  ;;  %5482 = vmatmul.mubr.bf16.gmra.mxu0 %v10474_v8  ;;  %9759 = vmatprep.subr.bf16.mxu1 %v10492_v59  ;;  %v9151_v51 = vadd.f32 %v9150_v50, %v9149_v41  ;;  %v12643_v59 = vadd.f32 %v12110_v48, %v2344_v33  ;;  %v5650_v41 = vrot.slane %v5648_v9, 4  ;;  %v14567_v22 = vld [vmem:[#allocation15_spill] sm:$0xff]  ;;  %v5659_v8 = vshrl.u32 %v8659_v34, 16  ;;  %v10503_v9 = vld [vmem:[%s14372_s6 + $0x3e0] sm:$0xff]   ;;  %v10482_v34 = vld [vmem:[%s10775_s16 + $0x154] ss:$8 sps:$4 sm:$0xff]  }
 0x224   : > { %14565 = vst [vmem:[#allocation14_spill] sm:$0xff] %v12618_v52  ;;  %5489 = vmatprep.mubr.bf16.mxu0 %v10479_v21  ;;  %v9152_v38 = vpop.f32.mrf.mxu1  ;;  %v5642_v21 = vrot.slane %v5641_v7, 4  ;;  %v10498_v48 = vld [vmem:[%s14372_s6 + $0x3a8] sm:$0xff]   ;;  %v10477_v7 = vld [vmem:[%s10775_s16 + $0x138] ss:$8 sps:$4 sm:$0xff]   ;;  %v5656_v29 = vrot.slane %v5654_v42, 5 }
 0x225   : > { %14566 = vst [vmem:[#allocation70_spill] sm:$0xff] %v12643_v59  ;;  %v9450_v10 = vpop.f32.mrf.mxu0  ;;  %v2349_v50 = vadd.f32 %v9151_v51, %v14567_v22  ;;  %v12656_v33 = vld [vmem:[%s10775_s16 + $0x68] sm:$0xff]  ;;  %v5651_v22 = vor.u32 %v5650_v41, %v5646_v4  ;;  %v4588_v60 = vrot.slane %v10615_v18, 5  ;;  %v5661_v42 = vrot.slane %v5659_v8, 4  ;;  %v14573_v18 = vld [vmem:[#allocation16_spill] sm:$0xff] }
 0x226   : > { %v12650_v24 = vadd.f32 %v9450_v10, %v9449_v16  ;;  %9760 = vmatpush3.bf16.msra.mxu1 %v10494_v28  ;;  %v9153_v43 = vpop.f32.mrf.mxu1  ;;  %v14569_v28 = vrot.slane %v12607_v54, 5  ;;  %v12667_v10 = vld [vmem:[%s10775_s16 + $0x188] sm:$0xff]  ;;  %v12678_v45 = vsel %vm10805_vm4, %v5642_v21, %v5646_v4 }
 0x227   : > { %v9452_v59 = vpop.f32.mrf.mxu0  ;;  %9761 = vmatprep.subr.bf16.mxu1 %v10496_v25  ;;  %v9154_v55 = vadd.f32 %v9153_v43, %v9152_v38  ;;  %v12674_v25 = vadd.f32 %v12124_v12, %v2349_v50  ;;  %14571 = vst [vmem:[#allocation72_spill] sm:$0xff] %v12678_v45  ;;  %v5652_v41 = vrot.slane %v5651_v22, 4  ;;  %v5664_v38 = vrot.slane %v5662_v2, 5  ;;  %v12717_v22 = vld [vmem:[%s10775_s16 + $0x70] sm:$0x11] }
 0x228   : > { %14568 = vst [vmem:[#allocation15_spill] sm:$0xff] %v12650_v24  ;;  %v12664_v16 = vrot.slane %v14569_v28, 4  ;;  %v9155_v28 = vpop.f32.mrf.mxu1  ;;  %v14572_v24 = vcombine.low %v12245_v19, %v12252_v26  ;;  %v5668_v43 = vshll.u32 %v12656_v33, 16  ;;  %v14574_v12 = vcombine.high %v12281_v63, %v12293_v46  ;;  %v10505_v26 = vld [vmem:[%s14372_s6 + $0x3a0] sm:$0xff]  }
 0x229   : > { %14570 = vst [vmem:[#allocation71_spill] sm:$0xff] %v12674_v25  ;;  %v9453_v51 = vpop.f32.mrf.mxu0  ;;  %v2352_v52 = vadd.f32 %v9154_v55, %v14573_v18  ;;  %v14575_v19 = vrot.slane %v12607_v54, 5  ;;  %v5672_v55 = vshrl.u32 %v12656_v33, 16  ;;  %v8460_v2 = vrot.slane %v8444_v47, 9  ;;  %v8662_v18 = vld [vmem:[%s10775_s16 + $0x78] sm:$0xff] }
 0x22a   : > { %4895 = vmatmul.mubr.bf16.gmra.mxu1 %v14572_v24  ;;  %v12688_v50 = vadd.f32 %v9453_v51, %v9452_v59  ;;  %v9156_v24 = vpop.f32.mrf.mxu1  ;;  %v10507_v59 = vld [vmem:[%s14372_s6 + $0x3d8] sm:$0xff]   ;;  %v14576_v54 = vrot.slane %v12667_v10, 5  ;;  %v5683_v47 = vshrl.u32 %v8662_v18, 16 }
 0x22b   : > { %4902 = vmatprep.mubr.bf16.mxu1 %v14574_v12  ;;  %9762 = vmatpush3.bf16.msra.mxu1 %v10498_v48  ;;  %v12697_v4 = vsel %vm11008_vm7, %v8459_v56, %v14575_v19  ;;  %v9455_v8 = vpop.f32.mrf.mxu0  ;;  %v12707_v56 = vsel %vm10805_vm4, %v5652_v41, %v5656_v29  ;;  %v5670_v48 = vrot.slane %v5668_v43, 5  ;;  %v9157_v51 = vadd.f32 %v9156_v24, %v9155_v28  ;;  %v10616_v29 = vld [vmem:[%s10775_s16 + $0x190] sm:$0x11] }
 0x22c   : > { %5490 = vmatmul.mubr.bf16.gmra.mxu0 %v10477_v7  ;;  %9763 = vmatprep.subr.bf16.mxu1 %v10503_v9  ;;  %v4594_v21 = vrot.slane %v14576_v54, 4  ;;  %14577 = vst [vmem:[#allocation16_spill] sm:$0xff] %v12707_v56  ;;  %v12710_v7 = vadd.f32 %v12131_v31, %v2352_v52  ;;  %v9158_v12 = vpop.f32.mrf.mxu1  ;;  %v4595_v41 = vrot.slane %v10616_v29, 5  ;;  %v5665_v28 = vor.u32 %v5664_v38, %v5661_v42  ;;  %v14579_v31 = vld [vmem:[#allocation17_spill] sm:$0xff]  ;;  %v10514_v42 = vld [vmem:[%s14372_s6 + $0x3d0] sm:$0xff]  }
 0x22d   : > { %5497 = vmatprep.mubr.bf16.mxu0 %v10482_v34  ;;  %v9456_v19 = vpop.f32.mrf.mxu0  ;;  %v5674_v43 = vrot.slane %v5672_v55, 4  ;;  %v5678_v34 = vshll.u32 %v12717_v22, 16  ;;  %v2357_v52 = vadd.f32 %v9157_v51, %v14579_v31  ;;  %v10480_v54 = vld [vmem:[%s10775_s16 + $0x150] ss:$8 sps:$4 sm:$0xff]   ;;  %v10491_v31 = vld [vmem:[%s10775_s16 + $0x16c] ss:$8 sps:$4 sm:$0xff]  }
 0x22e   : > { %14578 = vst [vmem:[#allocation73_spill] sm:$0xff] %v12710_v7  ;;  %v12723_v24 = vadd.f32 %v9456_v19, %v9455_v8  ;;  %v10509_v9 = vld [vmem:[%s14372_s6 + $0x398] sm:$0xff]   ;;  %v5686_v7 = vshll.u32 %v8662_v18, 16  ;;  %v9159_v25 = vpop.f32.mrf.mxu1  ;;  %v12733_v38 = vld [vmem:[%s10775_s16 + $0x30] sm:$0xee]  ;;  %v5666_v8 = vrot.slane %v5665_v28, 4  ;;  %v12740_v18 = vsel %vm11008_vm7, %v12664_v16, %v4588_v60 }
 0x22f   : > { %9764 = vmatpush3.bf16.msra.mxu1 %v10505_v26  ;;  %v9458_v29 = vpop.f32.mrf.mxu0  ;;  %v5675_v26 = vor.u32 %v5674_v43, %v5670_v48  ;;  %v5680_v51 = vrot.slane %v5678_v34, 5  ;;  %v9160_v19 = vadd.f32 %v9159_v25, %v9158_v12  ;;  %v12749_v45 = vadd.f32 %v12145_v11, %v2357_v52  ;;  %v12752_v55 = vld [vmem:[%s10775_s16 + $0x80] sm:$0xff] }
 0x230   : > { %9765 = vmatprep.subr.bf16.mxu1 %v10507_v59  ;;  %v14580_v59 = vrot.slane %v12667_v10, 5  ;;  %v9161_v28 = vpop.f32.mrf.mxu1  ;;  %v14582_v25 = vcombine.low %v12281_v63, %v12293_v46  ;;  %v12759_v60 = vsel %vm11008_vm7, %v4594_v21, %v4595_v41  ;;  %v12763_v16 = vsel %vm10805_vm4, %v5666_v8, %v5670_v48  ;;  %v14584_v11 = vld [vmem:[#allocation18_spill] sm:$0xff]  ;;  %v10516_v46 = vld [vmem:[%s14372_s6 + $0x390] sm:$0xff]   ;;  %v10518_v41 = vld [vmem:[%s14372_s6 + $0x3c8] sm:$0xff]  }
 0x231   : > { %14581 = vst [vmem:[#allocation17_spill] sm:$0xff] %v12749_v45  ;;  %v9459_v12 = vpop.f32.mrf.mxu0  ;;  %14583 = vst [vmem:[#allocation74_spill] sm:$0xff] %v12763_v16  ;;  %v5676_v10 = vrot.slane %v5675_v26, 4  ;;  %v2360_v43 = vadd.f32 %v9160_v19, %v14584_v11  ;;  %v14585_v34 = vcombine.high %v12297_v30, %v12312_v1  ;;  %v8797_v63 = vrot.slane %v12733_v38, 9  ;;  %v10502_v19 = vld [vmem:[%s10775_s16 + $0x184] ss:$8 sps:$4 sm:$0xff]  }
 0x232   : > { %v12746_v56 = vsel %vm11008_vm7, %v8460_v2, %v14580_v59  ;;  %4903 = vmatmul.mubr.bf16.gmra.mxu1 %v14582_v25  ;;  %v5685_v2 = vrot.slane %v5683_v47, 4  ;;  %v12769_v52 = vadd.f32 %v9459_v12, %v9458_v29  ;;  %v5688_v21 = vrot.slane %v5686_v7, 5  ;;  %v9162_v48 = vpop.f32.mrf.mxu1  ;;  %v12794_v59 = vld [vmem:[%s10775_s16 + $0x88] sm:$0x11] }
 0x233   : > { %4910 = vmatprep.mubr.bf16.mxu1 %v14585_v34  ;;  %9766 = vmatpush3.bf16.msra.mxu1 %v10509_v9  ;;  %v9461_v47 = vpop.f32.mrf.mxu0  ;;  %v14586_v29 = vrot.slane %v12508_v32, 5  ;;  %v6513_v8 = vrot.slane %v12550_v49, 5  ;;  %v12783_v26 = vsel %vm10805_vm4, %v5676_v10, %v5680_v51  ;;  %v5692_v7 = vshll.u32 %v12752_v55, 16  ;;  %v8665_v49 = vld [vmem:[%s10775_s16 + $0x90] sm:$0xff] }
 0x234   : > { %5498 = vmatmul.mubr.bf16.gmra.mxu0 %v10480_v54  ;;  %9767 = vmatprep.subr.bf16.mxu1 %v10514_v42  ;;  %14587 = vst [vmem:[#allocation18_spill] sm:$0xff] %v12783_v26  ;;  %v9163_v38 = vadd.f32 %v9162_v48, %v9161_v28  ;;  %v12787_v54 = vadd.f32 %v12152_v35, %v2360_v43  ;;  %v9164_v25 = vpop.f32.mrf.mxu1  ;;  %v5696_v28 = vshrl.u32 %v12752_v55, 16  ;;  %v14589_v35 = vld [vmem:[#allocation19_spill] sm:$0xff]  ;;  %v5707_v42 = vshrl.u32 %v8665_v49, 16  ;;  %v14593_v34 = vld [vmem:[#allocation20_spill] sm:$0xff] }
 0x235   : > { %v6512_v9 = vrot.slane %v14586_v29, 4  ;;  %5505 = vmatprep.mubr.bf16.mxu0 %v10491_v31  ;;  %v9462_v51 = vpop.f32.mrf.mxu0  ;;  %v5689_v12 = vor.u32 %v5688_v21, %v5685_v2  ;;  %v5694_v10 = vrot.slane %v5692_v7, 5  ;;  %v5702_v31 = vshll.u32 %v12794_v59, 16  ;;  %v10520_v2 = vld [vmem:[%s14372_s6 + $0x388] sm:$0xff]  }
 0x236   : > { %14588 = vst [vmem:[#allocation75_spill] sm:$0xff] %v12787_v54  ;;  %v2365_v11 = vadd.f32 %v9163_v38, %v14589_v35  ;;  %v12800_v43 = vadd.f32 %v9462_v51, %v9461_v47  ;;  %v9165_v21 = vpop.f32.mrf.mxu1  ;;  %v10489_v7 = vld [vmem:[%s10775_s16 + $0x168] ss:$8 sps:$4 sm:$0xff]   ;;  %v10522_v47 = vld [vmem:[%s14372_s6 + $0x3c0] sm:$0xff]   ;;  %v5698_v35 = vrot.slane %v5696_v28, 4  ;;  %v14594_v45 = vcombine.high %v12316_v15, %v12320_v13 }
 0x237   : > { %9768 = vmatpush3.bf16.msra.mxu1 %v10516_v46  ;;  %v9464_v29 = vpop.f32.mrf.mxu0  ;;  %v5690_v51 = vrot.slane %v5689_v12, 4  ;;  %v9166_v46 = vadd.f32 %v9165_v21, %v9164_v25  ;;  %v14591_v12 = vcombine.low %v12297_v30, %v12312_v1  ;;  %v14592_v25 = vrot.slane %v12508_v32, 5  ;;  %v10523_v1 = vld [vmem:[%s14372_s6 + $0x380] sm:$0xff]   ;;  %v8782_v32 = vld [vmem:[%s10775_s16 + $0x48] sm:$0xee] }
 0x238   : > { %9769 = vmatprep.subr.bf16.mxu1 %v10518_v41  ;;  %v12821_v54 = vadd.f32 %v12164_v14, %v2365_v11  ;;  %v12824_v41 = vld [vmem:[%s10775_s16 + $0x98] sm:$0xff]  ;;  %v9167_v38 = vpop.f32.mrf.mxu1  ;;  %v12837_v48 = vsel %vm11008_vm7, %v6512_v9, %v6513_v8  ;;  %v5699_v14 = vor.u32 %v5698_v35, %v5694_v10  ;;  %v5704_v11 = vrot.slane %v5702_v31, 5 }
 0x239   : > { %v9465_v28 = vpop.f32.mrf.mxu0  ;;  %v12833_v21 = vsel %vm11008_vm7, %v8797_v63, %v14592_v25  ;;  %v6517_v63 = vrot.slane %v12564_v20, 5  ;;  %v5710_v9 = vshll.u32 %v8665_v49, 16  ;;  %v12859_v20 = vld [vmem:[%s10775_s16 + $0xa0] sm:$0x11] }
 0x23a   : > { %14590 = vst [vmem:[#allocation19_spill] sm:$0xff] %v12821_v54  ;;  %4911 = vmatmul.mubr.bf16.gmra.mxu1 %v14591_v12  ;;  %v2368_v54 = vadd.f32 %v9166_v46, %v14593_v34  ;;  %v12843_v30 = vadd.f32 %v9465_v28, %v9464_v29  ;;  %v9168_v8 = vpop.f32.mrf.mxu1  ;;  %v12852_v34 = vsel %vm10805_vm4, %v5690_v51, %v5694_v10  ;;  %v5709_v29 = vrot.slane %v5707_v42, 4  ;;  %v12883_v28 = vld [vmem:[%s10775_s16 + $0x60] sm:$0xee] }
 0x23b   : > { %4918 = vmatprep.mubr.bf16.mxu1 %v14594_v45  ;;  %9770 = vmatpush3.bf16.msra.mxu1 %v10520_v2  ;;  %v9467_v31 = vpop.f32.mrf.mxu0  ;;  %14595 = vst [vmem:[#allocation20_spill] sm:$0xff] %v12852_v34  ;;  %v5700_v45 = vrot.slane %v5699_v14, 4  ;;  %v5716_v2 = vshll.u32 %v12824_v41, 16  ;;  %v9169_v35 = vadd.f32 %v9168_v8, %v9167_v38  ;;  %v5712_v49 = vrot.slane %v5710_v9, 5  ;;  %v14598_v38 = vld [vmem:[#allocation21_spill] sm:$0xff]  ;;  %v8668_v14 = vld [vmem:[%s10775_s16 + $0xa8] sm:$0xff] }
 0x23c   : > { %5506 = vmatmul.mubr.bf16.gmra.mxu0 %v10489_v7  ;;  %9771 = vmatprep.subr.bf16.mxu1 %v10522_v47  ;;  %v12856_v46 = vadd.f32 %v12172_v61, %v2368_v54  ;;  %v5720_v7 = vshrl.u32 %v12824_v41, 16  ;;  %v9170_v47 = vpop.f32.mrf.mxu1  ;;  %v8798_v10 = vrot.slane %v8782_v32, 9  ;;  %v10500_v9 = vld [vmem:[%s10775_s16 + $0x180] ss:$8 sps:$4 sm:$0xff]   ;;  %v14600_v8 = vcombine.low %v12316_v15, %v12320_v13  ;;  %v12902_v15 = vld [vmem:[%s10775_s16 + $0xb0] sm:$0xff] }
 0x23d   : > { %5513 = vmatprep.mubr.bf16.mxu0 %v10502_v19  ;;  %v9468_v12 = vpop.f32.mrf.mxu0  ;;  %v12864_v42 = vsel %vm10805_vm4, %v5700_v45, %v5704_v11  ;;  %v5718_v51 = vrot.slane %v5716_v2, 5  ;;  %v5726_v19 = vshll.u32 %v12859_v20, 16  ;;  %v2373_v61 = vadd.f32 %v9169_v35, %v14598_v38 }
 0x23e   : > { %14596 = vst [vmem:[#allocation76_spill] sm:$0xff] %v12856_v46  ;;  %14597 = vst [vmem:[#allocation77_spill] sm:$0xff] %v12864_v42  ;;  %v12868_v54 = vadd.f32 %v9468_v12, %v9467_v31  ;;  %v9171_v32 = vpop.f32.mrf.mxu1  ;;  %v5713_v31 = vor.u32 %v5712_v49, %v5709_v29  ;;  %v5722_v2 = vrot.slane %v5720_v7, 4  ;;  %v6519_v12 = vrot.slane %v6517_v63, 4 }
 0x23f   : > { %9772 = vmatpush3.bf16.msra.mxu1 %v10523_v1  ;;  %v9470_v11 = vpop.f32.mrf.mxu0  ;;  %v9172_v35 = vadd.f32 %v9171_v32, %v9170_v47  ;;  %v10513_v1 = vld [vmem:[%s10775_s16 + $0x19c] ss:$8 sps:$4 sm:$0xff]   ;;  %v6520_v38 = vrot.slane %v12629_v37, 5  ;;  %v12886_v25 = vadd.f32 %v12182_v44, %v2373_v61  ;;  %v5728_v49 = vrot.slane %v5726_v19, 5 }
 0x240   : > { %v9173_v46 = vpop.f32.mrf.mxu1  ;;  %v5714_v45 = vrot.slane %v5713_v31, 4  ;;  %v5723_v29 = vor.u32 %v5722_v2, %v5718_v51  ;;  %v5731_v7 = vshrl.u32 %v8668_v14, 16  ;;  %v14601_v47 = vld [vmem:[#allocation22_spill] sm:$0xff]  ;;  %v14602_v37 = vcombine.high %v12365_v40, %v12369_v5 }
 0x241   : > { %14599 = vst [vmem:[#allocation21_spill] sm:$0xff] %v12886_v25  ;;  %v9471_v42 = vpop.f32.mrf.mxu0  ;;  %v2376_v32 = vadd.f32 %v9172_v35, %v14601_v47  ;;  %v12899_v44 = vsel %vm11008_vm7, %v8798_v10, %v6517_v63  ;;  %v5734_v13 = vshll.u32 %v8668_v14, 16  ;;  %v8799_v19 = vrot.slane %v12883_v28, 9  ;;  %v12914_v10 = vld [vmem:[%s10775_s16 + $0xb8] sm:$0x11] }
 0x242   : > { %4919 = vmatmul.mubr.bf16.gmra.mxu1 %v14600_v8  ;;  %v12895_v34 = vadd.f32 %v9471_v42, %v9470_v11  ;;  %v9174_v61 = vpop.f32.mrf.mxu1  ;;  %v6524_v31 = vrot.slane %v12656_v33, 5  ;;  %v12908_v2 = vsel %vm10805_vm4, %v5714_v45, %v5718_v51  ;;  %v5724_v42 = vrot.slane %v5723_v29, 4 }
 0x243   : > { %4926 = vmatprep.mubr.bf16.mxu1 %v14602_v37  ;;  %v9473_v8 = vpop.f32.mrf.mxu0  ;;  %14603 = vst [vmem:[#allocation22_spill] sm:$0xff] %v12908_v2  ;;  %v9175_v11 = vadd.f32 %v9174_v61, %v9173_v46  ;;  %v12911_v63 = vadd.f32 %v12192_v58, %v2376_v32  ;;  %v5733_v14 = vrot.slane %v5731_v7, 4  ;;  %v5740_v51 = vshll.u32 %v12902_v15, 16  ;;  %v8671_v32 = vld [vmem:[%s10775_s16 + $0xc0] sm:$0xff]  ;;  %v14607_v7 = vld [vmem:[#allocation3_spill] sm:$0xff] }
 0x244   : > { %5514 = vmatmul.mubr.bf16.gmra.mxu0 %v10500_v9  ;;  %v5736_v9 = vrot.slane %v5734_v13, 5  ;;  %v9176_v35 = vpop.f32.mrf.mxu1  ;;  %v12918_v33 = vsel %vm10805_vm4, %v5724_v42, %v5728_v49  ;;  %v5744_v46 = vshrl.u32 %v12902_v15, 16  ;;  %v5750_v45 = vshll.u32 %v12914_v10, 16  ;;  %v10511_v13 = vld [vmem:[%s10775_s16 + $0x198] ss:$8 sps:$4 sm:$0xff]  }
 0x245   : > { %5521 = vmatprep.mubr.bf16.mxu0 %v10513_v1  ;;  %14604 = vst [vmem:[#allocation78_spill] sm:$0xff] %v12911_v63  ;;  %v9474_v28 = vpop.f32.mrf.mxu0  ;;  %14605 = vst [vmem:[#allocation79_spill] sm:$0xff] %v12918_v33  ;;  %v14606_v1 = vld [vmem:[#allocation23_spill] sm:$0xff]  ;;  %v12934_v61 = vsel %vm11008_vm7, %v6519_v12, %v6520_v38  ;;  %v5742_v63 = vrot.slane %v5740_v51, 5  ;;  %v14609_v33 = vcombine.low %v12365_v40, %v12369_v5  ;;  %v8784_v5 = vld [vmem:[%s10775_s16 + $0x78] sm:$0xee] }
 0x246   : > { %v2381_v58 = vadd.f32 %v9175_v11, %v14606_v1  ;;  %v12924_v29 = vadd.f32 %v9474_v28, %v9473_v8  ;;  %v9177_v37 = vpop.f32.mrf.mxu1  ;;  %v5737_v42 = vor.u32 %v5736_v9, %v5733_v14  ;;  %v5746_v11 = vrot.slane %v5744_v46, 4  ;;  %v12944_v14 = vld [vmem:[%s10775_s16 + $0xc8] sm:$0xff]  ;;  %v14611_v46 = vld [vmem:[#allocation6_spill] sm:$0xff] }
 0x247   : > { %v9476_v49 = vpop.f32.mrf.mxu0  ;;  %v9178_v8 = vadd.f32 %v9177_v37, %v9176_v35  ;;  %v6526_v28 = vrot.slane %v6524_v31, 4  ;;  %v6527_v1 = vrot.slane %v12717_v22, 5  ;;  %v5752_v38 = vrot.slane %v5750_v45, 5  ;;  %v14610_v35 = vld [vmem:[#allocation24_spill] sm:$0xff]  ;;  %v14612_v37 = vld [vmem:[#allocation7_spill] sm:$0xff] }
 0x248   : > { %v12938_v25 = vadd.f32 %v14607_v7, %v2381_v58  ;;  %v9179_v47 = vpop.f32.mrf.mxu1  ;;  %v5738_v26 = vrot.slane %v5737_v42, 4  ;;  %v5747_v12 = vor.u32 %v5746_v11, %v5742_v63  ;;  %v5755_v9 = vshrl.u32 %v8671_v32, 16 }
 0x249   : > { %v9477_v2 = vpop.f32.mrf.mxu0  ;;  %v2384_v51 = vadd.f32 %v9178_v8, %v14610_v35  ;;  %v14613_v22 = vcombine.high %v14611_v46, %v14612_v37  ;;  %v8848_v7 = vcombine.high %v12899_v44, %v12934_v61  ;;  %v12956_v40 = vsel %vm11008_vm7, %v8799_v19, %v6524_v31  ;;  %v14616_v31 = vld [vmem:[#allocation32_spill] sm:$0xff] }
 0x24a   : > { %14608 = vst [vmem:[#allocation23_spill] sm:$0xff] %v12938_v25  ;;  %4927 = vmatmul.mubr.bf16.gmra.mxu1 %v14609_v33  ;;  %v12950_v58 = vadd.f32 %v9477_v2, %v9476_v49  ;;  %v9180_v33 = vpop.f32.mrf.mxu1  ;;  %v12961_v42 = vsel %vm10805_vm4, %v5738_v26, %v5742_v63  ;;  %v5748_v11 = vrot.slane %v5747_v12, 4  ;;  %v5757_v8 = vrot.slane %v5755_v9, 4  ;;  %v14619_v12 = vld [vmem:[#allocation25_spill] sm:$0xff] }
 0x24b   : > { %4934 = vmatprep.mubr.bf16.mxu1 %v14613_v22  ;;  %v9479_v45 = vpop.f32.mrf.mxu0  ;;  %14614 = vst [vmem:[#allocation3_spill] sm:$0xff] %v12961_v42  ;;  %v5758_v35 = vshll.u32 %v8671_v32, 16  ;;  %v9181_v2 = vadd.f32 %v9180_v33, %v9179_v47  ;;  %v14615_v49 = vcombine.high %v12833_v21, %v12837_v48  ;;  %v6531_v19 = vrot.slane %v12752_v55, 5 }
 0x24c   : > { %5522 = vmatmul.mubr.bf16.gmra.mxu0 %v10511_v13  ;;  %v12968_v22 = vadd.f32 %v14616_v31, %v2384_v51  ;;  %v5764_v13 = vshll.u32 %v12944_v14, 16  ;;  %v9182_v25 = vpop.f32.mrf.mxu1  ;;  %v12973_v26 = vsel %vm11008_vm7, %v6526_v28, %v6527_v1  ;;  %v8800_v63 = vrot.slane %v8784_v5, 9  ;;  %v14620_v31 = vld [vmem:[#allocation33_spill] sm:$0xff]  ;;  %v14752_v27 = vld [vmem:[#allocation78_spill] sm:$0xff] }
 0x24d   : > { %6909 = vmatprep.mubr.bf16.mxu0 %v14615_v49  ;;  %v9480_v16 = vpop.f32.mrf.mxu0  ;;  %v12977_v47 = vsel %vm10805_vm4, %v5748_v11, %v5752_v38  ;;  %v5760_v32 = vrot.slane %v5758_v35, 5  ;;  %v2389_v55 = vadd.f32 %v9181_v2, %v14619_v12  ;;  %v12987_v49 = vld [vmem:[%s10775_s16 + $0xd0] sm:$0x11]  ;;  %v5768_v11 = vshrl.u32 %v12944_v14, 16  ;;  %v8674_v51 = vld [vmem:[%s10775_s16 + $0xd8] sm:$0xff] }
 0x24e   : > { %14617 = vst [vmem:[#allocation24_spill] sm:$0xff] %v12968_v22  ;;  %14618 = vst [vmem:[#allocation6_spill] sm:$0xff] %v12977_v47  ;;  %v12980_v9 = vadd.f32 %v9480_v16, %v9479_v45  ;;  %v9183_v28 = vpop.f32.mrf.mxu1  ;;  %v5766_v38 = vrot.slane %v5764_v13, 5  ;;  %v5774_v35 = vshll.u32 %v12987_v49, 16  ;;  %v6533_v16 = vrot.slane %v6531_v19, 4 }
 0x24f   : > { %v9482_v1 = vpop.f32.mrf.mxu0  ;;  %v5761_v5 = vor.u32 %v5760_v32, %v5757_v8  ;;  %v9184_v2 = vadd.f32 %v9183_v28, %v9182_v25  ;;  %v6534_v45 = vrot.slane %v12794_v59, 5  ;;  %v12993_v12 = vadd.f32 %v14620_v31, %v2389_v55  ;;  %v13004_v59 = vld [vmem:[%s10775_s16 + $0xe0] sm:$0xff] }
 0x250   : > { %v9185_v33 = vpop.f32.mrf.mxu1  ;;  %v14622_v22 = vcombine.low %v14611_v46, %v14612_v37  ;;  %v8847_v13 = vcombine.low %v12899_v44, %v12934_v61  ;;  %v5770_v28 = vrot.slane %v5768_v11, 4  ;;  %v14623_v55 = vld [vmem:[#allocation26_spill] sm:$0xff]  ;;  %v8850_v37 = vcombine.high %v12956_v40, %v12973_v26  ;;  %v8785_v11 = vld [vmem:[%s10775_s16 + $0x90] sm:$0xee] }
 0x251   : > { %14621 = vst [vmem:[#allocation7_spill] sm:$0xff] %v12993_v12  ;;  %v9483_v8 = vpop.f32.mrf.mxu0  ;;  %v5762_v32 = vrot.slane %v5761_v5, 4  ;;  %v2392_v31 = vadd.f32 %v9184_v2, %v14623_v55  ;;  %v14624_v12 = vcombine.high %v12417_v39, %v12430_v3  ;;  %v13016_v44 = vsel %vm11008_vm7, %v8800_v63, %v6531_v19  ;;  %v14626_v19 = vld [vmem:[#allocation35_spill] sm:$0xff] }
 0x252   : > { %4935 = vmatmul.mubr.bf16.gmra.mxu1 %v14622_v22  ;;  %v13010_v46 = vadd.f32 %v9483_v8, %v9482_v1  ;;  %v9186_v61 = vpop.f32.mrf.mxu1  ;;  %v14625_v5 = vcombine.low %v12833_v21, %v12837_v48  ;;  %v5771_v2 = vor.u32 %v5770_v28, %v5766_v38  ;;  %v5776_v55 = vrot.slane %v5774_v35, 5 }
 0x253   : > { %4942 = vmatprep.mubr.bf16.mxu1 %v14624_v12  ;;  %v9485_v22 = vpop.f32.mrf.mxu0  ;;  %v5779_v25 = vshrl.u32 %v8674_v51, 16  ;;  %v5782_v1 = vshll.u32 %v8674_v51, 16  ;;  %v9187_v12 = vadd.f32 %v9186_v61, %v9185_v33  ;;  %v13024_v8 = vsel %vm11008_vm7, %v6533_v16, %v6534_v45  ;;  %v14629_v33 = vld [vmem:[#allocation27_spill] sm:$0xff] }
 0x254   : > { %6910 = vmatmul.mubr.bf16.vlgmr.msra.gmra.mxu0 %v14625_v5  ;;  %v13027_v63 = vadd.f32 %v14626_v19, %v2392_v31  ;;  %v5788_v47 = vshll.u32 %v13004_v59, 16  ;;  %v9188_v42 = vpop.f32.mrf.mxu1  ;;  %v6538_v21 = vrot.slane %v12824_v41, 5  ;;  %v13033_v35 = vsel %vm10805_vm4, %v5762_v32, %v5766_v38  ;;  %v13039_v31 = vld [vmem:[%s10775_s16 + $0xe8] sm:$0x11] }
 0x255   : > { %6917 = vmatprep.mubr.bf16.mxu0 %v8848_v7  ;;  %v9486_v48 = vpop.f32.mrf.mxu0  ;;  %14628 = vst [vmem:[#allocation25_spill] sm:$0xff] %v13033_v35  ;;  %v5772_v51 = vrot.slane %v5771_v2, 4  ;;  %v5781_v7 = vrot.slane %v5779_v25, 4  ;;  %v2397_v28 = vadd.f32 %v9187_v12, %v14629_v33  ;;  %v8801_v45 = vrot.slane %v8785_v11, 9  ;;  %v8677_v25 = vld [vmem:[%s10775_s16 + $0xf0] sm:$0xff] }
 0x256   : > { %14627 = vst [vmem:[#allocation32_spill] sm:$0xff] %v13027_v63  ;;  %v13036_v16 = vadd.f32 %v9486_v48, %v9485_v22  ;;  %v5784_v61 = vrot.slane %v5782_v1, 5  ;;  %v9189_v5 = vpop.f32.mrf.mxu1  ;;  %v5790_v41 = vrot.slane %v5788_v47, 5  ;;  %v5792_v38 = vshrl.u32 %v13004_v59, 16  ;;  %v14631_v1 = vld [vmem:[#allocation37_spill] sm:$0xff]  ;;  %v14634_v22 = vld [vmem:[#allocation28_spill] sm:$0xff] }
 0x257   : > { %v9488_v19 = vpop.f32.mrf.mxu0  ;;  %v13043_v63 = vsel %vm10805_vm4, %v5772_v51, %v5776_v55  ;;  %v5798_v32 = vshll.u32 %v13039_v31, 16  ;;  %v9190_v2 = vadd.f32 %v9189_v5, %v9188_v42  ;;  %v13053_v12 = vadd.f32 %v14631_v1, %v2397_v28  ;;  %v8786_v42 = vld [vmem:[%s10775_s16 + $0xa8] sm:$0xee] }
 0x258   : > { %14630 = vst [vmem:[#allocation33_spill] sm:$0xff] %v13043_v63  ;;  %v9191_v48 = vpop.f32.mrf.mxu1  ;;  %v14633_v47 = vcombine.low %v12417_v39, %v12430_v3  ;;  %v5785_v33 = vor.u32 %v5784_v61, %v5781_v7  ;;  %v5794_v5 = vrot.slane %v5792_v38, 4  ;;  %v14635_v28 = vcombine.high %v12434_v57, %v12438_v36  ;;  %v13069_v3 = vld [vmem:[%s10775_s16 + $0xf8] sm:$0xff] }
 0x259   : > { %14632 = vst [vmem:[#allocation26_spill] sm:$0xff] %v13053_v12  ;;  %v9489_v55 = vpop.f32.mrf.mxu0  ;;  %v2400_v11 = vadd.f32 %v9190_v2, %v14634_v22  ;;  %v6540_v39 = vrot.slane %v6538_v21, 4  ;;  %v6541_v51 = vrot.slane %v12859_v20, 5  ;;  %v5800_v38 = vrot.slane %v5798_v32, 5 }
 0x25a   : > { %4943 = vmatmul.mubr.bf16.gmra.mxu1 %v14633_v47  ;;  %v13066_v1 = vadd.f32 %v9489_v55, %v9488_v19  ;;  %v5803_v47 = vshrl.u32 %v8677_v25, 16  ;;  %v9192_v12 = vpop.f32.mrf.mxu1  ;;  %v5786_v7 = vrot.slane %v5785_v33, 4  ;;  %v5795_v61 = vor.u32 %v5794_v5, %v5790_v41  ;;  %v14637_v19 = vld [vmem:[#allocation8_spill] sm:$0xff] }
 0x25b   : > { %4950 = vmatprep.mubr.bf16.mxu1 %v14635_v28  ;;  %v9491_v63 = vpop.f32.mrf.mxu0  ;;  %v9193_v2 = vadd.f32 %v9192_v12, %v9191_v48  ;;  %v13075_v22 = vsel %vm11008_vm7, %v8801_v45, %v6538_v21  ;;  %v13078_v55 = vadd.f32 %v14637_v19, %v2400_v11  ;;  %v5806_v28 = vshll.u32 %v8677_v25, 16 }
 0x25c   : > { %14636 = vst [vmem:[#allocation35_spill] sm:$0xff] %v13066_v1  ;;  %6918 = vmatmul.mubr.bf16.gmra.mxu0 %v8847_v13  ;;  %v9194_v35 = vpop.f32.mrf.mxu1  ;;  %v13082_v13 = vsel %vm10805_vm4, %v5786_v7, %v5790_v41  ;;  %v5796_v20 = vrot.slane %v5795_v61, 4  ;;  %v5805_v33 = vrot.slane %v5803_v47, 4  ;;  %v5812_v32 = vshll.u32 %v13069_v3, 16 }
 0x25d   : > { %6925 = vmatprep.mubr.bf16.mxu0 %v8850_v37  ;;  %14638 = vst [vmem:[#allocation27_spill] sm:$0xff] %v13078_v55  ;;  %v9492_v1 = vpop.f32.mrf.mxu0  ;;  %14639 = vst [vmem:[#allocation37_spill] sm:$0xff] %v13082_v13  ;;  %v14640_v37 = vld [vmem:[#allocation29_spill] sm:$0xff]  ;;  %v8802_v45 = vrot.slane %v8786_v42, 9  ;;  %v6545_v11 = vrot.slane %v12902_v15, 5  ;;  %v5808_v41 = vrot.slane %v5806_v28, 5 }
 0x25e   : > { %v2405_v12 = vadd.f32 %v9193_v2, %v14640_v37  ;;  %v13086_v21 = vadd.f32 %v9492_v1, %v9491_v63  ;;  %v9195_v25 = vpop.f32.mrf.mxu1  ;;  %v13091_v5 = vsel %vm10805_vm4, %v5796_v20, %v5800_v38  ;;  %v5814_v7 = vrot.slane %v5812_v32, 5  ;;  %v13102_v15 = vld [vmem:[%s10775_s16 + $0x100] sm:$0x11]  ;;  %v8680_v1 = vld [vmem:[%s10775_s16 + $0x108] sm:$0xff] }
 0x25f   : > { %v9494_v48 = vpop.f32.mrf.mxu0  ;;  %14641 = vst [vmem:[#allocation28_spill] sm:$0xff] %v13091_v5  ;;  %v5816_v47 = vshrl.u32 %v13069_v3, 16  ;;  %v9196_v61 = vadd.f32 %v9195_v25, %v9194_v35  ;;  %v14643_v38 = vcombine.low %v12434_v57, %v12438_v36  ;;  %v13110_v35 = vsel %vm11008_vm7, %v6540_v39, %v6541_v51  ;;  %v14645_v25 = vld [vmem:[#allocation58_spill] sm:$0xff] }
 0x260   : > { %v13099_v42 = vadd.f32 %v12441_v23, %v2405_v12  ;;  %v9325_v2 = vpop.f32.mrf.mxu1  ;;  %v5809_v20 = vor.u32 %v5808_v41, %v5805_v33  ;;  %v5822_v37 = vshll.u32 %v13102_v15, 16  ;;  %v14644_v23 = vld [vmem:[#allocation30_spill] sm:$0xff]  ;;  %v14646_v19 = vcombine.high %v12474_v53, %v14645_v25 }
 0x261   : > { %v9495_v28 = vpop.f32.mrf.mxu0  ;;  %v5818_v32 = vrot.slane %v5816_v47, 4  ;;  %v2408_v12 = vadd.f32 %v9196_v61, %v14644_v23  ;;  %v6547_v57 = vrot.slane %v6545_v11, 4  ;;  %v6548_v36 = vrot.slane %v12914_v10, 5  ;;  %v13124_v47 = vld [vmem:[%s10775_s16 + $0x110] sm:$0xff] }
 0x262   : > { %14642 = vst [vmem:[#allocation8_spill] sm:$0xff] %v13099_v42  ;;  %4951 = vmatmul.mubr.bf16.gmra.mxu1 %v14643_v38  ;;  %v13117_v63 = vadd.f32 %v9495_v28, %v9494_v48  ;;  %v9326_v38 = vpop.f32.mrf.mxu1  ;;  %v14648_v51 = vcombine.low %v12956_v40, %v12973_v26  ;;  %v5810_v39 = vrot.slane %v5809_v20, 4  ;;  %v5824_v41 = vrot.slane %v5822_v37, 5  ;;  %v8787_v40 = vld [vmem:[%s10775_s16 + $0xc0] sm:$0xee] }
 0x263   : > { %4958 = vmatprep.mubr.bf16.mxu1 %v14646_v19  ;;  %v9497_v42 = vpop.f32.mrf.mxu0  ;;  %v5819_v33 = vor.u32 %v5818_v32, %v5814_v7  ;;  %v5827_v61 = vshrl.u32 %v8680_v1, 16  ;;  %v9327_v23 = vadd.f32 %v9326_v38, %v9325_v2  ;;  %v14649_v48 = vcombine.high %v13016_v44, %v13024_v8  ;;  %v14650_v26 = vld [vmem:[#allocation10_spill] sm:$0xff] }
 0x264   : > { %14647 = vst [vmem:[#allocation29_spill] sm:$0xff] %v13117_v63  ;;  %6926 = vmatmul.mubr.bf16.gmra.mxu0 %v14648_v51  ;;  %v8854_v10 = vcombine.high %v13075_v22, %v13110_v35  ;;  %v13133_v19 = vsel %vm11008_vm7, %v8802_v45, %v6545_v11  ;;  %v13137_v28 = vadd.f32 %v14650_v26, %v2408_v12  ;;  %v9328_v20 = vpop.f32.mrf.mxu1  ;;  %v5830_v51 = vshll.u32 %v8680_v1, 16 }
 0x265   : > { %6933 = vmatprep.mubr.bf16.mxu0 %v14649_v48  ;;  %v9498_v32 = vpop.f32.mrf.mxu0  ;;  %v13141_v2 = vsel %vm10805_vm4, %v5810_v39, %v5814_v7  ;;  %v5820_v37 = vrot.slane %v5819_v33, 4  ;;  %v5829_v38 = vrot.slane %v5827_v61, 4  ;;  %v14653_v48 = vld [vmem:[#allocation52_spill] sm:$0xff]  ;;  %v6552_v45 = vrot.slane %v12944_v14, 5  ;;  %v14656_v61 = vld [vmem:[#allocation11_spill] sm:$0xff] }
 0x266   : > { %14651 = vst [vmem:[#allocation30_spill] sm:$0xff] %v13137_v28  ;;  %14652 = vst [vmem:[#allocation58_spill] sm:$0xff] %v13141_v2  ;;  %v3507_v55 = vadd.f32 %v9327_v23, %v14653_v48  ;;  %v13144_v5 = vadd.f32 %v9498_v32, %v9497_v42  ;;  %v5836_v11 = vshll.u32 %v13124_v47, 16  ;;  %v9329_v12 = vpop.f32.mrf.mxu1  ;;  %v13150_v28 = vsel %vm11008_vm7, %v6547_v57, %v6548_v36  ;;  %v13164_v32 = vld [vmem:[%s10775_s16 + $0x118] sm:$0x11]  ;;  %v14660_v42 = vld [vmem:[#allocation59_spill] sm:$0xff] }
 0x267   : > { %v9500_v26 = vpop.f32.mrf.mxu0  ;;  %v8803_v7 = vrot.slane %v8787_v40, 9  ;;  %v13154_v39 = vsel %vm10805_vm4, %v5820_v37, %v5824_v41  ;;  %v5832_v1 = vrot.slane %v5830_v51, 5  ;;  %v9330_v33 = vadd.f32 %v9329_v12, %v9328_v20  ;;  %v14659_v48 = vld [vmem:[#allocation53_spill] sm:$0xff] }
 0x268   : > { %14654 = vst [vmem:[#allocation10_spill] sm:$0xff] %v13144_v5  ;;  %14655 = vst [vmem:[#allocation52_spill] sm:$0xff] %v13154_v39  ;;  %v13161_v23 = vadd.f32 %v14656_v61, %v3507_v55  ;;  %v9331_v57 = vpop.f32.mrf.mxu1  ;;  %v14658_v36 = vcombine.low %v12474_v53, %v14645_v25  ;;  %v5838_v20 = vrot.slane %v5836_v11, 5  ;;  %v5840_v37 = vshrl.u32 %v13124_v47, 16  ;;  %v14661_v55 = vld [vmem:[#allocation60_spill] sm:$0xff]  ;;  %v8683_v25 = vld [vmem:[%s10775_s16 + $0x120] sm:$0xff] }
 0x269   : > { %v9501_v41 = vpop.f32.mrf.mxu0  ;;  %v5833_v40 = vor.u32 %v5832_v1, %v5829_v38  ;;  %v5846_v51 = vshll.u32 %v13164_v32, 16  ;;  %v3508_v12 = vadd.f32 %v9330_v33, %v14659_v48  ;;  %v14662_v61 = vcombine.high %v14660_v42, %v14661_v55 }
 0x26a   : > { %14657 = vst [vmem:[#allocation11_spill] sm:$0xff] %v13161_v23  ;;  %4959 = vmatmul.mubr.bf16.gmra.mxu1 %v14658_v36  ;;  %v13175_v14 = vadd.f32 %v9501_v41, %v9500_v26  ;;  %v6554_v23 = vrot.slane %v6552_v45, 4  ;;  %v6555_v53 = vrot.slane %v12987_v49, 5  ;;  %v9332_v38 = vpop.f32.mrf.mxu1  ;;  %v14664_v1 = vcombine.low %v13016_v44, %v13024_v8  ;;  %v13187_v41 = vld [vmem:[%s10775_s16 + $0x128] sm:$0xff]  ;;  %v8788_v44 = vld [vmem:[%s10775_s16 + $0xd8] sm:$0xee] }
 0x26b   : > { %4966 = vmatprep.mubr.bf16.mxu1 %v14662_v61  ;;  %v9503_v11 = vpop.f32.mrf.mxu0  ;;  %v8853_v33 = vcombine.low %v13075_v22, %v13110_v35  ;;  %v5834_v48 = vrot.slane %v5833_v40, 4  ;;  %v5842_v26 = vrot.slane %v5840_v37, 4  ;;  %v9333_v61 = vadd.f32 %v9332_v38, %v9331_v57  ;;  %v14665_v8 = vld [vmem:[#allocation12_spill] sm:$0xff]  ;;  %v14667_v57 = vld [vmem:[#allocation54_spill] sm:$0xff] }
 0x26c   : > { %14663 = vst [vmem:[#allocation53_spill] sm:$0xff] %v13175_v14  ;;  %6934 = vmatmul.mubr.bf16.gmra.mxu0 %v14664_v1  ;;  %v8856_v49 = vcombine.high %v13133_v19, %v13150_v28  ;;  %v13193_v39 = vsel %vm11008_vm7, %v8803_v7, %v6552_v45  ;;  %v13197_v1 = vadd.f32 %v14665_v8, %v3508_v12  ;;  %v9334_v22 = vpop.f32.mrf.mxu1  ;;  %v5848_v40 = vrot.slane %v5846_v51, 5 }
 0x26d   : > { %6941 = vmatprep.mubr.bf16.mxu0 %v8854_v10  ;;  %v9504_v35 = vpop.f32.mrf.mxu0  ;;  %v5843_v36 = vor.u32 %v5842_v26, %v5838_v20  ;;  %v5851_v37 = vshrl.u32 %v8683_v25, 16  ;;  %v5854_v2 = vshll.u32 %v8683_v25, 16  ;;  %v3509_v10 = vadd.f32 %v9333_v61, %v14667_v57 }
 0x26e   : > { %14666 = vst [vmem:[#allocation59_spill] sm:$0xff] %v13197_v1  ;;  %v13200_v38 = vadd.f32 %v9504_v35, %v9503_v11  ;;  %v13204_v13 = vsel %vm11008_vm7, %v6554_v23, %v6555_v53  ;;  %v5860_v45 = vshll.u32 %v13187_v41, 16  ;;  %v9335_v7 = vpop.f32.mrf.mxu1  ;;  %v8804_v8 = vrot.slane %v8788_v44, 9  ;;  %v13216_v23 = vld [vmem:[%s10775_s16 + $0x130] sm:$0x11] }
 0x26f   : > { %v9506_v12 = vpop.f32.mrf.mxu0  ;;  %v13209_v51 = vsel %vm10805_vm4, %v5834_v48, %v5838_v20  ;;  %v5844_v26 = vrot.slane %v5843_v36, 4  ;;  %v5853_v25 = vrot.slane %v5851_v37, 4  ;;  %v9336_v1 = vadd.f32 %v9335_v7, %v9334_v22  ;;  %v14673_v22 = vld [vmem:[#allocation55_spill] sm:$0xff] }
 0x270   : > { %14668 = vst [vmem:[#allocation60_spill] sm:$0xff] %v13200_v38  ;;  %14669 = vst [vmem:[#allocation12_spill] sm:$0xff] %v13209_v51  ;;  %v6559_v11 = vrot.slane %v13004_v59, 5  ;;  %v13213_v61 = vadd.f32 %v12569_v17, %v3509_v10  ;;  %v5856_v53 = vrot.slane %v5854_v2, 5  ;;  %v9337_v35 = vpop.f32.mrf.mxu1  ;;  %v14671_v44 = vcombine.low %v14660_v42, %v14661_v55  ;;  %v8686_v17 = vld [vmem:[%s10775_s16 + $0x138] sm:$0xff]  ;;  %v14675_v2 = vld [vmem:[#allocation62_spill] sm:$0xff] }
 0x271   : > { %v9507_v57 = vpop.f32.mrf.mxu0  ;;  %v13223_v20 = vsel %vm10805_vm4, %v5844_v26, %v5848_v40  ;;  %v5862_v36 = vrot.slane %v5860_v45, 5  ;;  %v5864_v48 = vshrl.u32 %v13187_v41, 16  ;;  %v5870_v59 = vshll.u32 %v13216_v23, 16  ;;  %v14674_v10 = vld [vmem:[#allocation61_spill] sm:$0xff]  ;;  %v14678_v55 = vld [vmem:[#allocation14_spill] sm:$0xff] }
 0x272   : > { %14670 = vst [vmem:[#allocation54_spill] sm:$0xff] %v13213_v61  ;;  %4967 = vmatmul.mubr.bf16.gmra.mxu1 %v14671_v44  ;;  %14672 = vst [vmem:[#allocation80_spill] sm:$0xff] %v13223_v20  ;;  %v3510_v37 = vadd.f32 %v9336_v1, %v14673_v22  ;;  %v14676_v7 = vcombine.high %v14674_v10, %v14675_v2  ;;  %v13232_v42 = vadd.f32 %v9507_v57, %v9506_v12  ;;  %v9338_v45 = vpop.f32.mrf.mxu1  ;;  %v13247_v40 = vld [vmem:[%s10775_s16 + $0x140] sm:$0xff] }
 0x273   : > { %v9509_v26 = vpop.f32.mrf.mxu0  ;;  %v8858_v44 = vcombine.high %v13193_v39, %v13204_v13  ;;  %v5857_v22 = vor.u32 %v5856_v53, %v5853_v25  ;;  %v9339_v12 = vadd.f32 %v9338_v45, %v9337_v35  ;;  %v6562_v57 = vrot.slane %v13039_v31, 5  ;;  %v14680_v35 = vld [vmem:[#allocation2_spill] sm:$0xff] }
 0x274   : > { %4974 = vmatprep.mubr.bf16.mxu1 %v14676_v7  ;;  %14677 = vst [vmem:[#allocation55_spill] sm:$0xff] %v13232_v42  ;;  %6942 = vmatmul.mubr.bf16.gmra.mxu0 %v8853_v33  ;;  %v5866_v7 = vrot.slane %v5864_v48, 4  ;;  %v13244_v61 = vadd.f32 %v14678_v55, %v3510_v37  ;;  %v5875_v20 = vshrl.u32 %v8686_v17, 16  ;;  %v9340_v51 = vpop.f32.mrf.mxu1  ;;  %v13251_v1 = vsel %vm11008_vm7, %v8804_v8, %v6559_v11  ;;  %v8789_v42 = vld [vmem:[%s10775_s16 + $0xf0] sm:$0xee] }
 0x275   : > { %6949 = vmatprep.mubr.bf16.mxu0 %v8856_v49  ;;  %v9510_v33 = vpop.f32.mrf.mxu0  ;;  %v5858_v38 = vrot.slane %v5857_v22, 4  ;;  %v5872_v53 = vrot.slane %v5870_v59, 5  ;;  %v3511_v49 = vadd.f32 %v9339_v12, %v14680_v35  ;;  %v6561_v31 = vrot.slane %v6559_v11, 4  ;;  %v14684_v12 = vld [vmem:[#allocation31_spill] sm:$0xff] }
 0x276   : > { %14679 = vst [vmem:[#allocation61_spill] sm:$0xff] %v13244_v61  ;;  %v5867_v25 = vor.u32 %v5866_v7, %v5862_v36  ;;  %v13255_v48 = vadd.f32 %v9510_v33, %v9509_v26  ;;  %v5878_v37 = vshll.u32 %v8686_v17, 16  ;;  %v9341_v55 = vpop.f32.mrf.mxu1  ;;  %v5877_v5 = vrot.slane %v5875_v20, 4  ;;  %v14681_v26 = vld [vmem:[#allocation15_spill] sm:$0xff] }
 0x277   : > { %v9512_v45 = vpop.f32.mrf.mxu0  ;;  %v13259_v61 = vsel %vm10805_vm4, %v5858_v38, %v5862_v36  ;;  %v5884_v8 = vshll.u32 %v13247_v40, 16  ;;  %v9342_v63 = vadd.f32 %v9341_v55, %v9340_v51  ;;  %v8805_v22 = vrot.slane %v8789_v42, 9 }
 0x278   : > { %v5868_v14 = vrot.slane %v5867_v25, 4  ;;  %v6566_v59 = vrot.slane %v13069_v3, 5  ;;  %v13264_v7 = vadd.f32 %v14681_v26, %v3511_v49  ;;  %v9343_v11 = vpop.f32.mrf.mxu1  ;;  %v14683_v17 = vcombine.low %v14674_v10, %v14675_v2  ;;  %v14685_v3 = vld [vmem:[#allocation13_spill] sm:$0xff]  ;;  %v14686_v25 = vld [vmem:[#allocation66_spill] sm:$0xff] }
 0x279   : > { %v9513_v38 = vpop.f32.mrf.mxu0  ;;  %v5880_v36 = vrot.slane %v5878_v37, 5  ;;  %v5886_v51 = vrot.slane %v5884_v8, 5  ;;  %v5888_v42 = vshrl.u32 %v13247_v40, 16  ;;  %v3512_v33 = vadd.f32 %v9342_v63, %v14684_v12 }
 0x27a   : > { %14682 = vst [vmem:[#allocation62_spill] sm:$0xff] %v13264_v7  ;;  %4975 = vmatmul.mubr.bf16.gmra.mxu1 %v14683_v17  ;;  %v13271_v20 = vsel %vm10805_vm4, %v5868_v14, %v5872_v53  ;;  %v14687_v35 = vcombine.high %v14685_v3, %v14686_v25  ;;  %v13278_v49 = vadd.f32 %v9513_v38, %v9512_v45  ;;  %v13285_v14 = vld [vmem:[%s10775_s16 + $0x148] sm:$0x11]  ;;  %v8689_v53 = vld [vmem:[%s10775_s16 + $0x150] sm:$0xff]  ;;  %v9344_v37 = vpop.f32.mrf.mxu1  ;;  %v6568_v12 = vrot.slane %v6566_v59, 4 }
 0x27b   : > { %v9515_v55 = vpop.f32.mrf.mxu0  ;;  %v14688_v63 = vcombine.low %v13133_v19, %v13150_v28  ;;  %v13293_v45 = vsel %vm11008_vm7, %v6561_v31, %v6562_v57  ;;  %v5881_v8 = vor.u32 %v5880_v36, %v5877_v5  ;;  %v5890_v26 = vrot.slane %v5888_v42, 4  ;;  %v13301_v57 = vld [vmem:[%s10775_s16 + $0x158] sm:$0xff]  ;;  %v14690_v31 = vld [vmem:[#allocation4_spill] sm:$0xff] }
 0x27c   : > { %4982 = vmatprep.mubr.bf16.mxu1 %v14687_v35  ;;  %v5894_v17 = vshll.u32 %v13285_v14, 16  ;;  %v9345_v38 = vadd.f32 %v9344_v37, %v9343_v11  ;;  %v6569_v35 = vrot.slane %v13102_v15, 5  ;;  %v13298_v10 = vadd.f32 %v12688_v50, %v3512_v33  ;;  %v9346_v19 = vpop.f32.mrf.mxu1  ;;  %v8790_v50 = vld [vmem:[%s10775_s16 + $0x108] sm:$0xee] }
 0x27d   : > { %6950 = vmatmul.mubr.bf16.gmra.mxu0 %v14688_v63  ;;  %v9516_v28 = vpop.f32.mrf.mxu0  ;;  %v5882_v63 = vrot.slane %v5881_v8, 4  ;;  %v5891_v2 = vor.u32 %v5890_v26, %v5886_v51  ;;  %v5899_v5 = vshrl.u32 %v8689_v53, 16  ;;  %v13310_v15 = vsel %vm11008_vm7, %v8805_v22, %v6566_v59 }
 0x27e   : > { %6957 = vmatprep.mubr.bf16.mxu0 %v8858_v44  ;;  %14689 = vst [vmem:[#allocation14_spill] sm:$0xff] %v13298_v10  ;;  %v5896_v7 = vrot.slane %v5894_v17, 5  ;;  %v3513_v36 = vadd.f32 %v9345_v38, %v14690_v31  ;;  %v13304_v42 = vadd.f32 %v9516_v28, %v9515_v55  ;;  %v8860_v44 = vcombine.high %v13251_v1, %v13293_v45  ;;  %v9347_v11 = vpop.f32.mrf.mxu1 }
 0x27f   : > { %v9518_v33 = vpop.f32.mrf.mxu0  ;;  %v13315_v37 = vsel %vm10805_vm4, %v5882_v63, %v5886_v51  ;;  %v5892_v8 = vrot.slane %v5891_v2, 4  ;;  %v5901_v26 = vrot.slane %v5899_v5, 4  ;;  %v5902_v17 = vshll.u32 %v8689_v53, 16 }
 0x280   : > { %v9348_v38 = vadd.f32 %v9347_v11, %v9346_v19  ;;  %v6573_v55 = vrot.slane %v13124_v47, 5  ;;  %v13319_v28 = vadd.f32 %v12723_v24, %v3513_v36  ;;  %v5908_v22 = vshll.u32 %v13301_v57, 16  ;;  %v9349_v59 = vpop.f32.mrf.mxu1  ;;  %v14693_v24 = vld [vmem:[#allocation5_spill] sm:$0xff] }
 0x281   : > { %v14692_v31 = vcombine.low %v14685_v3, %v14686_v25  ;;  %v9519_v10 = vpop.f32.mrf.mxu0  ;;  %v13327_v51 = vsel %vm11008_vm7, %v6568_v12, %v6569_v35  ;;  %v8806_v2 = vrot.slane %v8790_v50, 9  ;;  %v13331_v53 = vsel %vm10805_vm4, %v5892_v8, %v5896_v7  ;;  %v13344_v12 = vld [vmem:[%s10775_s16 + $0x160] sm:$0x11] }
 0x282   : > { %14691 = vst [vmem:[#allocation2_spill] sm:$0xff] %v13319_v28  ;;  %v5904_v47 = vrot.slane %v5902_v17, 5  ;;  %v3514_v19 = vadd.f32 %v9348_v38, %v14693_v24  ;;  %v14694_v63 = vcombine.high %v12594_v0, %v12604_v6  ;;  %v13337_v5 = vadd.f32 %v9519_v10, %v9518_v33  ;;  %v9350_v7 = vpop.f32.mrf.mxu1  ;;  %v8692_v24 = vld [vmem:[%s10775_s16 + $0x168] sm:$0xff] }
 0x283   : > { %4983 = vmatmul.mubr.bf16.gmra.mxu1 %v14692_v31  ;;  %v9521_v35 = vpop.f32.mrf.mxu0  ;;  %v14695_v36 = vcombine.low %v13193_v39, %v13204_v13  ;;  %v5910_v11 = vrot.slane %v5908_v22, 5  ;;  %v5912_v10 = vshrl.u32 %v13301_v57, 16  ;;  %v5918_v33 = vshll.u32 %v13344_v12, 16 }
 0x284   : > { %4990 = vmatprep.mubr.bf16.mxu1 %v14694_v63  ;;  %v5905_v50 = vor.u32 %v5904_v47, %v5901_v26  ;;  %v9351_v8 = vadd.f32 %v9350_v7, %v9349_v59  ;;  %v6575_v17 = vrot.slane %v6573_v55, 4  ;;  %v6576_v38 = vrot.slane %v13164_v32, 5  ;;  %v9352_v63 = vpop.f32.mrf.mxu1  ;;  %v13361_v59 = vld [vmem:[%s10775_s16 + $0x170] sm:$0xff] }
 0x285   : > { %6958 = vmatmul.mubr.bf16.gmra.mxu0 %v14695_v36  ;;  %v13353_v31 = vadd.f32 %v12769_v52, %v3514_v19  ;;  %v9522_v13 = vpop.f32.mrf.mxu0  ;;  %v8859_v39 = vcombine.low %v13251_v1, %v13293_v45  ;;  %v5914_v47 = vrot.slane %v5912_v10, 4  ;;  %v8862_v52 = vcombine.high %v13310_v15, %v13327_v51  ;;  %v8791_v19 = vld [vmem:[%s10775_s16 + $0x120] sm:$0xee] }
 0x286   : > { %6965 = vmatprep.mubr.bf16.mxu0 %v8860_v44  ;;  %v5906_v22 = vrot.slane %v5905_v50, 4  ;;  %v14697_v44 = vld [vmem:[#allocation56_spill] sm:$0xff]  ;;  %v13364_v36 = vadd.f32 %v9522_v13, %v9521_v35  ;;  %v13370_v32 = vsel %vm11008_vm7, %v8806_v2, %v6573_v55  ;;  %v9353_v1 = vpop.f32.mrf.mxu1  ;;  %v5920_v25 = vrot.slane %v5918_v33, 5 }
 0x287   : > { %14696 = vst [vmem:[#allocation15_spill] sm:$0xff] %v13353_v31  ;;  %v3515_v7 = vadd.f32 %v9351_v8, %v14697_v44  ;;  %v9524_v45 = vpop.f32.mrf.mxu0  ;;  %v5915_v3 = vor.u32 %v5914_v47, %v5910_v11  ;;  %v5923_v50 = vshrl.u32 %v8692_v24, 16  ;;  %v5926_v10 = vshll.u32 %v8692_v24, 16 }
 0x288   : > { %v9354_v26 = vadd.f32 %v9353_v1, %v9352_v63  ;;  %v13375_v35 = vsel %vm11008_vm7, %v6575_v17, %v6576_v38  ;;  %v5932_v13 = vshll.u32 %v13361_v59, 16  ;;  %v9355_v55 = vpop.f32.mrf.mxu1  ;;  %v14699_v2 = vcombine.low %v12594_v0, %v12604_v6  ;;  %v14700_v38 = vld [vmem:[#allocation57_spill] sm:$0xff] }
 0x289   : > { %v13378_v8 = vadd.f32 %v12800_v43, %v3515_v7  ;;  %v9525_v47 = vpop.f32.mrf.mxu0  ;;  %v8807_v33 = vrot.slane %v8791_v19, 9  ;;  %v13386_v24 = vsel %vm10805_vm4, %v5906_v22, %v5910_v11  ;;  %v5916_v63 = vrot.slane %v5915_v3, 4  ;;  %v13396_v6 = vld [vmem:[%s10775_s16 + $0x178] sm:$0x11] }
 0x28a   : > { %v5925_v17 = vrot.slane %v5923_v50, 4  ;;  %v3516_v44 = vadd.f32 %v9354_v26, %v14700_v38  ;;  %v14701_v43 = vcombine.high %v12697_v4, %v12740_v18  ;;  %v13392_v7 = vadd.f32 %v9525_v47, %v9524_v45  ;;  %v9356_v1 = vpop.f32.mrf.mxu1  ;;  %v8695_v45 = vld [vmem:[%s10775_s16 + $0x180] sm:$0xff] }
 0x28b   : > { %14698 = vst [vmem:[#allocation31_spill] sm:$0xff] %v13378_v8  ;;  %4991 = vmatmul.mubr.bf16.gmra.mxu1 %v14699_v2  ;;  %v6580_v0 = vrot.slane %v13187_v41, 5  ;;  %v5928_v19 = vrot.slane %v5926_v10, 5  ;;  %v9527_v2 = vpop.f32.mrf.mxu0  ;;  %v13400_v3 = vsel %vm10805_vm4, %v5916_v63, %v5920_v25  ;;  %v5934_v11 = vrot.slane %v5932_v13, 5  ;;  %v13419_v8 = vld [vmem:[%s10775_s16 + $0x188] sm:$0xff] }
 0x28c   : > { %4998 = vmatprep.mubr.bf16.mxu1 %v14701_v43  ;;  %v5936_v26 = vshrl.u32 %v13361_v59, 16  ;;  %v5942_v22 = vshll.u32 %v13396_v6, 16  ;;  %v9357_v50 = vadd.f32 %v9356_v1, %v9355_v55  ;;  %v9358_v25 = vpop.f32.mrf.mxu1  ;;  %v6583_v63 = vrot.slane %v13216_v23, 5  ;;  %v14703_v55 = vld [vmem:[#allocation9_spill] sm:$0xff] }
 0x28d   : > { %6966 = vmatmul.mubr.bf16.gmra.mxu0 %v8859_v39  ;;  %v13410_v39 = vadd.f32 %v12843_v30, %v3516_v44  ;;  %v9528_v47 = vpop.f32.mrf.mxu0  ;;  %v5929_v38 = vor.u32 %v5928_v19, %v5925_v17  ;;  %v6582_v41 = vrot.slane %v6580_v0, 4  ;;  %v5947_v10 = vshrl.u32 %v8695_v45, 16 }
 0x28e   : > { %6973 = vmatprep.mubr.bf16.mxu0 %v8862_v52  ;;  %v5938_v43 = vrot.slane %v5936_v26, 4  ;;  %v3517_v52 = vadd.f32 %v9357_v50, %v14703_v55  ;;  %v13416_v1 = vadd.f32 %v9528_v47, %v9527_v2  ;;  %v9359_v31 = vpop.f32.mrf.mxu1  ;;  %v8864_v44 = vcombine.high %v13370_v32, %v13375_v35 }
 0x28f   : > { %14702 = vst [vmem:[#allocation13_spill] sm:$0xff] %v13410_v39  ;;  %v9530_v30 = vpop.f32.mrf.mxu0  ;;  %v5930_v39 = vrot.slane %v5929_v38, 4  ;;  %v5944_v13 = vrot.slane %v5942_v22, 5  ;;  %v9360_v23 = vadd.f32 %v9359_v31, %v9358_v25  ;;  %v13425_v17 = vsel %vm11008_vm7, %v8807_v33, %v6580_v0  ;;  %v14706_v33 = vld [vmem:[#allocation63_spill] sm:$0xff] }
 0x290   : > { %v5939_v28 = vor.u32 %v5938_v43, %v5934_v11  ;;  %v13428_v19 = vadd.f32 %v12868_v54, %v3517_v52  ;;  %v5950_v2 = vshll.u32 %v8695_v45, 16  ;;  %v9361_v26 = vpop.f32.mrf.mxu1  ;;  %v14705_v50 = vcombine.low %v12697_v4, %v12740_v18  ;;  %v8792_v18 = vld [vmem:[%s10775_s16 + $0x138] sm:$0xee] }
 0x291   : > { %v9531_v47 = vpop.f32.mrf.mxu0  ;;  %v13435_v38 = vsel %vm10805_vm4, %v5930_v39, %v5934_v11  ;;  %v5949_v31 = vrot.slane %v5947_v10, 4  ;;  %v5956_v25 = vshll.u32 %v13419_v8, 16  ;;  %v3518_v0 = vadd.f32 %v9360_v23, %v14706_v33  ;;  %v13463_v23 = vld [vmem:[%s10775_s16 + $0x190] sm:$0x11] }
 0x292   : > { %14704 = vst [vmem:[#allocation66_spill] sm:$0xff] %v13428_v19  ;;  %v5940_v22 = vrot.slane %v5939_v28, 4  ;;  %v14707_v54 = vcombine.high %v12746_v56, %v12759_v60  ;;  %v13442_v45 = vadd.f32 %v9531_v47, %v9530_v30  ;;  %v13446_v4 = vsel %vm11008_vm7, %v6582_v41, %v6583_v63  ;;  %v9362_v11 = vpop.f32.mrf.mxu1 }
 0x293   : > { %4999 = vmatmul.mubr.bf16.gmra.mxu1 %v14705_v50  ;;  %v6587_v28 = vrot.slane %v13247_v40, 5  ;;  %v9661_v10 = vpop.f32.mrf.mxu0  ;;  %v14708_v39 = vcombine.low %v13310_v15, %v13327_v51  ;;  %v5952_v55 = vrot.slane %v5950_v2, 5  ;;  %v5958_v52 = vrot.slane %v5956_v25, 5  ;;  %v8698_v51 = vld [vmem:[%s10775_s16 + $0x198] sm:$0xff] }
 0x294   : > { %5006 = vmatprep.mubr.bf16.mxu1 %v14707_v54  ;;  %v13455_v43 = vsel %vm10805_vm4, %v5940_v22, %v5944_v13  ;;  %v5960_v30 = vshrl.u32 %v13419_v8, 16  ;;  %v9363_v41 = vadd.f32 %v9362_v11, %v9361_v26  ;;  %v13466_v15 = vadd.f32 %v12895_v34, %v3518_v0  ;;  %v9364_v13 = vpop.f32.mrf.mxu1  ;;  %v14711_v26 = vld [vmem:[#allocation64_spill] sm:$0xff] }
 0x295   : > { %6974 = vmatmul.mubr.bf16.gmra.mxu0 %v14708_v39  ;;  %14709 = vst [vmem:[#allocation4_spill] sm:$0xff] %v13455_v43  ;;  %v9662_v2 = vpop.f32.mrf.mxu0  ;;  %v8808_v50 = vrot.slane %v8792_v18, 9  ;;  %v5953_v47 = vor.u32 %v5952_v55, %v5949_v31  ;;  %v6589_v54 = vrot.slane %v6587_v28, 4  ;;  %v6590_v11 = vrot.slane %v13285_v14, 5 }
 0x296   : > { %6981 = vmatprep.mubr.bf16.mxu0 %v8864_v44  ;;  %14710 = vst [vmem:[#allocation5_spill] sm:$0xff] %v13466_v15  ;;  %v5962_v22 = vrot.slane %v5960_v30, 4  ;;  %v5966_v44 = vshll.u32 %v13463_v23, 16  ;;  %v3519_v25 = vadd.f32 %v9363_v41, %v14711_v26  ;;  %v13471_v33 = vadd.f32 %v9662_v2, %v9661_v10  ;;  %v9365_v39 = vpop.f32.mrf.mxu1  ;;  %v13475_v15 = vld [vmem:[%s10775_s16 + $0x1a0] sm:$0xff]  ;;  %v14714_v26 = vld [vmem:[#allocation69_spill] sm:$0xff] }
 0x297   : > { %v9664_v63 = vpop.f32.mrf.mxu0  ;;  %v5954_v34 = vrot.slane %v5953_v47, 4  ;;  %v5971_v19 = vshrl.u32 %v8698_v51, 16  ;;  %v9366_v18 = vadd.f32 %v9365_v39, %v9364_v13  ;;  %v8866_v31 = vcombine.high %v13425_v17, %v13446_v4  ;;  %v14713_v13 = vld [vmem:[#allocation65_spill] sm:$0xff]  ;;  %v14715_v39 = vld [vmem:[#allocation67_spill] sm:$0xff] }
 0x298   : > { %v5963_v0 = vor.u32 %v5962_v22, %v5958_v52  ;;  %v5968_v40 = vrot.slane %v5966_v44, 5  ;;  %v13480_v55 = vadd.f32 %v12924_v29, %v3519_v25  ;;  %v9367_v10 = vpop.f32.mrf.mxu1  ;;  %v14712_v30 = vcombine.low %v12746_v56, %v12759_v60 }
 0x299   : > { %v9665_v14 = vpop.f32.mrf.mxu0  ;;  %v13487_v41 = vsel %vm10805_vm4, %v5954_v34, %v5958_v52  ;;  %v5973_v47 = vrot.slane %v5971_v19, 4  ;;  %v5974_v22 = vshll.u32 %v8698_v51, 16  ;;  %v3520_v44 = vadd.f32 %v9366_v18, %v14713_v13 }
 0x29a   : > { %v5964_v2 = vrot.slane %v5963_v0, 4  ;;  %v14716_v43 = vcombine.high %v14714_v26, %v14715_v39  ;;  %v13493_v29 = vadd.f32 %v9665_v14, %v9664_v63  ;;  %v13497_v56 = vsel %vm11008_vm7, %v8808_v50, %v6587_v28  ;;  %v9368_v52 = vpop.f32.mrf.mxu1  ;;  %v8793_v0 = vld [vmem:[%s10775_s16 + $0x150] sm:$0xee] }
 0x29b   : > { %5007 = vmatmul.mubr.bf16.gmra.mxu1 %v14712_v30  ;;  %v5980_v60 = vshll.u32 %v13475_v15, 16  ;;  %v9667_v25 = vpop.f32.mrf.mxu0  ;;  %v14717_v19 = vcombine.low %v13370_v32, %v13375_v35  ;;  %v13505_v51 = vsel %vm11008_vm7, %v6589_v54, %v6590_v11  ;;  %v5976_v28 = vrot.slane %v5974_v22, 5  ;;  %v13517_v35 = vld [vmem:[%s10775_s16 + $0x1a8] sm:$0x11] }
 0x29c   : > { %6283 = vmatprep.mubr.bf16.mxu1 %v14716_v43  ;;  %v6594_v43 = vrot.slane %v13301_v57, 5  ;;  %v13510_v63 = vsel %vm10805_vm4, %v5964_v2, %v5968_v40  ;;  %v9369_v50 = vadd.f32 %v9368_v52, %v9367_v10  ;;  %v13520_v54 = vadd.f32 %v12950_v58, %v3520_v44  ;;  %v9370_v11 = vpop.f32.mrf.mxu1  ;;  %v14718_v10 = vld [vmem:[#allocation68_spill] sm:$0xff] }
 0x29d   : > { %6982 = vmatmul.mubr.bf16.gmra.mxu0 %v14717_v19  ;;  %v9668_v57 = vpop.f32.mrf.mxu0  ;;  %v5977_v18 = vor.u32 %v5976_v28, %v5973_v47  ;;  %v5982_v40 = vrot.slane %v5980_v60, 5  ;;  %v5984_v30 = vshrl.u32 %v13475_v15, 16  ;;  %v8865_v52 = vcombine.low %v13425_v17, %v13446_v4 }
 0x29e   : > { %6989 = vmatprep.mubr.bf16.mxu0 %v8866_v31  ;;  %v5990_v31 = vshll.u32 %v13517_v35, 16  ;;  %v3521_v14 = vadd.f32 %v9369_v50, %v14718_v10  ;;  %v13526_v2 = vadd.f32 %v9668_v57, %v9667_v25  ;;  %v9371_v22 = vpop.f32.mrf.mxu1  ;;  %v8868_v47 = vcombine.high %v13497_v56, %v13505_v51 }
 0x29f   : > { %v9670_v13 = vpop.f32.mrf.mxu0  ;;  %v5978_v58 = vrot.slane %v5977_v18, 4  ;;  %v5986_v44 = vrot.slane %v5984_v30, 4  ;;  %v9372_v19 = vadd.f32 %v9371_v22, %v9370_v11  ;;  %v8809_v60 = vrot.slane %v8793_v0, 9  ;;  %v14720_v18 = vld [vmem:[#allocation70_spill] sm:$0xff]  ;;  %v14721_v30 = vld [vmem:[#allocation72_spill] sm:$0xff] }
 0x2a0   : > { %v13533_v28 = vadd.f32 %v12980_v9, %v3521_v14  ;;  %v9373_v34 = vpop.f32.mrf.mxu1  ;;  %v14719_v25 = vcombine.low %v14714_v26, %v14715_v39  ;;  %v6596_v57 = vrot.slane %v6594_v43, 4  ;;  %v6597_v10 = vrot.slane %v13344_v12, 5  ;;  %v14722_v22 = vld [vmem:[#allocation16_spill] sm:$0xff] }
 0x2a1   : > { %v9671_v50 = vpop.f32.mrf.mxu0  ;;  %v5987_v17 = vor.u32 %v5986_v44, %v5982_v40  ;;  %v5992_v4 = vrot.slane %v5990_v31, 5  ;;  %v3522_v11 = vadd.f32 %v9372_v19, %v14720_v18  ;;  %v14723_v32 = vcombine.high %v14721_v30, %v14722_v22 }
 0x2a2   : > { %v13543_v0 = vadd.f32 %v9671_v50, %v9670_v13  ;;  %v9374_v9 = vpop.f32.mrf.mxu1  ;;  %v13547_v26 = vsel %vm10805_vm4, %v5978_v58, %v5982_v40  ;;  %v6598_v13 = vsel %vm11008_vm7, %v6596_v57, %v6597_v10  ;;  %v14724_v58 = vld [vmem:[#allocation71_spill] sm:$0xff] }
 0x2a3   : > { %6284 = vmatmul.mubr.bf16.vlgmr.msra.gmra.mxu1 %v14719_v25  ;;  %v9673_v14 = vpop.f32.mrf.mxu0  ;;  %v5988_v39 = vrot.slane %v5987_v17, 4  ;;  %v9375_v12 = vadd.f32 %v9374_v9, %v9373_v34  ;;  %v13550_v31 = vadd.f32 %v13010_v46, %v3522_v11  ;;  %v8794_v46 = vld [vmem:[%s10775_s16 + $0x168] sm:$0xee] }
 0x2a4   : > { %6291 = vmatprep.mubr.bf16.mxu1 %v14723_v32  ;;  %v9376_v44 = vpop.f32.mrf.mxu1  ;;  %v6595_v32 = vsel %vm11008_vm7, %v8809_v60, %v6594_v43  ;;  %v8810_v11 = vrot.slane %v8794_v46, 9 }
 0x2a5   : > { %6990 = vmatmul.mubr.bf16.gmra.mxu0 %v8865_v52  ;;  %v9674_v19 = vpop.f32.mrf.mxu0  ;;  %v6601_v52 = vrot.slane %v13361_v59, 5  ;;  %v13559_v40 = vsel %vm10805_vm4, %v5988_v39, %v5992_v4  ;;  %v3523_v34 = vadd.f32 %v9375_v12, %v14724_v58  ;;  %v8867_v59 = vcombine.low %v13497_v56, %v13505_v51  ;;  %v14726_v39 = vld [vmem:[#allocation73_spill] sm:$0xff]  ;;  %v14728_v58 = vld [vmem:[#allocation18_spill] sm:$0xff] }
 0x2a6   : > { %6997 = vmatprep.mubr.bf16.mxu0 %v8868_v47  ;;  %v13562_v47 = vadd.f32 %v9674_v19, %v9673_v14  ;;  %v9377_v60 = vpop.f32.mrf.mxu1  ;;  %v8870_v62 = vcombine.high %v6595_v32, %v6598_v13  ;;  %v14725_v4 = vcombine.low %v14721_v30, %v14722_v22  ;;  %v6604_v14 = vrot.slane %v13396_v6, 5  ;;  %v14727_v19 = vld [vmem:[#allocation74_spill] sm:$0xff]  ;;  %v14730_v30 = vld [vmem:[#allocation35_spill] sm:$0xff] }
 0x2a7   : > { %v9676_v50 = vpop.f32.mrf.mxu0  ;;  %v9378_v57 = vadd.f32 %v9377_v60, %v9376_v44  ;;  %v13572_v10 = vadd.f32 %v13036_v16, %v3523_v34  ;;  %v6603_v9 = vrot.slane %v6601_v52, 4  ;;  %v14729_v56 = vcombine.high %v14727_v19, %v14728_v58 }
 0x2a8   : > { %v9379_v17 = vpop.f32.mrf.mxu1  ;;  %v6602_v6 = vsel %vm11008_vm7, %v8810_v11, %v6601_v52  ;;  %v14732_v52 = vcombine.low %v14727_v19, %v14728_v58  ;;  %v14737_v19 = vld [vmem:[#allocation29_spill] sm:$0xff] }
 0x2a9   : > { %v9677_v18 = vpop.f32.mrf.mxu0  ;;  %v3524_v12 = vadd.f32 %v9378_v57, %v14726_v39  ;;  %v6605_v57 = vsel %vm11008_vm7, %v6603_v9, %v6604_v14  ;;  %v6611_v14 = vrot.slane %v13463_v23, 5 }
 0x2aa   : > { %v13582_v51 = vadd.f32 %v9677_v18, %v9676_v50  ;;  %v9380_v16 = vpop.f32.mrf.mxu1  ;;  %v14731_v50 = vld [vmem:[#allocation17_spill] sm:$0xff] }
 0x2ab   : > { %6292 = vmatmul.mubr.bf16.gmra.mxu1 %v14725_v4  ;;  %v9679_v44 = vpop.f32.mrf.mxu0  ;;  %v9381_v34 = vadd.f32 %v9380_v16, %v9379_v17  ;;  %v13585_v22 = vadd.f32 %v14730_v30, %v3524_v12  ;;  %v6608_v4 = vrot.slane %v13419_v8, 5  ;;  %v8872_v16 = vcombine.high %v6602_v6, %v6605_v57 }
 0x2ac   : > { %6299 = vmatprep.mubr.bf16.mxu1 %v14729_v56  ;;  %v9382_v46 = vpop.f32.mrf.mxu1  ;;  %v8869_v56 = vcombine.low %v6595_v32, %v6598_v13 }
 0x2ad   : > { %6998 = vmatmul.mubr.bf16.gmra.mxu0 %v8867_v59  ;;  %v9680_v60 = vpop.f32.mrf.mxu0  ;;  %v3525_v18 = vadd.f32 %v9381_v34, %v14731_v50  ;;  %v8795_v59 = vld [vmem:[%s10775_s16 + $0x180] sm:$0xee]  ;;  %v6610_v9 = vrot.slane %v6608_v4, 4  ;;  %v14735_v50 = vld [vmem:[#allocation77_spill] sm:$0xff] }
 0x2ae   : > { %7005 = vmatprep.mubr.bf16.mxu0 %v8870_v62  ;;  %v13593_v39 = vadd.f32 %v9680_v60, %v9679_v44  ;;  %v9383_v17 = vpop.f32.mrf.mxu1  ;;  %v8811_v8 = vrot.slane %v8795_v59, 9  ;;  %v14733_v44 = vld [vmem:[#allocation75_spill] sm:$0xff]  ;;  %v14734_v60 = vld [vmem:[#allocation20_spill] sm:$0xff] }
 0x2af   : > { %v9682_v62 = vpop.f32.mrf.mxu0  ;;  %v9384_v12 = vadd.f32 %v9383_v17, %v9382_v46  ;;  %v13597_v30 = vadd.f32 %v13086_v21, %v3525_v18  ;;  %v14736_v32 = vcombine.high %v14734_v60, %v14735_v50 }
 0x2b0   : > { %v9385_v25 = vpop.f32.mrf.mxu1  ;;  %v6609_v23 = vsel %vm11008_vm7, %v8811_v8, %v6608_v4  ;;  %v14742_v8 = vcombine.low %v14734_v60, %v14735_v50 }
 0x2b1   : > { %v9683_v11 = vpop.f32.mrf.mxu0  ;;  %v3526_v34 = vadd.f32 %v9384_v12, %v14733_v44  ;;  %v6612_v12 = vsel %vm11008_vm7, %v6610_v9, %v6611_v14 }
 0x2b2   : > { %v13607_v13 = vadd.f32 %v9683_v11, %v9682_v62  ;;  %v9386_v21 = vpop.f32.mrf.mxu1  ;;  %v14739_v62 = vld [vmem:[#allocation19_spill] sm:$0xff] }
 0x2b3   : > { %6300 = vmatmul.mubr.bf16.gmra.mxu1 %v14732_v52  ;;  %v9685_v46 = vpop.f32.mrf.mxu0  ;;  %v9387_v18 = vadd.f32 %v9386_v21, %v9385_v25  ;;  %v13610_v58 = vadd.f32 %v14737_v19, %v3526_v34  ;;  %v6615_v52 = vrot.slane %v13475_v15, 5  ;;  %v8871_v34 = vcombine.low %v6602_v6, %v6605_v57  ;;  %v14740_v19 = vld [vmem:[#allocation10_spill] sm:$0xff]  ;;  %v14745_v6 = vld [vmem:[#allocation79_spill] sm:$0xff] }
 0x2b4   : > { %6307 = vmatprep.mubr.bf16.mxu1 %v14736_v32  ;;  %v9388_v59 = vpop.f32.mrf.mxu1  ;;  %v8874_v21 = vcombine.high %v6609_v23, %v6612_v12 }
 0x2b5   : > { %7006 = vmatmul.mubr.bf16.gmra.mxu0 %v8869_v56  ;;  %14738 = vst [vmem:[#allocation56_spill] sm:$0xff] %v13610_v58  ;;  %v9686_v17 = vpop.f32.mrf.mxu0  ;;  %v3527_v11 = vadd.f32 %v9387_v18, %v14739_v62  ;;  %v8796_v56 = vld [vmem:[%s10775_s16 + $0x198] sm:$0xee]  ;;  %v6617_v14 = vrot.slane %v6615_v52, 4  ;;  %v14743_v18 = vld [vmem:[#allocation76_spill] sm:$0xff]  ;;  %v14744_v62 = vld [vmem:[#allocation22_spill] sm:$0xff] }
 0x2b6   : > { %7013 = vmatprep.mubr.bf16.mxu0 %v8872_v16  ;;  %v13618_v44 = vadd.f32 %v9686_v17, %v9685_v46  ;;  %v9389_v25 = vpop.f32.mrf.mxu1  ;;  %v8812_v9 = vrot.slane %v8796_v56, 9  ;;  %v6618_v46 = vrot.slane %v13517_v35, 5  ;;  %v14746_v57 = vcombine.high %v14744_v62, %v14745_v6 }
 0x2b7   : > { %v13621_v16 = vpop.f32.mrf.mxu0  ;;  %v9390_v32 = vadd.f32 %v9389_v25, %v9388_v59  ;;  %v13624_v43 = vadd.f32 %v14740_v19, %v3527_v11  ;;  %v14747_v19 = vld [vmem:[#allocation53_spill] sm:$0xff] }
 0x2b8   : > { %v9391_v4 = vpop.f32.mrf.mxu1  ;;  %v6616_v56 = vsel %vm11008_vm7, %v8812_v9, %v6615_v52  ;;  %v6619_v35 = vsel %vm11008_vm7, %v6617_v14, %v6618_v46  ;;  %v14753_v14 = vld [vmem:[#allocation3_spill] sm:$0xff]  ;;  %v14754_v46 = vld [vmem:[#allocation6_spill] sm:$0xff] }
 0x2b9   : > { %14741 = vst [vmem:[#allocation57_spill] sm:$0xff] %v13624_v43  ;;  %v13629_v15 = vpop.f32.mrf.mxu0  ;;  %v3528_v17 = vadd.f32 %v9390_v32, %v14743_v18  ;;  %v14749_v32 = vld [vmem:[#allocation21_spill] sm:$0xff] }
 0x2ba   : > { %v9392_v59 = vpop.f32.mrf.mxu1 }
 0x2bb   : > { %6308 = vmatmul.mubr.bf16.gmra.mxu1 %v14742_v8  ;;  %v9691_v11 = vpop.f32.mrf.mxu0  ;;  %v9393_v25 = vadd.f32 %v9392_v59, %v9391_v4  ;;  %v13637_v60 = vadd.f32 %v14747_v19, %v3528_v17  ;;  %v14750_v59 = vld [vmem:[#allocation60_spill] sm:$0xff] }
 0x2bc   : > { %6315 = vmatprep.mubr.bf16.mxu1 %v14746_v57  ;;  %v9394_v50 = vpop.f32.mrf.mxu1 }
 0x2bd   : > { %7014 = vmatmul.mubr.bf16.gmra.mxu0 %v8871_v34  ;;  %14748 = vst [vmem:[#allocation9_spill] sm:$0xff] %v13637_v60  ;;  %v9692_v8 = vpop.f32.mrf.mxu0  ;;  %v3529_v18 = vadd.f32 %v9393_v25, %v14749_v32  ;;  %v8873_v34 = vcombine.low %v6609_v23, %v6612_v12  ;;  %v14751_v60 = vcombine.low %v14744_v62, %v14745_v6  ;;  %v14757_v6 = vld [vmem:[#allocation23_spill] sm:$0xff] }
 0x2be   : > { %7021 = vmatprep.mubr.bf16.mxu0 %v8874_v21  ;;  %v13644_v43 = vadd.f32 %v9692_v8, %v9691_v11  ;;  %v9395_v57 = vpop.f32.mrf.mxu1  ;;  %v8876_v21 = vcombine.high %v6616_v56, %v6619_v35  ;;  %v14755_v11 = vcombine.high %v14753_v14, %v14754_v46  ;;  %v14756_v8 = vld [vmem:[#allocation55_spill] sm:$0xff] }
 0x2bf   : > { %v9694_v58 = vpop.f32.mrf.mxu0  ;;  %v9396_v4 = vadd.f32 %v9395_v57, %v9394_v50  ;;  %v13647_v17 = vadd.f32 %v14750_v59, %v3529_v18 }
 0x2c1   : > { %v9397_v19 = vpop.f32.mrf.mxu1  ;;  %v9695_v52 = vpop.f32.mrf.mxu0  ;;  %v3530_v9 = vadd.f32 %v9396_v4, %v14752_v27  ;;  %v8875_v27 = vcombine.low %v6616_v56, %v6619_v35 }
 0x2c2   : > { %v13656_v25 = vadd.f32 %v9695_v52, %v9694_v58 }
 0x2c3   : > { %6316 = vmatmul.mubr.bf16.gmra.mxu1 %v14751_v60  ;;  %v9398_v23 = vpop.f32.mrf.mxu1  ;;  %v9697_v12 = vpop.f32.mrf.mxu0  ;;  %v13659_v32 = vadd.f32 %v14756_v8, %v3530_v9  ;;  %v14761_v8 = vld [vmem:[#allocation33_spill] sm:$0xff] }
 0x2c4   : > { %6323 = vmatprep.mubr.bf16.mxu1 %v14755_v11  ;;  %v9399_v50 = vadd.f32 %v9398_v23, %v9397_v19  ;;  %v14759_v19 = vld [vmem:[#allocation24_spill] sm:$0xff]  ;;  %v14760_v23 = vld [vmem:[#allocation25_spill] sm:$0xff] }
 0x2c5   : > { %7022 = vmatmul.mubr.bf16.gmra.mxu0 %v8873_v34  ;;  %v9400_v18 = vpop.f32.mrf.mxu1  ;;  %v9698_v62 = vpop.f32.mrf.mxu0  ;;  %v14758_v34 = vcombine.low %v14753_v14, %v14754_v46  ;;  %v14763_v14 = vld [vmem:[#allocation7_spill] sm:$0xff] }
 0x2c6   : > { %7029 = vmatprep.mubr.bf16.mxu0 %v8876_v21  ;;  %v3531_v60 = vadd.f32 %v9399_v50, %v14757_v6  ;;  %v13662_v57 = vadd.f32 %v9698_v62, %v9697_v12  ;;  %v14762_v50 = vcombine.high %v14760_v23, %v14761_v8 }
 0x2c7   : > { %v9401_v4 = vpop.f32.mrf.mxu1  ;;  %v9700_v59 = vpop.f32.mrf.mxu0 }
 0x2c8   : > { %v9402_v11 = vadd.f32 %v9401_v4, %v9400_v18  ;;  %v13665_v58 = vadd.f32 %v13255_v48, %v3531_v60 }
 0x2c9   : > { %v9403_v52 = vpop.f32.mrf.mxu1  ;;  %v9701_v21 = vpop.f32.mrf.mxu0 }
 0x2ca   : > { %v3532_v9 = vadd.f32 %v9402_v11, %v14759_v19  ;;  %v13674_v12 = vadd.f32 %v9701_v21, %v9700_v59 }
 0x2cb   : > { %6324 = vmatmul.mubr.bf16.gmra.mxu1 %v14758_v34  ;;  %v9404_v62 = vpop.f32.mrf.mxu1  ;;  %v9703_v56 = vpop.f32.mrf.mxu0 }
 0x2cc   : > { %6331 = vmatprep.mubr.bf16.mxu1 %v14762_v50  ;;  %v9405_v35 = vadd.f32 %v9404_v62, %v9403_v52  ;;  %v13677_v48 = vadd.f32 %v13278_v49, %v3532_v9  ;;  %v14766_v49 = vld [vmem:[#allocation32_spill] sm:$0xff]  ;;  %v14767_v9 = vld [vmem:[#allocation37_spill] sm:$0xff] }
 0x2cd   : > { %7030 = vmatmul.mubr.bf16.gmra.mxu0 %v8875_v27  ;;  %v9406_v18 = vpop.f32.mrf.mxu1  ;;  %v9704_v6 = vpop.f32.mrf.mxu0  ;;  %v14765_v27 = vcombine.low %v14760_v23, %v14761_v8  ;;  %v14768_v50 = vld [vmem:[#allocation28_spill] sm:$0xff] }
 0x2ce   : > { %v3533_v46 = vadd.f32 %v9405_v35, %v14763_v14  ;;  %v13680_v60 = vadd.f32 %v9704_v6, %v9703_v56  ;;  %v14769_v62 = vcombine.high %v14767_v9, %v14768_v50 }
 0x2cf   : > { %v9407_v4 = vpop.f32.mrf.mxu1  ;;  %v9706_v11 = vpop.f32.mrf.mxu0 }
 0x2d0   : > { %v9408_v34 = vadd.f32 %v9407_v4, %v9406_v18  ;;  %v13683_v19 = vadd.f32 %v13304_v42, %v3533_v46  ;;  %v14771_v4 = vld [vmem:[#allocation26_spill] sm:$0xff] }
 0x2d1   : > { %v9409_v59 = vpop.f32.mrf.mxu1  ;;  %v9707_v52 = vpop.f32.mrf.mxu0 }
 0x2d2   : > { %14764 = vst [vmem:[#allocation63_spill] sm:$0xff] %v13683_v19  ;;  %v3534_v21 = vadd.f32 %v9408_v34, %v14766_v49  ;;  %v13692_v56 = vadd.f32 %v9707_v52, %v9706_v11  ;;  %v14773_v52 = vcombine.low %v14767_v9, %v14768_v50 }
 0x2d3   : > { %6332 = vmatmul.mubr.bf16.gmra.mxu1 %v14765_v27  ;;  %v9410_v35 = vpop.f32.mrf.mxu1  ;;  %v9709_v6 = vpop.f32.mrf.mxu0 }
 0x2d4   : > { %6339 = vmatprep.mubr.bf16.mxu1 %v14769_v62  ;;  %v9411_v18 = vadd.f32 %v9410_v35, %v9409_v59  ;;  %v13695_v42 = vadd.f32 %v13337_v5, %v3534_v21  ;;  %v14774_v5 = vld [vmem:[#allocation27_spill] sm:$0xff]  ;;  %v14775_v62 = vld [vmem:[#allocation58_spill] sm:$0xff]  ;;  %v14776_v35 = vld [vmem:[#allocation52_spill] sm:$0xff] }
 0x2d5   : > { %v9412_v14 = vpop.f32.mrf.mxu1  ;;  %v9710_v46 = vpop.f32.mrf.mxu0 }
 0x2d6   : > { %14770 = vst [vmem:[#allocation64_spill] sm:$0xff] %v13695_v42  ;;  %v3535_v23 = vadd.f32 %v9411_v18, %v14771_v4  ;;  %v13698_v8 = vadd.f32 %v9710_v46, %v9709_v6  ;;  %v14777_v42 = vcombine.high %v14775_v62, %v14776_v35 }
 0x2d7   : > { %v9413_v27 = vpop.f32.mrf.mxu1  ;;  %v9712_v34 = vpop.f32.mrf.mxu0 }
 0x2d8   : > { %v9414_v49 = vadd.f32 %v9413_v27, %v9412_v14  ;;  %v13701_v19 = vadd.f32 %v13364_v36, %v3535_v23  ;;  %v14779_v27 = vld [vmem:[#allocation8_spill] sm:$0xff] }
 0x2d9   : > { %v9415_v11 = vpop.f32.mrf.mxu1  ;;  %v9713_v59 = vpop.f32.mrf.mxu0 }
 0x2da   : > { %14772 = vst [vmem:[#allocation65_spill] sm:$0xff] %v13701_v19  ;;  %v3536_v21 = vadd.f32 %v9414_v49, %v14774_v5  ;;  %v13710_v6 = vadd.f32 %v9713_v59, %v9712_v34  ;;  %v14781_v34 = vcombine.low %v14775_v62, %v14776_v35 }
 0x2db   : > { %6340 = vmatmul.mubr.bf16.gmra.mxu1 %v14773_v52  ;;  %v9416_v18 = vpop.f32.mrf.mxu1  ;;  %v9715_v46 = vpop.f32.mrf.mxu0 }
 0x2dc   : > { %6347 = vmatprep.mubr.bf16.mxu1 %v14777_v42  ;;  %v9417_v14 = vadd.f32 %v9416_v18, %v9415_v11  ;;  %v13713_v36 = vadd.f32 %v13392_v7, %v3536_v21  ;;  %v14782_v7 = vld [vmem:[#allocation30_spill] sm:$0xff]  ;;  %v14783_v21 = vld [vmem:[#allocation12_spill] sm:$0xff] }
 0x2dd   : > { %v9418_v4 = vpop.f32.mrf.mxu1  ;;  %v9716_v23 = vpop.f32.mrf.mxu0  ;;  %v14784_v18 = vld [vmem:[#allocation80_spill] sm:$0xff] }
 0x2de   : > { %14778 = vst [vmem:[#allocation69_spill] sm:$0xff] %v13713_v36  ;;  %v3537_v9 = vadd.f32 %v9417_v14, %v14779_v27  ;;  %v13716_v50 = vadd.f32 %v9716_v23, %v9715_v46  ;;  %v14785_v36 = vcombine.high %v14783_v21, %v14784_v18 }
 0x2df   : > { %v9419_v52 = vpop.f32.mrf.mxu1  ;;  %v9718_v49 = vpop.f32.mrf.mxu0 }
 0x2e0   : > { %v9420_v5 = vadd.f32 %v9419_v52, %v9418_v4  ;;  %v13719_v19 = vadd.f32 %v13416_v1, %v3537_v9  ;;  %v14786_v52 = vld [vmem:[#allocation11_spill] sm:$0xff] }
 0x2e1   : > { %v9549_v42 = vpop.f32.mrf.mxu1  ;;  %v9719_v11 = vpop.f32.mrf.mxu0 }
 0x2e2   : > { %14780 = vst [vmem:[#allocation67_spill] sm:$0xff] %v13719_v19  ;;  %v3538_v59 = vadd.f32 %v9420_v5, %v14782_v7  ;;  %v13728_v46 = vadd.f32 %v9719_v11, %v9718_v49  ;;  %v14787_v49 = vcombine.low %v14783_v21, %v14784_v18 }
 0x2e3   : > { %6348 = vmatmul.mubr.bf16.gmra.mxu1 %v14781_v34  ;;  %v9550_v14 = vpop.f32.mrf.mxu1  ;;  %v9721_v23 = vpop.f32.mrf.mxu0 }
 0x2e4   : > { %6355 = vmatprep.mubr.bf16.mxu1 %v14785_v36  ;;  %v9551_v4 = vadd.f32 %v9550_v14, %v9549_v42  ;;  %v13731_v1 = vadd.f32 %v13442_v45, %v3538_v59  ;;  %v14788_v45 = vld [vmem:[#allocation59_spill] sm:$0xff]  ;;  %v14789_v59 = vcombine.high %v13259_v61, %v13271_v20 }
 0x2e5   : > { %v9552_v27 = vpop.f32.mrf.mxu1  ;;  %v9722_v9 = vpop.f32.mrf.mxu0 }
 0x2e6   : > { %v5015_v62 = vadd.f32 %v9551_v4, %v14786_v52  ;;  %v13734_v35 = vadd.f32 %v9722_v9, %v9721_v23  ;;  %v10524_v23 = vld [vmem:[%s14375_s9 + $0x18] sm:$0xff]   ;;  %v14790_v52 = vld [vmem:[#allocation54_spill] sm:$0xff] }
 0x2e7   : > { %v9553_v34 = vpop.f32.mrf.mxu1  ;;  %v9724_v5 = vpop.f32.mrf.mxu0  ;;  %10089 = vmatprep.subr.bf16.mxu1 %v10524_v23 }
 0x2e8   : > { %v9554_v7 = vadd.f32 %v9553_v34, %v9552_v27  ;;  %v13737_v19 = vadd.f32 %v13471_v33, %v5015_v62  ;;  %10090 = vmatpush3.bf16.msra.mxu1 %v10524_v23 }
 0x2e9   : > { %v9725_v42 = vpop.f32.mrf.mxu0 }
 0x2ea   : > { %v9555_v36 = vpop.f32.mrf.mxu1  ;;  %v5016_v11 = vadd.f32 %v9554_v7, %v14788_v45  ;;  %v13746_v14 = vadd.f32 %v9725_v42, %v9724_v5  ;;  %v10525_v5 = vld [vmem:[%s14375_s9 + $0x10] sm:$0xff]   ;;  %v14791_v45 = vcombine.low %v13259_v61, %v13271_v20 }
 0x2eb   : > { %6356 = vmatmul.mubr.bf16.gmra.mxu1 %v14787_v49  ;;  %10091 = vmatprep.subr.bf16.mxu1 %v10525_v5 }
 0x2ec   : > { %6363 = vmatprep.mubr.bf16.mxu1 %v14789_v59  ;;  %v9556_v33 = vpop.f32.mrf.mxu1  ;;  %v9727_v4 = vpop.f32.mrf.mxu0  ;;  %v13752_v9 = vadd.f32 %v13493_v29, %v5016_v11  ;;  %v14792_v59 = vld [vmem:[#allocation61_spill] sm:$0xff]  ;;  %10092 = vmatpush3.bf16.msra.mxu1 %v10525_v5  ;;  %v10527_v5 = vld [vmem:[%s14375_s9] sm:$0xff]  }
 0x2ed   : > { %v9557_v27 = vadd.f32 %v9556_v33, %v9555_v36  ;;  %v14793_v33 = vcombine.high %v13315_v37, %v13331_v53 }
 0x2ee   : > { %v9558_v21 = vpop.f32.mrf.mxu1  ;;  %v9728_v18 = vpop.f32.mrf.mxu0 }
 0x2ef   : > { %v5017_v62 = vadd.f32 %v9557_v27, %v14790_v52  ;;  %v13755_v34 = vadd.f32 %v9728_v18, %v9727_v4 }
 0x2f0   : > { %v9559_v7 = vpop.f32.mrf.mxu1  ;;  %v9730_v49 = vpop.f32.mrf.mxu0 }
 0x2f1   : > { %v9560_v42 = vadd.f32 %v9559_v7, %v9558_v21  ;;  %v13761_v36 = vadd.f32 %v13526_v2, %v5017_v62  ;;  %v10526_v2 = vld [vmem:[%s14375_s9 + $0x8] sm:$0xff]   ;;  %v14794_v62 = vld [vmem:[#allocation62_spill] sm:$0xff] }
 0x2f2   : > { %v9561_v29 = vpop.f32.mrf.mxu1  ;;  %v9731_v11 = vpop.f32.mrf.mxu0  ;;  %10093 = vmatprep.subr.bf16.mxu1 %v10526_v2 }
 0x2f3   : > { %6364 = vmatmul.mubr.bf16.gmra.mxu1 %v14791_v45  ;;  %v5018_v23 = vadd.f32 %v9560_v42, %v14792_v59  ;;  %v13770_v4 = vadd.f32 %v9731_v11, %v9730_v49  ;;  %v14795_v59 = vcombine.low %v13315_v37, %v13331_v53  ;;  %v14798_v37 = vld [vmem:[#allocation2_spill] sm:$0xff] }
 0x2f4   : > { %6371 = vmatprep.mubr.bf16.mxu1 %v14793_v33  ;;  %v9562_v27 = vpop.f32.mrf.mxu1  ;;  %v9733_v21 = vpop.f32.mrf.mxu0  ;;  %10094 = vmatpush3.bf16.msra.mxu1 %v10526_v2  ;;  %v14796_v33 = vld [vmem:[#allocation14_spill] sm:$0xff]  ;;  %v14797_v2 = vcombine.high %v13386_v24, %v13400_v3 }
 0x2f5   : > { %v9563_v18 = vadd.f32 %v9562_v27, %v9561_v29  ;;  %v13776_v61 = vadd.f32 %v13543_v0, %v5018_v23  ;;  %10095 = vmatprep.subr.bf16.mxu1 %v10527_v5 }
 0x2f6   : > { %v9564_v20 = vpop.f32.mrf.mxu1  ;;  %v9734_v52 = vpop.f32.mrf.mxu0 }
 0x2f7   : > { %v5019_v7 = vadd.f32 %v9563_v18, %v14794_v62  ;;  %v13779_v42 = vadd.f32 %v9734_v52, %v9733_v21 }
 0x2f8   : > { %v9565_v49 = vpop.f32.mrf.mxu1  ;;  %v9736_v45 = vpop.f32.mrf.mxu0  ;;  %10096 = vmatpush3.bf16.msra.mxu1 %v10527_v5  ;;  %v14800_v5 = vcombine.low %v13386_v24, %v13400_v3 }
 0x2f9   : > { %v9566_v11 = vadd.f32 %v9565_v49, %v9564_v20  ;;  %v13785_v29 = vadd.f32 %v13562_v47, %v5019_v7 }
 0x2fa   : > { %v9567_v0 = vpop.f32.mrf.mxu1  ;;  %v9737_v23 = vpop.f32.mrf.mxu0 }
 0x2fb   : > { %6372 = vmatmul.mubr.bf16.gmra.mxu1 %v14795_v59  ;;  %v5020_v27 = vadd.f32 %v9566_v11, %v14796_v33  ;;  %v13794_v21 = vadd.f32 %v9737_v23, %v9736_v45 }
 0x2fc   : > { %6379 = vmatprep.mubr.bf16.mxu1 %v14797_v2  ;;  %v9568_v18 = vpop.f32.mrf.mxu1  ;;  %v9739_v20 = vpop.f32.mrf.mxu0 }
 0x2fd   : > { %v9569_v47 = vadd.f32 %v9568_v18, %v9567_v0  ;;  %v13797_v52 = vadd.f32 %v13582_v51, %v5020_v27  ;;  %v14801_v51 = vld [vmem:[#allocation15_spill] sm:$0xff]  ;;  %v14802_v27 = vld [vmem:[#allocation4_spill] sm:$0xff] }
 0x2fe   : > { %v9570_v62 = vpop.f32.mrf.mxu1  ;;  %v9740_v7 = vpop.f32.mrf.mxu0  ;;  %v14803_v18 = vcombine.high %v13435_v38, %v14802_v27 }
 0x2ff   : > { %v5021_v53 = vadd.f32 %v9569_v47, %v14798_v37  ;;  %v13800_v49 = vadd.f32 %v9740_v7, %v9739_v20 }
 0x300   : > { %v9571_v11 = vpop.f32.mrf.mxu1  ;;  %v9742_v59 = vpop.f32.mrf.mxu0 }
 0x301   : > { %v9572_v33 = vadd.f32 %v9571_v11, %v9570_v62  ;;  %v13803_v2 = vadd.f32 %v13593_v39, %v5021_v53  ;;  %v14804_v11 = vld [vmem:[#allocation31_spill] sm:$0xff] }
 0x302   : > { %v9573_v45 = vpop.f32.mrf.mxu1  ;;  %v9743_v0 = vpop.f32.mrf.mxu0 }
 0x303   : > { %14799 = vst [vmem:[#allocation68_spill] sm:$0xff] %v13803_v2  ;;  %6380 = vmatmul.mubr.bf16.gmra.mxu1 %v14800_v5  ;;  %v5022_v23 = vadd.f32 %v9572_v33, %v14801_v51  ;;  %v13812_v20 = vadd.f32 %v9743_v0, %v9742_v59  ;;  %v14805_v0 = vcombine.low %v13435_v38, %v14802_v27  ;;  %v14808_v27 = vld [vmem:[#allocation66_spill] sm:$0xff] }
 0x304   : > { %6387 = vmatprep.mubr.bf16.mxu1 %v14803_v18  ;;  %v9574_v47 = vpop.f32.mrf.mxu1  ;;  %v9745_v7 = vpop.f32.mrf.mxu0 }
 0x305   : > { %v9575_v62 = vadd.f32 %v9574_v47, %v9573_v45  ;;  %v13815_v39 = vadd.f32 %v13607_v13, %v5022_v23  ;;  %v9690_v13 = vadd.f32 %v13629_v15, %v13621_v16  ;;  %v14806_v23 = vld [vmem:[#allocation13_spill] sm:$0xff]  ;;  %v14807_v47 = vcombine.high %v13487_v41, %v13510_v63 }
 0x306   : > { %v9576_v37 = vpop.f32.mrf.mxu1  ;;  %v9746_v53 = vpop.f32.mrf.mxu0 }
 0x307   : > { %v5023_v24 = vadd.f32 %v9575_v62, %v14804_v11  ;;  %v13818_v3 = vadd.f32 %v9746_v53, %v9745_v7 }
 0x308   : > { %v9577_v5 = vpop.f32.mrf.mxu1  ;;  %v9748_v33 = vpop.f32.mrf.mxu0 }
 0x309   : > { %v9578_v51 = vadd.f32 %v9577_v5, %v9576_v37  ;;  %v13821_v2 = vadd.f32 %v13618_v44, %v5023_v24 }
 0x30a   : > { %v9579_v59 = vpop.f32.mrf.mxu1  ;;  %v9749_v45 = vpop.f32.mrf.mxu0 }
 0x30b   : > { %6388 = vmatmul.mubr.bf16.gmra.mxu1 %v14805_v0  ;;  %v5024_v18 = vadd.f32 %v9578_v51, %v14806_v23  ;;  %v13832_v7 = vadd.f32 %v9749_v45, %v9748_v33  ;;  %v14809_v33 = vcombine.low %v13487_v41, %v13510_v63  ;;  %v14810_v45 = vld [vmem:[#allocation5_spill] sm:$0xff] }
 0x30c   : > { %6395 = vmatprep.mubr.bf16.mxu1 %v14807_v47  ;;  %v9580_v62 = vpop.f32.mrf.mxu1  ;;  %v9751_v44 = vpop.f32.mrf.mxu0 }
 0x30d   : > { %v9581_v37 = vadd.f32 %v9580_v62, %v9579_v59  ;;  %v13834_v53 = vadd.f32 %v9690_v13, %v5024_v18  ;;  %v14811_v18 = vcombine.high %v13547_v26, %v13559_v40 }
 0x30e   : > { %v9582_v11 = vpop.f32.mrf.mxu1  ;;  %v9752_v38 = vpop.f32.mrf.mxu0 }
 0x30f   : > { %v5025_v24 = vadd.f32 %v9581_v37, %v14808_v27  ;;  %v13837_v5 = vadd.f32 %v9752_v38, %v9751_v44 }
 0x310   : > { %v9583_v16 = vpop.f32.mrf.mxu1  ;;  %v9754_v15 = vpop.f32.mrf.mxu0 }
 0x311   : > { %v9584_v51 = vadd.f32 %v9583_v16, %v9582_v11  ;;  %v13840_v0 = vadd.f32 %v13644_v43, %v5025_v24 }
 0x312   : > { %v9585_v23 = vpop.f32.mrf.mxu1  ;;  %v9755_v59 = vpop.f32.mrf.mxu0 }
 0x313   : > { %6396 = vmatmul.mubr.bf16.gmra.mxu1 %v14809_v33  ;;  %v5026_v13 = vadd.f32 %v9584_v51, %v14810_v45  ;;  %v13849_v47 = vadd.f32 %v9755_v59, %v9754_v15  ;;  %v14812_v51 = vcombine.low %v13547_v26, %v13559_v40 }
 0x314   : > { %6403 = vmatprep.mubr.bf16.mxu1 %v14811_v18  ;;  %v9586_v62 = vpop.f32.mrf.mxu1  ;;  %v13851_v44 = vpop.f32.mrf.mxu0 }
 0x315   : > { %v9587_v37 = vadd.f32 %v9586_v62, %v9585_v23  ;;  %v13854_v43 = vadd.f32 %v13656_v25, %v5026_v13 }
 0x316   : > { %v9588_v11 = vpop.f32.mrf.mxu1  ;;  %v13856_v38 = vpop.f32.mrf.mxu0 }
 0x317   : > { %v5027_v41 = vadd.f32 %v9587_v37, %v13480_v55 }
 0x318   : > { %v9589_v63 = vpop.f32.mrf.mxu1  ;;  %v13859_v27 = vpop.f32.mrf.mxu0 }
 0x319   : > { %v9590_v24 = vadd.f32 %v9589_v63, %v9588_v11  ;;  %v13862_v16 = vadd.f32 %v13662_v57, %v5027_v41 }
 0x31a   : > { %v9591_v15 = vpop.f32.mrf.mxu1  ;;  %v13867_v23 = vpop.f32.mrf.mxu0 }
 0x31b   : > { %6404 = vmatmul.mubr.bf16.gmra.mxu1 %v14812_v51  ;;  %v5028_v25 = vadd.f32 %v9590_v24, %v13520_v54 }
 0x31c   : > { %v9592_v33 = vpop.f32.mrf.mxu1  ;;  %v13870_v59 = vpop.f32.mrf.mxu0 }
 0x31d   : > { %v9593_v55 = vadd.f32 %v9592_v33, %v9591_v15  ;;  %v13873_v45 = vadd.f32 %v13674_v12, %v5028_v25 }
 0x31e   : > { %v9594_v13 = vpop.f32.mrf.mxu1  ;;  %v13875_v18 = vpop.f32.mrf.mxu0 }
 0x31f   : > { %14813 = vst [vmem:[#allocation70_spill] sm:$0xff] %v13873_v45  ;;  %v5029_v57 = vadd.f32 %v9593_v55, %v13533_v28 }
 0x320   : > { %v9595_v62 = vpop.f32.mrf.mxu1  ;;  %v13878_v37 = vpop.f32.mrf.mxu0 }
 0x321   : > { %v9596_v26 = vadd.f32 %v9595_v62, %v9594_v13  ;;  %v13881_v40 = vadd.f32 %v13680_v60, %v5029_v57 }
 0x322   : > { %v9597_v54 = vpop.f32.mrf.mxu1  ;;  %v13883_v11 = vpop.f32.mrf.mxu0 }
 0x323   : > { %14814 = vst [vmem:[#allocation72_spill] sm:$0xff] %v13881_v40  ;;  %v5030_v41 = vadd.f32 %v9596_v26, %v13550_v31  ;;  %v14823_v40 = vld [vmem:[#allocation9_spill] sm:$0xff] }
 0x324   : > { %v9598_v63 = vpop.f32.mrf.mxu1  ;;  %v13886_v12 = vpop.f32.mrf.mxu0 }
 0x325   : > { %v9599_v24 = vadd.f32 %v9598_v63, %v9597_v54  ;;  %v13889_v15 = vadd.f32 %v13692_v56, %v5030_v41 }
 0x326   : > { %v9600_v28 = vpop.f32.mrf.mxu1  ;;  %v13891_v51 = vpop.f32.mrf.mxu0 }
 0x327   : > { %14815 = vst [vmem:[#allocation16_spill] sm:$0xff] %v13889_v15  ;;  %v5031_v25 = vadd.f32 %v9599_v24, %v13572_v10  ;;  %v14821_v15 = vld [vmem:[#allocation57_spill] sm:$0xff] }
 0x328   : > { %v9601_v33 = vpop.f32.mrf.mxu1  ;;  %v13894_v60 = vpop.f32.mrf.mxu0 }
 0x329   : > { %v9602_v55 = vadd.f32 %v9601_v33, %v9600_v28  ;;  %v13897_v13 = vadd.f32 %v13698_v8, %v5031_v25 }
 0x32a   : > { %v9603_v31 = vpop.f32.mrf.mxu1  ;;  %v13899_v57 = vpop.f32.mrf.mxu0 }
 0x32b   : > { %14816 = vst [vmem:[#allocation71_spill] sm:$0xff] %v13897_v13  ;;  %v5032_v62 = vadd.f32 %v9602_v55, %v13585_v22  ;;  %v14819_v13 = vld [vmem:[#allocation56_spill] sm:$0xff] }
 0x32c   : > { %v9604_v26 = vpop.f32.mrf.mxu1  ;;  %v13902_v56 = vpop.f32.mrf.mxu0 }
 0x32d   : > { %v9605_v54 = vadd.f32 %v9604_v26, %v9603_v31  ;;  %v13905_v41 = vadd.f32 %v13710_v6, %v5032_v62 }
 0x32e   : > { %v9606_v10 = vpop.f32.mrf.mxu1  ;;  %v13907_v63 = vpop.f32.mrf.mxu0 }
 0x32f   : > { %14817 = vst [vmem:[#allocation73_spill] sm:$0xff] %v13905_v41  ;;  %v5033_v24 = vadd.f32 %v9605_v54, %v13597_v30 }
 0x330   : > { %v9607_v28 = vpop.f32.mrf.mxu1  ;;  %v13910_v8 = vpop.f32.mrf.mxu0 }
 0x331   : > { %v9608_v25 = vadd.f32 %v9607_v28, %v9606_v10  ;;  %v13913_v33 = vadd.f32 %v13716_v50, %v5033_v24 }
 0x332   : > { %v9609_v22 = vpop.f32.mrf.mxu1  ;;  %v13915_v55 = vpop.f32.mrf.mxu0 }
 0x333   : > { %14818 = vst [vmem:[#allocation74_spill] sm:$0xff] %v13913_v33  ;;  %v5034_v31 = vadd.f32 %v9608_v25, %v14819_v13 }
 0x334   : > { %v9610_v26 = vpop.f32.mrf.mxu1  ;;  %v13918_v6 = vpop.f32.mrf.mxu0 }
 0x335   : > { %v9611_v62 = vadd.f32 %v9610_v26, %v9609_v22  ;;  %v13921_v41 = vadd.f32 %v13728_v46, %v5034_v31 }
 0x336   : > { %v9612_v30 = vpop.f32.mrf.mxu1  ;;  %v13923_v54 = vpop.f32.mrf.mxu0 }
 0x337   : > { %14820 = vst [vmem:[#allocation18_spill] sm:$0xff] %v13921_v41  ;;  %v5035_v10 = vadd.f32 %v9611_v62, %v14821_v15 }
 0x338   : > { %v9613_v28 = vpop.f32.mrf.mxu1  ;;  %v13926_v50 = vpop.f32.mrf.mxu0 }
 0x339   : > { %v9614_v24 = vadd.f32 %v9613_v28, %v9612_v30  ;;  %v13929_v33 = vadd.f32 %v13734_v35, %v5035_v10 }
 0x33a   : > { %v9615_v13 = vpop.f32.mrf.mxu1  ;;  %v13931_v25 = vpop.f32.mrf.mxu0 }
 0x33b   : > { %14822 = vst [vmem:[#allocation35_spill] sm:$0xff] %v13929_v33  ;;  %v5036_v22 = vadd.f32 %v9614_v24, %v14823_v40 }
 0x33c   : > { %v9616_v26 = vpop.f32.mrf.mxu1 }
 0x33d   : > { %v13934_v46 = vpop.f32.mrf.mxu0  ;;  %v9617_v31 = vadd.f32 %v9616_v26, %v9615_v13  ;;  %v13937_v41 = vadd.f32 %v13746_v14, %v5036_v22 }
 0x33e   : > { %v9618_v15 = vpop.f32.mrf.mxu1 }
 0x33f   : > { %14824 = vst [vmem:[#allocation17_spill] sm:$0xff] %v13937_v41  ;;  %v13939_v62 = vpop.f32.mrf.mxu0  ;;  %v5037_v30 = vadd.f32 %v9617_v31, %v13647_v17 }
 0x340   : > { %v9619_v28 = vpop.f32.mrf.mxu1 }
 0x341   : > { %v13942_v35 = vpop.f32.mrf.mxu0  ;;  %v9620_v10 = vadd.f32 %v9619_v28, %v9618_v15  ;;  %v13945_v33 = vadd.f32 %v13755_v34, %v5037_v30 }
 0x343   : > { %14825 = vst [vmem:[#allocation75_spill] sm:$0xff] %v13945_v33  ;;  %v9621_v40 = vpop.f32.mrf.mxu1  ;;  %v13947_v24 = vpop.f32.mrf.mxu0  ;;  %v5038_v13 = vadd.f32 %v9620_v10, %v13659_v32 }
 0x345   : > { %v9622_v26 = vpop.f32.mrf.mxu1  ;;  %v13950_v14 = vpop.f32.mrf.mxu0  ;;  %v13953_v41 = vadd.f32 %v13770_v4, %v5038_v13 }
 0x346   : > { %v9623_v22 = vadd.f32 %v9622_v26, %v9621_v40  ;;  %v14829_v26 = vld [vmem:[#allocation63_spill] sm:$0xff] }
 0x347   : > { %14826 = vst [vmem:[#allocation20_spill] sm:$0xff] %v13953_v41  ;;  %v9624_v17 = vpop.f32.mrf.mxu1  ;;  %v13956_v15 = vpop.f32.mrf.mxu0 }
 0x348   : > { %v5039_v31 = vadd.f32 %v9623_v22, %v13665_v58 }
 0x349   : > { %v9625_v45 = vpop.f32.mrf.mxu1  ;;  %v13962_v33 = vpop.f32.mrf.mxu0 }
 0x34a   : > { %v9626_v34 = vadd.f32 %v9625_v45, %v9624_v17  ;;  %v13959_v30 = vadd.f32 %v13779_v42, %v5039_v31  ;;  %v14831_v31 = vld [vmem:[#allocation64_spill] sm:$0xff] }
 0x34b   : > { %v9627_v28 = vpop.f32.mrf.mxu1  ;;  %v13968_v41 = vpop.f32.mrf.mxu0 }
 0x34c   : > { %14827 = vst [vmem:[#allocation77_spill] sm:$0xff] %v13959_v30  ;;  %v5040_v32 = vadd.f32 %v9626_v34, %v13677_v48 }
 0x34d   : > { %v9628_v10 = vpop.f32.mrf.mxu1  ;;  %v13974_v30 = vpop.f32.mrf.mxu0 }
 0x34e   : > { %v9629_v40 = vadd.f32 %v9628_v10, %v9627_v28  ;;  %v13965_v4 = vadd.f32 %v13794_v21, %v5040_v32  ;;  %v14833_v10 = vld [vmem:[#allocation65_spill] sm:$0xff] }
 0x34f   : > { %v9630_v13 = vpop.f32.mrf.mxu1 }
 0x350   : > { %14828 = vst [vmem:[#allocation29_spill] sm:$0xff] %v13965_v4  ;;  %v5041_v58 = vadd.f32 %v9629_v40, %v14829_v26  ;;  %v13980_v4 = vpop.f32.mrf.mxu0 }
 0x351   : > { %v9631_v22 = vpop.f32.mrf.mxu1 }
 0x352   : > { %v9632_v45 = vadd.f32 %v9631_v22, %v9630_v13  ;;  %v13971_v42 = vadd.f32 %v13800_v49, %v5041_v58  ;;  %v14834_v22 = vld [vmem:[#allocation69_spill] sm:$0xff] }
 0x353   : > { %v9633_v17 = vpop.f32.mrf.mxu1 }
 0x354   : > { %14830 = vst [vmem:[#allocation19_spill] sm:$0xff] %v13971_v42  ;;  %v5042_v48 = vadd.f32 %v9632_v45, %v14831_v31  ;;  %v13986_v42 = vpop.f32.mrf.mxu0 }
 0x355   : > { %v9634_v34 = vpop.f32.mrf.mxu1 }
 0x356   : > { %v9635_v28 = vadd.f32 %v9634_v34, %v9633_v17  ;;  %v13977_v21 = vadd.f32 %v13812_v20, %v5042_v48  ;;  %v14835_v34 = vld [vmem:[#allocation67_spill] sm:$0xff] }
 0x357   : > { %v9636_v32 = vpop.f32.mrf.mxu1 }
 0x358   : > { %14832 = vst [vmem:[#allocation10_spill] sm:$0xff] %v13977_v21  ;;  %v5043_v40 = vadd.f32 %v9635_v28, %v14833_v10  ;;  %v13992_v21 = vpop.f32.mrf.mxu0 }
 0x359   : > { %v9637_v26 = vpop.f32.mrf.mxu1 }
 0x35a   : > { %v9638_v13 = vadd.f32 %v9637_v26, %v9636_v32  ;;  %v13983_v49 = vadd.f32 %v13818_v3, %v5043_v40 }
 0x35b   : > { %v9639_v58 = vpop.f32.mrf.mxu1 }
 0x35c   : > { %v5044_v45 = vadd.f32 %v9638_v13, %v14834_v22  ;;  %v13998_v22 = vpop.f32.mrf.mxu0 }
 0x35d   : > { %v9640_v31 = vpop.f32.mrf.mxu1 }
 0x35e   : > { %v9641_v17 = vadd.f32 %v9640_v31, %v9639_v58  ;;  %v13989_v20 = vadd.f32 %v13832_v7, %v5044_v45  ;;  %v9887_v31 = vadd.f32 %v13856_v38, %v13851_v44 }
 0x35f   : > { %v9642_v48 = vpop.f32.mrf.mxu1 }
 0x360   : > { %v5045_v28 = vadd.f32 %v9641_v17, %v14835_v34  ;;  %v14006_v34 = vpop.f32.mrf.mxu0 }
 0x361   : > { %v9643_v10 = vpop.f32.mrf.mxu1 }
 0x362   : > { %v9644_v32 = vadd.f32 %v9643_v10, %v9642_v48  ;;  %v13995_v3 = vadd.f32 %v13837_v5, %v5045_v28  ;;  %v14019_v38 = vpop.f32.mrf.mxu0 }
 0x363   : > { %v9773_v40 = vpop.f32.mrf.mxu1 }
 0x364   : > { %14836 = vst [vmem:[#allocation76_spill] sm:$0xff] %v13995_v3  ;;  %v5046_v26 = vadd.f32 %v9644_v32, %v13731_v1  ;;  %v14011_v1 = vld [vmem:[%s14373_s7] ss:$0 sm:$0xff] }
 0x365   : > { %v9774_v13 = vpop.f32.mrf.mxu1 }
 0x366   : > { %v9775_v58 = vadd.f32 %v9774_v13, %v9773_v40  ;;  %v14001_v7 = vadd.f32 %v13849_v47, %v5046_v26  ;;  %v9890_v47 = vadd.f32 %v13867_v23, %v13859_v27  ;;  %v9893_v27 = vadd.f32 %v13875_v18, %v13870_v59 }
 0x367   : > { %v9776_v45 = vpop.f32.mrf.mxu1 }
 0x368   : > { %14837 = vst [vmem:[#allocation22_spill] sm:$0xff] %v14001_v7  ;;  %v6412_v17 = vadd.f32 %v9775_v58, %v13737_v19  ;;  %v10528_v19 = vld [vmem:[%s14374_s8 + $0x8] sm:$0xff]  }
 0x369   : > { %v9777_v48 = vpop.f32.mrf.mxu1  ;;  %10129 = vmatprep.subr.bf16.mxu1 %v10528_v19 }
 0x36a   : > { %v7038_v5 = vadd.f32 %v9887_v31, %v6412_v17  ;;  %v9778_v28 = vadd.f32 %v9777_v48, %v9776_v45  ;;  %v14026_v31 = vpop.f32.mrf.mxu0 }
 0x36b   : > { %v9779_v10 = vpop.f32.mrf.mxu1 }
 0x36c   : > { %v6413_v32 = vadd.f32 %v9778_v28, %v13752_v9  ;;  %v7077_v40 = vadd.f32 %v14011_v1, %v7038_v5  ;;  %v9896_v5 = vadd.f32 %v13883_v11, %v13878_v37 }
 0x36d   : > { %v9780_v44 = vpop.f32.mrf.mxu1 }
 0x36e   : > { %v7039_v26 = vadd.f32 %v9890_v47, %v6413_v32  ;;  %v9781_v13 = vadd.f32 %v9780_v44, %v9779_v10  ;;  %v7109_v17 = vmax.f32 %v7077_v40, 0.0  ;;  %v14031_v44 = vpop.f32.mrf.mxu0 }
 0x36f   : > { %v9782_v58 = vpop.f32.mrf.mxu1 }
 0x370   : > { %v7078_v45 = vadd.f32 %v14011_v1, %v7039_v26  ;;  %v6414_v9 = vadd.f32 %v9781_v13, %v13761_v36  ;;  %v9899_v13 = vadd.f32 %v13891_v51, %v13886_v12  ;;  %v10529_v12 = vld [vmem:[%s14374_s8] sm:$0xff]  }
 0x371   : > { %v9783_v23 = vpop.f32.mrf.mxu1 }
 0x372   : > { %v7110_v48 = vmax.f32 %v7078_v45, 0.0  ;;  %v7040_v28 = vadd.f32 %v9893_v27, %v6414_v9  ;;  %v9784_v7 = vadd.f32 %v9783_v23, %v9782_v58 }
 0x373   : > { %v9785_v3 = vpop.f32.mrf.mxu1 }
 0x374   : > { %v6415_v10 = vadd.f32 %v9784_v7, %v13776_v61  ;;  %v7161_v47 = vpack.c.bf16 %v7110_v48, %v7109_v17  ;;  %v7079_v36 = vadd.f32 %v14011_v1, %v7040_v28  ;;  %v14039_v61 = vpop.f32.mrf.mxu0 }
 0x375   : > { %v9786_v32 = vpop.f32.mrf.mxu1 }
 0x376   : > { %v7041_v59 = vadd.f32 %v9896_v5, %v6415_v10  ;;  %v9787_v18 = vadd.f32 %v9786_v32, %v9785_v3  ;;  %10097 = vmatprep.mubr.msk.bf16.mxu1 %vm7209_vm9, %v7161_v47  ;;  %v7111_v7 = vmax.f32 %v7079_v36, 0.0  ;;  %v9902_v3 = vadd.f32 %v13899_v57, %v13894_v60  ;;  %v14838_v60 = vld [vmem:[#allocation68_spill] sm:$0xff] }
 0x377   : > { %v9788_v40 = vpop.f32.mrf.mxu1 }
 0x378   : > { %v7080_v26 = vadd.f32 %v14011_v1, %v7041_v59  ;;  %v6416_v37 = vadd.f32 %v9787_v18, %v13785_v29  ;;  %v14047_v29 = vpop.f32.mrf.mxu0 }
 0x379   : > { %v9789_v11 = vpop.f32.mrf.mxu1 }
 0x37a   : > { %v7112_v58 = vmax.f32 %v7080_v26, 0.0  ;;  %v7042_v45 = vadd.f32 %v9899_v13, %v6416_v37  ;;  %v9790_v27 = vadd.f32 %v9789_v11, %v9788_v40  ;;  %v14055_v36 = vpop.f32.mrf.mxu0 }
 0x37b   : > { %v9791_v9 = vpop.f32.mrf.mxu1 }
 0x37c   : > { %v7162_v23 = vpack.c.bf16 %v7112_v58, %v7111_v7  ;;  %v6417_v17 = vadd.f32 %v9790_v27, %v13797_v52  ;;  %v7081_v48 = vadd.f32 %v14011_v1, %v7042_v45  ;;  %v9905_v52 = vadd.f32 %v13907_v63, %v13902_v56  ;;  %v14060_v56 = vpop.f32.mrf.mxu0 }
 0x37d   : > { %v9792_v51 = vpop.f32.mrf.mxu1 }
 0x37e   : > { %v7043_v28 = vadd.f32 %v9902_v3, %v6417_v17  ;;  %v9793_v5 = vadd.f32 %v9792_v51, %v9791_v9  ;;  %10098 = vmatmul.mubr.msk.bf16.vlgmr.msra.gmra.mxu1 %vm7209_vm9, %v7162_v23  ;;  %v7113_v59 = vmax.f32 %v7081_v48, 0.0  ;;  %v9911_v23 = vadd.f32 %v13923_v54, %v13918_v6 }
 0x37f   : > { %v9794_v10 = vpop.f32.mrf.mxu1  ;;  %10130 = vmatpush3.bf16.msra.mxu1 %v10528_v19  ;;  %v9908_v19 = vadd.f32 %v13915_v55, %v13910_v8 }
 0x380   : > { %v7082_v47 = vadd.f32 %v14011_v1, %v7043_v28  ;;  %v6418_v57 = vadd.f32 %v9793_v5, %v14838_v60  ;;  %10131 = vmatprep.subr.bf16.mxu1 %v10529_v12  ;;  %v9914_v5 = vadd.f32 %v13931_v25, %v13926_v50 }
 0x381   : > { %v9795_v32 = vpop.f32.mrf.mxu1 }
 0x382   : > { %v7114_v18 = vmax.f32 %v7082_v47, 0.0  ;;  %v7044_v40 = vadd.f32 %v9905_v52, %v6418_v57  ;;  %v9796_v26 = vadd.f32 %v9795_v32, %v9794_v10  ;;  %v9917_v32 = vadd.f32 %v13939_v62, %v13934_v46 }
 0x383   : > { %v9797_v13 = vpop.f32.mrf.mxu1  ;;  %10132 = vmatpush3.bf16.msra.mxu1 %v10529_v12 }
 0x384   : > { %v6419_v37 = vadd.f32 %v9796_v26, %v13815_v39  ;;  %v7163_v11 = vpack.c.bf16 %v7114_v18, %v7113_v59  ;;  %v7083_v63 = vadd.f32 %v14011_v1, %v7044_v40  ;;  %v14068_v39 = vpop.f32.mrf.mxu0 }
 0x385   : > { %v9798_v7 = vpop.f32.mrf.mxu1 }
 0x386   : > { %v7045_v58 = vadd.f32 %v9908_v19, %v6419_v37  ;;  %v9799_v45 = vadd.f32 %v9798_v7, %v9797_v13  ;;  %10101 = vmatprep.mubr.msk.bf16.mxu1 %vm7209_vm9, %v7163_v11  ;;  %v7115_v3 = vmax.f32 %v7083_v63, 0.0  ;;  %v14073_v52 = vpop.f32.mrf.mxu0  ;;  %v9920_v19 = vadd.f32 %v13947_v24, %v13942_v35 }
 0x387   : > { %v9800_v27 = vpop.f32.mrf.mxu1 }
 0x388   : > { %v7084_v9 = vadd.f32 %v14011_v1, %v7045_v58  ;;  %v6420_v8 = vadd.f32 %v9799_v45, %v13821_v2  ;;  %v14081_v25 = vpop.f32.mrf.mxu0 }
 0x389   : > { %v9801_v55 = vpop.f32.mrf.mxu1 }
 0x38a   : > { %v7116_v17 = vmax.f32 %v7084_v9, 0.0  ;;  %v7046_v12 = vadd.f32 %v9911_v23, %v6420_v8  ;;  %v9802_v51 = vadd.f32 %v9801_v55, %v9800_v27  ;;  %v14086_v63 = vpop.f32.mrf.mxu0  ;;  %v9923_v27 = vadd.f32 %v13956_v15, %v13950_v14 }
 0x38b   : > { %v9803_v48 = vpop.f32.mrf.mxu1 }
 0x38c   : > { %v7164_v28 = vpack.c.bf16 %v7116_v17, %v7115_v3  ;;  %v6421_v10 = vadd.f32 %v9802_v51, %v13834_v53  ;;  %v7085_v6 = vadd.f32 %v14011_v1, %v7046_v12  ;;  %v9926_v12 = vadd.f32 %v13968_v41, %v13962_v33  ;;  %v14839_v51 = vld [vmem:[#allocation70_spill] sm:$0xff] }
 0x38d   : > { %v9804_v47 = vpop.f32.mrf.mxu1 }
 0x38e   : > { %v7047_v2 = vadd.f32 %v9914_v5, %v6421_v10  ;;  %v9805_v54 = vadd.f32 %v9804_v47, %v9803_v48  ;;  %10102 = vmatmul.mubr.msk.bf16.gmra.mxu1 %vm7209_vm9, %v7164_v28  ;;  %v7117_v53 = vmax.f32 %v7085_v6, 0.0  ;;  %v9929_v6 = vadd.f32 %v13980_v4, %v13974_v30 }
 0x38f   : > { %v9806_v60 = vpop.f32.mrf.mxu1 }
 0x390   : > { %v7086_v57 = vadd.f32 %v14011_v1, %v7047_v2  ;;  %v6422_v59 = vadd.f32 %v9805_v54, %v13840_v0  ;;  %v14840_v2 = vld [vmem:[#allocation72_spill] sm:$0xff] }
 0x391   : > { %v9807_v50 = vpop.f32.mrf.mxu1 }
 0x392   : > { %v7118_v18 = vmax.f32 %v7086_v57, 0.0  ;;  %v7048_v40 = vadd.f32 %v9917_v32, %v6422_v59  ;;  %v9808_v26 = vadd.f32 %v9807_v50, %v9806_v60 }
 0x393   : > { %v9809_v13 = vpop.f32.mrf.mxu1 }
 0x394   : > { %v6423_v37 = vadd.f32 %v9808_v26, %v13854_v43  ;;  %v7165_v11 = vpack.c.bf16 %v7118_v18, %v7117_v53  ;;  %v7087_v46 = vadd.f32 %v14011_v1, %v7048_v40  ;;  %v14094_v43 = vpop.f32.mrf.mxu0  ;;  %v9932_v53 = vadd.f32 %v13992_v21, %v13986_v42  ;;  %v14841_v18 = vld [vmem:[#allocation16_spill] sm:$0xff] }
 0x395   : > { %v9810_v7 = vpop.f32.mrf.mxu1 }
 0x396   : > { %v7049_v0 = vadd.f32 %v9920_v19, %v6423_v37  ;;  %v9811_v62 = vadd.f32 %v9810_v7, %v9809_v13  ;;  %10105 = vmatprep.mubr.msk.bf16.mxu1 %vm7209_vm9, %v7165_v11  ;;  %v7119_v9 = vmax.f32 %v7087_v46, 0.0  ;;  %v14099_v5 = vpop.f32.mrf.mxu0  ;;  %v9935_v46 = vadd.f32 %v14006_v34, %v13998_v22 }
 0x397   : > { %v9812_v58 = vpop.f32.mrf.mxu1 }
 0x398   : > { %v7088_v45 = vadd.f32 %v14011_v1, %v7049_v0  ;;  %v6424_v35 = vadd.f32 %v9811_v62, %v13862_v16  ;;  %v14107_v33 = vpop.f32.mrf.mxu0  ;;  %v14842_v0 = vld [vmem:[#allocation71_spill] sm:$0xff] }
 0x399   : > { %v9813_v24 = vpop.f32.mrf.mxu1 }
 0x39a   : > { %v7120_v23 = vmax.f32 %v7088_v45, 0.0  ;;  %v7050_v8 = vadd.f32 %v9923_v27, %v6424_v35  ;;  %v9814_v55 = vadd.f32 %v9813_v24, %v9812_v58  ;;  %v14112_v19 = vpop.f32.mrf.mxu0 }
 0x39b   : > { %v9815_v3 = vpop.f32.mrf.mxu1 }
 0x39c   : > { %v7166_v17 = vpack.c.bf16 %v7120_v23, %v7119_v9  ;;  %v6425_v48 = vadd.f32 %v9814_v55, %v14839_v51  ;;  %v7089_v14 = vadd.f32 %v14011_v1, %v7050_v8  ;;  %v14120_v62 = vpop.f32.mrf.mxu0  ;;  %v9938_v23 = vadd.f32 %v14026_v31, %v14019_v38  ;;  %v14843_v8 = vld [vmem:[#allocation73_spill] sm:$0xff] }
 0x39d   : > { %v9816_v28 = vpop.f32.mrf.mxu1 }
 0x39e   : > { %v7051_v16 = vadd.f32 %v9926_v12, %v6425_v48  ;;  %v9817_v15 = vadd.f32 %v9816_v28, %v9815_v3  ;;  %10106 = vmatmul.mubr.msk.bf16.gmra.mxu1 %vm7209_vm9, %v7166_v17  ;;  %v7121_v60 = vmax.f32 %v7089_v14, 0.0  ;;  %v14125_v17 = vpop.f32.mrf.mxu0  ;;  %v9941_v28 = vadd.f32 %v14039_v61, %v14031_v44  ;;  %v14844_v14 = vld [vmem:[#allocation74_spill] sm:$0xff] }
 0x39f   : > { %v9818_v10 = vpop.f32.mrf.mxu1 }
 0x3a0   : > { %v7090_v47 = vadd.f32 %v14011_v1, %v7051_v16  ;;  %v6426_v54 = vadd.f32 %v9817_v15, %v14840_v2  ;;  %v14133_v31 = vpop.f32.mrf.mxu0 }
 0x3a1   : > { %v9819_v41 = vpop.f32.mrf.mxu1 }
 0x3a2   : > { %v7122_v57 = vmax.f32 %v7090_v47, 0.0  ;;  %v7052_v32 = vadd.f32 %v9929_v6, %v6426_v54  ;;  %v9820_v59 = vadd.f32 %v9819_v41, %v9818_v10  ;;  %v9944_v54 = vadd.f32 %v14055_v36, %v14047_v29  ;;  %v14845_v41 = vld [vmem:[#allocation18_spill] sm:$0xff] }
 0x3a3   : > { %v9821_v50 = vpop.f32.mrf.mxu1 }
 0x3a4   : > { %v6427_v40 = vadd.f32 %v9820_v59, %v14841_v18  ;;  %v7167_v26 = vpack.c.bf16 %v7122_v57, %v7121_v60  ;;  %v7091_v30 = vadd.f32 %v14011_v1, %v7052_v32  ;;  %v14138_v59 = vpop.f32.mrf.mxu0 }
 0x3a5   : > { %v9822_v13 = vpop.f32.mrf.mxu1 }
 0x3a6   : > { %v7053_v4 = vadd.f32 %v9932_v53, %v6427_v40  ;;  %v9823_v37 = vadd.f32 %v9822_v13, %v9821_v50  ;;  %10109 = vmatprep.mubr.msk.bf16.mxu1 %vm7209_vm9, %v7167_v26  ;;  %v7123_v58 = vmax.f32 %v7091_v30, 0.0  ;;  %v9947_v40 = vadd.f32 %v14068_v39, %v14060_v56  ;;  %v14846_v26 = vld [vmem:[#allocation35_spill] sm:$0xff]  ;;  %v9964_v13 = vpop.f32.mrf.mxu0 }
 0x3a7   : > { %v9824_v11 = vpop.f32.mrf.mxu1 }
 0x3a8   : > { %v7092_v7 = vadd.f32 %v14011_v1, %v7053_v4  ;;  %v6428_v42 = vadd.f32 %v9823_v37, %v14842_v0  ;;  %v9950_v0 = vadd.f32 %v14081_v25, %v14073_v52 }
 0x3a9   : > { %v9825_v21 = vpop.f32.mrf.mxu1 }
 0x3aa   : > { %v7124_v45 = vmax.f32 %v7092_v7, 0.0  ;;  %v7054_v27 = vadd.f32 %v9935_v46, %v6428_v42  ;;  %v9826_v35 = vadd.f32 %v9825_v21, %v9824_v11  ;;  %v14847_v42 = vld [vmem:[#allocation17_spill] sm:$0xff] }
 0x3ab   : > { %v9827_v24 = vpop.f32.mrf.mxu1 }
 0x3ac   : > { %v7168_v9 = vpack.c.bf16 %v7124_v45, %v7123_v58  ;;  %v6429_v55 = vadd.f32 %v9826_v35, %v14843_v8  ;;  %v7093_v22 = vadd.f32 %v14011_v1, %v7054_v27  ;;  %v9966_v45 = vpop.f32.mrf.mxu0 }
 0x3ad   : > { %v9828_v3 = vpop.f32.mrf.mxu1 }
 0x3ae   : > { %v7055_v34 = vadd.f32 %v9938_v23, %v6429_v55  ;;  %v9829_v12 = vadd.f32 %v9828_v3, %v9827_v24  ;;  %10110 = vmatmul.mubr.msk.bf16.gmra.mxu1 %vm7209_vm9, %v7168_v9  ;;  %v7125_v15 = vmax.f32 %v7093_v22, 0.0  ;;  %v9953_v9 = vadd.f32 %v14094_v43, %v14086_v63  ;;  %v14848_v23 = vld [vmem:[#allocation75_spill] sm:$0xff]  ;;  %v9967_v52 = vpop.f32.mrf.mxu0 }
 0x3af   : > { %v9830_v51 = vpop.f32.mrf.mxu1 }
 0x3b0   : > { %v7094_v48 = vadd.f32 %v14011_v1, %v7055_v34  ;;  %v6430_v16 = vadd.f32 %v9829_v12, %v14844_v14 }
 0x3b1   : > { %v9831_v38 = vpop.f32.mrf.mxu1 }
 0x3b2   : > { %v7126_v10 = vmax.f32 %v7094_v48, 0.0  ;;  %v7056_v47 = vadd.f32 %v9941_v28, %v6430_v16  ;;  %v9832_v6 = vadd.f32 %v9831_v38, %v9830_v51  ;;  %v9956_v51 = vadd.f32 %v14107_v33, %v14099_v5  ;;  %v14849_v48 = vld [vmem:[#allocation20_spill] sm:$0xff]  ;;  %v9969_v38 = vpop.f32.mrf.mxu0 }
 0x3b3   : > { %v9833_v2 = vpop.f32.mrf.mxu1 }
 0x3b4   : > { %v6431_v60 = vadd.f32 %v9832_v6, %v14845_v41  ;;  %v7169_v57 = vpack.c.bf16 %v7126_v10, %v7125_v15  ;;  %v7095_v44 = vadd.f32 %v14011_v1, %v7056_v47  ;;  %v9959_v6 = vadd.f32 %v14120_v62, %v14112_v19  ;;  %v9970_v33 = vpop.f32.mrf.mxu0 }
 0x3b5   : > { %v9834_v32 = vpop.f32.mrf.mxu1 }
 0x3b6   : > { %v7057_v61 = vadd.f32 %v9944_v54, %v6431_v60  ;;  %v9835_v50 = vadd.f32 %v9834_v32, %v9833_v2  ;;  %10113 = vmatprep.mubr.msk.bf16.mxu1 %vm7209_vm9, %v7169_v57  ;;  %v7127_v30 = vmax.f32 %v7095_v44, 0.0  ;;  %v14850_v2 = vld [vmem:[#allocation77_spill] sm:$0xff] }
 0x3b7   : > { %v9836_v53 = vpop.f32.mrf.mxu1 }
 0x3b8   : > { %v7096_v18 = vadd.f32 %v14011_v1, %v7057_v61  ;;  %v6432_v29 = vadd.f32 %v9835_v50, %v14846_v26  ;;  %v9962_v50 = vadd.f32 %v14133_v31, %v14125_v17  ;;  %v9972_v26 = vpop.f32.mrf.mxu0 }
 0x3b9   : > { %v9837_v36 = vpop.f32.mrf.mxu1 }
 0x3ba   : > { %v7128_v4 = vmax.f32 %v7096_v18, 0.0  ;;  %v7058_v37 = vadd.f32 %v9947_v40, %v6432_v29  ;;  %v9838_v11 = vadd.f32 %v9837_v36, %v9836_v53  ;;  %v14851_v53 = vld [vmem:[#allocation29_spill] sm:$0xff] }
 0x3bb   : > { %v9839_v7 = vpop.f32.mrf.mxu1 }
 0x3bc   : > { %v7170_v46 = vpack.c.bf16 %v7128_v4, %v7127_v30  ;;  %v6433_v21 = vadd.f32 %v9838_v11, %v14847_v42  ;;  %v7097_v27 = vadd.f32 %v14011_v1, %v7058_v37  ;;  %v9965_v4 = vadd.f32 %v9964_v13, %v14138_v59  ;;  %v14852_v37 = vld [vmem:[#allocation19_spill] sm:$0xff] }
 0x3bd   : > { %v9840_v58 = vpop.f32.mrf.mxu1 }
 0x3be   : > { %v7059_v56 = vadd.f32 %v9950_v0, %v6433_v21  ;;  %v9841_v39 = vadd.f32 %v9840_v58, %v9839_v7  ;;  %10114 = vmatmul.mubr.msk.bf16.gmra.mxu1 %vm7209_vm9, %v7170_v46  ;;  %v7129_v25 = vmax.f32 %v7097_v27, 0.0  ;;  %v9973_v46 = vpop.f32.mrf.mxu0  ;;  %v9968_v58 = vadd.f32 %v9967_v52, %v9966_v45  ;;  %v14853_v27 = vld [vmem:[#allocation10_spill] sm:$0xff] }
 0x3bf   : > { %v9842_v35 = vpop.f32.mrf.mxu1 }
 0x3c0   : > { %v7098_v24 = vadd.f32 %v14011_v1, %v7059_v56  ;;  %v6434_v8 = vadd.f32 %v9841_v39, %v14848_v23 }
 0x3c1   : > { %v9843_v55 = vpop.f32.mrf.mxu1 }
 0x3c2   : > { %v7130_v3 = vmax.f32 %v7098_v24, 0.0  ;;  %v7060_v22 = vadd.f32 %v9953_v9, %v6434_v8  ;;  %v9844_v34 = vadd.f32 %v9843_v55, %v9842_v35  ;;  %v9975_v24 = vpop.f32.mrf.mxu0  ;;  %v9971_v55 = vadd.f32 %v9970_v33, %v9969_v38 }
 0x3c3   : > { %v9845_v12 = vpop.f32.mrf.mxu1 }
 0x3c4   : > { %v6435_v28 = vadd.f32 %v9844_v34, %v14849_v48  ;;  %v7171_v14 = vpack.c.bf16 %v7130_v3, %v7129_v25  ;;  %v7099_v15 = vadd.f32 %v14011_v1, %v7060_v22  ;;  %v9976_v22 = vpop.f32.mrf.mxu0 }
 0x3c5   : > { %v9846_v16 = vpop.f32.mrf.mxu1 }
 0x3c6   : > { %v7061_v63 = vadd.f32 %v9956_v51, %v6435_v28  ;;  %v9847_v43 = vadd.f32 %v9846_v16, %v9845_v12  ;;  %10117 = vmatprep.mubr.msk.bf16.mxu1 %vm7209_vm9, %v7171_v14  ;;  %v7131_v41 = vmax.f32 %v7099_v15, 0.0  ;;  %v9974_v28 = vadd.f32 %v9973_v46, %v9972_v26  ;;  %v9978_v16 = vpop.f32.mrf.mxu0  ;;  %v14865_v46 = vld [vmem:[#allocation44_spill] sm:$0xff] }
 0x3c7   : > { %v9848_v10 = vpop.f32.mrf.mxu1 }
 0x3c8   : > { %v7100_v47 = vadd.f32 %v14011_v1, %v7061_v63  ;;  %v6436_v54 = vadd.f32 %v9847_v43, %v14850_v2 }
 0x3c9   : > { %v9849_v5 = vpop.f32.mrf.mxu1 }
 0x3ca   : > { %v7132_v60 = vmax.f32 %v7100_v47, 0.0  ;;  %v7062_v57 = vadd.f32 %v9959_v6, %v6436_v54  ;;  %v9850_v32 = vadd.f32 %v9849_v5, %v9848_v10  ;;  %v9977_v47 = vadd.f32 %v9976_v22, %v9975_v24  ;;  %v14854_v6 = vld [vmem:[#allocation76_spill] sm:$0xff]  ;;  %v9979_v54 = vpop.f32.mrf.mxu0 }
 0x3cb   : > { %v9851_v44 = vpop.f32.mrf.mxu1 }
 0x3cc   : > { %v7172_v61 = vpack.c.bf16 %v7132_v60, %v7131_v41  ;;  %v6437_v18 = vadd.f32 %v9850_v32, %v14851_v53  ;;  %v7101_v29 = vadd.f32 %v14011_v1, %v7062_v57  ;;  %v9980_v57 = vadd.f32 %v9979_v54, %v9978_v16  ;;  %v14855_v32 = vld [vmem:[#allocation22_spill] sm:$0xff] }
 0x3cd   : > { %v9852_v40 = vpop.f32.mrf.mxu1 }
 0x3ce   : > { %v7063_v19 = vadd.f32 %v9962_v50, %v6437_v18  ;;  %v9853_v62 = vadd.f32 %v9852_v40, %v9851_v44  ;;  %10118 = vmatmul.mubr.msk.bf16.gmra.mxu1 %vm7209_vm9, %v7172_v61  ;;  %v7133_v17 = vmax.f32 %v7101_v29, 0.0 }
 0x3cf   : > { %v9854_v36 = vpop.f32.mrf.mxu1 }
 0x3d0   : > { %v7102_v30 = vadd.f32 %v14011_v1, %v7063_v19  ;;  %v6438_v11 = vadd.f32 %v9853_v62, %v14852_v37  ;;  %v14856_v19 = vld [vmem:[#allocation36_spill] sm:$0xff]  ;;  %v14857_v62 = vld [vmem:[#allocation34_spill] sm:$0xff]  ;;  %v14862_v37 = vld [vmem:[#allocation43_spill] sm:$0xff] }
 0x3d1   : > { %v9855_v7 = vpop.f32.mrf.mxu1 }
 0x3d2   : > { %v7134_v31 = vmax.f32 %v7102_v30, 0.0  ;;  %v7064_v0 = vadd.f32 %v9965_v4, %v6438_v11  ;;  %v9856_v42 = vadd.f32 %v9855_v7, %v9854_v36  ;;  %v14858_v36 = vld [vmem:[#allocation39_spill] sm:$0xff]  ;;  %v14859_v30 = vld [vmem:[#allocation38_spill] sm:$0xff]  ;;  %v14860_v4 = vld [vmem:[#allocation41_spill] sm:$0xff] }
 0x3d3   : > { %v9857_v21 = vpop.f32.mrf.mxu1  ;;  %v14863_v11 = vld [vmem:[#allocation42_spill] sm:$0xff]  ;;  %v14864_v7 = vld [vmem:[#allocation45_spill] sm:$0xff] }
 0x3d4   : > { %v6439_v56 = vadd.f32 %v9856_v42, %v14853_v27  ;;  %v7173_v39 = vpack.c.bf16 %v7134_v31, %v7133_v17  ;;  %v7103_v9 = vadd.f32 %v14011_v1, %v7064_v0  ;;  %v14866_v17 = vld [vmem:[#allocation47_spill] sm:$0xff]  ;;  %v14867_v31 = vld [vmem:[#allocation46_spill] sm:$0xff]  ;;  %v14868_v0 = vld [vmem:[#allocation49_spill] sm:$0xff] }
 0x3d5   : > { %v9858_v35 = vpop.f32.mrf.mxu1  ;;  %v14869_v42 = vld [vmem:[#allocation48_spill] sm:$0xff] }
 0x3d6   : > { %v7065_v23 = vadd.f32 %v9968_v58, %v6439_v56  ;;  %v9859_v8 = vadd.f32 %v9858_v35, %v9857_v21  ;;  %10121 = vmatprep.mubr.msk.bf16.mxu1 %vm7209_vm9, %v7173_v39  ;;  %v7135_v45 = vmax.f32 %v7103_v9, 0.0  ;;  %v14870_v21 = vld [vmem:[#allocation51_spill] sm:$0xff]  ;;  %v14871_v58 = vld [vmem:[#allocation50_spill] sm:$0xff] }
 0x3d7   : > { %v9860_v59 = vpop.f32.mrf.mxu1 }
 0x3d8   : > { %v7104_v13 = vadd.f32 %v14011_v1, %v7065_v23  ;;  %v6440_v25 = vadd.f32 %v9859_v8, %v13983_v49 }
 0x3d9   : > { %v9861_v3 = vpop.f32.mrf.mxu1 }
 0x3da   : > { %v7136_v52 = vmax.f32 %v7104_v13, 0.0  ;;  %v7066_v34 = vadd.f32 %v9971_v55, %v6440_v25  ;;  %v9862_v12 = vadd.f32 %v9861_v3, %v9860_v59 }
 0x3db   : > { %v9863_v51 = vpop.f32.mrf.mxu1 }
 0x3dc   : > { %v7174_v48 = vpack.c.bf16 %v7136_v52, %v7135_v45  ;;  %v6441_v14 = vadd.f32 %v9862_v12, %v13989_v20  ;;  %v7105_v63 = vadd.f32 %v14011_v1, %v7066_v34 }
 0x3dd   : > { %v9864_v15 = vpop.f32.mrf.mxu1 }
 0x3de   : > { %v7067_v43 = vadd.f32 %v9974_v28, %v6441_v14  ;;  %v9865_v10 = vadd.f32 %v9864_v15, %v9863_v51  ;;  %10122 = vmatmul.mubr.msk.bf16.gmra.mxu1 %vm7209_vm9, %v7174_v48  ;;  %v7137_v33 = vmax.f32 %v7105_v63, 0.0 }
 0x3df   : > { %v9866_v49 = vpop.f32.mrf.mxu1 }
 0x3e0   : > { %v7106_v38 = vadd.f32 %v14011_v1, %v7067_v43  ;;  %v6442_v2 = vadd.f32 %v9865_v10, %v14854_v6 }
 0x3e1   : > { %v9867_v5 = vpop.f32.mrf.mxu1 }
 0x3e2   : > { %v7138_v41 = vmax.f32 %v7106_v38, 0.0  ;;  %v7068_v60 = vadd.f32 %v9977_v47, %v6442_v2  ;;  %v9868_v20 = vadd.f32 %v9867_v5, %v9866_v49 }
 0x3e4   : > { %v6443_v44 = vadd.f32 %v9868_v20, %v14855_v32  ;;  %v7175_v61 = vpack.c.bf16 %v7138_v41, %v7137_v33  ;;  %v7107_v50 = vadd.f32 %v14011_v1, %v7068_v60 }
 0x3e6   : > { %v7069_v53 = vadd.f32 %v9980_v57, %v6443_v44  ;;  %10125 = vmatprep.mubr.msk.bf16.mxu1 %vm7209_vm9, %v7175_v61  ;;  %v7139_v40 = vmax.f32 %v7107_v50, 0.0 }
 0x3e8   : > { %v7108_v18 = vadd.f32 %v14011_v1, %v7069_v53  ;;  %v14861_v1 = vld [vmem:[#allocation40_spill] sm:$0xff] }
 0x3ea   : > { %v7140_v26 = vmax.f32 %v7108_v18, 0.0 }
 0x3ec   : > { %v7176_v29 = vpack.c.bf16 %v7140_v26, %v7139_v40 }
 0x3ee   : > { %10126 = vmatmul.mubr.msk.bf16.gmra.mxu1 %vm7209_vm9, %v7176_v29 }
 0x3ef   : > { %10133 = vmatprep.mubr.msk.bf16.mxu1 %vm867_vm8, %v14856_v19 }
 0x3f6   : > { %10134 = vmatmul.mubr.msk.bf16.vlgmr.msra.gmra.mxu1 %vm867_vm8, %v14857_v62 }
 0x3f7   : > { %10137 = vmatprep.mubr.msk.bf16.mxu1 %vm867_vm8, %v14858_v36  ;;  %v14286_v36 = vld [vmem:[%s14376_s10] ss:$0 sm:$0xff] }
 0x3fe   : > { %10138 = vmatmul.mubr.msk.bf16.gmra.mxu1 %vm867_vm8, %v14859_v30 }
 0x3ff   : > { %10141 = vmatprep.mubr.msk.bf16.mxu1 %vm867_vm8, %v14860_v4 }
 0x406   : > { %10142 = vmatmul.mubr.msk.bf16.gmra.mxu1 %vm867_vm8, %v14861_v1 }
 0x407   : > { %10145 = vmatprep.mubr.msk.bf16.mxu1 %vm867_vm8, %v14862_v37 }
 0x40e   : > { %10146 = vmatmul.mubr.msk.bf16.gmra.mxu1 %vm867_vm8, %v14863_v11 }
 0x40f   : > { %10149 = vmatprep.mubr.msk.bf16.mxu1 %vm867_vm8, %v14864_v7 }
 0x416   : > { %10150 = vmatmul.mubr.msk.bf16.gmra.mxu1 %vm867_vm8, %v14865_v46 }
 0x417   : > { %10153 = vmatprep.mubr.msk.bf16.mxu1 %vm867_vm8, %v14866_v17 }
 0x41e   : > { %10154 = vmatmul.mubr.msk.bf16.gmra.mxu1 %vm867_vm8, %v14867_v31 }
 0x41f   : > { %10157 = vmatprep.mubr.msk.bf16.mxu1 %vm867_vm8, %v14868_v0 }
 0x426   : > { %10158 = vmatmul.mubr.msk.bf16.gmra.mxu1 %vm867_vm8, %v14869_v42 }
 0x427   : > { %10161 = vmatprep.mubr.msk.bf16.mxu1 %vm867_vm8, %v14870_v21 }
 0x42e   : > { %10162 = vmatmul.mubr.msk.bf16.gmra.mxu1 %vm867_vm8, %v14871_v58 }
 0x43e   : > { %v10099_v27 = vpop.f32.mrf.mxu1 }
 0x440   : > { %v7292_v56 = vpop.f32.mrf.mxu1 }
 0x442   : > { %v14219_v39 = vpop.f32.mrf.mxu1 }
 0x444   : > { %v7295_v35 = vpop.f32.mrf.mxu1 }
 0x44e   : > { %v14221_v24 = vpop.f32.mrf.mxu1 }
 0x450   : > { %v14223_v9 = vpop.f32.mrf.mxu1 }
 0x452   : > { %v14225_v23 = vpop.f32.mrf.mxu1 }
 0x454   : > { %v14227_v8 = vpop.f32.mrf.mxu1 }
 0x45e   : > { %v14229_v59 = vpop.f32.mrf.mxu1 }
 0x460   : > { %v14231_v13 = vpop.f32.mrf.mxu1 }
 0x462   : > { %v14233_v55 = vpop.f32.mrf.mxu1 }
 0x464   : > { %v14235_v25 = vpop.f32.mrf.mxu1 }
 0x46e   : > { %v14237_v3 = vpop.f32.mrf.mxu1 }
 0x470   : > { %v14239_v22 = vpop.f32.mrf.mxu1 }
 0x472   : > { %v14241_v45 = vpop.f32.mrf.mxu1 }
 0x474   : > { %v14243_v52 = vpop.f32.mrf.mxu1 }
 0x47e   : > { %v10115_v34 = vpop.f32.mrf.mxu1 }
 0x480   : > { %v7356_v12 = vpop.f32.mrf.mxu1 }
 0x482   : > { %v10116_v51 = vpop.f32.mrf.mxu1 }
 0x484   : > { %v7359_v48 = vpop.f32.mrf.mxu1 }
 0x48e   : > { %v14245_v28 = vpop.f32.mrf.mxu1 }
 0x490   : > { %v7372_v14 = vpop.f32.mrf.mxu1 }
 0x492   : > { %v14247_v16 = vpop.f32.mrf.mxu1 }
 0x494   : > { %v14249_v15 = vpop.f32.mrf.mxu1 }
 0x49e   : > { %v14251_v63 = vpop.f32.mrf.mxu1 }
 0x4a0   : > { %v14253_v43 = vpop.f32.mrf.mxu1 }
 0x4a2   : > { %v14255_v10 = vpop.f32.mrf.mxu1 }
 0x4a4   : > { %v14257_v49 = vpop.f32.mrf.mxu1 }
 0x4ae   : > { %v14259_v38 = vpop.f32.mrf.mxu1 }
 0x4b0   : > { %v14261_v47 = vpop.f32.mrf.mxu1 }
 0x4b2   : > { %v14263_v6 = vpop.f32.mrf.mxu1 }
 0x4b4   : > { %v14265_v2 = vpop.f32.mrf.mxu1 }
 0x4b6   : > { %v10135_v54 = vpop.f32.mrf.mxu1 }
 0x4b7   : > { %v7522_v17 = vadd.f32 %v10135_v54, %v10099_v27 }
 0x4b8   : > { %v7513_v5 = vpop.f32.mrf.mxu1 }
 0x4b9   : > { %v7514_v19 = vadd.f32 %v7513_v5, %v7292_v56 }
 0x4ba   : > { %v10136_v33 = vpop.f32.mrf.mxu1 }
 0x4bb   : > { %v7647_v37 = vadd.f32 %v14286_v36, %v7514_v19  ;;  %v7649_v19 = vadd.f32 %v14286_v36, %v7522_v17 }
 0x4bc   : > { %v7516_v41 = vpop.f32.mrf.mxu1 }
 0x4bd   : > { %v7517_v4 = vadd.f32 %v7516_v41, %v7295_v35  ;;  %v7679_v21 = vmax.f32 %v7647_v37, 0.0 }
 0x4be   : > { %v14267_v60 = vpop.f32.mrf.mxu1 }
 0x4bf   : > { %v7648_v0 = vadd.f32 %v14286_v36, %v7517_v4 }
 0x4c0   : > { %v7529_v20 = vpop.f32.mrf.mxu1 }
 0x4c2   : > { %v14269_v57 = vpop.f32.mrf.mxu1 }
 0x4c4   : > { %v7532_v32 = vpop.f32.mrf.mxu1 }
 0x4c6   : > { %v14271_v44 = vpop.f32.mrf.mxu1 }
 0x4c8   : > { %v14273_v61 = vpop.f32.mrf.mxu1 }
 0x4ca   : > { %v14275_v50 = vpop.f32.mrf.mxu1 }
 0x4cc   : > { %v14277_v53 = vpop.f32.mrf.mxu1 }
 0x4ce   : > { %v10147_v18 = vpop.f32.mrf.mxu1 }
 0x4d0   : > { %v14279_v40 = vpop.f32.mrf.mxu1 }
 0x4d2   : > { %v10148_v26 = vpop.f32.mrf.mxu1 }
 0x4d4   : > { %v14281_v29 = vpop.f32.mrf.mxu1 }
 0x4d5   : > { %14872 = vst [vmem:[#allocation79_spill] sm:$0xff] %v14281_v29 }
 0x4d6   : > { %v10151_v62 = vpop.f32.mrf.mxu1 }
 0x4d7   : > { %v7586_v7 = vadd.f32 %v10151_v62, %v10115_v34  ;;  %v7525_v34 = vadd.f32 %v10136_v33, %v14219_v39  ;;  %v7680_v62 = vmax.f32 %v7648_v0, 0.0 }
 0x4d8   : > { %v7577_v30 = vpop.f32.mrf.mxu1 }
 0x4d9   : > { %v7578_v1 = vadd.f32 %v7577_v30, %v7356_v12  ;;  %v7665_v5 = vadd.f32 %v14286_v36, %v7586_v7  ;;  %v7681_v7 = vmax.f32 %v7649_v19, 0.0 }
 0x4da   : > { %v10152_v11 = vpop.f32.mrf.mxu1 }
 0x4db   : > { %v7663_v46 = vadd.f32 %v14286_v36, %v7578_v1  ;;  %v7589_v29 = vadd.f32 %v10152_v11, %v10116_v51  ;;  %v7697_v30 = vmax.f32 %v7665_v5, 0.0  ;;  %v7650_v51 = vadd.f32 %v14286_v36, %v7525_v34 }
 0x4dc   : > { %v7580_v31 = vpop.f32.mrf.mxu1  ;;  %v7530_v11 = vadd.f32 %v7529_v20, %v14223_v9 }
 0x4dd   : > { %v7581_v42 = vadd.f32 %v7580_v31, %v7359_v48  ;;  %v7695_v58 = vmax.f32 %v7663_v46, 0.0  ;;  %v7666_v48 = vadd.f32 %v14286_v36, %v7589_v29  ;;  %v10180_v31 = vpack.i.bf16 %v7681_v7, %v7697_v30 }
 0x4de   : > { %v10155_v56 = vpop.f32.mrf.mxu1  ;;  %v7651_v29 = vadd.f32 %v14286_v36, %v7530_v11 }
 0x4df   : > { %v7664_v35 = vadd.f32 %v14286_v36, %v7581_v42  ;;  %v10176_v12 = vpack.i.bf16 %v7679_v21, %v7695_v58  ;;  %v7698_v17 = vmax.f32 %v7666_v48, 0.0  ;;  %v7682_v42 = vmax.f32 %v7650_v51, 0.0 }
 0x4e0   : > { %v7593_v41 = vpop.f32.mrf.mxu1  ;;  %v7570_v21 = vadd.f32 %v10147_v18, %v14237_v3  ;;  %v7602_v58 = vadd.f32 %v10155_v56, %v14245_v28 }
 0x4e1   : > { %v7696_v27 = vmax.f32 %v7664_v35, 0.0  ;;  %10177 = vxpose.xlu0.b32.start [1/16] (narrow) %v10176_v12, 64  ;;  %v7594_v4 = vadd.f32 %v7593_v41, %v7372_v14  ;;  %v7533_v14 = vadd.f32 %v7532_v32, %v14227_v8  ;;  %v10182_v35 = vpack.i.bf16 %v7682_v42, %v7698_v17 }
 0x4e2   : > { %v10156_v54 = vpop.f32.mrf.mxu1  ;;  %v7683_v41 = vmax.f32 %v7651_v29, 0.0  ;;  %v7661_v8 = vadd.f32 %v14286_v36, %v7570_v21  ;;  %v7573_v32 = vadd.f32 %v10148_v26, %v14241_v45  ;;  %v7669_v3 = vadd.f32 %v14286_v36, %v7602_v58 }
 0x4e3   : > { %v10178_v1 = vpack.i.bf16 %v7680_v62, %v7696_v27  ;;  %v7667_v39 = vadd.f32 %v14286_v36, %v7594_v4  ;;  %v7652_v19 = vadd.f32 %v14286_v36, %v7533_v14  ;;  %v7605_v28 = vadd.f32 %v10156_v54, %v14247_v16 }
 0x4e4   : > { %v7596_v37 = vpop.f32.mrf.mxu1  ;;  %v7541_v27 = vadd.f32 %v14269_v57, %v14225_v23  ;;  %v7693_v45 = vmax.f32 %v7661_v8, 0.0  ;;  %v7662_v26 = vadd.f32 %v14286_v36, %v7573_v32  ;;  %v7701_v4 = vmax.f32 %v7669_v3, 0.0 }
 0x4e5   : > { %10179 = vxpose.xlu0.b32.cont [2/16] (narrow) %v10178_v1, 64  ;;  %v7597_v33 = vadd.f32 %v7596_v37, %v14249_v15  ;;  %v7699_v20 = vmax.f32 %v7667_v39, 0.0  ;;  %v7538_v15 = vadd.f32 %v14267_v60, %v14221_v24  ;;  %v7684_v30 = vmax.f32 %v7652_v19, 0.0 }
 0x4e6   : > { %v10159_v46 = vpop.f32.mrf.mxu1  ;;  %v7670_v16 = vadd.f32 %v14286_v36, %v7605_v28  ;;  %v7654_v23 = vadd.f32 %v14286_v36, %v7541_v27  ;;  %v7546_v57 = vadd.f32 %v14273_v61, %v14231_v13  ;;  %v7694_v39 = vmax.f32 %v7662_v26, 0.0 }
 0x4e7   : > { %v7668_v5 = vadd.f32 %v14286_v36, %v7597_v33  ;;  %v10184_v62 = vpack.i.bf16 %v7683_v41, %v7699_v20  ;;  %v7653_v24 = vadd.f32 %v14286_v36, %v7538_v15  ;;  %v7549_v14 = vadd.f32 %v14277_v53, %v14235_v25 }
 0x4e8   : > { %v7609_v0 = vpop.f32.mrf.mxu1  ;;  %v7655_v29 = vadd.f32 %v14286_v36, %v7546_v57  ;;  %v7618_v61 = vadd.f32 %v10159_v46, %v14251_v63  ;;  %v7557_v63 = vadd.f32 %v14275_v50, %v14233_v55 }
 0x4e9   : > { %10181 = vxpose.xlu0.b32.cont [3/16] (narrow) %v10180_v31, 64  ;;  %v7700_v56 = vmax.f32 %v7668_v5, 0.0  ;;  %v7685_v51 = vmax.f32 %v7653_v24, 0.0  ;;  %v7702_v31 = vmax.f32 %v7670_v16, 0.0  ;;  %v7554_v5 = vadd.f32 %v14271_v44, %v14229_v59 }
 0x4ea   : > { %v10160_v9 = vpop.f32.mrf.mxu1  ;;  %v7673_v15 = vadd.f32 %v14286_v36, %v7618_v61  ;;  %v7658_v28 = vadd.f32 %v14286_v36, %v7557_v63 }
 0x4eb   : > { %v10186_v7 = vpack.i.bf16 %v7684_v30, %v7700_v56  ;;  %v10188_v33 = vpack.i.bf16 %v7685_v51, %v7701_v4  ;;  %v7657_v41 = vadd.f32 %v14286_v36, %v7554_v5  ;;  %v10625_v30 = vmov 0  }
 0x4ec   : > { %v7612_v12 = vpop.f32.mrf.mxu1  ;;  %v7705_v19 = vmax.f32 %v7673_v15, 0.0  ;;  %v7690_v56 = vmax.f32 %v7658_v28, 0.0  ;;  %7825 = vmatprep.mubr.bf16.mxu0 %v10625_v30  ;;  %10248 = vset.pattern.permute.xlu1 %v10625_v30 }
 0x4ed   : > { %10183 = vxpose.xlu0.b32.cont [4/16] (narrow) %v10182_v35, 64  ;;  %v7687_v35 = vmax.f32 %v7655_v29, 0.0  ;;  %v7689_v3 = vmax.f32 %v7657_v41, 0.0 }
 0x4ee   : > { %v10163_v18 = vpop.f32.mrf.mxu1 }
 0x4ef   : > { %v7634_v34 = vadd.f32 %v10163_v18, %v14259_v38  ;;  %v7610_v38 = vadd.f32 %v7609_v0, %v14253_v43  ;;  %v7613_v43 = vadd.f32 %v7612_v12, %v14257_v49  ;;  %v7656_v49 = vadd.f32 %v14286_v36, %v7549_v14 }
 0x4f0   : > { %v7625_v60 = vpop.f32.mrf.mxu1  ;;  %v7621_v12 = vadd.f32 %v10160_v9, %v14255_v10  ;;  %v7562_v10 = vadd.f32 %v14279_v40, %v14239_v22  ;;  %v10196_v50 = vpack.i.bf16 %v7689_v3, %v7705_v19 }
 0x4f1   : > { %v7677_v48 = vadd.f32 %v14286_v36, %v7634_v34  ;;  %10185 = vxpose.xlu0.b32.cont [5/16] (narrow) %v10184_v62, 64  ;;  %v7671_v42 = vadd.f32 %v14286_v36, %v7610_v38  ;;  %v7672_v58 = vadd.f32 %v14286_v36, %v7613_v43  ;;  %v7688_v46 = vmax.f32 %v7656_v49, 0.0 }
 0x4f2   : > { %v10164_v54 = vpop.f32.mrf.mxu1  ;;  %v7674_v59 = vadd.f32 %v14286_v36, %v7621_v12  ;;  %v7626_v44 = vadd.f32 %v7625_v60, %v14261_v47  ;;  %v7659_v34 = vadd.f32 %v14286_v36, %v7562_v10  ;;  %v14873_v47 = vld [vmem:[#allocation79_spill] sm:$0xff] }
 0x4f3   : > { %v7709_v1 = vmax.f32 %v7677_v48, 0.0  ;;  %v7637_v37 = vadd.f32 %v10164_v54, %v14263_v6  ;;  %v7686_v6 = vmax.f32 %v7654_v23, 0.0  ;;  %v7703_v21 = vmax.f32 %v7671_v42, 0.0 }
 0x4f4   : > { %v7704_v25 = vmax.f32 %v7672_v58, 0.0  ;;  %v7628_v32 = vpop.f32.mrf.mxu1  ;;  %v7706_v9 = vmax.f32 %v7674_v59, 0.0  ;;  %v7675_v18 = vadd.f32 %v14286_v36, %v7626_v44  ;;  %v7565_v62 = vadd.f32 %v14873_v47, %v14243_v52 }
 0x4f5   : > { %v7678_v11 = vadd.f32 %v14286_v36, %v7637_v37  ;;  %10187 = vxpose.xlu0.b32.cont [6/16] (narrow) %v10186_v7, 64  ;;  %v10204_v17 = vpack.i.bf16 %v7693_v45, %v7709_v1  ;;  %v10190_v20 = vpack.i.bf16 %v7686_v6, %v7702_v31  ;;  %v10192_v53 = vpack.i.bf16 %v7687_v35, %v7703_v21 }
 0x4f6   : > { %v10194_v8 = vpack.i.bf16 %v7688_v46, %v7704_v25  ;;  %v7629_v55 = vadd.f32 %v7628_v32, %v14265_v2  ;;  %v7707_v24 = vmax.f32 %v7675_v18, 0.0  ;;  %v10198_v27 = vpack.i.bf16 %v7690_v56, %v7706_v9  ;;  %v7784_v2 = vld [vmem:[%s14378_s12] sm:$0xff] }
 0x4f7   : > { %v7710_v0 = vmax.f32 %v7678_v11, 0.0  ;;  %v7691_v22 = vmax.f32 %v7659_v34, 0.0  ;;  %v7660_v40 = vadd.f32 %v14286_v36, %v7565_v62  ;;  %7787 = vperm.xlu1 %10248, %v7784_v2   ;;  %v7783_v25 = vld [vmem:[%s14377_s11] sm:$0xf] }
 0x4f8   : > { %v7676_v60 = vadd.f32 %v14286_v36, %v7629_v55 }
 0x4f9   : > { %10189 = vxpose.xlu0.b32.cont [7/16] (narrow) %v10188_v33, 64  ;;  %v10206_v13 = vpack.i.bf16 %v7694_v39, %v7710_v0  ;;  %v10200_v45 = vpack.i.bf16 %v7691_v22, %v7707_v24  ;;  %v7692_v52 = vmax.f32 %v7660_v40, 0.0 }
 0x4fa   : > { %v7708_v48 = vmax.f32 %v7676_v60, 0.0 }
 0x4fc   : > { %v10202_v26 = vpack.i.bf16 %v7692_v52, %v7708_v48 }
 0x4fd   : > { %10191 = vxpose.xlu0.b32.cont [8/16] (narrow) %v10190_v20, 64 }
 0x501   : > { %10193 = vxpose.xlu0.b32.cont [9/16] (narrow) %v10192_v53, 64 }
 0x505   : > { %10195 = vxpose.xlu0.b32.cont [10/16] (narrow) %v10194_v8, 64 }
 0x509   : > { %10197 = vxpose.xlu0.b32.cont [11/16] (narrow) %v10196_v50, 64 }
 0x50d   : > { %10199 = vxpose.xlu0.b32.cont [12/16] (narrow) %v10198_v27, 64 }
 0x511   : > { %10201 = vxpose.xlu0.b32.cont [13/16] (narrow) %v10200_v45, 64 }
 0x515   : > { %10203 = vxpose.xlu0.b32.cont [14/16] (narrow) %v10202_v26, 64 }
 0x519   : > { %10205 = vxpose.xlu0.b32.cont [15/16] (narrow) %v10204_v17, 64 }
 0x51d   : > { %10207 = vxpose.xlu0.b32.end [16/16] (narrow) %v10206_v13, 64 }
 0x546   : > { %10249 = vset.pattern.permute.xlu0 %v10625_v30 }
 0x55d   : > { %v10208_v4 = vpop.trf.xlu0 }
 0x55e   : > { %v10209_v20 = vunpack.i.l.bf16 %v10208_v4  ;;  %v10212_v15 = vunpack.i.h.bf16 %v10208_v4 }
 0x561   : > { %v10213_v16 = vpop.trf.xlu0 }
 0x562   : > { %v10214_v61 = vunpack.i.l.bf16 %v10213_v16  ;;  %v10217_v5 = vunpack.i.h.bf16 %v10213_v16 }
 0x564   : > { %v7776_v49 = vpack.c.bf16 %v10214_v61, %v10209_v20  ;;  %v7775_v12 = vpack.c.bf16 %v10217_v5, %v10212_v15 }
 0x565   : > { %v10218_v54 = vpop.trf.xlu0 }
 0x566   : > { %v10219_v29 = vunpack.i.l.bf16 %v10218_v54  ;;  %v10222_v58 = vunpack.i.h.bf16 %v10218_v54 }
 0x569   : > { %v10223_v38 = vpop.trf.xlu0 }
 0x56a   : > { %v10224_v17 = vunpack.i.l.bf16 %v10223_v38  ;;  %v10227_v14 = vunpack.i.h.bf16 %v10223_v38 }
 0x56c   : > { %v7778_v21 = vpack.c.bf16 %v10224_v17, %v10219_v29  ;;  %v7777_v35 = vpack.c.bf16 %v10227_v14, %v10222_v58 }
 0x56d   : > { %v10228_v36 = vpop.trf.xlu0 }
 0x56e   : > { %v10229_v33 = vunpack.i.l.bf16 %v10228_v36  ;;  %v10232_v6 = vunpack.i.h.bf16 %v10228_v36 }
 0x571   : > { %v10233_v1 = vpop.trf.xlu0 }
 0x572   : > { %v10234_v7 = vunpack.i.l.bf16 %v10233_v1  ;;  %v10237_v43 = vunpack.i.h.bf16 %v10233_v1  ;;  %v7788_v53 = vpop.permute.xlu1 %7787 }
 0x574   : > { %v7780_v0 = vpack.c.bf16 %v10234_v7, %v10229_v33  ;;  %v7779_v13 = vpack.c.bf16 %v10237_v43, %v10232_v6 }
 0x575   : > { %v10238_v37 = vpop.trf.xlu0 }
 0x576   : > { %v10242_v51 = vunpack.i.h.bf16 %v10238_v37  ;;  %v10239_v23 = vunpack.i.l.bf16 %v10238_v37 }
 0x579   : > { %v10243_v57 = vpop.trf.xlu0 }
 0x57a   : > { %v10247_v11 = vunpack.i.h.bf16 %v10243_v57  ;;  %v10244_v39 = vunpack.i.l.bf16 %v10243_v57 }
 0x57c   : > { %v7781_v31 = vpack.c.bf16 %v10247_v11, %v10242_v51  ;;  %v7782_v42 = vpack.c.bf16 %v10244_v39, %v10239_v23 }
 0x57e   : > { %7801 = vmatprep.subr.bf16.mxu0 %v7782_v42 }
 0x57f   : > { %7802 = vmatpush1.bf16.msra.mxu0 %v7781_v31 }
 0x580   : > { %7803 = vmatprep.subr.bf16.mxu0 %v7780_v0 }
 0x583   : > { %7804 = vmatpush1.bf16.msra.mxu0 %v7779_v13 }
 0x584   : > { %7805 = vmatprep.subr.bf16.mxu0 %v7778_v21 }
 0x587   : > { %7806 = vmatpush1.bf16.msra.mxu0 %v7777_v35 }
 0x588   : > { %7807 = vmatprep.subr.bf16.mxu0 %v7776_v49 }
 0x58b   : > { %7808 = vmatpush1.bf16.msra.mxu0 %v7775_v12 }
 0x58e   : > { %8933 = vmatmul.mubr.msk.bf16.vlgmr.msra.gmra.mxu0 %vm7209_vm9, %v7783_v25 }
 0x64e   : > { %v7827_v41 = vpop.f32.mrf.mxu0 }
 0x64f   : > { %v7828_v63 = vadd.f32 %v7827_v41, %v7788_v53 }
 0x650   : > { %v7829_v46 = vpop.f32.mrf.mxu0 }
 0x651   : > { %v7830_v19 = vadd.f32 %v7829_v46, %v7788_v53  ;;  %7834 = vst [vmem:[%s460_s30] sm:$0xff] %v7828_v63 }
 0x652   : > { %v7831_v59 = vpop.f32.mrf.mxu0 }
 0x653   : > { %7835 = vst [vmem:[%s460_s30 + $0x8] sm:$0xff] %v7830_v19 }
 0x654   : > { %v7832_v44 = vpop.f32.mrf.mxu0 }
 0x655 PF: > { %s23_s25 = sadd.s32 1, %s10623_s25  }
 0x656   : > { %p20_p4 = scmp.ge.s32.totalorder %s23_s25, 4  }
 0x658   :  { %22 = sbr.rel (!%p20_p4) target bundleno = 1 (0x1), region = 115 }

</bundles_post_ra>
